<compile_context>
chip_gen: v7x
topology: tpu7x:2x2x1
jax: 0.10.0
libtpu: 0.0.40
codegen_flags: <defaults>
</compile_context>

<pallas_src>
import functools

import jax
import jax.numpy as jnp
from jax import lax
from jax.experimental import pallas as pl
from jax.experimental.pallas import tpu as pltpu

n_channels = 3
z_dim = 2
FEATURE_DIM = 32 * 23 * 31  # 22816


def _round_up(x, m):
    return ((x + m - 1) // m) * m


# ----------------------------- Pallas kernels --------------------------------

def _mm_bias_act_kernel(w_ref, c_ref, b_ref, o_ref, *, activation):
    """o = act(W @ cols + bias); bf16 operands, f32 MXU accumulate."""
    acc = jnp.dot(w_ref[...], c_ref[...], preferred_element_type=jnp.float32)
    acc = acc + b_ref[...]
    if activation == "relu":
        acc = jnp.maximum(acc, 0.0)
    elif activation == "sigmoid":
        acc = jax.nn.sigmoid(acc)
    o_ref[...] = acc.astype(o_ref.dtype)


def conv_matmul(w, cols, bias, *, activation, out_dtype, n_tiles=1):
    """act(W @ cols + bias).  W: (CO, K) bf16 (resident), cols: (K, N) bf16 lane-dense,
    bias: (CO, 1) f32.  Optional lane tiling (<=2 tiles, 'parallel' for v7x 2-TC)."""
    CO, K = w.shape
    K2, N = cols.shape
    assert K == K2 and CO % 8 == 0
    if N % n_tiles != 0 or (N // n_tiles) % 128 != 0:
        n_tiles = 1
    tn = N // n_tiles
    return pl.pallas_call(
        functools.partial(_mm_bias_act_kernel, activation=activation),
        out_shape=jax.ShapeDtypeStruct((CO, N), out_dtype),
        grid=(n_tiles,),
        in_specs=[
            pl.BlockSpec((CO, K), lambda j: (0, 0)),   # weight stays resident
            pl.BlockSpec((K, tn), lambda j: (0, j)),   # lane-dense cols
            pl.BlockSpec((CO, 1), lambda j: (0, 0)),
        ],
        out_specs=pl.BlockSpec((CO, tn), lambda j: (0, j)),
        compiler_params=pltpu.CompilerParams(
            dimension_semantics=("parallel",)),
    )(w, cols, bias)


def _enc2_kernel(w_ref, c_ref, b_ref, mlw_ref, o_ref, *, batch):
    """conv2 (relu) + fused mean/logvar FC.

    w_ref:   (32, 144) bf16
    c_ref:   (144, batch*768) bf16 im2col of conv1 output (per-batch lane blocks)
    b_ref:   (32, 1) f32
    mlw_ref: (4, 32, 768) f32 -- [mean0, mean1, logvar0, logvar1] weights laid out
             exactly like one batch block of the conv2 output (zeros in padded lanes).
    o_ref:   (8, 128) f32 -- rows 0..3 = [m0, m1, lv0, lv1], cols 0..batch-1 = batch.
    """
    h = jnp.dot(w_ref[...], c_ref[...], preferred_element_type=jnp.float32)
    h = jnp.maximum(h + b_ref[...], 0.0)                    # (32, batch*768) f32

    ii = lax.broadcasted_iota(jnp.int32, (8, 128), 0)
    jj = lax.broadcasted_iota(jnp.int32, (8, 128), 1)
    acc = jnp.zeros((8, 128), jnp.float32)
    for n in range(4):
        wn = mlw_ref[n]                                     # (32, 768) f32
        for b in range(batch):
            p = h[:, b * 768:(b + 1) * 768] * wn            # lane-aligned slice
            s = jnp.sum(p)                                  # full reduce -> scalar
            acc = jnp.where((ii == n) & (jj == b), s, acc)
    o_ref[...] = acc


def enc_stage2(w2, cols2, b2, mlw, batch):
    return pl.pallas_call(
        functools.partial(_enc2_kernel, batch=batch),
        out_shape=jax.ShapeDtypeStruct((8, 128), jnp.float32),
        in_specs=[pl.BlockSpec(memory_space=pltpu.MemorySpace.VMEM)] * 4,
        out_specs=pl.BlockSpec(memory_space=pltpu.MemorySpace.VMEM),
    )(w2, cols2, b2, mlw)


def _dec1_kernel(z_ref, a0_ref, a1_ref, ab_ref, w_ref, b_ref, o_ref, *, batch):
    """Decoder FC + ConvTranspose2d(32,16,k=3,s=2) + relu, all 4 parities at once.

    z_ref:  (batch, 2) f32 in SMEM.
    a0/a1/ab: (128, 768) f32 -- FC weights/bias pre-arranged in the conv2T im2col
              layout (K = cin*2*2 taps, lanes = 24x32 per-parity output grid), zeros
              where the padded input border would be.
    w_ref:  (64, 128) bf16 -- 4 parity weight sets stacked on the cout axis.
    b_ref:  (64, 1) f32.
    o_ref:  (64, batch*768) bf16 parity-plane conv2T output.
    """
    a0 = a0_ref[...]
    a1 = a1_ref[...]
    ab = ab_ref[...]
    w = w_ref[...]
    bias = b_ref[...]
    for b in range(batch):
        z0 = z_ref[b, 0]
        z1 = z_ref[b, 1]
        cols = jnp.maximum(a0 * z0 + a1 * z1 + ab, 0.0)     # relu(fc) in cols layout
        acc = jnp.dot(w, cols.astype(jnp.bfloat16),
                      preferred_element_type=jnp.float32)   # (64, 768)
        acc = jnp.maximum(acc + bias, 0.0)
        o_ref[:, b * 768:(b + 1) * 768] = acc.astype(o_ref.dtype)


def dec_stage1(z, a0, a1, ab, w2s, b2s, batch):
    return pl.pallas_call(
        functools.partial(_dec1_kernel, batch=batch),
        out_shape=jax.ShapeDtypeStruct((64, batch * 768), jnp.bfloat16),
        in_specs=[pl.BlockSpec(memory_space=pltpu.MemorySpace.SMEM)]
        + [pl.BlockSpec(memory_space=pltpu.MemorySpace.VMEM)] * 5,
        out_specs=pl.BlockSpec(memory_space=pltpu.MemorySpace.VMEM),
    )(z, a0, a1, ab, w2s, b2s)


# --------------------------- XLA-side layout glue -----------------------------

def _im2col_stride2(x, ksize, m_block):
    """x (B, C, H, W) -> cols (round_up(C*k*k, 8), B*m_block) bf16.
    Row order (c, i, j); lane order (b, ho*Wo+wo) padded per-batch to m_block."""
    Bq, C, H, W = x.shape
    Ho = (H - ksize) // 2 + 1
    Wo = (W - ksize) // 2 + 1
    taps = []
    for i in range(ksize):
        for j in range(ksize):
            taps.append(x[:, :, i:i + 2 * (Ho - 1) + 1:2, j:j + 2 * (Wo - 1) + 1:2])
    t = jnp.stack(taps, axis=2)                      # (B, C, k*k, Ho, Wo)
    t = jnp.transpose(t, (1, 2, 0, 3, 4))            # (C, k*k, B, Ho, Wo)
    t = t.reshape(C * ksize * ksize, Bq, Ho * Wo)
    K = C * ksize * ksize
    t = jnp.pad(t, ((0, _round_up(K, 8) - K), (0, 0), (0, m_block - Ho * Wo)))
    return t.reshape(_round_up(K, 8), Bq * m_block).astype(jnp.bfloat16)


# ------------------------------- parameters ----------------------------------

def init_params(key):
    def uniform(k, shape, fan_in):
        bound = 1.0 / float(fan_in) ** 0.5
        return jax.random.uniform(k, shape, jnp.float32, -bound, bound)

    ks = jax.random.split(key, 14)
    p = {}
    # Encoder
    p["enc_conv1_w"] = uniform(ks[0], (16, n_channels, 3, 3), n_channels * 9)
    p["enc_conv1_b"] = uniform(ks[1], (16,), n_channels * 9)
    p["enc_conv2_w"] = uniform(ks[2], (32, 16, 3, 3), 16 * 9)
    p["enc_conv2_b"] = uniform(ks[3], (32,), 16 * 9)
    p["mean_fc_w"] = uniform(ks[4], (z_dim, FEATURE_DIM), FEATURE_DIM)
    p["mean_fc_b"] = uniform(ks[5], (z_dim,), FEATURE_DIM)
    p["logvar_fc_w"] = uniform(ks[6], (z_dim, FEATURE_DIM), FEATURE_DIM)
    p["logvar_fc_b"] = uniform(ks[7], (z_dim,), FEATURE_DIM)
    # Decoder
    p["dec_fc_w"] = uniform(ks[8], (FEATURE_DIM, z_dim), z_dim)
    p["dec_fc_b"] = uniform(ks[9], (FEATURE_DIM,), z_dim)
    p["dec_conv2_w"] = uniform(ks[10], (32, 16, 3, 3), 16 * 9)          # ConvTranspose2d(32,16)
    p["dec_conv2_b"] = uniform(ks[11], (16,), 16 * 9)
    p["dec_conv1_w"] = uniform(ks[12], (16, n_channels, 3, 3), 16 * 9)  # ConvTranspose2d(16,3)
    p["dec_conv1_b"] = uniform(ks[13], (n_channels,), 16 * 9)
    return p


def prepare_params(p):
    """All weight-side work (reshape / pad / parity-stack / bf16 cast) hoisted to init."""
    wp = {}
    # Encoder conv1 / conv2 weight matrices, K order (c, i, j).
    w1 = p["enc_conv1_w"].reshape(16, 27)
    wp["ec1_w"] = jnp.pad(w1, ((0, 0), (0, 32 - 27))).astype(jnp.bfloat16)   # (16, 32)
    wp["ec1_b"] = p["enc_conv1_b"].reshape(16, 1).astype(jnp.float32)
    wp["ec2_w"] = p["enc_conv2_w"].reshape(32, 144).astype(jnp.bfloat16)     # (32, 144)
    wp["ec2_b"] = p["enc_conv2_b"].reshape(32, 1).astype(jnp.float32)

    # mean/logvar FC weights arranged like one batch block of the conv2 output
    # (lanes = h*31+w, padded 713 -> 768 with zeros so padding never contributes).
    wm = p["mean_fc_w"].reshape(z_dim, 32, 23 * 31)
    wl = p["logvar_fc_w"].reshape(z_dim, 32, 23 * 31)
    mlw = jnp.concatenate([wm, wl], axis=0)                                  # (4, 32, 713)
    wp["ml_w"] = jnp.pad(mlw, ((0, 0), (0, 0), (0, 768 - 713))).astype(jnp.float32)
    wp["mean_b"] = p["mean_fc_b"].astype(jnp.float32)
    wp["logvar_b"] = p["logvar_fc_b"].astype(jnp.float32)

    # Decoder FC folded into the conv2T im2col ("cols") layout.
    # cols[(c,dy,dx), u*32+v] = pad1(h)[c, u+dy, v+dx]; h = relu(A0*z0 + A1*z1 + Ab).
    def fc_to_cols(t):  # t (32, 23, 31) -> (128, 768) f32
        tp = jnp.pad(t, ((0, 0), (1, 1), (1, 1)))                            # (32, 25, 33)
        taps = [tp[:, dy:dy + 24, dx:dx + 32] for dy in (0, 1) for dx in (0, 1)]
        return jnp.stack(taps, axis=1).reshape(128, 768).astype(jnp.float32)

    w_fc = p["dec_fc_w"]                                                     # (22816, 2)
    wp["a0"] = fc_to_cols(w_fc[:, 0].reshape(32, 23, 31))
    wp["a1"] = fc_to_cols(w_fc[:, 1].reshape(32, 23, 31))
    wp["ab"] = fc_to_cols(p["dec_fc_b"].reshape(32, 23, 31))

    # Parity-merged ConvTranspose2d(stride=2, k=3) weights:
    # rows r = (rp*2+cp)*cout_pad + co, cols k = c*4 + dy*2 + dx.
    # Tap (dy) of the padded input maps to ky: rp=0 -> {dy0: ky2, dy1: ky0},
    # rp=1 -> {dy1: ky1}; same for (cp, dx) -> kx. Missing taps are zero.
    def ct_stack(w, cout_pad):
        cin, cout = w.shape[0], w.shape[1]
        ky_sel = {(0, 0): 2, (0, 1): 0, (1, 1): 1}
        blocks = []
        for rp in range(2):
            for cp in range(2):
                m = jnp.zeros((cout, cin, 2, 2), jnp.float32)
                for dy in range(2):
                    for dx in range(2):
                        if (rp, dy) in ky_sel and (cp, dx) in ky_sel:
                            ky, kx = ky_sel[(rp, dy)], ky_sel[(cp, dx)]
                            m = m.at[:, :, dy, dx].set(w[:, :, ky, kx].T)
                m = m.reshape(cout, cin * 4)
                blocks.append(jnp.pad(m, ((0, cout_pad - cout), (0, 0))))
        return jnp.concatenate(blocks, axis=0).astype(jnp.bfloat16)

    def ct_bias(b, cout_pad):
        bb = jnp.pad(b, (0, cout_pad - b.shape[0]))
        return jnp.tile(bb, 4).reshape(4 * cout_pad, 1).astype(jnp.float32)

    wp["dc2_w"] = ct_stack(p["dec_conv2_w"], 16)      # (64, 128)
    wp["dc2_b"] = ct_bias(p["dec_conv2_b"], 16)       # (64, 1)
    wp["dc1_w"] = ct_stack(p["dec_conv1_w"], 4)       # (16, 64)
    wp["dc1_b"] = ct_bias(p["dec_conv1_b"], 4)        # (16, 1)
    return wp


# ------------------------------- VAE forward ----------------------------------

def encode(wp, x):
    Bq = x.shape[0]
    # conv1: im2col in XLA (lane-dim reshape), matmul+relu in Pallas.
    cols1 = _im2col_stride2(x, 3, 3072)                                      # (32, B*3072)
    h1 = conv_matmul(wp["ec1_w"], cols1, wp["ec1_b"],
                     activation="relu", out_dtype=jnp.bfloat16, n_tiles=2)   # (16, B*3072)
    h1 = h1.reshape(16, Bq, 3072)[:, :, :47 * 63].reshape(16, Bq, 47, 63)
    h1 = jnp.transpose(h1, (1, 0, 2, 3))                                     # (B, 16, 47, 63)
    # conv2 + mean/logvar FC fused in one Pallas call (conv2 activation never hits HBM).
    cols2 = _im2col_stride2(h1, 3, 768)                                      # (144, B*768)
    ml = enc_stage2(wp["ec2_w"], cols2, wp["ec2_b"], wp["ml_w"], Bq)         # (8, 128)
    ml = ml[:4, :Bq]                                                         # (4, B)
    mean = ml[:2, :].T + wp["mean_b"]
    logvar = ml[2:4, :].T + wp["logvar_b"]
    return mean, logvar


def decode(wp, z):
    Bq = z.shape[0]
    # FC + ConvTranspose2d(32,16) + relu in one Pallas call (parity-plane output).
    q = dec_stage1(z.astype(jnp.float32), wp["a0"], wp["a1"], wp["ab"],
                   wp["dc2_w"], wp["dc2_b"], Bq)                             # (64, B*768)
    # Single fused XLA producer: parity interleave -> pad -> 2x2 taps for conv1T.
    q = q.reshape(2, 2, 16, Bq, 24, 32)                                      # (rp,cp,co,b,u,v)
    q = jnp.transpose(q, (2, 3, 4, 0, 5, 1)).reshape(16, Bq, 48, 64)
    q = q[:, :, :47, :63]
    qp = jnp.pad(q, ((0, 0), (0, 0), (1, 1), (1, 1)))                        # (16, B, 49, 65)
    taps = [qp[:, :, dy:dy + 48, dx:dx + 64] for dy in (0, 1) for dx in (0, 1)]
    cols1 = jnp.stack(taps, axis=1).reshape(64, Bq * 48 * 64)                # (64, B*3072)
    # ConvTranspose2d(16,3) + sigmoid, all parities in one matmul.
    o = conv_matmul(wp["dc1_w"], cols1, wp["dc1_b"],
                    activation="sigmoid", out_dtype=jnp.float32, n_tiles=2)  # (16, B*3072)
    o = o.reshape(2, 2, 4, Bq, 48, 64)                                       # (rp,cp,co4,b,u,v)
    o = jnp.transpose(o, (3, 2, 4, 0, 5, 1)).reshape(Bq, 4, 96, 128)
    return o[:, :n_channels]


def vae_forward(wp, x, eps):
    mean, logvar = encode(wp, x)
    # Reparameterize: z = mean + exp(logvar/2) * eps  (2x2 -- plain jnp, no launch).
    z = mean + jnp.exp(0.5 * logvar) * eps
    x_hat = decode(wp, z)
    return x_hat, mean, logvar


if __name__ == "__main__":
    key = jax.random.PRNGKey(0)
    k_param, k_x, k_eps = jax.random.split(key, 3)
    params = init_params(k_param)
    wp = prepare_params(params)   # hoisted: padded / parity-stacked / bf16 weights

    B = 2
    # Input spatial size is dictated by the module (encoder output must be 32x23x31).
    x = jax.random.uniform(k_x, (B, n_channels, 96, 128), jnp.float32)
    eps = jax.random.normal(k_eps, (B, z_dim), jnp.float32)

    fwd = jax.jit(vae_forward)
    x_hat, mean, logvar = fwd(wp, x, eps)
    jax.block_until_ready((x_hat, mean, logvar))

    assert x_hat.shape == (B, n_channels, 96, 128)
    assert mean.shape == (B, z_dim) and logvar.shape == (B, z_dim)
    assert bool(jnp.all(jnp.isfinite(x_hat)))
    assert bool(jnp.all(jnp.isfinite(mean))) and bool(jnp.all(jnp.isfinite(logvar)))
    print("KERNEL_OK")
</pallas_src>

<mosaic_0001>
module attributes {stable_mosaic.version = 11 : i64} {
  func.func @_mm_bias_act_kernel(%arg0: i32, %arg1: memref<16x32xbf16, #tpu.memory_space<vmem>>, %arg2: memref<32x3072xbf16, #tpu.memory_space<vmem>>, %arg3: memref<16x1xf32, #tpu.memory_space<vmem>>, %arg4: memref<16x3072xbf16, #tpu.memory_space<vmem>>) attributes {dimension_semantics = [#tpu.dimension_semantics<parallel>], iteration_bounds = array<i64: 2>, scalar_prefetch = 0 : i64, scratch_operands = 0 : i64, tpu.core_type = #tpu.core_type<tc>, window_params = [{pipeline_mode = #tpu.pipeline_mode<synchronous>, transform_indices = @transform_0, window_bounds = array<i64: 16, 32>}, {transform_indices = @transform_1, window_bounds = array<i64: 32, 3072>}, {pipeline_mode = #tpu.pipeline_mode<synchronous>, transform_indices = @transform_2, window_bounds = array<i64: 16, 1>}, {transform_indices = @transform_3, window_bounds = array<i64: 16, 3072>}]} {
    %c0 = arith.constant 0 : index
    %c0_0 = arith.constant 0 : index
    %0 = vector.load %arg1[%c0, %c0_0] : memref<16x32xbf16, #tpu.memory_space<vmem>>, vector<16x32xbf16>
    %c0_1 = arith.constant 0 : index
    %c0_2 = arith.constant 0 : index
    %1 = vector.load %arg2[%c0_1, %c0_2] : memref<32x3072xbf16, #tpu.memory_space<vmem>>, vector<32x3072xbf16>
    %cst = arith.constant dense<0.000000e+00> : vector<16x3072xf32>
    %2 = tpu.matmul %0, %1, %cst {dimension_numbers = #tpu.dot_dimension_numbers<[1], [0], [0], [1], [0, 0, 1, 1], [], []>} : vector<16x32xbf16>, vector<32x3072xbf16>, vector<16x3072xf32> -> vector<16x3072xf32>
    %c0_3 = arith.constant 0 : index
    %c0_4 = arith.constant 0 : index
    %3 = vector.load %arg3[%c0_3, %c0_4] : memref<16x1xf32, #tpu.memory_space<vmem>>, vector<16x1xf32>
    %4 = vector.broadcast %3 : vector<16x1xf32> to vector<16x3072xf32>
    %5 = arith.addf %2, %4 : vector<16x3072xf32>
    %cst_5 = arith.constant 0.000000e+00 : f32
    %6 = vector.broadcast %cst_5 : f32 to vector<16x3072xf32>
    %7 = arith.maximumf %5, %6 : vector<16x3072xf32>
    %8 = arith.truncf %7 : vector<16x3072xf32> to vector<16x3072xbf16>
    %c0_6 = arith.constant 0 : index
    %c0_7 = arith.constant 0 : index
    %9 = vector.load %arg4[%c0_6, %c0_7] : memref<16x3072xbf16, #tpu.memory_space<vmem>>, vector<16x3072xbf16>
    tpu.vector_store %arg4[%c0_6, %c0_7], %8 {strides = array<i32>} : memref<16x3072xbf16, #tpu.memory_space<vmem>>, vector<16x3072xbf16>,
    return
  }
  func.func @transform_0(%arg0: i32) -> (i32, i32) {
    %c0_i32 = arith.constant 0 : i32
    %c0_i32_0 = arith.constant 0 : i32
    %c0_i32_1 = arith.constant 0 : i32
    return %c0_i32, %c0_i32_0 : i32, i32
  }
  func.func @transform_1(%arg0: i32) -> (i32, i32) {
    %c0_i32 = arith.constant 0 : i32
    %c0_i32_0 = arith.constant 0 : i32
    return %c0_i32, %arg0 : i32, i32
  }
  func.func @transform_2(%arg0: i32) -> (i32, i32) {
    %c0_i32 = arith.constant 0 : i32
    %c0_i32_0 = arith.constant 0 : i32
    %c0_i32_1 = arith.constant 0 : i32
    return %c0_i32, %c0_i32_0 : i32, i32
  }
  func.func @transform_3(%arg0: i32) -> (i32, i32) {
    %c0_i32 = arith.constant 0 : i32
    %c0_i32_0 = arith.constant 0 : i32
    return %c0_i32, %arg0 : i32, i32
  }
}

module attributes {stable_mosaic.version = 11 : i64} {
  func.func @_enc2_kernel(%arg0: memref<32x144xbf16, #tpu.memory_space<vmem>>, %arg1: memref<144x1536xbf16, #tpu.memory_space<vmem>>, %arg2: memref<32x1xf32, #tpu.memory_space<vmem>>, %arg3: memref<4x32x768xf32, #tpu.memory_space<vmem>>, %arg4: memref<8x128xf32, #tpu.memory_space<vmem>>) attributes {dimension_semantics = [], scalar_prefetch = 0 : i64, scratch_operands = 0 : i64, tpu.core_type = #tpu.core_type<tc>} {
    %c0 = arith.constant 0 : index
    %c0_0 = arith.constant 0 : index
    %0 = vector.load %arg0[%c0, %c0_0] : memref<32x144xbf16, #tpu.memory_space<vmem>>, vector<32x144xbf16>
    %c0_1 = arith.constant 0 : index
    %c0_2 = arith.constant 0 : index
    %1 = vector.load %arg1[%c0_1, %c0_2] : memref<144x1536xbf16, #tpu.memory_space<vmem>>, vector<144x1536xbf16>
    %cst = arith.constant dense<0.000000e+00> : vector<32x1536xf32>
    %2 = tpu.matmul %0, %1, %cst {dimension_numbers = #tpu.dot_dimension_numbers<[1], [0], [0], [1], [0, 0, 1, 1], [], []>} : vector<32x144xbf16>, vector<144x1536xbf16>, vector<32x1536xf32> -> vector<32x1536xf32>
    %c0_3 = arith.constant 0 : index
    %c0_4 = arith.constant 0 : index
    %3 = vector.load %arg2[%c0_3, %c0_4] : memref<32x1xf32, #tpu.memory_space<vmem>>, vector<32x1xf32>
    %4 = vector.broadcast %3 : vector<32x1xf32> to vector<32x1536xf32>
    %5 = arith.addf %2, %4 : vector<32x1536xf32>
    %cst_5 = arith.constant 0.000000e+00 : f32
    %6 = vector.broadcast %cst_5 : f32 to vector<32x1536xf32>
    %7 = arith.maximumf %5, %6 : vector<32x1536xf32>
    %8 = tpu.iota {dimensions = array<i32: 0>} : vector<8x128xi32>
    %9 = tpu.iota {dimensions = array<i32: 1>} : vector<8x128xi32>
    %cst_6 = arith.constant 0.000000e+00 : f32
    %10 = vector.broadcast %cst_6 : f32 to vector<8x128xf32>
    %c0_7 = arith.constant 0 : index
    %c0_8 = arith.constant 0 : index
    %c0_9 = arith.constant 0 : index
    %11 = vector.load %arg3[%c0_7, %c0_8, %c0_9] : memref<4x32x768xf32, #tpu.memory_space<vmem>>, vector<1x32x768xf32>
    %12 = vector.shape_cast %11 : vector<1x32x768xf32> to vector<32x768xf32>
    %13 = vector.extract_strided_slice %7 {offsets = [0, 0], sizes = [32, 768], strides = [1, 1]} : vector<32x1536xf32> to vector<32x768xf32>
    %14 = arith.mulf %13, %12 : vector<32x768xf32>
    %15 = vector.shape_cast %14 : vector<32x768xf32> to vector<1x32x768xf32>
    %cst_10 = arith.constant dense<0.000000e+00> : vector<1xf32>
    %16 = vector.multi_reduction <add>, %15, %cst_10 [1, 2] : vector<1x32x768xf32> to vector<1xf32>
    %17 = vector.shape_cast %16 : vector<1xf32> to vector<1x1x1xf32>
    %18 = vector.extract %17[0, 0, 0] : f32 from vector<1x1x1xf32>
    %c0_i32 = arith.constant 0 : i32
    %19 = vector.broadcast %c0_i32 : i32 to vector<8x128xi32>
    %20 = arith.cmpi eq, %8, %19 : vector<8x128xi32>
    %c0_i32_11 = arith.constant 0 : i32
    %21 = vector.broadcast %c0_i32_11 : i32 to vector<8x128xi32>
    %22 = arith.cmpi eq, %9, %21 : vector<8x128xi32>
    %23 = arith.andi %20, %22 : vector<8x128xi1>
    %24 = vector.broadcast %18 : f32 to vector<8x128xf32>
    %25 = arith.select %23, %24, %10 : vector<8x128xi1>, vector<8x128xf32>
    %26 = vector.extract_strided_slice %7 {offsets = [0, 768], sizes = [32, 768], strides = [1, 1]} : vector<32x1536xf32> to vector<32x768xf32>
    %27 = arith.mulf %26, %12 : vector<32x768xf32>
    %28 = vector.shape_cast %27 : vector<32x768xf32> to vector<1x32x768xf32>
    %cst_12 = arith.constant dense<0.000000e+00> : vector<1xf32>
    %29 = vector.multi_reduction <add>, %28, %cst_12 [1, 2] : vector<1x32x768xf32> to vector<1xf32>
    %30 = vector.shape_cast %29 : vector<1xf32> to vector<1x1x1xf32>
    %31 = vector.extract %30[0, 0, 0] : f32 from vector<1x1x1xf32>
    %c0_i32_13 = arith.constant 0 : i32
    %32 = vector.broadcast %c0_i32_13 : i32 to vector<8x128xi32>
    %33 = arith.cmpi eq, %8, %32 : vector<8x128xi32>
    %c1_i32 = arith.constant 1 : i32
    %34 = vector.broadcast %c1_i32 : i32 to vector<8x128xi32>
    %35 = arith.cmpi eq, %9, %34 : vector<8x128xi32>
    %36 = arith.andi %33, %35 : vector<8x128xi1>
    %37 = vector.broadcast %31 : f32 to vector<8x128xf32>
    %38 = arith.select %36, %37, %25 : vector<8x128xi1>, vector<8x128xf32>
    %c1 = arith.constant 1 : index
    %c0_14 = arith.constant 0 : index
    %c0_15 = arith.constant 0 : index
    %39 = vector.load %arg3[%c1, %c0_14, %c0_15] : memref<4x32x768xf32, #tpu.memory_space<vmem>>, vector<1x32x768xf32>
    %40 = vector.shape_cast %39 : vector<1x32x768xf32> to vector<32x768xf32>
    %41 = vector.extract_strided_slice %7 {offsets = [0, 0], sizes = [32, 768], strides = [1, 1]} : vector<32x1536xf32> to vector<32x768xf32>
    %42 = arith.mulf %41, %40 : vector<32x768xf32>
    %43 = vector.shape_cast %42 : vector<32x768xf32> to vector<1x32x768xf32>
    %cst_16 = arith.constant dense<0.000000e+00> : vector<1xf32>
    %44 = vector.multi_reduction <add>, %43, %cst_16 [1, 2] : vector<1x32x768xf32> to vector<1xf32>
    %45 = vector.shape_cast %44 : vector<1xf32> to vector<1x1x1xf32>
    %46 = vector.extract %45[0, 0, 0] : f32 from vector<1x1x1xf32>
    %c1_i32_17 = arith.constant 1 : i32
    %47 = vector.broadcast %c1_i32_17 : i32 to vector<8x128xi32>
    %48 = arith.cmpi eq, %8, %47 : vector<8x128xi32>
    %c0_i32_18 = arith.constant 0 : i32
    %49 = vector.broadcast %c0_i32_18 : i32 to vector<8x128xi32>
    %50 = arith.cmpi eq, %9, %49 : vector<8x128xi32>
    %51 = arith.andi %48, %50 : vector<8x128xi1>
    %52 = vector.broadcast %46 : f32 to vector<8x128xf32>
    %53 = arith.select %51, %52, %38 : vector<8x128xi1>, vector<8x128xf32>
    %54 = vector.extract_strided_slice %7 {offsets = [0, 768], sizes = [32, 768], strides = [1, 1]} : vector<32x1536xf32> to vector<32x768xf32>
    %55 = arith.mulf %54, %40 : vector<32x768xf32>
    %56 = vector.shape_cast %55 : vector<32x768xf32> to vector<1x32x768xf32>
    %cst_19 = arith.constant dense<0.000000e+00> : vector<1xf32>
    %57 = vector.multi_reduction <add>, %56, %cst_19 [1, 2] : vector<1x32x768xf32> to vector<1xf32>
    %58 = vector.shape_cast %57 : vector<1xf32> to vector<1x1x1xf32>
    %59 = vector.extract %58[0, 0, 0] : f32 from vector<1x1x1xf32>
    %c1_i32_20 = arith.constant 1 : i32
    %60 = vector.broadcast %c1_i32_20 : i32 to vector<8x128xi32>
    %61 = arith.cmpi eq, %8, %60 : vector<8x128xi32>
    %c1_i32_21 = arith.constant 1 : i32
    %62 = vector.broadcast %c1_i32_21 : i32 to vector<8x128xi32>
    %63 = arith.cmpi eq, %9, %62 : vector<8x128xi32>
    %64 = arith.andi %61, %63 : vector<8x128xi1>
    %65 = vector.broadcast %59 : f32 to vector<8x128xf32>
    %66 = arith.select %64, %65, %53 : vector<8x128xi1>, vector<8x128xf32>
    %c2 = arith.constant 2 : index
    %c0_22 = arith.constant 0 : index
    %c0_23 = arith.constant 0 : index
    %67 = vector.load %arg3[%c2, %c0_22, %c0_23] : memref<4x32x768xf32, #tpu.memory_space<vmem>>, vector<1x32x768xf32>
    %68 = vector.shape_cast %67 : vector<1x32x768xf32> to vector<32x768xf32>
    %69 = vector.extract_strided_slice %7 {offsets = [0, 0], sizes = [32, 768], strides = [1, 1]} : vector<32x1536xf32> to vector<32x768xf32>
    %70 = arith.mulf %69, %68 : vector<32x768xf32>
    %71 = vector.shape_cast %70 : vector<32x768xf32> to vector<1x32x768xf32>
    %cst_24 = arith.constant dense<0.000000e+00> : vector<1xf32>
    %72 = vector.multi_reduction <add>, %71, %cst_24 [1, 2] : vector<1x32x768xf32> to vector<1xf32>
    %73 = vector.shape_cast %72 : vector<1xf32> to vector<1x1x1xf32>
    %74 = vector.extract %73[0, 0, 0] : f32 from vector<1x1x1xf32>
    %c2_i32 = arith.constant 2 : i32
    %75 = vector.broadcast %c2_i32 : i32 to vector<8x128xi32>
    %76 = arith.cmpi eq, %8, %75 : vector<8x128xi32>
    %c0_i32_25 = arith.constant 0 : i32
    %77 = vector.broadcast %c0_i32_25 : i32 to vector<8x128xi32>
    %78 = arith.cmpi eq, %9, %77 : vector<8x128xi32>
    %79 = arith.andi %76, %78 : vector<8x128xi1>
    %80 = vector.broadcast %74 : f32 to vector<8x128xf32>
    %81 = arith.select %79, %80, %66 : vector<8x128xi1>, vector<8x128xf32>
    %82 = vector.extract_strided_slice %7 {offsets = [0, 768], sizes = [32, 768], strides = [1, 1]} : vector<32x1536xf32> to vector<32x768xf32>
    %83 = arith.mulf %82, %68 : vector<32x768xf32>
    %84 = vector.shape_cast %83 : vector<32x768xf32> to vector<1x32x768xf32>
    %cst_26 = arith.constant dense<0.000000e+00> : vector<1xf32>
    %85 = vector.multi_reduction <add>, %84, %cst_26 [1, 2] : vector<1x32x768xf32> to vector<1xf32>
    %86 = vector.shape_cast %85 : vector<1xf32> to vector<1x1x1xf32>
    %87 = vector.extract %86[0, 0, 0] : f32 from vector<1x1x1xf32>
    %c2_i32_27 = arith.constant 2 : i32
    %88 = vector.broadcast %c2_i32_27 : i32 to vector<8x128xi32>
    %89 = arith.cmpi eq, %8, %88 : vector<8x128xi32>
    %c1_i32_28 = arith.constant 1 : i32
    %90 = vector.broadcast %c1_i32_28 : i32 to vector<8x128xi32>
    %91 = arith.cmpi eq, %9, %90 : vector<8x128xi32>
    %92 = arith.andi %89, %91 : vector<8x128xi1>
    %93 = vector.broadcast %87 : f32 to vector<8x128xf32>
    %94 = arith.select %92, %93, %81 : vector<8x128xi1>, vector<8x128xf32>
    %c3 = arith.constant 3 : index
    %c0_29 = arith.constant 0 : index
    %c0_30 = arith.constant 0 : index
    %95 = vector.load %arg3[%c3, %c0_29, %c0_30] : memref<4x32x768xf32, #tpu.memory_space<vmem>>, vector<1x32x768xf32>
    %96 = vector.shape_cast %95 : vector<1x32x768xf32> to vector<32x768xf32>
    %97 = vector.extract_strided_slice %7 {offsets = [0, 0], sizes = [32, 768], strides = [1, 1]} : vector<32x1536xf32> to vector<32x768xf32>
    %98 = arith.mulf %97, %96 : vector<32x768xf32>
    %99 = vector.shape_cast %98 : vector<32x768xf32> to vector<1x32x768xf32>
    %cst_31 = arith.constant dense<0.000000e+00> : vector<1xf32>
    %100 = vector.multi_reduction <add>, %99, %cst_31 [1, 2] : vector<1x32x768xf32> to vector<1xf32>
    %101 = vector.shape_cast %100 : vector<1xf32> to vector<1x1x1xf32>
    %102 = vector.extract %101[0, 0, 0] : f32 from vector<1x1x1xf32>
    %c3_i32 = arith.constant 3 : i32
    %103 = vector.broadcast %c3_i32 : i32 to vector<8x128xi32>
    %104 = arith.cmpi eq, %8, %103 : vector<8x128xi32>
    %c0_i32_32 = arith.constant 0 : i32
    %105 = vector.broadcast %c0_i32_32 : i32 to vector<8x128xi32>
    %106 = arith.cmpi eq, %9, %105 : vector<8x128xi32>
    %107 = arith.andi %104, %106 : vector<8x128xi1>
    %108 = vector.broadcast %102 : f32 to vector<8x128xf32>
    %109 = arith.select %107, %108, %94 : vector<8x128xi1>, vector<8x128xf32>
    %110 = vector.extract_strided_slice %7 {offsets = [0, 768], sizes = [32, 768], strides = [1, 1]} : vector<32x1536xf32> to vector<32x768xf32>
    %111 = arith.mulf %110, %96 : vector<32x768xf32>
    %112 = vector.shape_cast %111 : vector<32x768xf32> to vector<1x32x768xf32>
    %cst_33 = arith.constant dense<0.000000e+00> : vector<1xf32>
    %113 = vector.multi_reduction <add>, %112, %cst_33 [1, 2] : vector<1x32x768xf32> to vector<1xf32>
    %114 = vector.shape_cast %113 : vector<1xf32> to vector<1x1x1xf32>
    %115 = vector.extract %114[0, 0, 0] : f32 from vector<1x1x1xf32>
    %c3_i32_34 = arith.constant 3 : i32
    %116 = vector.broadcast %c3_i32_34 : i32 to vector<8x128xi32>
    %117 = arith.cmpi eq, %8, %116 : vector<8x128xi32>
    %c1_i32_35 = arith.constant 1 : i32
    %118 = vector.broadcast %c1_i32_35 : i32 to vector<8x128xi32>
    %119 = arith.cmpi eq, %9, %118 : vector<8x128xi32>
    %120 = arith.andi %117, %119 : vector<8x128xi1>
    %121 = vector.broadcast %115 : f32 to vector<8x128xf32>
    %122 = arith.select %120, %121, %109 : vector<8x128xi1>, vector<8x128xf32>
    %c0_36 = arith.constant 0 : index
    %c0_37 = arith.constant 0 : index
    %123 = vector.load %arg4[%c0_36, %c0_37] : memref<8x128xf32, #tpu.memory_space<vmem>>, vector<8x128xf32>
    tpu.vector_store %arg4[%c0_36, %c0_37], %122 {strides = array<i32>} : memref<8x128xf32, #tpu.memory_space<vmem>>, vector<8x128xf32>,
    return
  }
}

module attributes {stable_mosaic.version = 11 : i64} {
  func.func @_dec1_kernel(%arg0: memref<2x2xf32, #tpu.memory_space<smem>>, %arg1: memref<128x768xf32, #tpu.memory_space<vmem>>, %arg2: memref<128x768xf32, #tpu.memory_space<vmem>>, %arg3: memref<128x768xf32, #tpu.memory_space<vmem>>, %arg4: memref<64x128xbf16, #tpu.memory_space<vmem>>, %arg5: memref<64x1xf32, #tpu.memory_space<vmem>>, %arg6: memref<64x1536xbf16, #tpu.memory_space<vmem>>) attributes {dimension_semantics = [], scalar_prefetch = 0 : i64, scratch_operands = 0 : i64, tpu.core_type = #tpu.core_type<tc>} {
    %c0 = arith.constant 0 : index
    %c0_0 = arith.constant 0 : index
    %0 = vector.load %arg1[%c0, %c0_0] : memref<128x768xf32, #tpu.memory_space<vmem>>, vector<128x768xf32>
    %c0_1 = arith.constant 0 : index
    %c0_2 = arith.constant 0 : index
    %1 = vector.load %arg2[%c0_1, %c0_2] : memref<128x768xf32, #tpu.memory_space<vmem>>, vector<128x768xf32>
    %c0_3 = arith.constant 0 : index
    %c0_4 = arith.constant 0 : index
    %2 = vector.load %arg3[%c0_3, %c0_4] : memref<128x768xf32, #tpu.memory_space<vmem>>, vector<128x768xf32>
    %c0_5 = arith.constant 0 : index
    %c0_6 = arith.constant 0 : index
    %3 = vector.load %arg4[%c0_5, %c0_6] : memref<64x128xbf16, #tpu.memory_space<vmem>>, vector<64x128xbf16>
    %c0_7 = arith.constant 0 : index
    %c0_8 = arith.constant 0 : index
    %4 = vector.load %arg5[%c0_7, %c0_8] : memref<64x1xf32, #tpu.memory_space<vmem>>, vector<64x1xf32>
    %c0_9 = arith.constant 0 : index
    %c0_10 = arith.constant 0 : index
    %5 = memref.load %arg0[%c0_9, %c0_10] : memref<2x2xf32, #tpu.memory_space<smem>>
    %c0_11 = arith.constant 0 : index
    %c1 = arith.constant 1 : index
    %6 = memref.load %arg0[%c0_11, %c1] : memref<2x2xf32, #tpu.memory_space<smem>>
    %7 = vector.broadcast %5 : f32 to vector<128x768xf32>
    %8 = arith.mulf %0, %7 : vector<128x768xf32>
    %9 = vector.broadcast %6 : f32 to vector<128x768xf32>
    %10 = arith.mulf %1, %9 : vector<128x768xf32>
    %11 = arith.addf %8, %10 : vector<128x768xf32>
    %12 = arith.addf %11, %2 : vector<128x768xf32>
    %cst = arith.constant 0.000000e+00 : f32
    %13 = vector.broadcast %cst : f32 to vector<128x768xf32>
    %14 = arith.maximumf %12, %13 : vector<128x768xf32>
    %15 = arith.truncf %14 : vector<128x768xf32> to vector<128x768xbf16>
    %cst_12 = arith.constant dense<0.000000e+00> : vector<64x768xf32>
    %16 = tpu.matmul %3, %15, %cst_12 {dimension_numbers = #tpu.dot_dimension_numbers<[1], [0], [0], [1], [0, 0, 1, 1], [], []>} : vector<64x128xbf16>, vector<128x768xbf16>, vector<64x768xf32> -> vector<64x768xf32>
    %17 = vector.broadcast %4 : vector<64x1xf32> to vector<64x768xf32>
    %18 = arith.addf %16, %17 : vector<64x768xf32>
    %cst_13 = arith.constant 0.000000e+00 : f32
    %19 = vector.broadcast %cst_13 : f32 to vector<64x768xf32>
    %20 = arith.maximumf %18, %19 : vector<64x768xf32>
    %21 = arith.truncf %20 : vector<64x768xf32> to vector<64x768xbf16>
    %c0_14 = arith.constant 0 : index
    %c0_15 = arith.constant 0 : index
    %22 = vector.load %arg6[%c0_14, %c0_15] : memref<64x1536xbf16, #tpu.memory_space<vmem>>, vector<64x768xbf16>
    tpu.vector_store %arg6[%c0_14, %c0_15], %21 {strides = array<i32>} : memref<64x1536xbf16, #tpu.memory_space<vmem>>, vector<64x768xbf16>,
    %c1_16 = arith.constant 1 : index
    %c0_17 = arith.constant 0 : index
    %23 = memref.load %arg0[%c1_16, %c0_17] : memref<2x2xf32, #tpu.memory_space<smem>>
    %c1_18 = arith.constant 1 : index
    %c1_19 = arith.constant 1 : index
    %24 = memref.load %arg0[%c1_18, %c1_19] : memref<2x2xf32, #tpu.memory_space<smem>>
    %25 = vector.broadcast %23 : f32 to vector<128x768xf32>
    %26 = arith.mulf %0, %25 : vector<128x768xf32>
    %27 = vector.broadcast %24 : f32 to vector<128x768xf32>
    %28 = arith.mulf %1, %27 : vector<128x768xf32>
    %29 = arith.addf %26, %28 : vector<128x768xf32>
    %30 = arith.addf %29, %2 : vector<128x768xf32>
    %cst_20 = arith.constant 0.000000e+00 : f32
    %31 = vector.broadcast %cst_20 : f32 to vector<128x768xf32>
    %32 = arith.maximumf %30, %31 : vector<128x768xf32>
    %33 = arith.truncf %32 : vector<128x768xf32> to vector<128x768xbf16>
    %cst_21 = arith.constant dense<0.000000e+00> : vector<64x768xf32>
    %34 = tpu.matmul %3, %33, %cst_21 {dimension_numbers = #tpu.dot_dimension_numbers<[1], [0], [0], [1], [0, 0, 1, 1], [], []>} : vector<64x128xbf16>, vector<128x768xbf16>, vector<64x768xf32> -> vector<64x768xf32>
    %35 = vector.broadcast %4 : vector<64x1xf32> to vector<64x768xf32>
    %36 = arith.addf %34, %35 : vector<64x768xf32>
    %cst_22 = arith.constant 0.000000e+00 : f32
    %37 = vector.broadcast %cst_22 : f32 to vector<64x768xf32>
    %38 = arith.maximumf %36, %37 : vector<64x768xf32>
    %39 = arith.truncf %38 : vector<64x768xf32> to vector<64x768xbf16>
    %c0_23 = arith.constant 0 : index
    %c768 = arith.constant 768 : index
    %40 = vector.load %arg6[%c0_23, %c768] : memref<64x1536xbf16, #tpu.memory_space<vmem>>, vector<64x768xbf16>
    tpu.vector_store %arg6[%c0_23, %c768], %39 {strides = array<i32>} : memref<64x1536xbf16, #tpu.memory_space<vmem>>, vector<64x768xbf16>,
    return
  }
}

module attributes {stable_mosaic.version = 11 : i64} {
  func.func @_mm_bias_act_kernel(%arg0: i32, %arg1: memref<16x64xbf16, #tpu.memory_space<vmem>>, %arg2: memref<64x3072xbf16, #tpu.memory_space<vmem>>, %arg3: memref<16x1xf32, #tpu.memory_space<vmem>>, %arg4: memref<16x3072xf32, #tpu.memory_space<vmem>>) attributes {dimension_semantics = [#tpu.dimension_semantics<parallel>], iteration_bounds = array<i64: 2>, scalar_prefetch = 0 : i64, scratch_operands = 0 : i64, tpu.core_type = #tpu.core_type<tc>, window_params = [{pipeline_mode = #tpu.pipeline_mode<synchronous>, transform_indices = @transform_0, window_bounds = array<i64: 16, 64>}, {transform_indices = @transform_1, window_bounds = array<i64: 64, 3072>}, {pipeline_mode = #tpu.pipeline_mode<synchronous>, transform_indices = @transform_2, window_bounds = array<i64: 16, 1>}, {transform_indices = @transform_3, window_bounds = array<i64: 16, 3072>}]} {
    %c0 = arith.constant 0 : index
    %c0_0 = arith.constant 0 : index
    %0 = vector.load %arg1[%c0, %c0_0] : memref<16x64xbf16, #tpu.memory_space<vmem>>, vector<16x64xbf16>
    %c0_1 = arith.constant 0 : index
    %c0_2 = arith.constant 0 : index
    %1 = vector.load %arg2[%c0_1, %c0_2] : memref<64x3072xbf16, #tpu.memory_space<vmem>>, vector<64x3072xbf16>
    %cst = arith.constant dense<0.000000e+00> : vector<16x3072xf32>
    %2 = tpu.matmul %0, %1, %cst {dimension_numbers = #tpu.dot_dimension_numbers<[1], [0], [0], [1], [0, 0, 1, 1], [], []>} : vector<16x64xbf16>, vector<64x3072xbf16>, vector<16x3072xf32> -> vector<16x3072xf32>
    %c0_3 = arith.constant 0 : index
    %c0_4 = arith.constant 0 : index
    %3 = vector.load %arg3[%c0_3, %c0_4] : memref<16x1xf32, #tpu.memory_space<vmem>>, vector<16x1xf32>
    %4 = vector.broadcast %3 : vector<16x1xf32> to vector<16x3072xf32>
    %5 = arith.addf %2, %4 : vector<16x3072xf32>
    %6 = arith.negf %5 : vector<16x3072xf32>
    %7 = math.exp %6 : vector<16x3072xf32>
    %cst_5 = arith.constant 1.000000e+00 : f32
    %8 = vector.broadcast %cst_5 : f32 to vector<16x3072xf32>
    %9 = arith.addf %8, %7 : vector<16x3072xf32>
    %10 = arith.divf %8, %9 : vector<16x3072xf32>
    %c0_6 = arith.constant 0 : index
    %c0_7 = arith.constant 0 : index
    %11 = vector.load %arg4[%c0_6, %c0_7] : memref<16x3072xf32, #tpu.memory_space<vmem>>, vector<16x3072xf32>
    tpu.vector_store %arg4[%c0_6, %c0_7], %10 {strides = array<i32>} : memref<16x3072xf32, #tpu.memory_space<vmem>>, vector<16x3072xf32>,
    return
  }
  func.func @transform_0(%arg0: i32) -> (i32, i32) {
    %c0_i32 = arith.constant 0 : i32
    %c0_i32_0 = arith.constant 0 : i32
    %c0_i32_1 = arith.constant 0 : i32
    return %c0_i32, %c0_i32_0 : i32, i32
  }
  func.func @transform_1(%arg0: i32) -> (i32, i32) {
    %c0_i32 = arith.constant 0 : i32
    %c0_i32_0 = arith.constant 0 : i32
    return %c0_i32, %arg0 : i32, i32
  }
  func.func @transform_2(%arg0: i32) -> (i32, i32) {
    %c0_i32 = arith.constant 0 : i32
    %c0_i32_0 = arith.constant 0 : i32
    %c0_i32_1 = arith.constant 0 : i32
    return %c0_i32, %c0_i32_0 : i32, i32
  }
  func.func @transform_3(%arg0: i32) -> (i32, i32) {
    %c0_i32 = arith.constant 0 : i32
    %c0_i32_0 = arith.constant 0 : i32
    return %c0_i32, %arg0 : i32, i32
  }
}

</mosaic_0001>

<bundles_post_ra>
// kernel: vae_forward.4
= control target key start
LH: loop header
LB: loop body
LE: loop exit
PB: predicated region body
PF: predicated region fallthrough
CT: control target
= control target key end

     0   :  { %s1649_s12 = smov 0   ;;  %s1651_s13 = smov 0   ;;  %s2039_s0 = inlined_call_operand.vmem [shape: bf16[16,32], index: 0, kind: input, shape index: {}]   ;;  %s2040_s1 = inlined_call_operand.vmem [shape: bf16[32,6144], index: 1, kind: input, shape index: {}]   ;;  %s2041_s2 = inlined_call_operand.vmem [shape: f32[16,1], index: 2, kind: input, shape index: {}]   ;;  %s2042_s3 = inlined_call_operand.vmem [shape: bf16[16,6144], index: 3, kind: output, shape index: {}]  }
   0x1   :  { %s1653_s14 = smov 0  }
   0x2 LB: > { %s1454_s15 = sadd.s32 4294967295, %s1626_s14   ;;  %s1666_s16 = sadd.s32 1, %s1626_s14   ;;  %s1626_s14 = sphi %s1653_s14, %s2046_s14   ;;  %s1622_s13 = sphi %s1651_s13, %s2045_s13   ;;  %s1618_s12 = sphi %s1649_s12, %s2044_s12  }
   0x3   : > { %s38_s17 = ssub.s32 %s1626_s14, %s1666_s16  ;;  %s41_s18 = sadd.s32 1, %s1622_s13 }
   0x4   : > { %p39_p0 = scmp.eq.s32.totalorder %s38_s17, 0  ;;  %p48_p1 = scmp.ne.s32.totalorder %s1622_s13, %s1618_s12 }
   0x5   : > { %p49_p2 = scmp.eq.s32.totalorder %s1626_s14, 0  ;;  %p99_p3 = scmp.eq.s32.totalorder %s1454_s15, 1 }
   0x6   : > { %s1677_s19 = scalar_select %p39_p0, %s1622_s13, %s41_s18  }
   0x7   : > { %p50_p4 = por %p49_p2, %p48_p1  ;;  %p1679_p5 = por %p99_p3, %p48_p1 }
   0x8   : > { %p1457_p6 = scmp.ge.s32.totalorder %s1626_s14, 2 }
   0xa   : > { %127 = sbr.rel (%p1457_p6) target bundleno = 46 (0x2e), region = 24 }
  0x11   : > { %130 = sbr.rel (!%p50_p4) target bundleno = 46 (0x2e), region = 28  ;;  %s132_s21 = sand.u32 (%p50_p4), 1, %s1622_s13  }
  0x12   : > { %s1548_s22 = smul.u32 (%p50_p4), 96, %s1626_s14 }
  0x13   : > { %s1574_s23 = smul.u32 (%p50_p4), 384, %s132_s21 }
  0x14   : > { %s1689_s26 = scalar_lea.vmem (%p50_p4), %s2040_s1, %s1548_s22 }
  0x15   : > { %v150_v0 = vld [vmem:[%s1689_s26] sm:$0xff] (%p50_p4)  ;;  %v152_v1 = vld [vmem:[%s1689_s26 + $0x8] sm:$0xff] (%p50_p4)  ;;  %v154_v2 = vld [vmem:[%s1689_s26 + $0x10] sm:$0xff] (%p50_p4)  ;;  %s1694_s27 = scalar_lea.vmem (%p50_p4), [#allocation2], %s1574_s23 }
  0x16   : > { %151 = vst [vmem:[%s1694_s27] sm:$0xff] (%p50_p4), %v150_v0  ;;  %153 = vst [vmem:[%s1694_s27 + $0x8] sm:$0xff] (%p50_p4), %v152_v1  ;;  %v156_v3 = vld [vmem:[%s1689_s26 + $0x18] sm:$0xff] (%p50_p4)  ;;  %v158_v4 = vld [vmem:[%s1689_s26 + $0x20] sm:$0xff] (%p50_p4) }
  0x17   : > { %155 = vst [vmem:[%s1694_s27 + $0x10] sm:$0xff] (%p50_p4), %v154_v2  ;;  %v160_v5 = vld [vmem:[%s1689_s26 + $0x28] sm:$0xff] (%p50_p4)  ;;  %157 = vst [vmem:[%s1694_s27 + $0x18] sm:$0xff] (%p50_p4), %v156_v3  ;;  %v162_v6 = vld [vmem:[%s1689_s26 + $0x30] sm:$0xff] (%p50_p4) }
  0x18   : > { %159 = vst [vmem:[%s1694_s27 + $0x20] sm:$0xff] %v158_v4  ;;  %161 = vst [vmem:[%s1694_s27 + $0x28] sm:$0xff] %v160_v5  ;;  %v164_v7 = vld [vmem:[%s1689_s26 + $0x38] sm:$0xff]  ;;  %v166_v8 = vld [vmem:[%s1689_s26 + $0x40] sm:$0xff] }
  0x19   : > { %163 = vst [vmem:[%s1694_s27 + $0x30] sm:$0xff] %v162_v6  ;;  %165 = vst [vmem:[%s1694_s27 + $0x38] sm:$0xff] %v164_v7  ;;  %v168_v9 = vld [vmem:[%s1689_s26 + $0x48] sm:$0xff]  ;;  %v170_v10 = vld [vmem:[%s1689_s26 + $0x50] sm:$0xff] }
  0x1a   : > { %167 = vst [vmem:[%s1694_s27 + $0x40] sm:$0xff] %v166_v8  ;;  %v172_v11 = vld [vmem:[%s1689_s26 + $0x58] sm:$0xff]  ;;  %169 = vst [vmem:[%s1694_s27 + $0x48] sm:$0xff] %v168_v9  ;;  %v174_v12 = vld [vmem:[%s1689_s26 + $0xc0] sm:$0xff] }
  0x1b   : > { %171 = vst [vmem:[%s1694_s27 + $0x50] sm:$0xff] %v170_v10  ;;  %173 = vst [vmem:[%s1694_s27 + $0x58] sm:$0xff] %v172_v11  ;;  %v176_v13 = vld [vmem:[%s1689_s26 + $0xc8] sm:$0xff]  ;;  %v178_v14 = vld [vmem:[%s1689_s26 + $0xd0] sm:$0xff] }
  0x1c   : > { %175 = vst [vmem:[%s1694_s27 + $0x60] sm:$0xff] %v174_v12  ;;  %177 = vst [vmem:[%s1694_s27 + $0x68] sm:$0xff] %v176_v13  ;;  %v180_v15 = vld [vmem:[%s1689_s26 + $0xd8] sm:$0xff]  ;;  %v182_v16 = vld [vmem:[%s1689_s26 + $0xe0] sm:$0xff] }
  0x1d   : > { %179 = vst [vmem:[%s1694_s27 + $0x70] sm:$0xff] %v178_v14  ;;  %v184_v17 = vld [vmem:[%s1689_s26 + $0xe8] sm:$0xff]  ;;  %181 = vst [vmem:[%s1694_s27 + $0x78] sm:$0xff] %v180_v15  ;;  %v186_v18 = vld [vmem:[%s1689_s26 + $0xf0] sm:$0xff] }
  0x1e   : > { %183 = vst [vmem:[%s1694_s27 + $0x80] sm:$0xff] %v182_v16  ;;  %185 = vst [vmem:[%s1694_s27 + $0x88] sm:$0xff] %v184_v17  ;;  %v188_v19 = vld [vmem:[%s1689_s26 + $0xf8] sm:$0xff]  ;;  %v190_v20 = vld [vmem:[%s1689_s26 + $0x100] sm:$0xff] }
  0x1f   : > { %187 = vst [vmem:[%s1694_s27 + $0x90] sm:$0xff] %v186_v18  ;;  %189 = vst [vmem:[%s1694_s27 + $0x98] sm:$0xff] %v188_v19  ;;  %v192_v21 = vld [vmem:[%s1689_s26 + $0x108] sm:$0xff]  ;;  %v194_v22 = vld [vmem:[%s1689_s26 + $0x110] sm:$0xff] }
  0x20   : > { %191 = vst [vmem:[%s1694_s27 + $0xa0] sm:$0xff] %v190_v20  ;;  %v196_v23 = vld [vmem:[%s1689_s26 + $0x118] sm:$0xff]  ;;  %193 = vst [vmem:[%s1694_s27 + $0xa8] sm:$0xff] %v192_v21  ;;  %v198_v24 = vld [vmem:[%s1689_s26 + $0x180] sm:$0xff] }
  0x21   : > { %195 = vst [vmem:[%s1694_s27 + $0xb0] sm:$0xff] %v194_v22  ;;  %197 = vst [vmem:[%s1694_s27 + $0xb8] sm:$0xff] %v196_v23  ;;  %v200_v25 = vld [vmem:[%s1689_s26 + $0x188] sm:$0xff]  ;;  %v202_v26 = vld [vmem:[%s1689_s26 + $0x190] sm:$0xff] }
  0x22   : > { %199 = vst [vmem:[%s1694_s27 + $0xc0] sm:$0xff] %v198_v24  ;;  %201 = vst [vmem:[%s1694_s27 + $0xc8] sm:$0xff] %v200_v25  ;;  %v204_v27 = vld [vmem:[%s1689_s26 + $0x198] sm:$0xff]  ;;  %v206_v28 = vld [vmem:[%s1689_s26 + $0x1a0] sm:$0xff] }
  0x23   : > { %203 = vst [vmem:[%s1694_s27 + $0xd0] sm:$0xff] %v202_v26  ;;  %v208_v29 = vld [vmem:[%s1689_s26 + $0x1a8] sm:$0xff]  ;;  %205 = vst [vmem:[%s1694_s27 + $0xd8] sm:$0xff] %v204_v27  ;;  %v210_v30 = vld [vmem:[%s1689_s26 + $0x1b0] sm:$0xff] }
  0x24   : > { %207 = vst [vmem:[%s1694_s27 + $0xe0] sm:$0xff] %v206_v28  ;;  %209 = vst [vmem:[%s1694_s27 + $0xe8] sm:$0xff] %v208_v29  ;;  %v212_v31 = vld [vmem:[%s1689_s26 + $0x1b8] sm:$0xff]  ;;  %v214_v32 = vld [vmem:[%s1689_s26 + $0x1c0] sm:$0xff] }
  0x25   : > { %211 = vst [vmem:[%s1694_s27 + $0xf0] sm:$0xff] %v210_v30  ;;  %213 = vst [vmem:[%s1694_s27 + $0xf8] sm:$0xff] %v212_v31  ;;  %v216_v33 = vld [vmem:[%s1689_s26 + $0x1c8] sm:$0xff]  ;;  %v218_v34 = vld [vmem:[%s1689_s26 + $0x1d0] sm:$0xff] }
  0x26   : > { %215 = vst [vmem:[%s1694_s27 + $0x100] sm:$0xff] %v214_v32  ;;  %v220_v35 = vld [vmem:[%s1689_s26 + $0x1d8] sm:$0xff]  ;;  %217 = vst [vmem:[%s1694_s27 + $0x108] sm:$0xff] %v216_v33  ;;  %v222_v36 = vld [vmem:[%s1689_s26 + $0x240] sm:$0xff] }
  0x27   : > { %219 = vst [vmem:[%s1694_s27 + $0x110] sm:$0xff] %v218_v34  ;;  %221 = vst [vmem:[%s1694_s27 + $0x118] sm:$0xff] %v220_v35  ;;  %v224_v37 = vld [vmem:[%s1689_s26 + $0x248] sm:$0xff]  ;;  %v226_v38 = vld [vmem:[%s1689_s26 + $0x250] sm:$0xff] }
  0x28   : > { %223 = vst [vmem:[%s1694_s27 + $0x120] sm:$0xff] %v222_v36  ;;  %225 = vst [vmem:[%s1694_s27 + $0x128] sm:$0xff] %v224_v37  ;;  %v228_v39 = vld [vmem:[%s1689_s26 + $0x258] sm:$0xff]  ;;  %v230_v40 = vld [vmem:[%s1689_s26 + $0x260] sm:$0xff] }
  0x29   : > { %227 = vst [vmem:[%s1694_s27 + $0x130] sm:$0xff] %v226_v38  ;;  %v232_v41 = vld [vmem:[%s1689_s26 + $0x268] sm:$0xff]  ;;  %229 = vst [vmem:[%s1694_s27 + $0x138] sm:$0xff] %v228_v39  ;;  %v234_v42 = vld [vmem:[%s1689_s26 + $0x270] sm:$0xff] }
  0x2a   : > { %231 = vst [vmem:[%s1694_s27 + $0x140] sm:$0xff] %v230_v40  ;;  %233 = vst [vmem:[%s1694_s27 + $0x148] sm:$0xff] %v232_v41  ;;  %v236_v43 = vld [vmem:[%s1689_s26 + $0x278] sm:$0xff]  ;;  %v238_v44 = vld [vmem:[%s1689_s26 + $0x280] sm:$0xff] }
  0x2b   : > { %235 = vst [vmem:[%s1694_s27 + $0x150] sm:$0xff] %v234_v42  ;;  %237 = vst [vmem:[%s1694_s27 + $0x158] sm:$0xff] %v236_v43  ;;  %v240_v45 = vld [vmem:[%s1689_s26 + $0x288] sm:$0xff]  ;;  %v242_v46 = vld [vmem:[%s1689_s26 + $0x290] sm:$0xff] }
  0x2c   : > { %239 = vst [vmem:[%s1694_s27 + $0x160] sm:$0xff] %v238_v44  ;;  %v244_v47 = vld [vmem:[%s1689_s26 + $0x298] sm:$0xff]  ;;  %241 = vst [vmem:[%s1694_s27 + $0x168] sm:$0xff] %v240_v45 }
  0x2d   : > { %243 = vst [vmem:[%s1694_s27 + $0x170] sm:$0xff] %v242_v46  ;;  %245 = vst [vmem:[%s1694_s27 + $0x178] sm:$0xff] %v244_v47 }
  0x2e PF: > { %p1459_p7 = scmp.ge.s32.totalorder %s1626_s14, 1  ;;  %p250_p8 = scmp.lt.s32.totalorder %s1626_s14, 3 }
  0x30   : > { %p251_p9 = pnand %p1459_p7, %p250_p8 }
  0x31   : > { %s257_s28 = sand.u32 (!%p251_p9), 1, %s1618_s12   ;;  %v1628_v48 = vmov (!%p251_p9), 0   ;;  %v332_v49 = vld [vmem:[%s2041_s2] sm:$0xff] (!%p251_p9)  ;;  %v333_v50 = vld [vmem:[%s2041_s2 + $0x8] sm:$0xff] (!%p251_p9)  ;;  %vm589_vm0 = vcmask (!%p251_p9), 261120  }
  0x32   : > { %254 = sbr.rel (%p251_p9) target bundleno = 336 (0x150), region = 51  ;;  %625 = vmatprep.mubr.bf16.mxu0 (!%p251_p9), %v1628_v48  ;;  %668 = vmatprep.mubr.bf16.mxu1 (!%p251_p9), %v1628_v48  ;;  %v1822_v11 = vld [vmem:[%s2039_s0] sm:$0xff] (!%p251_p9)  }
  0x33   : > { %s1575_s29 = smul.u32 (!%p251_p9), 384, %s257_s28  ;;  %1602 = vset.pattern.permute.xlu0 (!%p251_p9), %v1628_v48 }
  0x34   : > { %336 = vperm.xlu0 (!%p251_p9), %1602, %v332_v49   ;;  %s1576_s10 = smul.u32 (!%p251_p9), 192, %s257_s28 }
  0x35   : > { %s1803_s7 = scalar_lea.vmem (!%p251_p9), [#allocation2], %s1575_s29 }
  0x36   : > { %v284_v51 = vld [vmem:[%s1803_s7] sm:$0xff] (!%p251_p9)  ;;  %v285_v53 = vld [vmem:[%s1803_s7 + $0x8] sm:$0xff] (!%p251_p9)  ;;  %v286_v0 = vld [vmem:[%s1803_s7 + $0x10] sm:$0xff] (!%p251_p9)  ;;  %s1906_s11 = scalar_lea.vmem (!%p251_p9), [#allocation3], %s1576_s10 }
  0x37   : > { %v296_v52 = vld [vmem:[%s1803_s7 + $0x60] sm:$0xff] (!%p251_p9)  ;;  %v297_v55 = vld [vmem:[%s1803_s7 + $0x68] sm:$0xff] (!%p251_p9)  ;;  %v298_v2 = vld [vmem:[%s1803_s7 + $0x70] sm:$0xff] (!%p251_p9) }
  0x38   : > { %v1462_v54 = vcombine.high (!%p251_p9), %v284_v51, %v296_v52  ;;  %v1461_v56 = vcombine.low (!%p251_p9), %v284_v51, %v296_v52  ;;  %v308_v57 = vld [vmem:[%s1803_s7 + $0xc0] sm:$0xff] (!%p251_p9)  ;;  %v1464_v59 = vcombine.high (!%p251_p9), %v285_v53, %v297_v55  ;;  %v1463_v60 = vcombine.low (!%p251_p9), %v285_v53, %v297_v55  ;;  %v309_v62 = vld [vmem:[%s1803_s7 + $0xc8] sm:$0xff] (!%p251_p9)  ;;  %v287_v3 = vld [vmem:[%s1803_s7 + $0x18] sm:$0xff] (!%p251_p9)  ;;  %341 = vperm.xlu0 (!%p251_p9), %1602, %v333_v50  }
  0x39   : > { %v320_v58 = vld [vmem:[%s1803_s7 + $0x120] sm:$0xff]  ;;  %v321_v63 = vld [vmem:[%s1803_s7 + $0x128] sm:$0xff]  ;;  %v299_v4 = vld [vmem:[%s1803_s7 + $0x78] sm:$0xff]  ;;  %v1466_v7 = vcombine.high %v286_v0, %v298_v2  ;;  %v1465_v14 = vcombine.low %v286_v0, %v298_v2  ;;  %s1573_s12 = smul.u32 (%p1679_p5), 96, %s1454_s15 }
  0x3a   : > { %v1486_v61 = vcombine.high %v308_v57, %v320_v58  ;;  %593 = vmatprep.subr.bf16.mxu0 %v1462_v54  ;;  %v1488_v1 = vcombine.high %v309_v62, %v321_v63  ;;  %636 = vmatprep.subr.bf16.mxu1 %v1464_v59  ;;  %v1485_v5 = vcombine.low %v308_v57, %v320_v58  ;;  %v310_v9 = vld [vmem:[%s1803_s7 + $0xd0] sm:$0xff]  ;;  %v311_v12 = vld [vmem:[%s1803_s7 + $0xd8] sm:$0xff]  ;;  %v288_v18 = vld [vmem:[%s1803_s7 + $0x20] sm:$0xff] }
  0x3b   : > { %594 = vmatpush1.bf16.msra.mxu0 %v1461_v56  ;;  %637 = vmatpush1.bf16.msra.mxu1 %v1463_v60  ;;  %v1487_v6 = vcombine.low %v309_v62, %v321_v63  ;;  %v1468_v8 = vcombine.high %v287_v3, %v299_v4  ;;  %v322_v10 = vld [vmem:[%s1803_s7 + $0x130] sm:$0xff]  ;;  %v323_v13 = vld [vmem:[%s1803_s7 + $0x138] sm:$0xff]  ;;  %v1467_v15 = vcombine.low %v287_v3, %v299_v4  ;;  %v300_v19 = vld [vmem:[%s1803_s7 + $0x80] sm:$0xff]  ;;  %s1985_s18 = scalar_lea.vmem (%p1679_p5), %s2042_s3, %s1573_s12 }
  0x3c   : > { %595 = vmatprep.subr.bf16.mxu0 %v1486_v61  ;;  %638 = vmatprep.subr.bf16.mxu1 %v1488_v1  ;;  %v1490_v16 = vcombine.high %v310_v9, %v322_v10  ;;  %v1492_v17 = vcombine.high %v311_v12, %v323_v13  ;;  %v289_v20 = vld [vmem:[%s1803_s7 + $0x28] sm:$0xff]  ;;  %v1489_v22 = vcombine.low %v310_v9, %v322_v10  ;;  %v312_v26 = vld [vmem:[%s1803_s7 + $0xe0] sm:$0xff]  ;;  %v290_v34 = vld [vmem:[%s1803_s7 + $0x30] sm:$0xff] }
  0x3d   : > { %v301_v21 = vld [vmem:[%s1803_s7 + $0x88] sm:$0xff]  ;;  %v1491_v23 = vcombine.low %v311_v12, %v323_v13  ;;  %v1470_v24 = vcombine.high %v288_v18, %v300_v19  ;;  %v324_v27 = vld [vmem:[%s1803_s7 + $0x140] sm:$0xff]  ;;  %v1469_v30 = vcombine.low %v288_v18, %v300_v19  ;;  %v302_v35 = vld [vmem:[%s1803_s7 + $0x90] sm:$0xff] }
  0x3e   : > { %v1472_v25 = vcombine.high %v289_v20, %v301_v21  ;;  %v313_v28 = vld [vmem:[%s1803_s7 + $0xe8] sm:$0xff]  ;;  %v1471_v31 = vcombine.low %v289_v20, %v301_v21  ;;  %v1494_v32 = vcombine.high %v312_v26, %v324_v27  ;;  %v291_v36 = vld [vmem:[%s1803_s7 + $0x38] sm:$0xff]  ;;  %v1493_v38 = vcombine.low %v312_v26, %v324_v27  ;;  %v314_v42 = vld [vmem:[%s1803_s7 + $0xf0] sm:$0xff] }
  0x3f   : > { %596 = vmatpush1.bf16.msra.mxu0 %v1485_v5  ;;  %639 = vmatpush1.bf16.msra.mxu1 %v1487_v6  ;;  %v325_v29 = vld [vmem:[%s1803_s7 + $0x148] sm:$0xff]  ;;  %v303_v37 = vld [vmem:[%s1803_s7 + $0x98] sm:$0xff]  ;;  %v1474_v40 = vcombine.high %v290_v34, %v302_v35  ;;  %v326_v43 = vld [vmem:[%s1803_s7 + $0x150] sm:$0xff]  ;;  %v1473_v46 = vcombine.low %v290_v34, %v302_v35 }
  0x40   : > { %679 = vmatprep.subr.bf16.mxu0 %v1466_v7  ;;  %722 = vmatprep.subr.bf16.mxu1 %v1468_v8  ;;  %v1496_v33 = vcombine.high %v313_v28, %v325_v29  ;;  %v1495_v39 = vcombine.low %v313_v28, %v325_v29  ;;  %v1476_v41 = vcombine.high %v291_v36, %v303_v37  ;;  %v315_v44 = vld [vmem:[%s1803_s7 + $0xf8] sm:$0xff]  ;;  %v292_v51 = vld [vmem:[%s1803_s7 + $0x40] sm:$0xff]  ;;  %v293_v53 = vld [vmem:[%s1803_s7 + $0x48] sm:$0xff] }
  0x41   : > { %v327_v45 = vld [vmem:[%s1803_s7 + $0x158] sm:$0xff]  ;;  %v1475_v47 = vcombine.low %v291_v36, %v303_v37  ;;  %v1498_v49 = vcombine.high %v314_v42, %v326_v43  ;;  %v304_v52 = vld [vmem:[%s1803_s7 + $0xa0] sm:$0xff]  ;;  %v305_v54 = vld [vmem:[%s1803_s7 + $0xa8] sm:$0xff]  ;;  %v1497_v55 = vcombine.low %v314_v42, %v326_v43 }
  0x42   : > { %1509 = vmatmul.mubr.msk.bf16.vlgmr.msra.gmra.mrb[0].mxu0 %vm589_vm0, %v1822_v11  ;;  %1510 = vmatmul.mubr.msk.bf16.vlgmr.msra.gmra.mrb[0].mxu1 %vm589_vm0, %v1822_v11  ;;  %v1500_v50 = vcombine.high %v315_v44, %v327_v45  ;;  %v1499_v56 = vcombine.low %v315_v44, %v327_v45  ;;  %v1478_v57 = vcombine.high %v292_v51, %v304_v52  ;;  %v316_v59 = vld [vmem:[%s1803_s7 + $0x100] sm:$0xff]  ;;  %v317_v61 = vld [vmem:[%s1803_s7 + $0x108] sm:$0xff]  ;;  %v294_v3 = vld [vmem:[%s1803_s7 + $0x50] sm:$0xff] }
  0x43   : > { %680 = vmatpush1.bf16.msra.mxu0 %v1465_v14  ;;  %723 = vmatpush1.bf16.msra.mxu1 %v1467_v15  ;;  %v1480_v58 = vcombine.high %v293_v53, %v305_v54  ;;  %v328_v60 = vld [vmem:[%s1803_s7 + $0x160] sm:$0xff]  ;;  %v329_v62 = vld [vmem:[%s1803_s7 + $0x168] sm:$0xff]  ;;  %v1477_v63 = vcombine.low %v292_v51, %v304_v52  ;;  %v1479_v0 = vcombine.low %v293_v53, %v305_v54  ;;  %v306_v4 = vld [vmem:[%s1803_s7 + $0xb0] sm:$0xff] }
  0x44   : > { %681 = vmatprep.subr.bf16.mxu0 %v1490_v16  ;;  %724 = vmatprep.subr.bf16.mxu1 %v1492_v17  ;;  %v1502_v1 = vcombine.high %v316_v59, %v328_v60  ;;  %v1504_v2 = vcombine.high %v317_v61, %v329_v62  ;;  %v295_v5 = vld [vmem:[%s1803_s7 + $0x58] sm:$0xff]  ;;  %v1501_v7 = vcombine.low %v316_v59, %v328_v60  ;;  %v318_v12 = vld [vmem:[%s1803_s7 + $0x110] sm:$0xff] }
  0x45   : > { %711 = vmatprep.mubr.bf16.mxu0 %v1628_v48  ;;  %754 = vmatprep.mubr.bf16.mxu1 %v1628_v48  ;;  %v307_v6 = vld [vmem:[%s1803_s7 + $0xb8] sm:$0xff]  ;;  %v1503_v8 = vcombine.low %v317_v61, %v329_v62  ;;  %v1482_v9 = vcombine.high %v294_v3, %v306_v4  ;;  %v330_v13 = vld [vmem:[%s1803_s7 + $0x170] sm:$0xff]  ;;  %v1481_v16 = vcombine.low %v294_v3, %v306_v4 }
  0x46   : > { %v1484_v10 = vcombine.high %v295_v5, %v307_v6  ;;  %v319_v14 = vld [vmem:[%s1803_s7 + $0x118] sm:$0xff]  ;;  %v1483_v17 = vcombine.low %v295_v5, %v307_v6  ;;  %v1506_v18 = vcombine.high %v318_v12, %v330_v13  ;;  %v1505_v20 = vcombine.low %v318_v12, %v330_v13 }
  0x47   : > { %682 = vmatpush1.bf16.msra.mxu0 %v1489_v22  ;;  %725 = vmatpush1.bf16.msra.mxu1 %v1491_v23  ;;  %v331_v15 = vld [vmem:[%s1803_s7 + $0x178] sm:$0xff] }
  0x48   : > { %765 = vmatprep.subr.bf16.mxu0 %v1470_v24  ;;  %808 = vmatprep.subr.bf16.mxu1 %v1472_v25  ;;  %v1508_v19 = vcombine.high %v319_v14, %v331_v15  ;;  %v1507_v21 = vcombine.low %v319_v14, %v331_v15 }
  0x4a   : > { %1511 = vmatmul.mubr.msk.bf16.vlgmr.msra.gmra.mrb[4].mxu0 %vm589_vm0, %v1822_v11  ;;  %1512 = vmatmul.mubr.msk.bf16.vlgmr.msra.gmra.mrb[4].mxu1 %vm589_vm0, %v1822_v11 }
  0x4b   : > { %766 = vmatpush1.bf16.msra.mxu0 %v1469_v30  ;;  %809 = vmatpush1.bf16.msra.mxu1 %v1471_v31 }
  0x4c   : > { %767 = vmatprep.subr.bf16.mxu0 %v1494_v32  ;;  %810 = vmatprep.subr.bf16.mxu1 %v1496_v33 }
  0x4d   : > { %797 = vmatprep.mubr.bf16.mxu0 %v1628_v48  ;;  %840 = vmatprep.mubr.bf16.mxu1 %v1628_v48 }
  0x4f   : > { %768 = vmatpush1.bf16.msra.mxu0 %v1493_v38  ;;  %811 = vmatpush1.bf16.msra.mxu1 %v1495_v39 }
  0x50   : > { %851 = vmatprep.subr.bf16.mxu0 %v1474_v40  ;;  %894 = vmatprep.subr.bf16.mxu1 %v1476_v41 }
  0x52   : > { %1513 = vmatmul.mubr.msk.bf16.vlgmr.msra.gmra.mrb[8].mxu0 %vm589_vm0, %v1822_v11  ;;  %1514 = vmatmul.mubr.msk.bf16.vlgmr.msra.gmra.mrb[8].mxu1 %vm589_vm0, %v1822_v11 }
  0x53   : > { %852 = vmatpush1.bf16.msra.mxu0 %v1473_v46  ;;  %895 = vmatpush1.bf16.msra.mxu1 %v1475_v47 }
  0x54   : > { %853 = vmatprep.subr.bf16.mxu0 %v1498_v49  ;;  %896 = vmatprep.subr.bf16.mxu1 %v1500_v50 }
  0x55   : > { %883 = vmatprep.mubr.bf16.mxu0 %v1628_v48  ;;  %926 = vmatprep.mubr.bf16.mxu1 %v1628_v48 }
  0x57   : > { %854 = vmatpush1.bf16.msra.mxu0 %v1497_v55  ;;  %897 = vmatpush1.bf16.msra.mxu1 %v1499_v56 }
  0x58   : > { %937 = vmatprep.subr.bf16.mxu0 %v1478_v57  ;;  %980 = vmatprep.subr.bf16.mxu1 %v1480_v58 }
  0x5a   : > { %1515 = vmatmul.mubr.msk.bf16.vlgmr.msra.gmra.mrb[12].mxu0 %vm589_vm0, %v1822_v11  ;;  %1516 = vmatmul.mubr.msk.bf16.vlgmr.msra.gmra.mrb[12].mxu1 %vm589_vm0, %v1822_v11 }
  0x5b   : > { %938 = vmatpush1.bf16.msra.mxu0 %v1477_v63  ;;  %981 = vmatpush1.bf16.msra.mxu1 %v1479_v0 }
  0x5c   : > { %939 = vmatprep.subr.bf16.mxu0 %v1502_v1  ;;  %982 = vmatprep.subr.bf16.mxu1 %v1504_v2 }
  0x5d   : > { %969 = vmatprep.mubr.bf16.mxu0 %v1628_v48  ;;  %1012 = vmatprep.mubr.bf16.mxu1 %v1628_v48 }
  0x5f   : > { %940 = vmatpush1.bf16.msra.mxu0 %v1501_v7  ;;  %983 = vmatpush1.bf16.msra.mxu1 %v1503_v8 }
  0x60   : > { %1023 = vmatprep.subr.bf16.mxu0 %v1482_v9  ;;  %1066 = vmatprep.subr.bf16.mxu1 %v1484_v10 }
  0x62   : > { %1517 = vmatmul.mubr.msk.bf16.vlgmr.msra.gmra.mrb[16].mxu0 %vm589_vm0, %v1822_v11  ;;  %1518 = vmatmul.mubr.msk.bf16.vlgmr.msra.gmra.mrb[16].mxu1 %vm589_vm0, %v1822_v11 }
  0x63   : > { %1024 = vmatpush1.bf16.msra.mxu0 %v1481_v16  ;;  %1067 = vmatpush1.bf16.msra.mxu1 %v1483_v17 }
  0x64   : > { %1025 = vmatprep.subr.bf16.mxu0 %v1506_v18  ;;  %1068 = vmatprep.subr.bf16.mxu1 %v1508_v19 }
  0x65   : > { %1055 = vmatprep.mubr.bf16.mxu0 %v1628_v48  ;;  %1098 = vmatprep.mubr.bf16.mxu1 %v1628_v48 }
  0x67   : > { %1026 = vmatpush1.bf16.msra.mxu0 %v1505_v20  ;;  %1069 = vmatpush1.bf16.msra.mxu1 %v1507_v21 }
  0x6a   : > { %1519 = vmatmul.mubr.msk.bf16.vlgmr.msra.gmra.mrb[20].mxu0 %vm589_vm0, %v1822_v11  ;;  %1520 = vmatmul.mubr.msk.bf16.vlgmr.msra.gmra.mrb[20].mxu1 %vm589_vm0, %v1822_v11 }
  0xb3   : > { %v1892_v22 = vpop.permute.xlu0 %336 }
  0xb7   : > { %v1894_v24 = vpop.permute.xlu0 %341 }
 0x115   : > { %v627_v23 = vpop.f32.mrb[0].mxu0  ;;  %v670_v26 = vpop.f32.mrb[0].mxu1 }
 0x116   : > { %v628_v25 = vadd.f32 %v627_v23, %v1892_v22  ;;  %v629_v27 = vpop.f32.mrb[1].mxu0  ;;  %v671_v48 = vadd.f32 %v670_v26, %v1892_v22  ;;  %v672_v29 = vpop.f32.mrb[1].mxu1 }
 0x117   : > { %v630_v28 = vadd.f32 %v629_v27, %v1892_v22  ;;  %v631_v30 = vpop.f32.mrb[2].mxu0  ;;  %v673_v11 = vadd.f32 %v672_v29, %v1892_v22  ;;  %v674_v33 = vpop.f32.mrb[2].mxu1 }
 0x118   : > { %v1109_v31 = vmax.f32 %v628_v25, 0.0  ;;  %v632_v32 = vadd.f32 %v631_v30, %v1894_v24  ;;  %v633_v34 = vpop.f32.mrb[3].mxu0  ;;  %v1111_v35 = vmax.f32 %v671_v48, 0.0  ;;  %v675_v37 = vadd.f32 %v674_v33, %v1894_v24  ;;  %v676_v39 = vpop.f32.mrb[3].mxu1 }
 0x119   : > { %v1110_v36 = vmax.f32 %v630_v28, 0.0  ;;  %v634_v38 = vadd.f32 %v633_v34, %v1894_v24  ;;  %v1112_v40 = vmax.f32 %v673_v11, 0.0  ;;  %v677_v42 = vadd.f32 %v676_v39, %v1894_v24 }
 0x11a   : > { %v1133_v41 = vmax.f32 %v632_v32, 0.0  ;;  %v1135_v44 = vmax.f32 %v675_v37, 0.0 }
 0x11b   : > { %v1549_v43 = vpack.c.bf16 %v1110_v36, %v1109_v31  ;;  %v1134_v45 = vmax.f32 %v634_v38, 0.0  ;;  %v1550_v46 = vpack.c.bf16 %v1112_v40, %v1111_v35  ;;  %v1136_v47 = vmax.f32 %v677_v42, 0.0 }
 0x11d   : > { %1301 = vst [vmem:[%s1906_s11] sm:$0xff] %v1549_v43  ;;  %v1561_v49 = vpack.c.bf16 %v1134_v45, %v1133_v41  ;;  %v713_v50 = vpop.f32.mrb[4].mxu0  ;;  %1302 = vst [vmem:[%s1906_s11 + $0x8] sm:$0xff] %v1550_v46  ;;  %v1562_v51 = vpack.c.bf16 %v1136_v47, %v1135_v44  ;;  %v756_v53 = vpop.f32.mrb[4].mxu1 }
 0x11e   : > { %v714_v52 = vadd.f32 %v713_v50, %v1892_v22  ;;  %v715_v54 = vpop.f32.mrb[5].mxu0  ;;  %v757_v55 = vadd.f32 %v756_v53, %v1892_v22  ;;  %v758_v57 = vpop.f32.mrb[5].mxu1 }
 0x11f   : > { %1313 = vst [vmem:[%s1906_s11 + $0x60] sm:$0xff] %v1561_v49  ;;  %v716_v56 = vadd.f32 %v715_v54, %v1892_v22  ;;  %v717_v58 = vpop.f32.mrb[6].mxu0  ;;  %1314 = vst [vmem:[%s1906_s11 + $0x68] sm:$0xff] %v1562_v51  ;;  %v759_v60 = vadd.f32 %v758_v57, %v1892_v22  ;;  %v760_v62 = vpop.f32.mrb[6].mxu1 }
 0x120   : > { %v1113_v59 = vmax.f32 %v714_v52, 0.0  ;;  %v718_v61 = vadd.f32 %v717_v58, %v1894_v24  ;;  %v719_v63 = vpop.f32.mrb[7].mxu0  ;;  %v1115_v0 = vmax.f32 %v757_v55, 0.0  ;;  %v761_v2 = vadd.f32 %v760_v62, %v1894_v24  ;;  %v762_v4 = vpop.f32.mrb[7].mxu1 }
 0x121   : > { %v1114_v1 = vmax.f32 %v716_v56, 0.0  ;;  %v720_v3 = vadd.f32 %v719_v63, %v1894_v24  ;;  %v1116_v5 = vmax.f32 %v759_v60, 0.0  ;;  %v763_v7 = vadd.f32 %v762_v4, %v1894_v24 }
 0x122   : > { %v1137_v6 = vmax.f32 %v718_v61, 0.0  ;;  %v1139_v9 = vmax.f32 %v761_v2, 0.0 }
 0x123   : > { %v1551_v8 = vpack.c.bf16 %v1114_v1, %v1113_v59  ;;  %v1138_v10 = vmax.f32 %v720_v3, 0.0  ;;  %v1552_v12 = vpack.c.bf16 %v1116_v5, %v1115_v0  ;;  %v1140_v13 = vmax.f32 %v763_v7, 0.0 }
 0x125   : > { %1303 = vst [vmem:[%s1906_s11 + $0x10] sm:$0xff] %v1551_v8  ;;  %v1563_v14 = vpack.c.bf16 %v1138_v10, %v1137_v6  ;;  %v799_v15 = vpop.f32.mrb[8].mxu0  ;;  %1304 = vst [vmem:[%s1906_s11 + $0x18] sm:$0xff] %v1552_v12  ;;  %v1564_v16 = vpack.c.bf16 %v1140_v13, %v1139_v9  ;;  %v842_v18 = vpop.f32.mrb[8].mxu1 }
 0x126   : > { %v800_v17 = vadd.f32 %v799_v15, %v1892_v22  ;;  %v801_v19 = vpop.f32.mrb[9].mxu0  ;;  %v843_v20 = vadd.f32 %v842_v18, %v1892_v22  ;;  %v844_v23 = vpop.f32.mrb[9].mxu1 }
 0x127   : > { %1315 = vst [vmem:[%s1906_s11 + $0x70] sm:$0xff] %v1563_v14  ;;  %v802_v21 = vadd.f32 %v801_v19, %v1892_v22  ;;  %v803_v25 = vpop.f32.mrb[10].mxu0  ;;  %1316 = vst [vmem:[%s1906_s11 + $0x78] sm:$0xff] %v1564_v16  ;;  %v845_v27 = vadd.f32 %v844_v23, %v1892_v22  ;;  %v846_v28 = vpop.f32.mrb[10].mxu1 }
 0x128   : > { %v1117_v26 = vmax.f32 %v800_v17, 0.0  ;;  %v804_v48 = vadd.f32 %v803_v25, %v1894_v24  ;;  %v805_v29 = vpop.f32.mrb[11].mxu0  ;;  %v1119_v30 = vmax.f32 %v843_v20, 0.0  ;;  %v847_v11 = vadd.f32 %v846_v28, %v1894_v24  ;;  %v848_v33 = vpop.f32.mrb[11].mxu1 }
 0x129   : > { %v1118_v31 = vmax.f32 %v802_v21, 0.0  ;;  %v806_v32 = vadd.f32 %v805_v29, %v1894_v24  ;;  %v1120_v34 = vmax.f32 %v845_v27, 0.0  ;;  %v849_v36 = vadd.f32 %v848_v33, %v1894_v24 }
 0x12a   : > { %v1141_v35 = vmax.f32 %v804_v48, 0.0  ;;  %v1143_v38 = vmax.f32 %v847_v11, 0.0 }
 0x12b   : > { %v1553_v37 = vpack.c.bf16 %v1118_v31, %v1117_v26  ;;  %v1142_v39 = vmax.f32 %v806_v32, 0.0  ;;  %v1554_v40 = vpack.c.bf16 %v1120_v34, %v1119_v30  ;;  %v1144_v41 = vmax.f32 %v849_v36, 0.0 }
 0x12d   : > { %1305 = vst [vmem:[%s1906_s11 + $0x20] sm:$0xff] %v1553_v37  ;;  %v1565_v42 = vpack.c.bf16 %v1142_v39, %v1141_v35  ;;  %v885_v43 = vpop.f32.mrb[12].mxu0  ;;  %1306 = vst [vmem:[%s1906_s11 + $0x28] sm:$0xff] %v1554_v40  ;;  %v1566_v44 = vpack.c.bf16 %v1144_v41, %v1143_v38  ;;  %v928_v46 = vpop.f32.mrb[12].mxu1 }
 0x12e   : > { %v886_v45 = vadd.f32 %v885_v43, %v1892_v22  ;;  %v887_v47 = vpop.f32.mrb[13].mxu0  ;;  %v929_v49 = vadd.f32 %v928_v46, %v1892_v22  ;;  %v930_v51 = vpop.f32.mrb[13].mxu1 }
 0x12f   : > { %1317 = vst [vmem:[%s1906_s11 + $0x80] sm:$0xff] %v1565_v42  ;;  %v888_v50 = vadd.f32 %v887_v47, %v1892_v22  ;;  %v889_v52 = vpop.f32.mrb[14].mxu0  ;;  %1318 = vst [vmem:[%s1906_s11 + $0x88] sm:$0xff] %v1566_v44  ;;  %v931_v54 = vadd.f32 %v930_v51, %v1892_v22  ;;  %v932_v56 = vpop.f32.mrb[14].mxu1 }
 0x130   : > { %v1121_v53 = vmax.f32 %v886_v45, 0.0  ;;  %v890_v55 = vadd.f32 %v889_v52, %v1894_v24  ;;  %v891_v57 = vpop.f32.mrb[15].mxu0  ;;  %v1123_v58 = vmax.f32 %v929_v49, 0.0  ;;  %v933_v60 = vadd.f32 %v932_v56, %v1894_v24  ;;  %v934_v62 = vpop.f32.mrb[15].mxu1 }
 0x131   : > { %v1122_v59 = vmax.f32 %v888_v50, 0.0  ;;  %v892_v61 = vadd.f32 %v891_v57, %v1894_v24  ;;  %v1124_v63 = vmax.f32 %v931_v54, 0.0  ;;  %v935_v1 = vadd.f32 %v934_v62, %v1894_v24 }
 0x132   : > { %v1145_v0 = vmax.f32 %v890_v55, 0.0  ;;  %v1147_v3 = vmax.f32 %v933_v60, 0.0 }
 0x133   : > { %v1555_v2 = vpack.c.bf16 %v1122_v59, %v1121_v53  ;;  %v1146_v4 = vmax.f32 %v892_v61, 0.0  ;;  %v1556_v5 = vpack.c.bf16 %v1124_v63, %v1123_v58  ;;  %v1148_v6 = vmax.f32 %v935_v1, 0.0 }
 0x135   : > { %1307 = vst [vmem:[%s1906_s11 + $0x30] sm:$0xff] %v1555_v2  ;;  %v1567_v7 = vpack.c.bf16 %v1146_v4, %v1145_v0  ;;  %v971_v8 = vpop.f32.mrb[16].mxu0  ;;  %1308 = vst [vmem:[%s1906_s11 + $0x38] sm:$0xff] %v1556_v5  ;;  %v1568_v9 = vpack.c.bf16 %v1148_v6, %v1147_v3  ;;  %v1014_v12 = vpop.f32.mrb[16].mxu1  ;;  %v1349_v2 = vld [vmem:[%s1906_s11 + $0x8] sm:$0xff] (%p1679_p5)  ;;  %v1351_v3 = vld [vmem:[%s1906_s11 + $0x10] sm:$0xff] (%p1679_p5) }
 0x136   : > { %v972_v10 = vadd.f32 %v971_v8, %v1892_v22  ;;  %v973_v13 = vpop.f32.mrb[17].mxu0  ;;  %v1015_v14 = vadd.f32 %v1014_v12, %v1892_v22  ;;  %v1016_v16 = vpop.f32.mrb[17].mxu1  ;;  %v1353_v4 = vld [vmem:[%s1906_s11 + $0x18] sm:$0xff] (%p1679_p5)  ;;  %v1355_v5 = vld [vmem:[%s1906_s11 + $0x20] sm:$0xff] (%p1679_p5)  ;;  %v1357_v6 = vld [vmem:[%s1906_s11 + $0x28] sm:$0xff] (%p1679_p5)  ;;  %1350 = vst [vmem:[%s1985_s18 + $0x8] sm:$0xff] (%p1679_p5), %v1349_v2 }
 0x137   : > { %1319 = vst [vmem:[%s1906_s11 + $0x90] sm:$0xff] %v1567_v7  ;;  %v974_v15 = vadd.f32 %v973_v13, %v1892_v22  ;;  %v975_v17 = vpop.f32.mrb[18].mxu0  ;;  %1320 = vst [vmem:[%s1906_s11 + $0x98] sm:$0xff] %v1568_v9  ;;  %v1017_v19 = vadd.f32 %v1016_v16, %v1892_v22  ;;  %v1018_v21 = vpop.f32.mrb[18].mxu1  ;;  %v1375_v16 = vld [vmem:[%s1906_s11 + $0x70] sm:$0xff] (%p1679_p5) }
 0x138   : > { %v1125_v18 = vmax.f32 %v972_v10, 0.0  ;;  %v976_v20 = vadd.f32 %v975_v17, %v1894_v24  ;;  %v977_v23 = vpop.f32.mrb[19].mxu0  ;;  %v1127_v25 = vmax.f32 %v1015_v14, 0.0  ;;  %v1019_v27 = vadd.f32 %v1018_v21, %v1894_v24  ;;  %v1020_v28 = vpop.f32.mrb[19].mxu1  ;;  %1352 = vst [vmem:[%s1985_s18 + $0x10] sm:$0xff] (%p1679_p5), %v1351_v3  ;;  %1354 = vst [vmem:[%s1985_s18 + $0x18] sm:$0xff] (%p1679_p5), %v1353_v4 }
 0x139   : > { %v1126_v26 = vmax.f32 %v974_v15, 0.0  ;;  %v978_v48 = vadd.f32 %v977_v23, %v1894_v24  ;;  %v1128_v29 = vmax.f32 %v1017_v19, 0.0  ;;  %v1021_v31 = vadd.f32 %v1020_v28, %v1894_v24  ;;  %1356 = vst [vmem:[%s1985_s18 + $0x20] sm:$0xff] (%p1679_p5), %v1355_v5  ;;  %1358 = vst [vmem:[%s1985_s18 + $0x28] sm:$0xff] (%p1679_p5), %v1357_v6  ;;  %v1371_v14 = vld [vmem:[%s1906_s11 + $0x60] sm:$0xff] (%p1679_p5)  ;;  %v1373_v15 = vld [vmem:[%s1906_s11 + $0x68] sm:$0xff] (%p1679_p5) }
 0x13a   : > { %v1149_v30 = vmax.f32 %v976_v20, 0.0  ;;  %v1151_v32 = vmax.f32 %v1019_v27, 0.0  ;;  %1372 = vst [vmem:[%s1985_s18 + $0xc0] sm:$0xff] (%p1679_p5), %v1371_v14  ;;  %1374 = vst [vmem:[%s1985_s18 + $0xc8] sm:$0xff] (%p1679_p5), %v1373_v15  ;;  %v1377_v17 = vld [vmem:[%s1906_s11 + $0x78] sm:$0xff] (%p1679_p5)  ;;  %v1381_v19 = vld [vmem:[%s1906_s11 + $0x88] sm:$0xff] (%p1679_p5) }
 0x13b   : > { %v1557_v11 = vpack.c.bf16 %v1126_v26, %v1125_v18  ;;  %v1150_v33 = vmax.f32 %v978_v48, 0.0  ;;  %v1558_v34 = vpack.c.bf16 %v1128_v29, %v1127_v25  ;;  %v1152_v35 = vmax.f32 %v1021_v31, 0.0  ;;  %1376 = vst [vmem:[%s1985_s18 + $0xd0] sm:$0xff] (%p1679_p5), %v1375_v16  ;;  %v1379_v18 = vld [vmem:[%s1906_s11 + $0x80] sm:$0xff] (%p1679_p5)  ;;  %1378 = vst [vmem:[%s1985_s18 + $0xd8] sm:$0xff] (%p1679_p5), %v1377_v17 }
 0x13c   : > { %v1359_v7 = vld [vmem:[%s1906_s11 + $0x30] sm:$0xff] (%p1679_p5)  ;;  %v1361_v8 = vld [vmem:[%s1906_s11 + $0x38] sm:$0xff] (%p1679_p5)  ;;  %1380 = vst [vmem:[%s1985_s18 + $0xe0] sm:$0xff] (%p1679_p5), %v1379_v18  ;;  %1382 = vst [vmem:[%s1985_s18 + $0xe8] sm:$0xff] (%p1679_p5), %v1381_v19 }
 0x13d   : > { %1309 = vst [vmem:[%s1906_s11 + $0x40] sm:$0xff] %v1557_v11  ;;  %v1569_v36 = vpack.c.bf16 %v1150_v33, %v1149_v30  ;;  %v1057_v37 = vpop.f32.mrb[20].mxu0  ;;  %1310 = vst [vmem:[%s1906_s11 + $0x48] sm:$0xff] %v1558_v34  ;;  %v1570_v38 = vpack.c.bf16 %v1152_v35, %v1151_v32  ;;  %v1100_v40 = vpop.f32.mrb[20].mxu1 }
 0x13e   : > { %v1058_v39 = vadd.f32 %v1057_v37, %v1892_v22  ;;  %v1059_v41 = vpop.f32.mrb[21].mxu0  ;;  %v1101_v42 = vadd.f32 %v1100_v40, %v1892_v22  ;;  %v1102_v44 = vpop.f32.mrb[21].mxu1  ;;  %1360 = vst [vmem:[%s1985_s18 + $0x30] sm:$0xff] (%p1679_p5), %v1359_v7  ;;  %1362 = vst [vmem:[%s1985_s18 + $0x38] sm:$0xff] (%p1679_p5), %v1361_v8  ;;  %v1383_v20 = vld [vmem:[%s1906_s11 + $0x90] sm:$0xff] (%p1679_p5)  ;;  %v1385_v21 = vld [vmem:[%s1906_s11 + $0x98] sm:$0xff] (%p1679_p5) }
 0x13f   : > { %1321 = vst [vmem:[%s1906_s11 + $0xa0] sm:$0xff] %v1569_v36  ;;  %v1060_v43 = vadd.f32 %v1059_v41, %v1892_v22  ;;  %v1061_v45 = vpop.f32.mrb[22].mxu0  ;;  %1322 = vst [vmem:[%s1906_s11 + $0xa8] sm:$0xff] %v1570_v38  ;;  %v1103_v47 = vadd.f32 %v1102_v44, %v1892_v22  ;;  %v1104_v50 = vpop.f32.mrb[22].mxu1 }
 0x140   : > { %v1129_v46 = vmax.f32 %v1058_v39, 0.0  ;;  %v1062_v49 = vadd.f32 %v1061_v45, %v1894_v24  ;;  %v1063_v51 = vpop.f32.mrb[23].mxu0  ;;  %v1131_v52 = vmax.f32 %v1101_v42, 0.0  ;;  %v1105_v54 = vadd.f32 %v1104_v50, %v1894_v24  ;;  %v1106_v56 = vpop.f32.mrb[23].mxu1  ;;  %1384 = vst [vmem:[%s1985_s18 + $0xf0] sm:$0xff] (%p1679_p5), %v1383_v20  ;;  %1386 = vst [vmem:[%s1985_s18 + $0xf8] sm:$0xff] (%p1679_p5), %v1385_v21 }
 0x141   : > { %v1130_v53 = vmax.f32 %v1060_v43, 0.0  ;;  %v1064_v55 = vadd.f32 %v1063_v51, %v1894_v24  ;;  %v1132_v57 = vmax.f32 %v1103_v47, 0.0  ;;  %v1107_v59 = vadd.f32 %v1106_v56, %v1894_v24  ;;  %1331 = sbr.rel (!%p1679_p5) target bundleno = 336 (0x150), region = 59  ;;  %v1347_v24 = vld [vmem:[%s1906_s11] sm:$0xff] (%p1679_p5) }
 0x142   : > { %v1153_v58 = vmax.f32 %v1062_v49, 0.0  ;;  %v1155_v60 = vmax.f32 %v1105_v54, 0.0  ;;  %1348 = vst [vmem:[%s1985_s18] sm:$0xff] (%p1679_p5), %v1347_v24 }
 0x143   : > { %v1559_v22 = vpack.c.bf16 %v1130_v53, %v1129_v46  ;;  %v1154_v61 = vmax.f32 %v1064_v55, 0.0  ;;  %v1560_v62 = vpack.c.bf16 %v1132_v57, %v1131_v52  ;;  %v1156_v63 = vmax.f32 %v1107_v59, 0.0 }
 0x144   : > { %v1363_v9 = vld [vmem:[%s1906_s11 + $0x40] sm:$0xff] (%p1679_p5)  ;;  %v1365_v10 = vld [vmem:[%s1906_s11 + $0x48] sm:$0xff] (%p1679_p5) }
 0x145   : > { %1311 = vst [vmem:[%s1906_s11 + $0x50] sm:$0xff] %v1559_v22  ;;  %v1571_v0 = vpack.c.bf16 %v1154_v61, %v1153_v58  ;;  %1312 = vst [vmem:[%s1906_s11 + $0x58] sm:$0xff] %v1560_v62  ;;  %v1572_v1 = vpack.c.bf16 %v1156_v63, %v1155_v60 }
 0x146   : > { %1364 = vst [vmem:[%s1985_s18 + $0x40] sm:$0xff] (%p1679_p5), %v1363_v9  ;;  %1366 = vst [vmem:[%s1985_s18 + $0x48] sm:$0xff] (%p1679_p5), %v1365_v10  ;;  %v1387_v23 = vld [vmem:[%s1906_s11 + $0xa0] sm:$0xff] (%p1679_p5)  ;;  %v1389_v25 = vld [vmem:[%s1906_s11 + $0xa8] sm:$0xff] (%p1679_p5) }
 0x147   : > { %1323 = vst [vmem:[%s1906_s11 + $0xb0] sm:$0xff] %v1571_v0  ;;  %1324 = vst [vmem:[%s1906_s11 + $0xb8] sm:$0xff] %v1572_v1 }
 0x148   : > { %1388 = vst [vmem:[%s1985_s18 + $0x100] sm:$0xff] %v1387_v23  ;;  %1390 = vst [vmem:[%s1985_s18 + $0x108] sm:$0xff] %v1389_v25 }
 0x14c   : > { %v1367_v12 = vld [vmem:[%s1906_s11 + $0x50] sm:$0xff]  ;;  %v1369_v13 = vld [vmem:[%s1906_s11 + $0x58] sm:$0xff] }
 0x14d   : > { %1368 = vst [vmem:[%s1985_s18 + $0x50] sm:$0xff] %v1367_v12  ;;  %1370 = vst [vmem:[%s1985_s18 + $0x58] sm:$0xff] %v1369_v13 }
 0x14e   : > { %v1391_v26 = vld [vmem:[%s1906_s11 + $0xb0] sm:$0xff]  ;;  %v1393_v27 = vld [vmem:[%s1906_s11 + $0xb8] sm:$0xff] }
 0x14f   : > { %1392 = vst [vmem:[%s1985_s18 + $0x110] sm:$0xff] %v1391_v26  ;;  %1394 = vst [vmem:[%s1985_s18 + $0x118] sm:$0xff] %v1393_v27 }
 0x150 PF: > { %p10_p10 = scmp.ge.s32.totalorder %s1666_s16, 4   ;;  %s2044_s12 = smov %s1622_s13 }
 0x151   : > { %s2045_s13 = smov %s1677_s19  ;;  %s2046_s14 = smov %s1666_s16 }
 0x152   :  { %12 = sbr.rel (!%p10_p10) target bundleno = 2 (0x2), region = 113 }

// kernel: vae_forward.5
= control target key start
LH: loop header
LB: loop body
LE: loop exit
PB: predicated region body
PF: predicated region fallthrough
CT: control target
= control target key end

     0   :  { %v2054_v1 = vmov 0   ;;  %vm712_vm0 = vcmask 130048   ;;  %s3562_s1 = inlined_call_operand.vmem [shape: bf16[144,1536], index: 1, kind: input, shape index: {}]   ;;  %s3563_s0 = inlined_call_operand.vmem [shape: bf16[32,144], index: 0, kind: input, shape index: {}]   ;;  %s3564_s2 = inlined_call_operand.vmem [shape: f32[32,1], index: 2, kind: input, shape index: {}]   ;;  %s3565_s3 = inlined_call_operand.vmem [shape: f32[4,32,768], index: 3, kind: input, shape index: {}]   ;;  %s3566_s4 = inlined_call_operand.vmem [shape: f32[8,128], index: 4, kind: output, shape index: {}]  }
   0x1   :  { %v1886_v0 = vld [vmem:[%s3562_s1 + $0x4] ss:$48 sps:$4 sm:$0xff]   ;;  %1884 = vset.pattern.permute.xlu0 %v2054_v1  ;;  %1885 = vset.pattern.permute.xlu1 %v2054_v1  ;;  %v1888_v2 = vld [vmem:[%s3562_s1 + $0xc] ss:$48 sps:$4 sm:$0xff]   ;;  %v1890_v3 = vld [vmem:[%s3562_s1] ss:$48 sps:$4 sm:$0xff]  }
   0x2   :  { %719 = vmatprep.subr.bf16.mxu0 %v1886_v0  ;;  %v1891_v4 = vld [vmem:[%s3562_s1 + $0x8] ss:$48 sps:$4 sm:$0xff]   ;;  %772 = vmatprep.subr.bf16.mxu1 %v1888_v2  ;;  %v1892_v5 = vld [vmem:[%s3562_s1 + $0x64] ss:$48 sps:$4 sm:$0xff]   ;;  %v1894_v6 = vld [vmem:[%s3562_s1 + $0x6c] ss:$48 sps:$4 sm:$0xff]  }
   0x3   :  { %720 = vmatpush1.bf16.msra.mxu0 %v1890_v3  ;;  %773 = vmatpush1.bf16.msra.mxu1 %v1891_v4  ;;  %v1896_v7 = vld [vmem:[%s3562_s1 + $0x60] ss:$48 sps:$4 sm:$0xff]   ;;  %v1897_v8 = vld [vmem:[%s3562_s1 + $0x68] ss:$48 sps:$4 sm:$0xff]   ;;  %v1898_v9 = vld [vmem:[%s3562_s1 + $0xc4] ss:$48 sps:$4 sm:$0xff]  }
   0x4   :  { %721 = vmatprep.subr.bf16.mxu0 %v1892_v5  ;;  %774 = vmatprep.subr.bf16.mxu1 %v1894_v6  ;;  %v1900_v10 = vld [vmem:[%s3562_s1 + $0xcc] ss:$48 sps:$4 sm:$0xff]   ;;  %v1902_v11 = vld [vmem:[%s3562_s1 + $0xc0] ss:$48 sps:$4 sm:$0xff]   ;;  %v1903_v12 = vld [vmem:[%s3562_s1 + $0xc8] ss:$48 sps:$4 sm:$0xff]  }
   0x5   :  { %v1904_v13 = vld [vmem:[%s3562_s1 + $0x124] ss:$48 sps:$4 sm:$0xff]   ;;  %v1906_v14 = vld [vmem:[%s3562_s1 + $0x12c] ss:$48 sps:$4 sm:$0xff]   ;;  %v1908_v15 = vld [vmem:[%s3562_s1 + $0x120] ss:$48 sps:$4 sm:$0xff]  }
   0x6   :  { %v1909_v16 = vld [vmem:[%s3562_s1 + $0x128] ss:$48 sps:$4 sm:$0xff]   ;;  %v1910_v17 = vld [vmem:[%s3562_s1 + $0x184] ss:$48 sps:$4 sm:$0xff]   ;;  %v1912_v18 = vld [vmem:[%s3562_s1 + $0x18c] ss:$48 sps:$4 sm:$0xff]  }
   0x7   :  { %722 = vmatpush1.bf16.msra.mxu0 %v1896_v7  ;;  %775 = vmatpush1.bf16.msra.mxu1 %v1897_v8  ;;  %v1914_v19 = vld [vmem:[%s3562_s1 + $0x180] ss:$48 sps:$4 sm:$0xff]   ;;  %v1915_v20 = vld [vmem:[%s3562_s1 + $0x188] ss:$48 sps:$4 sm:$0xff]   ;;  %v1916_v21 = vld [vmem:[%s3562_s1 + $0x1e4] ss:$48 sps:$4 sm:$0xff]  }
   0x8   :  { %723 = vmatprep.subr.bf16.mxu0 %v1898_v9  ;;  %776 = vmatprep.subr.bf16.mxu1 %v1900_v10  ;;  %v1918_v22 = vld [vmem:[%s3562_s1 + $0x1ec] ss:$48 sps:$4 sm:$0xff]   ;;  %v1920_v23 = vld [vmem:[%s3562_s1 + $0x1e0] ss:$48 sps:$4 sm:$0xff]   ;;  %v1921_v24 = vld [vmem:[%s3562_s1 + $0x1e8] ss:$48 sps:$4 sm:$0xff]  }
   0x9   :  { %v1922_v25 = vld [vmem:[%s3562_s1 + $0x244] ss:$48 sps:$4 sm:$0xff]   ;;  %v1924_v26 = vld [vmem:[%s3562_s1 + $0x24c] ss:$48 sps:$4 sm:$0xff]   ;;  %v1926_v27 = vld [vmem:[%s3562_s1 + $0x240] ss:$48 sps:$4 sm:$0xff]  }
   0xa   :  { %v1927_v28 = vld [vmem:[%s3562_s1 + $0x248] ss:$48 sps:$4 sm:$0xff]   ;;  %v1928_v29 = vld [vmem:[%s3562_s1 + $0x2a4] ss:$48 sps:$4 sm:$0xff]   ;;  %v1930_v31 = vld [vmem:[%s3562_s1 + $0x2ac] ss:$48 sps:$4 sm:$0xff]  }
   0xb   :  { %724 = vmatpush1.bf16.msra.mxu0 %v1902_v11  ;;  %777 = vmatpush1.bf16.msra.mxu1 %v1903_v12  ;;  %v2170_v30 = vld [vmem:[%s3563_s0 + $0x4] ss:$8 sps:$4 sm:$0xff]   ;;  %v1932_v32 = vld [vmem:[%s3562_s1 + $0x2a0] ss:$48 sps:$4 sm:$0xff]   ;;  %v1933_v33 = vld [vmem:[%s3562_s1 + $0x2a8] ss:$48 sps:$4 sm:$0xff]  }
   0xc   :  { %725 = vmatprep.subr.bf16.mxu0 %v1904_v13  ;;  %778 = vmatprep.subr.bf16.mxu1 %v1906_v14  ;;  %v1934_v34 = vld [vmem:[%s3562_s1 + $0x304] ss:$48 sps:$4 sm:$0xff]   ;;  %v1936_v35 = vld [vmem:[%s3562_s1 + $0x30c] ss:$48 sps:$4 sm:$0xff]   ;;  %v1938_v36 = vld [vmem:[%s3562_s1 + $0x300] ss:$48 sps:$4 sm:$0xff]  }
   0xd   :  { %1783 = vmatprep.mubr.msk.bf16.mxu0 %vm712_vm0, %v2170_v30  ;;  %1785 = vmatprep.mubr.msk.bf16.mxu1 %vm712_vm0, %v2170_v30  ;;  %v1939_v37 = vld [vmem:[%s3562_s1 + $0x308] ss:$48 sps:$4 sm:$0xff]   ;;  %v1945_v38 = vld [vmem:[%s3562_s1 + $0x14] ss:$48 sps:$4 sm:$0xff]   ;;  %v1948_v39 = vld [vmem:[%s3562_s1 + $0x1c] ss:$48 sps:$4 sm:$0xff]  }
   0xe   :  { %v2206_v40 = vld [vmem:[%s3563_s0] ss:$8 sps:$4 sm:$0xff]   ;;  %v1951_v43 = vld [vmem:[%s3562_s1 + $0x74] ss:$48 sps:$4 sm:$0xff]   ;;  %v1954_v44 = vld [vmem:[%s3562_s1 + $0x7c] ss:$48 sps:$4 sm:$0xff]  }
   0xf   :  { %726 = vmatpush1.bf16.msra.mxu0 %v1908_v15  ;;  %779 = vmatpush1.bf16.msra.mxu1 %v1909_v16  ;;  %v1943_v41 = vld [vmem:[%s3562_s1 + $0x10] ss:$48 sps:$4 sm:$0xff]   ;;  %v1946_v42 = vld [vmem:[%s3562_s1 + $0x18] ss:$48 sps:$4 sm:$0xff]   ;;  %v1957_v47 = vld [vmem:[%s3562_s1 + $0xd4] ss:$48 sps:$4 sm:$0xff]  }
  0x10   :  { %727 = vmatprep.subr.bf16.mxu0 %v1910_v17  ;;  %780 = vmatprep.subr.bf16.mxu1 %v1912_v18  ;;  %v1949_v45 = vld [vmem:[%s3562_s1 + $0x70] ss:$48 sps:$4 sm:$0xff]   ;;  %v1952_v46 = vld [vmem:[%s3562_s1 + $0x78] ss:$48 sps:$4 sm:$0xff]   ;;  %v1960_v48 = vld [vmem:[%s3562_s1 + $0xdc] ss:$48 sps:$4 sm:$0xff]  }
  0x11   :  { %v1955_v49 = vld [vmem:[%s3562_s1 + $0xd0] ss:$48 sps:$4 sm:$0xff]   ;;  %v1958_v50 = vld [vmem:[%s3562_s1 + $0xd8] ss:$48 sps:$4 sm:$0xff]   ;;  %v1963_v51 = vld [vmem:[%s3562_s1 + $0x134] ss:$48 sps:$4 sm:$0xff]  }
  0x12   :  { %v1966_v52 = vld [vmem:[%s3562_s1 + $0x13c] ss:$48 sps:$4 sm:$0xff]   ;;  %v2254_v54 = vld [vmem:[%s3563_s0 + $0x10] ss:$8 sps:$4 sm:$0xff]   ;;  %v1969_v57 = vld [vmem:[%s3562_s1 + $0x194] ss:$48 sps:$4 sm:$0xff]  }
  0x13   :  { %728 = vmatpush1.bf16.msra.mxu0 %v1914_v19  ;;  %781 = vmatpush1.bf16.msra.mxu1 %v1915_v20  ;;  %v2249_v53 = vld [vmem:[%s3563_s0 + $0x14] ss:$8 sps:$4 sm:$0xff]   ;;  %v1961_v55 = vld [vmem:[%s3562_s1 + $0x130] ss:$48 sps:$4 sm:$0xff]   ;;  %v1964_v56 = vld [vmem:[%s3562_s1 + $0x138] ss:$48 sps:$4 sm:$0xff]  }
  0x14   :  { %729 = vmatprep.subr.bf16.mxu0 %v1916_v21  ;;  %782 = vmatprep.subr.bf16.mxu1 %v1918_v22  ;;  %v1972_v58 = vld [vmem:[%s3562_s1 + $0x19c] ss:$48 sps:$4 sm:$0xff]   ;;  %v1967_v59 = vld [vmem:[%s3562_s1 + $0x190] ss:$48 sps:$4 sm:$0xff]   ;;  %v1970_v60 = vld [vmem:[%s3562_s1 + $0x198] ss:$48 sps:$4 sm:$0xff]  }
  0x15   :  { %v1975_v61 = vld [vmem:[%s3562_s1 + $0x1f4] ss:$48 sps:$4 sm:$0xff]   ;;  %v1978_v62 = vld [vmem:[%s3562_s1 + $0x1fc] ss:$48 sps:$4 sm:$0xff]   ;;  %v1973_v63 = vld [vmem:[%s3562_s1 + $0x1f0] ss:$48 sps:$4 sm:$0xff]  }
  0x16   :  { %v1976_v0 = vld [vmem:[%s3562_s1 + $0x1f8] ss:$48 sps:$4 sm:$0xff]   ;;  %v1981_v1 = vld [vmem:[%s3562_s1 + $0x254] ss:$48 sps:$4 sm:$0xff]   ;;  %v1984_v2 = vld [vmem:[%s3562_s1 + $0x25c] ss:$48 sps:$4 sm:$0xff]  }
  0x17   :  { %730 = vmatpush1.bf16.msra.mxu0 %v1920_v23  ;;  %783 = vmatpush1.bf16.msra.mxu1 %v1921_v24  ;;  %v1979_v3 = vld [vmem:[%s3562_s1 + $0x250] ss:$48 sps:$4 sm:$0xff]   ;;  %v1982_v4 = vld [vmem:[%s3562_s1 + $0x258] ss:$48 sps:$4 sm:$0xff]   ;;  %v1990_v5 = vld [vmem:[%s3562_s1 + $0x2b4] ss:$48 sps:$4 sm:$0xff]  }
  0x18   :  { %731 = vmatprep.subr.bf16.mxu0 %v1922_v25  ;;  %784 = vmatprep.subr.bf16.mxu1 %v1924_v26  ;;  %v1993_v6 = vld [vmem:[%s3562_s1 + $0x2bc] ss:$48 sps:$4 sm:$0xff]   ;;  %v1988_v7 = vld [vmem:[%s3562_s1 + $0x2b0] ss:$48 sps:$4 sm:$0xff]   ;;  %v1991_v8 = vld [vmem:[%s3562_s1 + $0x2b8] ss:$48 sps:$4 sm:$0xff]  }
  0x19   :  { %v1996_v9 = vld [vmem:[%s3562_s1 + $0x314] ss:$48 sps:$4 sm:$0xff]   ;;  %v1999_v10 = vld [vmem:[%s3562_s1 + $0x31c] ss:$48 sps:$4 sm:$0xff]   ;;  %v1994_v11 = vld [vmem:[%s3562_s1 + $0x310] ss:$48 sps:$4 sm:$0xff]  }
  0x1a   :  { %v1997_v12 = vld [vmem:[%s3562_s1 + $0x318] ss:$48 sps:$4 sm:$0xff]   ;;  %v2002_v13 = vld [vmem:[%s3562_s1 + $0x24] ss:$48 sps:$4 sm:$0xff]   ;;  %v2005_v14 = vld [vmem:[%s3562_s1 + $0x2c] ss:$48 sps:$4 sm:$0xff]  }
  0x1b   :  { %732 = vmatpush1.bf16.msra.mxu0 %v1926_v27  ;;  %785 = vmatpush1.bf16.msra.mxu1 %v1927_v28  ;;  %v2000_v15 = vld [vmem:[%s3562_s1 + $0x20] ss:$48 sps:$4 sm:$0xff]   ;;  %v2003_v16 = vld [vmem:[%s3562_s1 + $0x28] ss:$48 sps:$4 sm:$0xff]   ;;  %v2008_v17 = vld [vmem:[%s3562_s1 + $0x84] ss:$48 sps:$4 sm:$0xff]  }
  0x1c   :  { %733 = vmatprep.subr.bf16.mxu0 %v1928_v29  ;;  %786 = vmatprep.subr.bf16.mxu1 %v1930_v31  ;;  %v2011_v18 = vld [vmem:[%s3562_s1 + $0x8c] ss:$48 sps:$4 sm:$0xff]   ;;  %v2006_v19 = vld [vmem:[%s3562_s1 + $0x80] ss:$48 sps:$4 sm:$0xff]   ;;  %v2009_v20 = vld [vmem:[%s3562_s1 + $0x88] ss:$48 sps:$4 sm:$0xff]  }
  0x1d   :  { %v130_v21 = vld [vmem:[%s3564_s2] sm:$0xff]  ;;  %v132_v22 = vld [vmem:[%s3564_s2 + $0x10] sm:$0xff]  ;;  %v2017_v24 = vld [vmem:[%s3562_s1 + $0xec] ss:$48 sps:$4 sm:$0xff]  }
  0x1e   :  { %v2014_v23 = vld [vmem:[%s3562_s1 + $0xe4] ss:$48 sps:$4 sm:$0xff]   ;;  %136 = vperm.xlu0 %1884, %v130_v21   ;;  %146 = vperm.xlu1 %1885, %v132_v22   ;;  %v2012_v25 = vld [vmem:[%s3562_s1 + $0xe0] ss:$48 sps:$4 sm:$0xff]   ;;  %v2015_v26 = vld [vmem:[%s3562_s1 + $0xe8] ss:$48 sps:$4 sm:$0xff]  }
  0x1f   :  { %734 = vmatpush1.bf16.msra.mxu0 %v1932_v32  ;;  %787 = vmatpush1.bf16.msra.mxu1 %v1933_v33  ;;  %v2020_v27 = vld [vmem:[%s3562_s1 + $0x144] ss:$48 sps:$4 sm:$0xff]   ;;  %v2023_v28 = vld [vmem:[%s3562_s1 + $0x14c] ss:$48 sps:$4 sm:$0xff]   ;;  %v2018_v29 = vld [vmem:[%s3562_s1 + $0x140] ss:$48 sps:$4 sm:$0xff]  }
  0x20   :  { %735 = vmatprep.subr.bf16.mxu0 %v1934_v34  ;;  %788 = vmatprep.subr.bf16.mxu1 %v1936_v35  ;;  %v2021_v31 = vld [vmem:[%s3562_s1 + $0x148] ss:$48 sps:$4 sm:$0xff]   ;;  %v2026_v34 = vld [vmem:[%s3562_s1 + $0x1a4] ss:$48 sps:$4 sm:$0xff]   ;;  %v2029_v35 = vld [vmem:[%s3562_s1 + $0x1ac] ss:$48 sps:$4 sm:$0xff]  }
  0x21   :  { %v131_v32 = vld [vmem:[%s3564_s2 + $0x8] sm:$0xff]  ;;  %v133_v33 = vld [vmem:[%s3564_s2 + $0x18] sm:$0xff] }
  0x22   :  { %141 = vperm.xlu0 %1884, %v131_v32   ;;  %151 = vperm.xlu1 %1885, %v133_v33  }
  0x23   :  { %736 = vmatpush1.bf16.msra.mxu0 %v1938_v36  ;;  %789 = vmatpush1.bf16.msra.mxu1 %v1939_v37  ;;  %v2024_v36 = vld [vmem:[%s3562_s1 + $0x1a0] ss:$48 sps:$4 sm:$0xff]   ;;  %v2027_v37 = vld [vmem:[%s3562_s1 + $0x1a8] ss:$48 sps:$4 sm:$0xff]  }
  0x24   :  { %825 = vmatprep.subr.bf16.mxu0 %v1945_v38  ;;  %878 = vmatprep.subr.bf16.mxu1 %v1948_v39  ;;  %v2032_v38 = vld [vmem:[%s3562_s1 + $0x204] ss:$48 sps:$4 sm:$0xff]   ;;  %v2030_v39 = vld [vmem:[%s3562_s1 + $0x200] ss:$48 sps:$4 sm:$0xff]  }
  0x26   :  { %752 = vmatmul.mubr.bf16.vlgmr.msra.gmra.mrb[0].mxu0 %v2206_v40  ;;  %805 = vmatmul.mubr.bf16.vlgmr.msra.gmra.mrb[0].mxu1 %v2206_v40 }
  0x27   :  { %826 = vmatpush1.bf16.msra.mxu0 %v1943_v41  ;;  %879 = vmatpush1.bf16.msra.mxu1 %v1946_v42  ;;  %v2033_v41 = vld [vmem:[%s3562_s1 + $0x208] ss:$48 sps:$4 sm:$0xff]   ;;  %v2038_v42 = vld [vmem:[%s3562_s1 + $0x264] ss:$48 sps:$4 sm:$0xff]  }
  0x28   :  { %827 = vmatprep.subr.bf16.mxu0 %v1951_v43  ;;  %880 = vmatprep.subr.bf16.mxu1 %v1954_v44  ;;  %v2041_v43 = vld [vmem:[%s3562_s1 + $0x26c] ss:$48 sps:$4 sm:$0xff]   ;;  %v2036_v44 = vld [vmem:[%s3562_s1 + $0x260] ss:$48 sps:$4 sm:$0xff]  }
  0x29   :  { %1784 = vmatprep.mubr.msk.bf16.mxu0 %vm712_vm0, %v2249_v53  ;;  %1786 = vmatprep.mubr.msk.bf16.mxu1 %vm712_vm0, %v2249_v53 }
  0x2b   :  { %828 = vmatpush1.bf16.msra.mxu0 %v1949_v45  ;;  %881 = vmatpush1.bf16.msra.mxu1 %v1952_v46  ;;  %v2039_v45 = vld [vmem:[%s3562_s1 + $0x268] ss:$48 sps:$4 sm:$0xff]   ;;  %v2044_v46 = vld [vmem:[%s3562_s1 + $0x2c4] ss:$48 sps:$4 sm:$0xff]  }
  0x2c   :  { %829 = vmatprep.subr.bf16.mxu0 %v1957_v47  ;;  %882 = vmatprep.subr.bf16.mxu1 %v1960_v48  ;;  %v2047_v47 = vld [vmem:[%s3562_s1 + $0x2cc] ss:$48 sps:$4 sm:$0xff]   ;;  %v2042_v48 = vld [vmem:[%s3562_s1 + $0x2c0] ss:$48 sps:$4 sm:$0xff]  }
  0x2e   :  { %762 = vmatmul.mubr.bf16.gmra.mrb[4].mxu0 %v2254_v54  ;;  %815 = vmatmul.mubr.bf16.gmra.mrb[4].mxu1 %v2254_v54 }
  0x2f   :  { %830 = vmatpush1.bf16.msra.mxu0 %v1955_v49  ;;  %883 = vmatpush1.bf16.msra.mxu1 %v1958_v50  ;;  %v2045_v49 = vld [vmem:[%s3562_s1 + $0x2c8] ss:$48 sps:$4 sm:$0xff]   ;;  %v2050_v50 = vld [vmem:[%s3562_s1 + $0x324] ss:$48 sps:$4 sm:$0xff]  }
  0x30   :  { %831 = vmatprep.subr.bf16.mxu0 %v1963_v51  ;;  %884 = vmatprep.subr.bf16.mxu1 %v1966_v52  ;;  %v2053_v51 = vld [vmem:[%s3562_s1 + $0x32c] ss:$48 sps:$4 sm:$0xff]   ;;  %v2048_v52 = vld [vmem:[%s3562_s1 + $0x320] ss:$48 sps:$4 sm:$0xff]  }
  0x31   :  { %1787 = vmatprep.mubr.msk.bf16.mxu0 %vm712_vm0, %v2170_v30  ;;  %1789 = vmatprep.mubr.msk.bf16.mxu1 %vm712_vm0, %v2170_v30 }
  0x33   :  { %832 = vmatpush1.bf16.msra.mxu0 %v1961_v55  ;;  %885 = vmatpush1.bf16.msra.mxu1 %v1964_v56  ;;  %v2051_v55 = vld [vmem:[%s3562_s1 + $0x328] ss:$48 sps:$4 sm:$0xff]  }
  0x34   :  { %833 = vmatprep.subr.bf16.mxu0 %v1969_v57  ;;  %886 = vmatprep.subr.bf16.mxu1 %v1972_v58 }
  0x37   :  { %834 = vmatpush1.bf16.msra.mxu0 %v1967_v59  ;;  %887 = vmatpush1.bf16.msra.mxu1 %v1970_v60  ;;  %v2483_v60 = vld [vmem:[%s3565_s3 + $0xc0] sm:$0xff] }
  0x38   :  { %835 = vmatprep.subr.bf16.mxu0 %v1975_v61  ;;  %888 = vmatprep.subr.bf16.mxu1 %v1978_v62 }
  0x3b   :  { %836 = vmatpush1.bf16.msra.mxu0 %v1973_v63  ;;  %889 = vmatpush1.bf16.msra.mxu1 %v1976_v0  ;;  %v2494_v63 = vld [vmem:[%s3565_s3 + $0x240] sm:$0xff] }
  0x3c   :  { %837 = vmatprep.subr.bf16.mxu0 %v1981_v1  ;;  %890 = vmatprep.subr.bf16.mxu1 %v1984_v2  ;;  %v2500_v1 = vld [vmem:[%s3565_s3 + $0x8] sm:$0xff] }
  0x3d   :  { %v2505_v2 = vld [vmem:[%s3565_s3 + $0xc8] sm:$0xff] }
  0x3f   :  { %838 = vmatpush1.bf16.msra.mxu0 %v1979_v3  ;;  %891 = vmatpush1.bf16.msra.mxu1 %v1982_v4 }
  0x40   :  { %839 = vmatprep.subr.bf16.mxu0 %v1990_v5  ;;  %892 = vmatprep.subr.bf16.mxu1 %v1993_v6  ;;  %v2510_v6 = vld [vmem:[%s3565_s3 + $0x188] sm:$0xff] }
  0x43   :  { %840 = vmatpush1.bf16.msra.mxu0 %v1988_v7  ;;  %893 = vmatpush1.bf16.msra.mxu1 %v1991_v8  ;;  %v2515_v7 = vld [vmem:[%s3565_s3 + $0x248] sm:$0xff] }
  0x44   :  { %841 = vmatprep.subr.bf16.mxu0 %v1996_v9  ;;  %894 = vmatprep.subr.bf16.mxu1 %v1999_v10 }
  0x47   :  { %842 = vmatpush1.bf16.msra.mxu0 %v1994_v11  ;;  %895 = vmatpush1.bf16.msra.mxu1 %v1997_v12 }
  0x48   :  { %931 = vmatprep.subr.bf16.mxu0 %v2002_v13  ;;  %984 = vmatprep.subr.bf16.mxu1 %v2005_v14  ;;  %v2521_v13 = vld [vmem:[%s3565_s3 + $0x10] sm:$0xff] }
  0x49   :  { %3651 = vst [vmem:[#allocation3_spill] sm:$0xff] %v2521_v13  ;;  %v2526_v14 = vld [vmem:[%s3565_s3 + $0xd0] sm:$0xff] }
  0x4a   :  { %858 = vmatmul.mubr.bf16.vlgmr.msra.gmra.mrb[8].mxu0 %v2206_v40  ;;  %911 = vmatmul.mubr.bf16.vlgmr.msra.gmra.mrb[8].mxu1 %v2206_v40  ;;  %3652 = vst [vmem:[#allocation4_spill] sm:$0xff] %v2526_v14 }
  0x4b   :  { %932 = vmatpush1.bf16.msra.mxu0 %v2000_v15  ;;  %985 = vmatpush1.bf16.msra.mxu1 %v2003_v16  ;;  %v2531_v15 = vld [vmem:[%s3565_s3 + $0x190] sm:$0xff] }
  0x4c   :  { %933 = vmatprep.subr.bf16.mxu0 %v2008_v17  ;;  %986 = vmatprep.subr.bf16.mxu1 %v2011_v18  ;;  %3653 = vst [vmem:[#allocation5_spill] sm:$0xff] %v2531_v15 }
  0x4d   :  { %1788 = vmatprep.mubr.msk.bf16.mxu0 %vm712_vm0, %v2249_v53  ;;  %1790 = vmatprep.mubr.msk.bf16.mxu1 %vm712_vm0, %v2249_v53 }
  0x4f   :  { %934 = vmatpush1.bf16.msra.mxu0 %v2006_v19  ;;  %987 = vmatpush1.bf16.msra.mxu1 %v2009_v20 }
  0x50   :  { %935 = vmatprep.subr.bf16.mxu0 %v2014_v23  ;;  %988 = vmatprep.subr.bf16.mxu1 %v2017_v24 }
  0x52   :  { %868 = vmatmul.mubr.bf16.gmra.mrb[12].mxu0 %v2254_v54  ;;  %921 = vmatmul.mubr.bf16.gmra.mrb[12].mxu1 %v2254_v54 }
  0x53   :  { %936 = vmatpush1.bf16.msra.mxu0 %v2012_v25  ;;  %989 = vmatpush1.bf16.msra.mxu1 %v2015_v26 }
  0x54   :  { %937 = vmatprep.subr.bf16.mxu0 %v2020_v27  ;;  %990 = vmatprep.subr.bf16.mxu1 %v2023_v28  ;;  %v2547_v27 = vld [vmem:[%s3565_s3 + $0x250] sm:$0xff] }
  0x55   :  { %1791 = vmatprep.mubr.msk.bf16.mxu0 %vm712_vm0, %v2170_v30  ;;  %1793 = vmatprep.mubr.msk.bf16.mxu1 %vm712_vm0, %v2170_v30  ;;  %v2035_v30 = vld [vmem:[%s3562_s1 + $0x20c] ss:$48 sps:$4 sm:$0xff]   ;;  %3654 = vst [vmem:[#allocation6_spill] sm:$0xff] %v2547_v27 }
  0x57   :  { %938 = vmatpush1.bf16.msra.mxu0 %v2018_v29  ;;  %991 = vmatpush1.bf16.msra.mxu1 %v2021_v31 }
  0x58   :  { %939 = vmatprep.subr.bf16.mxu0 %v2026_v34  ;;  %992 = vmatprep.subr.bf16.mxu1 %v2029_v35  ;;  %v2552_v34 = vld [vmem:[%s3565_s3 + $0x18] sm:$0xff] }
  0x59   :  { %3655 = vst [vmem:[#allocation7_spill] sm:$0xff] %v2552_v34  ;;  %v2557_v35 = vld [vmem:[%s3565_s3 + $0xd8] sm:$0xff] }
  0x5a   :  { %3656 = vst [vmem:[#allocation8_spill] sm:$0xff] %v2557_v35 }
  0x5b   :  { %940 = vmatpush1.bf16.msra.mxu0 %v2024_v36  ;;  %993 = vmatpush1.bf16.msra.mxu1 %v2027_v37  ;;  %v2562_v36 = vld [vmem:[%s3565_s3 + $0x198] sm:$0xff] }
  0x5c   :  { %941 = vmatprep.subr.bf16.mxu0 %v2032_v38  ;;  %994 = vmatprep.subr.bf16.mxu1 %v2035_v30  ;;  %3657 = vst [vmem:[#allocation9_spill] sm:$0xff] %v2562_v36  ;;  %v2567_v30 = vld [vmem:[%s3565_s3 + $0x258] sm:$0xff] }
  0x5d   :  { %3658 = vst [vmem:[#allocation10_spill] sm:$0xff] %v2567_v30 }
  0x5f   :  { %942 = vmatpush1.bf16.msra.mxu0 %v2030_v39  ;;  %995 = vmatpush1.bf16.msra.mxu1 %v2033_v41 }
  0x60   :  { %943 = vmatprep.subr.bf16.mxu0 %v2038_v42  ;;  %996 = vmatprep.subr.bf16.mxu1 %v2041_v43 }
  0x63   :  { %944 = vmatpush1.bf16.msra.mxu0 %v2036_v44  ;;  %997 = vmatpush1.bf16.msra.mxu1 %v2039_v45 }
  0x64   :  { %945 = vmatprep.subr.bf16.mxu0 %v2044_v46  ;;  %998 = vmatprep.subr.bf16.mxu1 %v2047_v47 }
  0x67   :  { %946 = vmatpush1.bf16.msra.mxu0 %v2042_v48  ;;  %999 = vmatpush1.bf16.msra.mxu1 %v2045_v49 }
  0x68   :  { %947 = vmatprep.subr.bf16.mxu0 %v2050_v50  ;;  %1000 = vmatprep.subr.bf16.mxu1 %v2053_v51 }
  0x6b   :  { %948 = vmatpush1.bf16.msra.mxu0 %v2048_v52  ;;  %1001 = vmatpush1.bf16.msra.mxu1 %v2051_v55 }
  0x6e   :  { %964 = vmatmul.mubr.bf16.vlgmr.msra.gmra.mrb[16].mxu0 %v2206_v40  ;;  %1017 = vmatmul.mubr.bf16.vlgmr.msra.gmra.mrb[16].mxu1 %v2206_v40  ;;  %v2478_v40 = vld [vmem:[%s3565_s3] sm:$0xff] }
  0x6f   :  { %1792 = vmatprep.mubr.msk.bf16.mxu0 %vm712_vm0, %v2249_v53  ;;  %1794 = vmatprep.mubr.msk.bf16.mxu1 %vm712_vm0, %v2249_v53  ;;  %v2488_v53 = vld [vmem:[%s3565_s3 + $0x180] sm:$0xff] }
  0x76   :  { %974 = vmatmul.mubr.bf16.gmra.mrb[20].mxu0 %v2254_v54  ;;  %1027 = vmatmul.mubr.bf16.gmra.mrb[20].mxu1 %v2254_v54 }
  0x9d   :  { %v2472_v56 = vpop.permute.xlu0 %136 }
  0x9e   :  { %3650 = vst [vmem:[#allocation2_spill] sm:$0xff] %v2472_v56 }
  0xa1   :  { %v2573_v55 = vpop.permute.xlu0 %141 }
  0xa2   :  { %3659 = vst [vmem:[#allocation11_spill] sm:$0xff] %v2573_v55 }
  0xf9   :  { %v753_v57 = vpop.f32.mrb[0].mxu0  ;;  %v806_v58 = vpop.f32.mrb[0].mxu1 }
  0xfa   :  { %v754_v59 = vadd.f32 %v753_v57, %v2472_v56  ;;  %v755_v54 = vpop.f32.mrb[1].mxu0  ;;  %v807_v61 = vadd.f32 %v806_v58, %v2472_v56  ;;  %v808_v62 = vpop.f32.mrb[1].mxu1 }
  0xfb   :  { %v756_v0 = vadd.f32 %v755_v54, %v2472_v56  ;;  %v757_v3 = vpop.f32.mrb[2].mxu0  ;;  %v810_v4 = vpop.f32.mrb[2].mxu1  ;;  %v809_v10 = vadd.f32 %v808_v62, %v2472_v56 }
  0xfc   :  { %v1037_v5 = vmax.f32 %v754_v59, 0.0  ;;  %v1039_v8 = vmax.f32 %v807_v61, 0.0  ;;  %v759_v9 = vpop.f32.mrb[3].mxu0  ;;  %v812_v11 = vpop.f32.mrb[3].mxu1 }
  0xfd   :  { %v1038_v12 = vmax.f32 %v756_v0, 0.0  ;;  %v1040_v28 = vmax.f32 %v809_v10, 0.0  ;;  %v758_v0 = vadd.f32 %v757_v3, %v2573_v55  ;;  %v2602_v3 = vld [vmem:[%s3565_s3 + $0x1b0] sm:$0xff] }
  0xfe   :  { %v1113_v16 = vmul.f32 %v2478_v40, %v1037_v5  ;;  %v1259_v17 = vmul.f32 %v2483_v60, %v1037_v5  ;;  %v1403_v18 = vmul.f32 %v2488_v53, %v1037_v5  ;;  %v1547_v19 = vmul.f32 %v2494_v63, %v1037_v5  ;;  %v2585_v5 = vpop.permute.xlu1 %146  ;;  %3661 = vst [vmem:[#allocation13_spill] sm:$0xff] %v2602_v3 }
  0xff   :  { %v1114_v20 = vmul.f32 %v2500_v1, %v1038_v12  ;;  %v1260_v21 = vmul.f32 %v2505_v2, %v1038_v12  ;;  %v1404_v22 = vmul.f32 %v2510_v6, %v1038_v12  ;;  %v1548_v23 = vmul.f32 %v2515_v7, %v1038_v12  ;;  %v2591_v12 = vld [vmem:[%s3565_s3 + $0x30] sm:$0xff] }
 0x100   :  { %v1115_v24 = vmul.f32 %v2521_v13, %v1039_v8  ;;  %v1261_v25 = vmul.f32 %v2526_v14, %v1039_v8  ;;  %v1405_v26 = vmul.f32 %v2531_v15, %v1039_v8  ;;  %v1549_v45 = vmul.f32 %v2547_v27, %v1039_v8  ;;  %v2786_v14 = vld [vmem:[%s3565_s3 + $0x2d8] sm:$0xff] }
 0x101   :  { %v1137_v29 = vadd.f32 %v1114_v20, %v1113_v16  ;;  %v1283_v31 = vadd.f32 %v1260_v21, %v1259_v17  ;;  %v1427_v32 = vadd.f32 %v1404_v22, %v1403_v18  ;;  %v1571_v33 = vadd.f32 %v1548_v23, %v1547_v19  ;;  %v763_v37 = vpop.f32.mrb[4].mxu0  ;;  %v816_v38 = vpop.f32.mrb[4].mxu1  ;;  %v2596_v16 = vld [vmem:[%s3565_s3 + $0xf0] sm:$0xff]  ;;  %v2613_v20 = vld [vmem:[%s3565_s3 + $0x38] sm:$0xff]  ;;  %3687 = vst [vmem:[#allocation39_spill] sm:$0xff] %v2786_v14 }
 0x102   :  { %v765_v39 = vpop.f32.mrb[5].mxu0  ;;  %v818_v41 = vpop.f32.mrb[5].mxu1  ;;  %v1116_v48 = vmul.f32 %v2552_v34, %v1040_v28  ;;  %v1262_v49 = vmul.f32 %v2557_v35, %v1040_v28  ;;  %v1406_v50 = vmul.f32 %v2562_v36, %v1040_v28  ;;  %v1550_v58 = vmul.f32 %v2567_v30, %v1040_v28  ;;  %3660 = vst [vmem:[#allocation12_spill] sm:$0xff] %v2596_v16  ;;  %v2731_v34 = vld [vmem:[%s3565_s3 + $0x2a0] sm:$0xff] }
 0x103   :  { %v1138_v42 = vadd.f32 %v1137_v29, %v1115_v24  ;;  %v1284_v43 = vadd.f32 %v1283_v31, %v1261_v25  ;;  %v1428_v44 = vadd.f32 %v1427_v32, %v1405_v26  ;;  %v767_v46 = vpop.f32.mrb[6].mxu0  ;;  %v820_v47 = vpop.f32.mrb[6].mxu1  ;;  %v1572_v57 = vadd.f32 %v1571_v33, %v1549_v45  ;;  %3663 = vst [vmem:[#allocation15_spill] sm:$0xff] %v2613_v20  ;;  %v2636_v24 = vld [vmem:[%s3565_s3 + $0x278] sm:$0xff]  ;;  %v2648_v31 = vld [vmem:[%s3565_s3 + $0x40] sm:$0xff] }
 0x104   :  { %v769_v51 = vpop.f32.mrb[7].mxu0  ;;  %v822_v52 = vpop.f32.mrb[7].mxu1  ;;  %v760_v8 = vadd.f32 %v759_v9, %v2573_v55  ;;  %v1049_v10 = vmax.f32 %v758_v0, 0.0  ;;  %v811_v17 = vadd.f32 %v810_v4, %v2573_v55  ;;  %v2607_v9 = vld [vmem:[%s3565_s3 + $0x270] sm:$0xff]  ;;  %v813_v19 = vadd.f32 %v812_v11, %v2573_v55  ;;  %v2618_v4 = vld [vmem:[%s3565_s3 + $0xf8] sm:$0xff]  ;;  %3667 = vst [vmem:[#allocation19_spill] sm:$0xff] %v2636_v24 }
 0x105   :  { %v2576_v59 = vadd.f32 %v1138_v42, %v1116_v48  ;;  %v2578_v54 = vadd.f32 %v1284_v43, %v1262_v49  ;;  %v2580_v61 = vadd.f32 %v1428_v44, %v1406_v50  ;;  %v2582_v62 = vadd.f32 %v1572_v57, %v1550_v58  ;;  %3662 = vst [vmem:[#allocation14_spill] sm:$0xff] %v2607_v9  ;;  %v2620_v21 = vpop.permute.xlu1 %151  ;;  %v2631_v11 = vld [vmem:[%s3565_s3 + $0x1b8] sm:$0xff]  ;;  %v2653_v32 = vld [vmem:[%s3565_s3 + $0x100] sm:$0xff]  ;;  %v2687_v57 = vld [vmem:[%s3565_s3 + $0x108] sm:$0xff] }
 0x106   :  { %v1050_v18 = vmax.f32 %v760_v8, 0.0  ;;  %3664 = vst [vmem:[#allocation16_spill] sm:$0xff] %v2618_v4  ;;  %3665 = vst [vmem:[#allocation17_spill] sm:$0xff] %v2620_v21  ;;  %v2623_v22 = vmul.f32 %v2591_v12, %v1049_v10  ;;  %v2626_v23 = vmul.f32 %v2596_v16, %v1049_v10  ;;  %v764_v25 = vadd.f32 %v763_v37, %v2585_v5  ;;  %v2665_v43 = vld [vmem:[%s3565_s3 + $0x1c0] sm:$0xff]  ;;  %v2692_v58 = vld [vmem:[%s3565_s3 + $0x1c8] sm:$0xff] }
 0x107   :  { %3666 = vst [vmem:[#allocation18_spill] sm:$0xff] %v2631_v11  ;;  %v2640_v26 = vmul.f32 %v2602_v3, %v1049_v10  ;;  %v2643_v28 = vmul.f32 %v2607_v9, %v1049_v10  ;;  %v1051_v29 = vmax.f32 %v811_v17, 0.0  ;;  %3668 = vst [vmem:[#allocation20_spill] sm:$0xff] %v2648_v31  ;;  %v766_v33 = vadd.f32 %v765_v39, %v2585_v5  ;;  %v2670_v44 = vld [vmem:[%s3565_s3 + $0x280] sm:$0xff]  ;;  %v2675_v39 = vld [vmem:[%s3565_s3 + $0x48] sm:$0xff] }
 0x108   :  { %3669 = vst [vmem:[#allocation21_spill] sm:$0xff] %v2653_v32  ;;  %v2657_v37 = vmul.f32 %v2613_v20, %v1050_v18  ;;  %v2660_v42 = vmul.f32 %v2618_v4, %v1050_v18  ;;  %3670 = vst [vmem:[#allocation22_spill] sm:$0xff] %v2665_v43  ;;  %v1052_v45 = vmax.f32 %v813_v19, 0.0  ;;  %v770_v48 = vadd.f32 %v769_v51, %v2620_v21  ;;  %v2697_v51 = vld [vmem:[%s3565_s3 + $0x288] sm:$0xff]  ;;  %v2704_v17 = vld [vmem:[%s3565_s3 + $0x60] sm:$0xff] }
 0x109   :  { %3671 = vst [vmem:[#allocation23_spill] sm:$0xff] %v2670_v44  ;;  %3672 = vst [vmem:[#allocation24_spill] sm:$0xff] %v2675_v39  ;;  %v2679_v49 = vmul.f32 %v2631_v11, %v1050_v18  ;;  %v2682_v50 = vmul.f32 %v2636_v24, %v1050_v18  ;;  %v817_v0 = vadd.f32 %v816_v38, %v2585_v5  ;;  %v1061_v10 = vmax.f32 %v764_v25, 0.0  ;;  %v2709_v18 = vld [vmem:[%s3565_s3 + $0x120] sm:$0xff]  ;;  %v2799_v24 = vld [vmem:[%s3565_s3 + $0x130] sm:$0xff] }
 0x10a   :  { %3673 = vst [vmem:[#allocation25_spill] sm:$0xff] %v2687_v57  ;;  %3674 = vst [vmem:[#allocation26_spill] sm:$0xff] %v2692_v58  ;;  %v819_v8 = vadd.f32 %v818_v41, %v2585_v5  ;;  %v2714_v19 = vld [vmem:[%s3565_s3 + $0x1e0] sm:$0xff]  ;;  %v821_v38 = vadd.f32 %v820_v47, %v2620_v21  ;;  %v823_v41 = vadd.f32 %v822_v52, %v2620_v21  ;;  %v1062_v27 = vmax.f32 %v766_v33, 0.0  ;;  %v2736_v47 = vld [vmem:[%s3565_s3 + $0x68] sm:$0xff] }
 0x10b   :  { %3675 = vst [vmem:[#allocation27_spill] sm:$0xff] %v2697_v51  ;;  %3676 = vst [vmem:[#allocation28_spill] sm:$0xff] %v2704_v17  ;;  %v768_v25 = vadd.f32 %v767_v46, %v2620_v21  ;;  %v2720_v30 = vmul.f32 %v2648_v31, %v1051_v29  ;;  %v2723_v36 = vmul.f32 %v2653_v32, %v1051_v29  ;;  %v2741_v46 = vld [vmem:[%s3565_s3 + $0x128] sm:$0xff]  ;;  %v1074_v15 = vmax.f32 %v770_v48, 0.0  ;;  %v2781_v48 = vld [vmem:[%s3565_s3 + $0x218] sm:$0xff] }
 0x10c   :  { %3677 = vst [vmem:[#allocation29_spill] sm:$0xff] %v2709_v18  ;;  %3678 = vst [vmem:[#allocation30_spill] sm:$0xff] %v2714_v19  ;;  %v2726_v35 = vmul.f32 %v2665_v43, %v1051_v29  ;;  %v2744_v52 = vmul.f32 %v2670_v44, %v1051_v29  ;;  %v2747_v43 = vmul.f32 %v2675_v39, %v1052_v45  ;;  %v2755_v33 = vld [vmem:[%s3565_s3 + $0x1e8] sm:$0xff]  ;;  %v2765_v29 = vld [vmem:[%s3565_s3 + $0x98] sm:$0xff]  ;;  %v1064_v13 = vmax.f32 %v819_v8, 0.0 }
 0x10d   :  { %3679 = vst [vmem:[#allocation31_spill] sm:$0xff] %v2731_v34  ;;  %3680 = vst [vmem:[#allocation32_spill] sm:$0xff] %v2736_v47  ;;  %v2750_v32 = vmul.f32 %v2687_v57, %v1052_v45  ;;  %v2760_v31 = vld [vmem:[%s3565_s3 + $0x2a8] sm:$0xff]  ;;  %v2768_v39 = vmul.f32 %v2692_v58, %v1052_v45  ;;  %v2771_v57 = vmul.f32 %v2697_v51, %v1052_v45  ;;  %v2776_v44 = vld [vmem:[%s3565_s3 + $0x158] sm:$0xff]  ;;  %v1063_v58 = vmax.f32 %v817_v0, 0.0 }
 0x10e   :  { %3681 = vst [vmem:[#allocation33_spill] sm:$0xff] %v2741_v46  ;;  %3682 = vst [vmem:[#allocation34_spill] sm:$0xff] %v2755_v33  ;;  %v2789_v45 = vmul.f32 %v2704_v17, %v1061_v10  ;;  %v2794_v51 = vld [vmem:[%s3565_s3 + $0x70] sm:$0xff]  ;;  %v1075_v0 = vmax.f32 %v821_v38, 0.0  ;;  %v2806_v8 = vmax.f32 %v823_v41, 0.0  ;;  %v2808_v17 = vmax.f32 %v768_v25, 0.0 }
 0x10f   :  { %3683 = vst [vmem:[#allocation35_spill] sm:$0xff] %v2760_v31  ;;  %3684 = vst [vmem:[#allocation36_spill] sm:$0xff] %v2765_v29  ;;  %v2804_v11 = vld [vmem:[%s3565_s3 + $0x1f0] sm:$0xff]  ;;  %v2811_v4 = vmul.f32 %v2709_v18, %v1061_v10  ;;  %v2814_v20 = vmul.f32 %v2714_v19, %v1061_v10  ;;  %v2817_v9 = vmul.f32 %v2731_v34, %v1061_v10  ;;  %v2830_v41 = vld [vmem:[%s3565_s3 + $0x78] sm:$0xff] }
 0x110   :  { %3685 = vst [vmem:[#allocation37_spill] sm:$0xff] %v2776_v44  ;;  %3686 = vst [vmem:[#allocation38_spill] sm:$0xff] %v2781_v48  ;;  %v2820_v3 = vmul.f32 %v2736_v47, %v1062_v27  ;;  %v2825_v38 = vld [vmem:[%s3565_s3 + $0x2b0] sm:$0xff]  ;;  %v2835_v25 = vld [vmem:[%s3565_s3 + $0x138] sm:$0xff]  ;;  %v2838_v10 = vmul.f32 %v2741_v46, %v1062_v27  ;;  %v2841_v47 = vmul.f32 %v2755_v33, %v1062_v27 }
 0x111   :  { %3688 = vst [vmem:[#allocation40_spill] sm:$0xff] %v2794_v51  ;;  %3689 = vst [vmem:[#allocation41_spill] sm:$0xff] %v2799_v24  ;;  %v2844_v34 = vmul.f32 %v2760_v31, %v1062_v27  ;;  %v2847_v19 = vmul.f32 %v2765_v29, %v1074_v15  ;;  %v2852_v18 = vld [vmem:[%s3565_s3 + $0x1f8] sm:$0xff]  ;;  %v2862_v33 = vld [vmem:[%s3565_s3 + $0xa0] sm:$0xff]  ;;  %v2865_v27 = vmul.f32 %v2776_v44, %v1074_v15 }
 0x112   :  { %3690 = vst [vmem:[#allocation42_spill] sm:$0xff] %v2804_v11  ;;  %3691 = vst [vmem:[#allocation43_spill] sm:$0xff] %v2820_v3  ;;  %v2857_v16 = vld [vmem:[%s3565_s3 + $0x2b8] sm:$0xff]  ;;  %v2871_v29 = vmul.f32 %v2786_v14, %v1074_v15  ;;  %v2874_v31 = vmul.f32 %v2794_v51, %v1063_v58  ;;  %v2879_v46 = vld [vmem:[%s3565_s3 + $0x160] sm:$0xff] }
 0x113   :  { %3692 = vst [vmem:[#allocation44_spill] sm:$0xff] %v2825_v38  ;;  %3693 = vst [vmem:[#allocation45_spill] sm:$0xff] %v2830_v41  ;;  %v2901_v14 = vld [vmem:[%s3565_s3 + $0x2e0] sm:$0xff]  ;;  %v2923_v44 = vld [vmem:[%s3565_s3 + $0x150] sm:$0xff] }
 0x114   :  { %3694 = vst [vmem:[#allocation46_spill] sm:$0xff] %v2835_v25  ;;  %3695 = vst [vmem:[#allocation47_spill] sm:$0xff] %v2838_v10 }
 0x115   :  { %3696 = vst [vmem:[#allocation48_spill] sm:$0xff] %v2841_v47  ;;  %3697 = vst [vmem:[#allocation49_spill] sm:$0xff] %v2844_v34  ;;  %v2884_v34 = vld [vmem:[%s3565_s3 + $0x220] sm:$0xff] }
 0x116   :  { %3698 = vst [vmem:[#allocation50_spill] sm:$0xff] %v2847_v19  ;;  %3699 = vst [vmem:[#allocation51_spill] sm:$0xff] %v2852_v18  ;;  %v2868_v19 = vmul.f32 %v2781_v48, %v1074_v15  ;;  %v2893_v15 = vmul.f32 %v2825_v38, %v1063_v58  ;;  %v2906_v48 = vld [vmem:[%s3565_s3 + $0x90] sm:$0xff] }
 0x117   :  { %3700 = vst [vmem:[#allocation52_spill] sm:$0xff] %v2857_v16  ;;  %3701 = vst [vmem:[#allocation53_spill] sm:$0xff] %v2862_v33 }
 0x118   :  { %3702 = vst [vmem:[#allocation54_spill] sm:$0xff] %v2865_v27  ;;  %3703 = vst [vmem:[#allocation55_spill] sm:$0xff] %v2868_v19  ;;  %v2887_v27 = vmul.f32 %v2799_v24, %v1063_v58  ;;  %v2890_v19 = vmul.f32 %v2804_v11, %v1063_v58  ;;  %v2909_v24 = vmul.f32 %v2835_v25, %v1064_v13 }
 0x119   :  { %3704 = vst [vmem:[#allocation56_spill] sm:$0xff] %v2871_v29  ;;  %3705 = vst [vmem:[#allocation57_spill] sm:$0xff] %v2874_v31  ;;  %v2896_v29 = vmul.f32 %v2830_v41, %v1064_v13  ;;  %v2912_v11 = vmul.f32 %v2852_v18, %v1064_v13  ;;  %v2915_v58 = vmul.f32 %v2857_v16, %v1064_v13  ;;  %v2935_v13 = vld [vmem:[%s3565_s3 + $0x20] sm:$0xff] }
 0x11a   :  { %3706 = vst [vmem:[#allocation58_spill] sm:$0xff] %v2879_v46  ;;  %3707 = vst [vmem:[#allocation59_spill] sm:$0xff] %v2884_v34  ;;  %v2918_v41 = vmul.f32 %v2862_v33, %v1075_v0  ;;  %v2929_v25 = vmul.f32 %v2884_v34, %v1075_v0  ;;  %v2940_v33 = vld [vmem:[%s3565_s3 + $0xe0] sm:$0xff] }
 0x11b   :  { %3708 = vst [vmem:[#allocation60_spill] sm:$0xff] %v2887_v27  ;;  %3709 = vst [vmem:[#allocation61_spill] sm:$0xff] %v2890_v19 }
 0x11c   :  { %3710 = vst [vmem:[#allocation62_spill] sm:$0xff] %v2893_v15  ;;  %3711 = vst [vmem:[#allocation63_spill] sm:$0xff] %v2896_v29  ;;  %v2926_v29 = vmul.f32 %v2879_v46, %v1075_v0  ;;  %v2945_v46 = vld [vmem:[%s3565_s3 + $0x1a0] sm:$0xff]  ;;  %v2980_v15 = vld [vmem:[%s3565_s3 + $0x268] sm:$0xff] }
 0x11d   :  { %3712 = vst [vmem:[#allocation64_spill] sm:$0xff] %v2901_v14  ;;  %3713 = vst [vmem:[#allocation65_spill] sm:$0xff] %v2906_v48  ;;  %v859_v38 = vpop.f32.mrb[8].mxu0  ;;  %v912_v51 = vpop.f32.mrb[8].mxu1 }
 0x11e   :  { %3714 = vst [vmem:[#allocation66_spill] sm:$0xff] %v2909_v24  ;;  %3715 = vst [vmem:[#allocation67_spill] sm:$0xff] %v2912_v11  ;;  %v860_v18 = vadd.f32 %v859_v38, %v2472_v56  ;;  %v914_v34 = vpop.f32.mrb[9].mxu1  ;;  %v2949_v38 = vmul.f32 %v2901_v14, %v1075_v0 }
 0x11f   :  { %3716 = vst [vmem:[#allocation68_spill] sm:$0xff] %v2915_v58  ;;  %3717 = vst [vmem:[#allocation69_spill] sm:$0xff] %v2918_v41  ;;  %v2954_v41 = vld [vmem:[%s3565_s3 + $0x260] sm:$0xff]  ;;  %v2960_v58 = vld [vmem:[%s3565_s3 + $0x28] sm:$0xff]  ;;  %v915_v0 = vadd.f32 %v914_v34, %v2472_v56  ;;  %v916_v14 = vpop.f32.mrb[10].mxu1 }
 0x120   :  { %3718 = vst [vmem:[#allocation70_spill] sm:$0xff] %v2926_v29  ;;  %3719 = vst [vmem:[#allocation71_spill] sm:$0xff] %v2929_v25  ;;  %v861_v29 = vpop.f32.mrb[9].mxu0  ;;  %v913_v25 = vadd.f32 %v912_v51, %v2472_v56  ;;  %v2965_v51 = vld [vmem:[%s3565_s3 + $0xe8] sm:$0xff]  ;;  %v1041_v24 = vmax.f32 %v860_v18, 0.0  ;;  %v2991_v47 = vadd.f32 %v916_v14, %v2573_v55 }
 0x121   :  { %3720 = vst [vmem:[#allocation72_spill] sm:$0xff] %v2935_v13  ;;  %3721 = vst [vmem:[#allocation73_spill] sm:$0xff] %v2940_v33  ;;  %v862_v16 = vadd.f32 %v861_v29, %v2472_v56  ;;  %v863_v11 = vpop.f32.mrb[10].mxu0  ;;  %v2975_v29 = vld [vmem:[%s3565_s3 + $0x1a8] sm:$0xff]  ;;  %v918_v56 = vpop.f32.mrb[11].mxu1  ;;  %v2988_v31 = vmax.f32 %v915_v0, 0.0 }
 0x122   :  { %3722 = vst [vmem:[#allocation74_spill] sm:$0xff] %v2945_v46  ;;  %3723 = vst [vmem:[#allocation75_spill] sm:$0xff] %v2949_v38  ;;  %v2970_v38 = vmul.f32 %v2906_v48, %v2808_v17  ;;  %v864_v19 = vadd.f32 %v863_v11, %v2573_v55  ;;  %v1043_v27 = vmax.f32 %v913_v25, 0.0  ;;  %v865_v34 = vpop.f32.mrb[11].mxu0  ;;  %v2985_v48 = vmul.f32 %v2923_v44, %v2808_v17 }
 0x123   :  { %3724 = vst [vmem:[#allocation76_spill] sm:$0xff] %v2954_v41  ;;  %3725 = vst [vmem:[#allocation77_spill] sm:$0xff] %v2960_v58  ;;  %v1042_v18 = vmax.f32 %v862_v16, 0.0  ;;  %v1117_v10 = vmul.f32 %v2935_v13, %v1041_v24  ;;  %v1263_v3 = vmul.f32 %v2940_v33, %v1041_v24  ;;  %v1407_v11 = vmul.f32 %v2945_v46, %v1041_v24 }
 0x124   :  { %3726 = vst [vmem:[#allocation78_spill] sm:$0xff] %v2965_v51  ;;  %3727 = vst [vmem:[#allocation79_spill] sm:$0xff] %v2970_v38  ;;  %v866_v38 = vadd.f32 %v865_v34, %v2573_v55  ;;  %v1551_v25 = vmul.f32 %v2954_v41, %v1041_v24  ;;  %v3008_v24 = vld [vmem:[%s3565_s3 + $0x50] sm:$0xff]  ;;  %v1607_v46 = vmul.f32 %v2494_v63, %v1043_v27 }
 0x125   :  { %3728 = vst [vmem:[#allocation80_spill] sm:$0xff] %v2975_v29  ;;  %3729 = vst [vmem:[#allocation81_spill] sm:$0xff] %v2980_v15  ;;  %v1118_v21 = vmul.f32 %v2960_v58, %v1042_v18  ;;  %v1408_v16 = vmul.f32 %v2975_v29, %v1042_v18  ;;  %v1552_v0 = vmul.f32 %v2980_v15, %v1042_v18  ;;  %v3032_v58 = vld [vmem:[%s3565_s3 + $0x290] sm:$0xff] }
 0x126   :  { %3730 = vst [vmem:[#allocation82_spill] sm:$0xff] %v2985_v48  ;;  %v1264_v48 = vmul.f32 %v2965_v51, %v1042_v18  ;;  %v1140_v34 = vadd.f32 %v2576_v59, %v1117_v10  ;;  %v1286_v14 = vadd.f32 %v2578_v54, %v1263_v3  ;;  %v1430_v13 = vadd.f32 %v2580_v61, %v1407_v11  ;;  %v3013_v51 = vld [vmem:[%s3565_s3 + $0x110] sm:$0xff]  ;;  %v3025_v10 = vpop.f32.mrb[12].mxu0  ;;  %v3027_v18 = vpop.f32.mrb[12].mxu1 }
 0x127   :  { %v1574_v33 = vadd.f32 %v2582_v62, %v1551_v25  ;;  %3731 = vst [vmem:[#allocation83_spill] sm:$0xff] %v3008_v24  ;;  %3732 = vst [vmem:[#allocation84_spill] sm:$0xff] %v3013_v51  ;;  %v3018_v59 = vld [vmem:[%s3565_s3 + $0x1d0] sm:$0xff]  ;;  %v1053_v54 = vmax.f32 %v864_v19, 0.0  ;;  %v1174_v61 = vmul.f32 %v2478_v40, %v1043_v27  ;;  %v1319_v62 = vmul.f32 %v2483_v60, %v1043_v27  ;;  %v3034_v19 = vpop.f32.mrb[13].mxu0  ;;  %v3036_v40 = vpop.f32.mrb[13].mxu1 }
 0x128   :  { %3733 = vst [vmem:[#allocation85_spill] sm:$0xff] %v3018_v59  ;;  %v3023_v3 = vadd.f32 %v918_v56, %v2573_v55  ;;  %v1141_v11 = vadd.f32 %v1140_v34, %v1118_v21  ;;  %v1287_v25 = vadd.f32 %v1286_v14, %v1264_v48  ;;  %v1431_v15 = vadd.f32 %v1430_v13, %v1408_v16  ;;  %v3042_v48 = vpop.f32.mrb[14].mxu0  ;;  %v3053_v14 = vld [vmem:[%s3565_s3 + $0x58] sm:$0xff] }
 0x129   :  { %v1575_v29 = vadd.f32 %v1574_v33, %v1552_v0  ;;  %v1123_v56 = vmul.f32 %v3008_v24, %v1053_v54  ;;  %v1269_v60 = vmul.f32 %v3013_v51, %v1053_v54  ;;  %v1413_v41 = vmul.f32 %v3018_v59, %v1053_v54  ;;  %v3044_v33 = vpop.f32.mrb[14].mxu1 }
 0x12a   :  { %v1463_v21 = vmul.f32 %v2488_v53, %v1043_v27  ;;  %v1142_v13 = vadd.f32 %v1141_v11, %v2623_v22  ;;  %v1288_v16 = vadd.f32 %v1287_v25, %v2626_v23  ;;  %v1432_v0 = vadd.f32 %v1431_v15, %v2640_v26  ;;  %v3058_v53 = vld [vmem:[%s3565_s3 + $0x118] sm:$0xff]  ;;  %v875_v23 = vpop.f32.mrb[15].mxu0  ;;  %v3065_v11 = vpop.f32.mrb[15].mxu1 }
 0x12b   :  { %v1576_v34 = vadd.f32 %v1575_v29, %v2643_v28  ;;  %v3063_v22 = vld [vmem:[%s3565_s3 + $0x1d8] sm:$0xff]  ;;  %v1557_v26 = vmul.f32 %v3032_v58, %v1053_v54  ;;  %v1054_v28 = vmax.f32 %v866_v38, 0.0  ;;  %v1175_v15 = vmul.f32 %v2500_v1, %v2988_v31 }
 0x12c   :  { %v1320_v29 = vmul.f32 %v2505_v2, %v2988_v31  ;;  %v1143_v25 = vadd.f32 %v1142_v13, %v2657_v37  ;;  %v1289_v59 = vadd.f32 %v1288_v16, %v2660_v42  ;;  %v1433_v51 = vadd.f32 %v1432_v0, %v2679_v49  ;;  %v3087_v49 = vld [vmem:[%s3565_s3 + $0x298] sm:$0xff]  ;;  %v3132_v16 = vld [vmem:[%s3565_s3 + $0x228] sm:$0xff] }
 0x12d   :  { %v1577_v24 = vadd.f32 %v1576_v34, %v2682_v50  ;;  %v1124_v55 = vmul.f32 %v3053_v14, %v1054_v28  ;;  %v1270_v38 = vmul.f32 %v3058_v53, %v1054_v28  ;;  %v1414_v54 = vmul.f32 %v3063_v22, %v1054_v28  ;;  %3736 = vst [vmem:[#allocation88_spill] sm:$0xff] %v3132_v16  ;;  %v3137_v0 = vld [vmem:[%s3565_s3 + $0x2e8] sm:$0xff] }
 0x12e   :  { %v1144_v1 = vadd.f32 %v1143_v25, %v2720_v30  ;;  %v1290_v2 = vadd.f32 %v1289_v59, %v2723_v36  ;;  %v1434_v37 = vadd.f32 %v1433_v51, %v2726_v35  ;;  %v3089_v63 = vadd.f32 %v1175_v15, %v1174_v61  ;;  %v3100_v35 = vld [vmem:[%s3565_s3 + $0x210] sm:$0xff]  ;;  %3737 = vst [vmem:[#allocation89_spill] sm:$0xff] %v3137_v0 }
 0x12f   :  { %v1578_v42 = vadd.f32 %v1577_v24, %v2744_v52  ;;  %v3091_v50 = vadd.f32 %v1320_v29, %v1319_v62  ;;  %v1464_v27 = vmul.f32 %v2510_v6, %v2988_v31  ;;  %v1608_v30 = vmul.f32 %v2515_v7, %v2988_v31  ;;  %v3109_v6 = vld [vmem:[%s3565_s3 + $0x2d0] sm:$0xff]  ;;  %v3114_v7 = vld [vmem:[%s3565_s3 + $0xa8] sm:$0xff] }
 0x130   :  { %v1145_v36 = vadd.f32 %v1144_v1, %v2747_v43  ;;  %v1291_v52 = vadd.f32 %v1290_v2, %v2750_v32  ;;  %v1435_v51 = vadd.f32 %v1434_v37, %v2768_v39  ;;  %3734 = vst [vmem:[#allocation86_spill] sm:$0xff] %v3114_v7  ;;  %v3119_v31 = vld [vmem:[%s3565_s3 + $0x168] sm:$0xff]  ;;  %v1558_v32 = vmul.f32 %v3087_v49, %v1054_v28  ;;  %v3744_v1 = vld [vmem:[#allocation17_spill] sm:$0xff] }
 0x131   :  { %v1579_v24 = vadd.f32 %v1578_v42, %v2771_v57  ;;  %3735 = vst [vmem:[#allocation87_spill] sm:$0xff] %v3119_v31  ;;  %v3122_v43 = vadd.f32 %v1464_v27, %v1463_v21  ;;  %v3124_v39 = vadd.f32 %v1608_v30, %v1607_v46  ;;  %v3127_v57 = vmax.f32 %v2991_v47, 0.0  ;;  %v3745_v2 = vld [vmem:[#allocation43_spill] sm:$0xff]  ;;  %v3747_v42 = vld [vmem:[#allocation48_spill] sm:$0xff] }
 0x132   :  { %v1146_v59 = vadd.f32 %v1145_v36, %v1123_v56  ;;  %v1292_v61 = vadd.f32 %v1291_v52, %v1269_v60  ;;  %v1436_v62 = vadd.f32 %v1435_v51, %v1413_v41  ;;  %v3141_v46 = vmul.f32 %v3100_v35, %v2808_v17  ;;  %v3746_v37 = vld [vmem:[#allocation47_spill] sm:$0xff]  ;;  %v3193_v36 = vld [vmem:[%s3565_s3 + $0x140] sm:$0xff] }
 0x133   :  { %v1580_v13 = vadd.f32 %v1579_v24, %v1557_v26  ;;  %v3145_v47 = vmul.f32 %v3109_v6, %v2808_v17  ;;  %v3149_v41 = vmul.f32 %v3114_v7, %v2806_v8  ;;  %v3153_v56 = vmul.f32 %v3119_v31, %v2806_v8  ;;  %v3208_v51 = vld [vmem:[%s3565_s3 + $0x88] sm:$0xff] }
 0x134   :  { %3738 = vst [vmem:[#allocation90_spill] sm:$0xff] %v3141_v46  ;;  %v1147_v60 = vadd.f32 %v1146_v59, %v1124_v55  ;;  %v1293_v21 = vadd.f32 %v1292_v61, %v1270_v38  ;;  %v1437_v34 = vadd.f32 %v1436_v62, %v1414_v54  ;;  %v3157_v28 = vmul.f32 %v2591_v12, %v3127_v57  ;;  %v3179_v54 = vld [vmem:[%s3565_s3 + $0x80] sm:$0xff]  ;;  %v3752_v59 = vld [vmem:[#allocation57_spill] sm:$0xff]  ;;  %v3753_v62 = vld [vmem:[#allocation60_spill] sm:$0xff] }
 0x135   :  { %3739 = vst [vmem:[#allocation91_spill] sm:$0xff] %v3145_v47  ;;  %3740 = vst [vmem:[#allocation92_spill] sm:$0xff] %v3149_v41  ;;  %v1581_v26 = vadd.f32 %v1580_v13, %v1558_v32  ;;  %v3160_v15 = vmax.f32 %v3023_v3, 0.0  ;;  %v3164_v17 = vmul.f32 %v3132_v16, %v2806_v8  ;;  %v3168_v29 = vmul.f32 %v3137_v0, %v2806_v8  ;;  %v3786_v16 = vld [vmem:[#allocation32_spill] sm:$0xff] }
 0x136   :  { %3741 = vst [vmem:[#allocation93_spill] sm:$0xff] %v3153_v56  ;;  %v1148_v55 = vadd.f32 %v1147_v60, %v2789_v45  ;;  %v1294_v25 = vadd.f32 %v1293_v21, %v2811_v4  ;;  %v1438_v38 = vadd.f32 %v1437_v34, %v2814_v20  ;;  %v870_v3 = vadd.f32 %v3025_v10, %v2585_v5  ;;  %v3748_v10 = vld [vmem:[#allocation49_spill] sm:$0xff]  ;;  %v3755_v34 = vld [vmem:[#allocation62_spill] sm:$0xff] }
 0x137   :  { %3742 = vst [vmem:[#allocation94_spill] sm:$0xff] %v3164_v17  ;;  %3743 = vst [vmem:[#allocation95_spill] sm:$0xff] %v3168_v29  ;;  %v1582_v12 = vadd.f32 %v1581_v26, %v2817_v9  ;;  %v872_v8 = vadd.f32 %v3034_v19, %v2585_v5  ;;  %v874_v45 = vadd.f32 %v3042_v48, %v3744_v1  ;;  %v3198_v19 = vld [vmem:[%s3565_s3 + $0x200] sm:$0xff]  ;;  %v3754_v60 = vld [vmem:[#allocation61_spill] sm:$0xff] }
 0x138   :  { %v876_v4 = vadd.f32 %v875_v23, %v3744_v1  ;;  %v1149_v20 = vadd.f32 %v1148_v55, %v3745_v2  ;;  %v1295_v9 = vadd.f32 %v1294_v25, %v3746_v37  ;;  %v1439_v27 = vadd.f32 %v1438_v38, %v3747_v42  ;;  %v3203_v48 = vld [vmem:[%s3565_s3 + $0x2c0] sm:$0xff]  ;;  %3749 = vst [vmem:[#allocation43_spill] sm:$0xff] %v3208_v51  ;;  %v3221_v55 = vld [vmem:[%s3565_s3 + $0x148] sm:$0xff] }
 0x139   :  { %v1583_v30 = vadd.f32 %v1582_v12, %v3748_v10  ;;  %v1065_v23 = vmax.f32 %v870_v3, 0.0  ;;  %v1066_v52 = vmax.f32 %v872_v8, 0.0  ;;  %v3210_v24 = vmax.f32 %v874_v45, 0.0  ;;  %3756 = vst [vmem:[#allocation49_spill] sm:$0xff] %v3221_v55  ;;  %v3226_v25 = vld [vmem:[%s3565_s3 + $0x208] sm:$0xff] }
 0x13a   :  { %v3212_v32 = vmax.f32 %v876_v4, 0.0  ;;  %v1150_v61 = vadd.f32 %v1149_v20, %v3752_v59  ;;  %v1296_v13 = vadd.f32 %v1295_v9, %v3753_v62  ;;  %v1440_v21 = vadd.f32 %v1439_v27, %v3754_v60  ;;  %3757 = vst [vmem:[#allocation57_spill] sm:$0xff] %v3226_v25  ;;  %v3231_v38 = vld [vmem:[%s3565_s3 + $0x2c8] sm:$0xff]  ;;  %v3760_v20 = vld [vmem:[#allocation66_spill] sm:$0xff]  ;;  %v3762_v27 = vld [vmem:[#allocation68_spill] sm:$0xff] }
 0x13b   :  { %3750 = vst [vmem:[#allocation47_spill] sm:$0xff] %v3210_v24  ;;  %v1584_v26 = vadd.f32 %v1583_v30, %v3755_v34  ;;  %3758 = vst [vmem:[#allocation60_spill] sm:$0xff] %v3231_v38  ;;  %v1129_v12 = vmul.f32 %v3179_v54, %v1065_v23  ;;  %v1275_v3 = vmul.f32 %v3193_v36, %v1065_v23  ;;  %v3759_v4 = vld [vmem:[#allocation63_spill] sm:$0xff] }
 0x13c   :  { %3751 = vst [vmem:[#allocation48_spill] sm:$0xff] %v3212_v32  ;;  %v1419_v8 = vmul.f32 %v3198_v19, %v1065_v23  ;;  %v1563_v45 = vmul.f32 %v3203_v48, %v1065_v23  ;;  %v1151_v2 = vadd.f32 %v1150_v61, %v3759_v4  ;;  %v1297_v37 = vadd.f32 %v1296_v13, %v3760_v20  ;;  %v3761_v9 = vld [vmem:[#allocation67_spill] sm:$0xff] }
 0x13d   :  { %v1441_v42 = vadd.f32 %v1440_v21, %v3761_v9  ;;  %v1585_v10 = vadd.f32 %v1584_v26, %v3762_v27  ;;  %v1130_v30 = vmul.f32 %v3208_v51, %v1066_v52  ;;  %v1276_v59 = vmul.f32 %v3221_v55, %v1066_v52  ;;  %v3772_v9 = vld [vmem:[#allocation15_spill] sm:$0xff]  ;;  %v3824_v51 = vld [vmem:[#allocation81_spill] sm:$0xff] }
 0x13e   :  { %v1420_v62 = vmul.f32 %v3226_v25, %v1066_v52  ;;  %v1564_v60 = vmul.f32 %v3231_v38, %v1066_v52  ;;  %v1152_v34 = vadd.f32 %v1151_v2, %v1129_v12  ;;  %v1298_v0 = vadd.f32 %v1297_v37, %v1275_v3  ;;  %v3766_v3 = vld [vmem:[#allocation12_spill] sm:$0xff]  ;;  %v3771_v2 = vld [vmem:[#allocation14_spill] sm:$0xff] }
 0x13f   :  { %v1442_v29 = vadd.f32 %v1441_v42, %v1419_v8  ;;  %v1586_v23 = vadd.f32 %v1585_v10, %v1563_v45  ;;  %v923_v61 = vadd.f32 %v3027_v18, %v2585_v5  ;;  %v925_v13 = vadd.f32 %v3036_v40, %v2585_v5  ;;  %v3767_v18 = vld [vmem:[#allocation13_spill] sm:$0xff]  ;;  %v3773_v10 = vld [vmem:[#allocation79_spill] sm:$0xff] }
 0x140   :  { %v927_v21 = vadd.f32 %v3044_v33, %v3744_v1  ;;  %v929_v26 = vadd.f32 %v3065_v11, %v3744_v1  ;;  %v1153_v4 = vadd.f32 %v1152_v34, %v1130_v30  ;;  %v3253_v20 = vadd.f32 %v1298_v0, %v1276_v59  ;;  %v3270_v11 = vld [vmem:[%s3565_s3 + $0xb0] sm:$0xff]  ;;  %v3275_v0 = vld [vmem:[%s3565_s3 + $0xb8] sm:$0xff] }
 0x141   :  { %v3255_v52 = vadd.f32 %v1442_v29, %v1420_v62  ;;  %v3257_v12 = vadd.f32 %v1586_v23, %v1564_v60  ;;  %v3261_v8 = vmul.f32 %v3766_v3, %v3127_v57  ;;  %v3265_v40 = vmul.f32 %v3767_v18, %v3127_v57  ;;  %3768 = vst [vmem:[#allocation66_spill] sm:$0xff] %v3270_v11  ;;  %v3280_v29 = vld [vmem:[%s3565_s3 + $0x170] sm:$0xff]  ;;  %v3776_v60 = vld [vmem:[#allocation18_spill] sm:$0xff]  ;;  %v3777_v23 = vld [vmem:[#allocation19_spill] sm:$0xff]  ;;  %v1018_v3 = vpop.f32.mrb[16].mxu1 }
 0x142   :  { %3763 = vst [vmem:[#allocation61_spill] sm:$0xff] %v3253_v20  ;;  %v1067_v45 = vmax.f32 %v923_v61, 0.0  ;;  %v1068_v33 = vmax.f32 %v925_v13, 0.0  ;;  %3769 = vst [vmem:[#allocation67_spill] sm:$0xff] %v3275_v0  ;;  %v3284_v37 = vmul.f32 %v3771_v2, %v3127_v57  ;;  %v3288_v42 = vmul.f32 %v3772_v9, %v3160_v15  ;;  %v3775_v59 = vld [vmem:[#allocation16_spill] sm:$0xff]  ;;  %v965_v13 = vpop.f32.mrb[16].mxu0 }
 0x143   :  { %3764 = vst [vmem:[#allocation62_spill] sm:$0xff] %v3255_v52  ;;  %3765 = vst [vmem:[#allocation63_spill] sm:$0xff] %v3257_v12  ;;  %v1079_v27 = vmax.f32 %v927_v21, 0.0  ;;  %v3291_v30 = vadd.f32 %v1153_v4, %v3773_v10  ;;  %v3295_v62 = vmul.f32 %v3775_v59, %v3160_v15  ;;  %v3299_v34 = vmul.f32 %v3776_v60, %v3160_v15  ;;  %v3779_v21 = vld [vmem:[#allocation28_spill] sm:$0xff]  ;;  %v967_v4 = vpop.f32.mrb[17].mxu0  ;;  %v1020_v2 = vpop.f32.mrb[17].mxu1 }
 0x144   :  { %3770 = vst [vmem:[#allocation68_spill] sm:$0xff] %v3280_v29  ;;  %v3303_v57 = vmul.f32 %v3777_v23, %v3160_v15  ;;  %v3305_v61 = vmax.f32 %v929_v26, 0.0  ;;  %v3308_v18 = vmul.f32 %v3779_v21, %v1067_v45  ;;  %v3312_v9 = vmul.f32 %v3270_v11, %v3210_v24  ;;  %v3783_v26 = vld [vmem:[#allocation29_spill] sm:$0xff]  ;;  %v3784_v60 = vld [vmem:[#allocation30_spill] sm:$0xff]  ;;  %v3785_v21 = vld [vmem:[#allocation31_spill] sm:$0xff]  ;;  %v969_v47 = vpop.f32.mrb[18].mxu0 }
 0x145   :  { %3774 = vst [vmem:[#allocation12_spill] sm:$0xff] %v3291_v30  ;;  %v3316_v10 = vmul.f32 %v3275_v0, %v3212_v32  ;;  %v3320_v15 = vmul.f32 %v3280_v29, %v3210_v24  ;;  %v3323_v59 = vmul.f32 %v3783_v26, %v1067_v45  ;;  %v3326_v23 = vmul.f32 %v3784_v60, %v1067_v45  ;;  %v1022_v56 = vpop.f32.mrb[18].mxu1  ;;  %v3788_v0 = vld [vmem:[#allocation33_spill] sm:$0xff]  ;;  %v3790_v52 = vld [vmem:[#allocation34_spill] sm:$0xff]  ;;  %v971_v46 = vpop.f32.mrb[19].mxu0  ;;  %v3798_v32 = vld [vmem:[#allocation11_spill] sm:$0xff] }
 0x146   :  { %3778 = vst [vmem:[#allocation13_spill] sm:$0xff] %v3305_v61  ;;  %3780 = vst [vmem:[#allocation14_spill] sm:$0xff] %v3312_v9  ;;  %v3329_v17 = vmul.f32 %v3785_v21, %v1067_v45  ;;  %v3332_v12 = vmul.f32 %v3786_v16, %v1068_v33  ;;  %v3335_v31 = vmul.f32 %v3788_v0, %v1068_v33  ;;  %v3794_v29 = vld [vmem:[#allocation65_spill] sm:$0xff]  ;;  %v1024_v45 = vpop.f32.mrb[19].mxu1  ;;  %v3797_v16 = vld [vmem:[#allocation2_spill] sm:$0xff] }
 0x147   :  { %3781 = vst [vmem:[#allocation15_spill] sm:$0xff] %v3316_v10  ;;  %3782 = vst [vmem:[#allocation79_spill] sm:$0xff] %v3320_v15  ;;  %v3338_v24 = vmul.f32 %v3790_v52, %v1068_v33  ;;  %v3792_v15 = vld [vmem:[#allocation35_spill] sm:$0xff]  ;;  %v3344_v60 = vmul.f32 %v3794_v29, %v1079_v27  ;;  %v3347_v21 = vmul.f32 %v2923_v44, %v1079_v27  ;;  %v3807_v10 = vld [vmem:[#allocation5_spill] sm:$0xff] }
 0x148   :  { %3787 = vst [vmem:[#allocation16_spill] sm:$0xff] %v3332_v12  ;;  %3789 = vst [vmem:[#allocation18_spill] sm:$0xff] %v3335_v31  ;;  %v3341_v26 = vmul.f32 %v3792_v15, %v1068_v33  ;;  %v966_v11 = vadd.f32 %v965_v13, %v3797_v16  ;;  %v1019_v7 = vadd.f32 %v1018_v3, %v3797_v16  ;;  %v3801_v13 = vld [vmem:[#allocation36_spill] sm:$0xff]  ;;  %v3821_v1 = vld [vmem:[#allocation77_spill] sm:$0xff] }
 0x149   :  { %3791 = vst [vmem:[#allocation19_spill] sm:$0xff] %v3338_v24  ;;  %3795 = vst [vmem:[#allocation29_spill] sm:$0xff] %v3344_v60  ;;  %v968_v0 = vadd.f32 %v967_v4, %v3797_v16  ;;  %v1021_v52 = vadd.f32 %v1020_v2, %v3797_v16  ;;  %v970_v20 = vadd.f32 %v969_v47, %v3798_v32  ;;  %v3803_v4 = vld [vmem:[#allocation37_spill] sm:$0xff]  ;;  %v975_v9 = vpop.f32.mrb[20].mxu0  ;;  %v3822_v30 = vld [vmem:[#allocation78_spill] sm:$0xff] }
 0x14a   :  { %3793 = vst [vmem:[#allocation28_spill] sm:$0xff] %v3341_v26  ;;  %3796 = vst [vmem:[#allocation30_spill] sm:$0xff] %v3347_v21  ;;  %v1023_v33 = vadd.f32 %v1022_v56, %v3798_v32  ;;  %v972_v29 = vadd.f32 %v971_v46, %v3798_v32  ;;  %v3357_v15 = vmul.f32 %v3100_v35, %v1079_v27  ;;  %v1045_v3 = vmax.f32 %v966_v11, 0.0  ;;  %v3805_v46 = vld [vmem:[#allocation3_spill] sm:$0xff]  ;;  %v3806_v35 = vld [vmem:[#allocation4_spill] sm:$0xff] }
 0x14b   :  { %v3360_v44 = vmul.f32 %v3109_v6, %v1079_v27  ;;  %v3364_v21 = vmul.f32 %v3801_v13, %v3305_v61  ;;  %v3368_v2 = vmul.f32 %v3803_v4, %v3305_v61  ;;  %v1047_v47 = vmax.f32 %v1019_v7, 0.0  ;;  %v3808_v27 = vld [vmem:[#allocation6_spill] sm:$0xff]  ;;  %v1028_v13 = vpop.f32.mrb[20].mxu1  ;;  %v977_v4 = vpop.f32.mrb[21].mxu0  ;;  %v3825_v31 = vld [vmem:[#allocation20_spill] sm:$0xff]  ;;  %v3826_v12 = vld [vmem:[#allocation21_spill] sm:$0xff] }
 0x14c   :  { %3799 = vst [vmem:[#allocation31_spill] sm:$0xff] %v3357_v15  ;;  %v1046_v16 = vmax.f32 %v968_v0, 0.0  ;;  %v1025_v56 = vadd.f32 %v1024_v45, %v3798_v32  ;;  %v1176_v60 = vmul.f32 %v3805_v46, %v1045_v3  ;;  %v1321_v15 = vmul.f32 %v3806_v35, %v1045_v3  ;;  %v3811_v46 = vld [vmem:[#allocation7_spill] sm:$0xff] }
 0x14d   :  { %3800 = vst [vmem:[#allocation32_spill] sm:$0xff] %v3360_v44  ;;  %3802 = vst [vmem:[#allocation33_spill] sm:$0xff] %v3364_v21  ;;  %v1465_v6 = vmul.f32 %v3807_v10, %v1045_v3  ;;  %v1609_v44 = vmul.f32 %v3808_v27, %v1045_v3  ;;  %v1048_v21 = vmax.f32 %v1021_v52, 0.0  ;;  %v1057_v11 = vmax.f32 %v970_v20, 0.0  ;;  %v3381_v10 = vpop.f32.mrb[22].mxu0  ;;  %v3812_v20 = vld [vmem:[#allocation8_spill] sm:$0xff] }
 0x14e   :  { %3804 = vst [vmem:[#allocation34_spill] sm:$0xff] %v3368_v2  ;;  %v1059_v41 = vmax.f32 %v1023_v33, 0.0  ;;  %v1058_v38 = vmax.f32 %v972_v29, 0.0  ;;  %v3375_v2 = vpop.f32.mrb[21].mxu1  ;;  %v1199_v7 = vadd.f32 %v3089_v63, %v1176_v60  ;;  %v1344_v32 = vadd.f32 %v3091_v50, %v1321_v15  ;;  %3809 = vst [vmem:[#allocation35_spill] sm:$0xff] %v3381_v10  ;;  %v3813_v29 = vld [vmem:[#allocation9_spill] sm:$0xff] }
 0x14f   :  { %v1488_v45 = vadd.f32 %v3122_v43, %v1465_v6  ;;  %v1632_v0 = vadd.f32 %v3124_v39, %v1609_v44  ;;  %v3383_v3 = vpop.f32.mrb[22].mxu1  ;;  %v1177_v52 = vmul.f32 %v3811_v46, %v1046_v16  ;;  %v1322_v33 = vmul.f32 %v3812_v20, %v1046_v16  ;;  %v3814_v27 = vld [vmem:[#allocation10_spill] sm:$0xff]  ;;  %v3389_v25 = vpop.f32.mrb[23].mxu0  ;;  %v3817_v50 = vld [vmem:[#allocation72_spill] sm:$0xff]  ;;  %v3818_v60 = vld [vmem:[#allocation73_spill] sm:$0xff] }
 0x150   :  { %3810 = vst [vmem:[#allocation65_spill] sm:$0xff] %v3383_v3  ;;  %v1466_v35 = vmul.f32 %v3813_v29, %v1046_v16  ;;  %v1610_v61 = vmul.f32 %v3814_v27, %v1046_v16  ;;  %3815 = vst [vmem:[#allocation2_spill] sm:$0xff] %v3389_v25  ;;  %v3391_v63 = vpop.f32.mrb[23].mxu1  ;;  %v1178_v43 = vmul.f32 %v3817_v50, %v1047_v47  ;;  %v3819_v15 = vld [vmem:[#allocation74_spill] sm:$0xff]  ;;  %v3820_v6 = vld [vmem:[#allocation76_spill] sm:$0xff] }
 0x151   :  { %3816 = vst [vmem:[#allocation11_spill] sm:$0xff] %v3391_v63  ;;  %v1323_v39 = vmul.f32 %v3818_v60, %v1047_v47  ;;  %v1467_v44 = vmul.f32 %v3819_v15, %v1047_v47  ;;  %v1611_v3 = vmul.f32 %v3820_v6, %v1047_v47  ;;  %v1200_v55 = vadd.f32 %v1199_v7, %v1177_v52  ;;  %v3823_v27 = vld [vmem:[#allocation80_spill] sm:$0xff]  ;;  %v3827_v7 = vld [vmem:[#allocation22_spill] sm:$0xff] }
 0x152   :  { %v1345_v46 = vadd.f32 %v1344_v32, %v1322_v33  ;;  %v1489_v10 = vadd.f32 %v1488_v45, %v1466_v35  ;;  %v1633_v20 = vadd.f32 %v1632_v0, %v1610_v61  ;;  %v1179_v29 = vmul.f32 %v3821_v1, %v1048_v21  ;;  %v3829_v35 = vld [vmem:[#allocation83_spill] sm:$0xff] }
 0x153   :  { %v1324_v16 = vmul.f32 %v3822_v30, %v1048_v21  ;;  %v1468_v25 = vmul.f32 %v3823_v27, %v1048_v21  ;;  %v1612_v63 = vmul.f32 %v3824_v51, %v1048_v21  ;;  %v1201_v26 = vadd.f32 %v1200_v55, %v1178_v43  ;;  %v3828_v30 = vld [vmem:[#allocation23_spill] sm:$0xff]  ;;  %v3830_v51 = vld [vmem:[#allocation84_spill] sm:$0xff]  ;;  %v3831_v21 = vld [vmem:[#allocation85_spill] sm:$0xff] }
 0x154   :  { %v1346_v50 = vadd.f32 %v1345_v46, %v1323_v39  ;;  %v1490_v24 = vadd.f32 %v1489_v10, %v1467_v44  ;;  %v1634_v60 = vadd.f32 %v1633_v20, %v1611_v3  ;;  %v1182_v15 = vmul.f32 %v3825_v31, %v1057_v11  ;;  %v3834_v43 = vld [vmem:[#allocation26_spill] sm:$0xff]  ;;  %v3835_v20 = vld [vmem:[#allocation27_spill] sm:$0xff] }
 0x155   :  { %v1327_v47 = vmul.f32 %v3826_v12, %v1057_v11  ;;  %v1471_v32 = vmul.f32 %v3827_v7, %v1057_v11  ;;  %v1060_v45 = vmax.f32 %v1025_v56, 0.0  ;;  %v1202_v61 = vadd.f32 %v1201_v26, %v1179_v29 }
 0x156   :  { %v1347_v0 = vadd.f32 %v1346_v50, %v1324_v16  ;;  %v1491_v1 = vadd.f32 %v1490_v24, %v1468_v25  ;;  %v1635_v52 = vadd.f32 %v1634_v60, %v1612_v63  ;;  %v1615_v33 = vmul.f32 %v3828_v30, %v1057_v11  ;;  %v3832_v24 = vld [vmem:[#allocation24_spill] sm:$0xff]  ;;  %v3833_v63 = vld [vmem:[#allocation25_spill] sm:$0xff] }
 0x157   :  { %v1184_v6 = vmul.f32 %v3829_v35, %v1059_v41  ;;  %v1329_v55 = vmul.f32 %v3830_v51, %v1059_v41  ;;  %v1473_v10 = vmul.f32 %v3831_v21, %v1059_v41  ;;  %v1203_v3 = vadd.f32 %v1202_v61, %v3157_v28 }
 0x158   :  { %v1348_v31 = vadd.f32 %v1347_v0, %v3261_v8  ;;  %v1492_v12 = vadd.f32 %v1491_v1, %v3265_v40  ;;  %v1636_v56 = vadd.f32 %v1635_v52, %v3284_v37  ;;  %v1617_v26 = vmul.f32 %v3032_v58, %v1059_v41  ;;  %v3836_v1 = vld [vmem:[#allocation40_spill] sm:$0xff]  ;;  %v3837_v52 = vld [vmem:[#allocation41_spill] sm:$0xff] }
 0x159   :  { %v1183_v25 = vmul.f32 %v3832_v24, %v1058_v38  ;;  %v1328_v11 = vmul.f32 %v3833_v63, %v1058_v38  ;;  %v1472_v39 = vmul.f32 %v3834_v43, %v1058_v38  ;;  %v1204_v44 = vadd.f32 %v1203_v3, %v3288_v42  ;;  %v3840_v24 = vld [vmem:[#allocation45_spill] sm:$0xff]  ;;  %v3841_v63 = vld [vmem:[#allocation46_spill] sm:$0xff]  ;;  %v3842_v43 = vld [vmem:[#allocation51_spill] sm:$0xff] }
 0x15a   :  { %v1349_v46 = vadd.f32 %v1348_v31, %v3295_v62  ;;  %v1493_v28 = vadd.f32 %v1492_v12, %v3299_v34  ;;  %v1637_v8 = vadd.f32 %v1636_v56, %v3303_v57  ;;  %v1616_v40 = vmul.f32 %v3835_v20, %v1058_v38  ;;  %v3848_v20 = vld [vmem:[#allocation43_spill] sm:$0xff] }
 0x15b   :  { %v976_v37 = vadd.f32 %v975_v9, %v2585_v5  ;;  %v1029_v58 = vadd.f32 %v1028_v13, %v2585_v5  ;;  %v978_v41 = vadd.f32 %v977_v4, %v2585_v5  ;;  %v1205_v29 = vadd.f32 %v1204_v44, %v1182_v15  ;;  %v3844_v44 = vld [vmem:[#allocation18_spill] sm:$0xff] }
 0x15c   :  { %v1350_v16 = vadd.f32 %v1349_v46, %v1327_v47  ;;  %v1494_v27 = vadd.f32 %v1493_v28, %v1471_v32  ;;  %v1638_v50 = vadd.f32 %v1637_v8, %v1615_v33  ;;  %v1185_v42 = vmul.f32 %v3053_v14, %v1060_v45  ;;  %v3838_v33 = vld [vmem:[#allocation42_spill] sm:$0xff]  ;;  %v3845_v46 = vld [vmem:[#allocation19_spill] sm:$0xff]  ;;  %v3846_v28 = vld [vmem:[#allocation28_spill] sm:$0xff] }
 0x15d   :  { %v1330_v62 = vmul.f32 %v3058_v53, %v1060_v45  ;;  %v1069_v60 = vmax.f32 %v976_v37, 0.0  ;;  %v1031_v34 = vadd.f32 %v3375_v2, %v2585_v5  ;;  %v1206_v57 = vadd.f32 %v1205_v29, %v1183_v25  ;;  %v3847_v8 = vld [vmem:[#allocation52_spill] sm:$0xff] }
 0x15e   :  { %v1351_v38 = vadd.f32 %v1350_v16, %v1328_v11  ;;  %v1495_v7 = vadd.f32 %v1494_v27, %v1472_v39  ;;  %v1639_v9 = vadd.f32 %v1638_v50, %v1616_v40  ;;  %v1474_v13 = vmul.f32 %v3063_v22, %v1060_v45  ;;  %v3839_v22 = vld [vmem:[#allocation44_spill] sm:$0xff]  ;;  %v3849_v40 = vld [vmem:[#allocation50_spill] sm:$0xff] }
 0x15f   :  { %v1618_v4 = vmul.f32 %v3087_v49, %v1060_v45  ;;  %v1071_v15 = vmax.f32 %v1029_v58, 0.0  ;;  %v1070_v47 = vmax.f32 %v978_v41, 0.0  ;;  %v1207_v32 = vadd.f32 %v1206_v57, %v1184_v6  ;;  %v3843_v39 = vld [vmem:[#allocation16_spill] sm:$0xff]  ;;  %v3851_v58 = vld [vmem:[#allocation17_spill] sm:$0xff]  ;;  %v3852_v41 = vld [vmem:[#allocation35_spill] sm:$0xff] }
 0x160   :  { %v1352_v61 = vadd.f32 %v1351_v38, %v1329_v55  ;;  %v1496_v0 = vadd.f32 %v1495_v7, %v1473_v10  ;;  %v1640_v14 = vadd.f32 %v1639_v9, %v1617_v26  ;;  %v1188_v53 = vmul.f32 %v3836_v1, %v1069_v60  ;;  %v3855_v38 = vld [vmem:[#allocation65_spill] sm:$0xff]  ;;  %v3856_v9 = vld [vmem:[#allocation2_spill] sm:$0xff] }
 0x161   :  { %v1333_v30 = vmul.f32 %v3837_v52, %v1069_v60  ;;  %v1477_v5 = vmul.f32 %v3838_v33, %v1069_v60  ;;  %v1072_v2 = vmax.f32 %v1031_v34, 0.0  ;;  %v1208_v35 = vadd.f32 %v1207_v32, %v1185_v42  ;;  %v3854_v34 = vld [vmem:[#allocation69_spill] sm:$0xff] }
 0x162   :  { %v1353_v51 = vadd.f32 %v1352_v61, %v1330_v62  ;;  %v1497_v21 = vadd.f32 %v1496_v0, %v1474_v13  ;;  %v1641_v3 = vadd.f32 %v1640_v14, %v1618_v4  ;;  %v1621_v31 = vmul.f32 %v3839_v22, %v1069_v60  ;;  %v3853_v62 = vld [vmem:[#allocation49_spill] sm:$0xff]  ;;  %v3858_v14 = vld [vmem:[#allocation60_spill] sm:$0xff] }
 0x163   :  { %v1190_v49 = vmul.f32 %v3179_v54, %v1071_v15  ;;  %v1335_v45 = vmul.f32 %v3193_v36, %v1071_v15  ;;  %v1479_v6 = vmul.f32 %v3198_v19, %v1071_v15  ;;  %v1209_v55 = vadd.f32 %v1208_v35, %v3308_v18  ;;  %v3857_v61 = vld [vmem:[#allocation57_spill] sm:$0xff] }
 0x164   :  { %v1354_v10 = vadd.f32 %v1353_v51, %v3323_v59  ;;  %v1498_v12 = vadd.f32 %v1497_v21, %v3326_v23  ;;  %v1642_v56 = vadd.f32 %v1641_v3, %v3329_v17  ;;  %v1623_v26 = vmul.f32 %v3203_v48, %v1071_v15  ;;  %v3850_v48 = vld [vmem:[#allocation12_spill] sm:$0xff]  ;;  %v3860_v21 = vld [vmem:[#allocation14_spill] sm:$0xff] }
 0x165   :  { %v1189_v25 = vmul.f32 %v3840_v24, %v1070_v47  ;;  %v1334_v11 = vmul.f32 %v3841_v63, %v1070_v47  ;;  %v1478_v54 = vmul.f32 %v3842_v43, %v1070_v47  ;;  %v1210_v36 = vadd.f32 %v1209_v55, %v3843_v39  ;;  %v3861_v55 = vld [vmem:[#allocation11_spill] sm:$0xff]  ;;  %v3867_v39 = vld [vmem:[#allocation61_spill] sm:$0xff] }
 0x166   :  { %v1355_v19 = vadd.f32 %v1354_v10, %v3844_v44  ;;  %v1499_v18 = vadd.f32 %v1498_v12, %v3845_v46  ;;  %v1643_v59 = vadd.f32 %v1642_v56, %v3846_v28  ;;  %v1622_v23 = vmul.f32 %v3847_v8, %v1070_v47  ;;  %v3868_v44 = vld [vmem:[#allocation53_spill] sm:$0xff]  ;;  %v3869_v46 = vld [vmem:[#allocation58_spill] sm:$0xff] }
 0x167   :  { %v1191_v17 = vmul.f32 %v3848_v20, %v1072_v2  ;;  %v1155_v37 = vadd.f32 %v3850_v48, %v3849_v40  ;;  %v980_v29 = vadd.f32 %v3852_v41, %v3851_v58  ;;  %v1211_v16 = vadd.f32 %v1210_v36, %v1188_v53  ;;  %v3859_v53 = vld [vmem:[#allocation92_spill] sm:$0xff]  ;;  %v3873_v48 = vld [vmem:[#allocation54_spill] sm:$0xff] }
 0x168   :  { %v1356_v27 = vadd.f32 %v1355_v19, %v1333_v30  ;;  %v1500_v50 = vadd.f32 %v1499_v18, %v1477_v5  ;;  %v1644_v42 = vadd.f32 %v1643_v59, %v1621_v31  ;;  %v1336_v60 = vmul.f32 %v3853_v62, %v1072_v2  ;;  %v3870_v59 = vld [vmem:[#allocation29_spill] sm:$0xff] }
 0x169   :  { %v1156_v57 = vadd.f32 %v1155_v37, %v3854_v34  ;;  %v1033_v7 = vadd.f32 %v3855_v38, %v3851_v58  ;;  %v982_v13 = vadd.f32 %v3856_v9, %v3851_v58  ;;  %v1212_v4 = vadd.f32 %v1211_v16, %v1189_v25  ;;  %v3864_v25 = vld [vmem:[#allocation39_spill] sm:$0xff]  ;;  %v3878_v34 = vld [vmem:[#allocation90_spill] sm:$0xff] }
 0x16a   :  { %v1357_v15 = vadd.f32 %v1356_v27, %v1334_v11  ;;  %v1501_v47 = vadd.f32 %v1500_v50, %v1478_v54  ;;  %v1645_v32 = vadd.f32 %v1644_v42, %v1622_v23  ;;  %v1480_v0 = vmul.f32 %v3857_v61, %v1072_v2  ;;  %v3865_v11 = vld [vmem:[#allocation15_spill] sm:$0xff]  ;;  %v3866_v54 = vld [vmem:[#allocation82_spill] sm:$0xff]  ;;  %v3877_v42 = vld [vmem:[#allocation33_spill] sm:$0xff] }
 0x16b   :  { %v1624_v1 = vmul.f32 %v3858_v14, %v1072_v2  ;;  %v1157_v52 = vadd.f32 %v1156_v57, %v3859_v53  ;;  %v3464_v30 = vmax.f32 %v980_v29, 0.0  ;;  %v1213_v33 = vadd.f32 %v1212_v4, %v1190_v49  ;;  %v1818_v49 = vld [vmem:[%s3565_s3 + $0x178] sm:$0xff]  ;;  %v3871_v23 = vld [vmem:[#allocation59_spill] sm:$0xff]  ;;  %v3875_v29 = vld [vmem:[#allocation86_spill] sm:$0xff] }
 0x16c   :  { %v1358_v5 = vadd.f32 %v1357_v15, %v1335_v45  ;;  %v1502_v35 = vadd.f32 %v1501_v47, %v1479_v6  ;;  %v1646_v51 = vadd.f32 %v1645_v32, %v1623_v26  ;;  %v3467_v22 = vmax.f32 %v1033_v7, 0.0  ;;  %v3862_v45 = vld [vmem:[#allocation13_spill] sm:$0xff]  ;;  %v3863_v6 = vld [vmem:[#allocation38_spill] sm:$0xff]  ;;  %v3882_v15 = vld [vmem:[#allocation68_spill] sm:$0xff] }
 0x16d   :  { %v1158_v3 = vadd.f32 %v1157_v52, %v3860_v21  ;;  %v3469_v31 = vmax.f32 %v982_v13, 0.0  ;;  %v1035_v10 = vadd.f32 %v3861_v55, %v3851_v58  ;;  %v1214_v12 = vadd.f32 %v1213_v33, %v1191_v17  ;;  %v3872_v17 = vld [vmem:[#allocation48_spill] sm:$0xff]  ;;  %v3874_v58 = vld [vmem:[#allocation30_spill] sm:$0xff]  ;;  %v3881_v13 = vld [vmem:[#allocation87_spill] sm:$0xff] }
 0x16e   :  { %v1359_v56 = vadd.f32 %v1358_v5, %v1336_v60  ;;  %v1503_v2 = vadd.f32 %v1502_v35, %v1480_v0  ;;  %v1647_v24 = vadd.f32 %v1646_v51, %v1624_v1  ;;  %v1482_v26 = vmul.f32 %v3863_v6, %v3862_v45  ;;  %v3876_v27 = vld [vmem:[#allocation66_spill] sm:$0xff]  ;;  %v1841_v60 = vld [vmem:[%s3565_s3 + $0x230] sm:$0xff]  ;;  %v3884_v0 = vld [vmem:[#allocation67_spill] sm:$0xff] }
 0x16f   :  { %v1626_v63 = vmul.f32 %v3864_v25, %v3862_v45  ;;  %v1159_v43 = vadd.f32 %v1158_v3, %v3865_v11  ;;  %v1300_v36 = vadd.f32 %v3867_v39, %v3866_v54  ;;  %v1194_v19 = vmul.f32 %v3868_v44, %v3464_v30  ;;  %v3879_v57 = vld [vmem:[#allocation62_spill] sm:$0xff]  ;;  %v1842_v53 = vld [vmem:[%s3565_s3 + $0x238] sm:$0xff]  ;;  %v3885_v52 = vld [vmem:[#allocation55_spill] sm:$0xff] }
 0x170   :  { %v1339_v18 = vmul.f32 %v3869_v46, %v3464_v30  ;;  %v3487_v28 = vmax.f32 %v1035_v10, 0.0  ;;  %v1215_v8 = vadd.f32 %v1214_v12, %v3870_v59  ;;  %v1483_v20 = vmul.f32 %v3871_v23, %v3464_v30  ;;  %v3880_v7 = vld [vmem:[#allocation70_spill] sm:$0xff]  ;;  %v3886_v5 = vld [vmem:[#allocation31_spill] sm:$0xff]  ;;  %v3887_v51 = vld [vmem:[#allocation93_spill] sm:$0xff] }
 0x171   :  { %1160 = vadd.xlane.f32.xlu0 %v1159_v43  ;;  %v1282_v40 = vmul.f32 %v1818_v49, %v3872_v17  ;;  %v1301_v37 = vadd.f32 %v1300_v36, %v3873_v48  ;;  %v1360_v41 = vadd.f32 %v1359_v56, %v3874_v58  ;;  %v1195_v16 = vmul.f32 %v3875_v29, %v3469_v31  ;;  %v3883_v32 = vld [vmem:[#allocation34_spill] sm:$0xff]  ;;  %v3888_v10 = vld [vmem:[#allocation47_spill] sm:$0xff]  ;;  %v3895_v23 = vld [vmem:[#allocation56_spill] sm:$0xff] }
 0x172   :  { %v1196_v50 = vmul.f32 %v3876_v27, %v3467_v22  ;;  %v1216_v62 = vadd.f32 %v1215_v8, %v3877_v42  ;;  %v1444_v38 = vadd.f32 %v3879_v57, %v3878_v34  ;;  %v1340_v4 = vmul.f32 %v3881_v13, %v3469_v31  ;;  %v3889_v45 = vld [vmem:[#allocation71_spill] sm:$0xff]  ;;  %v3896_v29 = vld [vmem:[#allocation32_spill] sm:$0xff] }
 0x173   :  { %v1302_v9 = vadd.f32 %v1301_v37, %v3880_v7  ;;  %v1341_v47 = vmul.f32 %v3882_v15, %v3467_v22  ;;  %v1361_v61 = vadd.f32 %v1360_v41, %v3883_v32  ;;  %v1197_v14 = vmul.f32 %v3884_v0, %v3487_v28  ;;  %v3890_v11 = vld [vmem:[#allocation91_spill] sm:$0xff]  ;;  %v1865_v41 = vld [vmem:[%s3565_s3 + $0x2f0] sm:$0xff] }
 0x174   :  { %v1217_v1 = vadd.f32 %v1216_v62, %v1194_v19  ;;  %v1445_v33 = vadd.f32 %v1444_v38, %v3885_v52  ;;  %v1504_v35 = vadd.f32 %v1503_v2, %v3886_v5  ;;  %v1342_v3 = vmul.f32 %v1818_v49, %v3487_v28  ;;  %v3891_v43 = vld [vmem:[#allocation63_spill] sm:$0xff]  ;;  %v3893_v2 = vld [vmem:[#allocation88_spill] sm:$0xff]  ;;  %v3894_v49 = vld [vmem:[#allocation94_spill] sm:$0xff] }
 0x175   :  { %v1303_v21 = vadd.f32 %v1302_v9, %v3887_v51  ;;  %v1362_v55 = vadd.f32 %v1361_v61, %v1339_v18  ;;  %v1425_v12 = vmul.f32 %v1841_v60, %v3888_v10  ;;  %v1588_v54 = vadd.f32 %v3891_v43, %v3890_v11  ;;  %v3892_v39 = vld [vmem:[#allocation79_spill] sm:$0xff]  ;;  %v3898_v57 = vld [vmem:[#allocation64_spill] sm:$0xff] }
 0x176   :  { %v1218_v56 = vadd.f32 %v1217_v1, %v1195_v16  ;;  %v1446_v6 = vadd.f32 %v1445_v33, %v3889_v45  ;;  %v1505_v25 = vadd.f32 %v1504_v35, %v1482_v26  ;;  %v1426_v19 = vmul.f32 %v1842_v53, %v3872_v17  ;;  %v3897_v34 = vld [vmem:[#allocation75_spill] sm:$0xff] }
 0x177   :  { %v1304_v36 = vadd.f32 %v1303_v21, %v3892_v39  ;;  %v1363_v44 = vadd.f32 %v1362_v55, %v1340_v4  ;;  %v1484_v46 = vmul.f32 %v3893_v2, %v3469_v31  ;;  %v1589_v48 = vadd.f32 %v1588_v54, %v3895_v23  ;;  %v3899_v4 = vld [vmem:[#allocation95_spill] sm:$0xff] }
 0x178   :  { %v1219_v59 = vadd.f32 %v1218_v56, %v1196_v50  ;;  %v1447_v18 = vadd.f32 %v1446_v6, %v3894_v49  ;;  %v1506_v8 = vadd.f32 %v1505_v25, %v1483_v20  ;;  %v1485_v26 = vmul.f32 %v1841_v60, %v3467_v22  ;;  %v1866_v60 = vld [vmem:[%s3565_s3 + $0x2f8] sm:$0xff] }
 0x179   :  { %v1305_v37 = vadd.f32 %v1304_v36, %v1282_v40  ;;  %v1364_v58 = vadd.f32 %v1363_v44, %v1341_v47  ;;  %v1648_v16 = vadd.f32 %v1647_v24, %v3896_v29  ;;  %v1590_v50 = vadd.f32 %v1589_v48, %v3897_v34  ;;  %v3900_v47 = vld [vmem:[#allocation89_spill] sm:$0xff] }
 0x17a   :  { %v1220_v27 = vadd.f32 %v1219_v59, %v1197_v14  ;;  %v1448_v42 = vadd.f32 %v1447_v18, %v1425_v12  ;;  %v1507_v62 = vadd.f32 %v1506_v8, %v1484_v46  ;;  %v1627_v20 = vmul.f32 %v3898_v57, %v3464_v30 }
 0x17b   :  { %1306 = vadd.xlane.f32.xlu0 %v1305_v37  ;;  %v1365_v38 = vadd.f32 %v1364_v58, %v1342_v3  ;;  %v1486_v40 = vmul.f32 %v1842_v53, %v3487_v28  ;;  %v1649_v7 = vadd.f32 %v1648_v16, %v1626_v63  ;;  %v1569_v13 = vmul.f32 %v1865_v41, %v3888_v10 }
 0x17c   :  { %1221 = vadd.xlane.f32.xlu1 %v1220_v27  ;;  %v1449_v9 = vadd.f32 %v1448_v42, %v1426_v19  ;;  %v1508_v24 = vadd.f32 %v1507_v62, %v1485_v26  ;;  %v1591_v15 = vadd.f32 %v1590_v50, %v3899_v4  ;;  %v1628_v32 = vmul.f32 %v3900_v47, %v3469_v31 }
 0x17d   :  { %v1650_v30 = vadd.f32 %v1649_v7, %v1627_v20  ;;  %v1570_v0 = vmul.f32 %v1866_v60, %v3872_v17  ;;  %v1629_v1 = vmul.f32 %v1865_v41, %v3467_v22  ;;  %v1630_v52 = vmul.f32 %v1866_v60, %v3487_v28 }
 0x17e   :  { %v1509_v61 = vadd.f32 %v1508_v24, %v1486_v40  ;;  %v1592_v14 = vadd.f32 %v1591_v15, %v1569_v13 }
 0x17f   :  { %1366 = vadd.xlane.f32.xlu0 %v1365_v38  ;;  %v1651_v53 = vadd.f32 %v1650_v30, %v1628_v32 }
 0x180   :  { %1450 = vadd.xlane.f32.xlu1 %v1449_v9  ;;  %v1593_v63 = vadd.f32 %v1592_v14, %v1570_v0  ;;  %v1085_v0 = vlaneseq }
 0x181   :  { %v1652_v33 = vadd.f32 %v1651_v53, %v1629_v1 }
 0x182   :  { %v1086_v14 = vshrl.u32 %v1085_v0, 7  ;;  %v1088_v1 = vand.u32 127, %v1085_v0 }
 0x183   :  { %1510 = vadd.xlane.f32.xlu0 %v1509_v61  ;;  %v1653_v5 = vadd.f32 %v1652_v33, %v1630_v52 }
 0x184   :  { %1594 = vadd.xlane.f32.xlu1 %v1593_v63  ;;  %vm1169_vm1 = vcmp.eq.s32.totalorder %v1086_v14, 0  ;;  %vm1170_vm2 = vcmp.eq.s32.totalorder %v1088_v1, 0  ;;  %vm1230_vm3 = vcmp.eq.s32.totalorder %v1088_v1, 1  ;;  %vm1315_vm4 = vcmp.eq.s32.totalorder %v1086_v14, 1 }
 0x185   :  { %vm1171_vm5 = vmand %vm1169_vm1, %vm1170_vm2  ;;  %vm1459_vm8 = vcmp.eq.s32.totalorder %v1086_v14, 2  ;;  %vm1603_vm11 = vcmp.eq.s32.totalorder %v1086_v14, 3 }
 0x186   :  { %vm1231_vm6 = vmand %vm1169_vm1, %vm1230_vm3 }
 0x187   :  { %1654 = vadd.xlane.f32.xlu0 %v1653_v5  ;;  %vm1316_vm7 = vmand %vm1315_vm4, %vm1170_vm2 }
 0x188   :  { %vm1375_vm9 = vmand %vm1315_vm4, %vm1230_vm3 }
 0x189   :  { %vm1460_vm10 = vmand %vm1459_vm8, %vm1170_vm2 }
 0x18a   :  { %vm1519_vm12 = vmand %vm1459_vm8, %vm1230_vm3 }
 0x18b   :  { %vm1604_vm13 = vmand %vm1603_vm11, %vm1170_vm2 }
 0x18c   :  { %vm1663_vm14 = vmand %vm1603_vm11, %vm1230_vm3 }
 0x1fe   :  { %v1161_v35 = vpop.xlane.xlu0 %1160 }
 0x1ff   :  { %v1162_v31 = vrot.slane %v1161_v35, 4 }
 0x201   :  { %v1163_v51 = vadd.f32 %v1162_v31, %v1161_v35 }
 0x203   :  { %v1164_v21 = vrot.slane %v1163_v51, 2 }
 0x205   :  { %v1165_v3 = vadd.f32 %v1164_v21, %v1163_v51 }
 0x207   :  { %v1166_v17 = vrot.slane %v1165_v3, 1 }
 0x208   :  { %v1307_v55 = vpop.xlane.xlu0 %1306 }
 0x209   :  { %v1308_v10 = vrot.slane %v1307_v55, 4  ;;  %v1167_v12 = vadd.f32 %v1166_v17, %v1165_v3  ;;  %v1222_v22 = vpop.xlane.xlu1 %1221 }
 0x20a   :  { %v1223_v56 = vrot.slane %v1222_v22, 4 }
 0x20b   :  { %v1309_v45 = vadd.f32 %v1308_v10, %v1307_v55  ;;  %1867 = vpush %v1167_v12 }
 0x20c   :  { %v1224_v6 = vadd.f32 %v1223_v56, %v1222_v22  ;;  %v1367_v28 = vpop.xlane.xlu0 %1366 }
 0x20d   :  { %v1310_v25 = vrot.slane %v1309_v45, 2  ;;  %v1368_v11 = vrot.slane %v1367_v28, 4  ;;  %v1451_v43 = vpop.xlane.xlu1 %1450 }
 0x20e   :  { %v1225_v54 = vrot.slane %v1224_v6, 2  ;;  %v1452_v39 = vrot.slane %v1451_v43, 4 }
 0x20f   :  { %v1369_v36 = vadd.f32 %v1368_v11, %v1367_v28  ;;  %v1311_v44 = vadd.f32 %v1310_v25, %v1309_v45 }
 0x210   :  { %v1453_v19 = vadd.f32 %v1452_v39, %v1451_v43  ;;  %v1511_v2 = vpop.xlane.xlu0 %1510  ;;  %v1226_v46 = vadd.f32 %v1225_v54, %v1224_v6 }
 0x211   :  { %v1370_v59 = vrot.slane %v1369_v36, 2  ;;  %v1512_v49 = vrot.slane %v1511_v2, 4  ;;  %v1595_v18 = vpop.xlane.xlu1 %1594  ;;  %v1312_v8 = vrot.slane %v1311_v44, 1 }
 0x212   :  { %v1454_v23 = vrot.slane %v1453_v19, 2  ;;  %v1596_v48 = vrot.slane %v1595_v18, 4  ;;  %v1227_v37 = vrot.slane %v1226_v46, 1 }
 0x213   :  { %v1513_v58 = vadd.f32 %v1512_v49, %v1511_v2  ;;  %v1371_v26 = vadd.f32 %v1370_v59, %v1369_v36  ;;  %v1313_v34 = vadd.f32 %v1312_v8, %v1311_v44 }
 0x214   :  { %v1597_v41 = vadd.f32 %v1596_v48, %v1595_v18  ;;  %v1655_v29 = vpop.xlane.xlu0 %1654  ;;  %v1228_v16 = vadd.f32 %v1227_v37, %v1226_v46  ;;  %v1455_v27 = vadd.f32 %v1454_v23, %v1453_v19 }
 0x215   :  { %v1514_v42 = vrot.slane %v1513_v58, 2  ;;  %v1656_v62 = vrot.slane %v1655_v29, 4  ;;  %v1372_v50 = vrot.slane %v1371_v26, 1 }
 0x216   :  { %v1598_v57 = vrot.slane %v1597_v41, 2  ;;  %1869 = vpush %v1228_v16  ;;  %v1456_v20 = vrot.slane %v1455_v27, 1 }
 0x217   :  { %v1657_v38 = vadd.f32 %v1656_v62, %v1655_v29  ;;  %1871 = vpush %v1313_v34  ;;  %v1373_v40 = vadd.f32 %v1372_v50, %v1371_v26  ;;  %v1515_v60 = vadd.f32 %v1514_v42, %v1513_v58 }
 0x218   :  { %v1599_v7 = vadd.f32 %v1598_v57, %v1597_v41  ;;  %v1457_v9 = vadd.f32 %v1456_v20, %v1455_v27 }
 0x219   :  { %v1658_v24 = vrot.slane %v1657_v38, 2  ;;  %1873 = vpush %v1373_v40  ;;  %v1516_v13 = vrot.slane %v1515_v60, 1 }
 0x21a   :  { %1875 = vpush %v1457_v9  ;;  %v1600_v4 = vrot.slane %v1599_v7, 1 }
 0x21b   :  { %v1659_v15 = vadd.f32 %v1658_v24, %v1657_v38  ;;  %v1517_v47 = vadd.f32 %v1516_v13, %v1515_v60 }
 0x21c   :  { %v1601_v32 = vadd.f32 %v1600_v4, %v1599_v7 }
 0x21d   :  { %1877 = vpush %v1517_v47  ;;  %v1660_v30 = vrot.slane %v1659_v15, 1 }
 0x21e   :  { %1879 = vpush %v1601_v32 }
 0x21f   :  { %v1661_v61 = vadd.f32 %v1660_v30, %v1659_v15 }
 0x221   :  { %1881 = vpush %v1661_v61 }
 0x23c   :  { %s1868_s3 = spop %1867 }
 0x23d   :  { %v1172_v53 = vstv %s1868_s3 }
 0x23e   :  { %v1173_v63 = vsel %vm1171_vm5, %v1172_v53, 0.0 }
 0x247   :  { %s1870_s0 = spop %1869 }
 0x248   :  { %v1232_v52 = vstv %s1870_s0  ;;  %s1872_s23 = spop %1871 }
 0x249   :  { %v1233_v33 = vsel %vm1231_vm6, %v1232_v52, %v1173_v63  ;;  %v1317_v5 = vstv %s1872_s23 }
 0x24a   :  { %v1318_v35 = vsel %vm1316_vm7, %v1317_v5, %v1233_v33  ;;  %s1874_s24 = spop %1873 }
 0x24b   :  { %v1376_v31 = vstv %s1874_s24  ;;  %s1876_s2 = spop %1875 }
 0x24c   :  { %v1377_v51 = vsel %vm1375_vm9, %v1376_v31, %v1318_v35  ;;  %v1461_v21 = vstv %s1876_s2 }
 0x24d   :  { %v1462_v3 = vsel %vm1460_vm10, %v1461_v21, %v1377_v51 }
 0x24e   :  { %s1878_s25 = spop %1877 }
 0x24f   :  { %v1520_v17 = vstv %s1878_s25  ;;  %s1880_s26 = spop %1879 }
 0x250   :  { %v1521_v55 = vsel %vm1519_vm12, %v1520_v17, %v1462_v3  ;;  %v1605_v10 = vstv %s1880_s26 }
 0x251   :  { %v1606_v12 = vsel %vm1604_vm13, %v1605_v10, %v1521_v55 }
 0x252   :  { %s1882_s27 = spop %1881 }
 0x253   :  { %v1664_v22 = vstv %s1882_s27 }
 0x254   :  { %v1665_v56 = vsel %vm1663_vm14, %v1664_v22, %v1606_v12 }
 0x255   :  { %1666 = vst [vmem:[%s3566_s4] sm:$0xff] %v1665_v56 }

// kernel: vae_forward.6
= control target key start
LH: loop header
LB: loop body
LE: loop exit
PB: predicated region body
PF: predicated region fallthrough
CT: control target
= control target key end

     0   :  { %11 = vsyncpa [#allocation3], 0  ;;  %s5023_s0 = inlined_call_operand.vmem [shape: f32[2,2], index: 0, kind: input, shape index: {}]   ;;  %s5024_s1 = inlined_call_operand.vmem [shape: f32[128,768], index: 1, kind: input, shape index: {}]   ;;  %s5025_s2 = inlined_call_operand.vmem [shape: f32[128,768], index: 2, kind: input, shape index: {}]   ;;  %s5026_s3 = inlined_call_operand.vmem [shape: f32[128,768], index: 3, kind: input, shape index: {}]   ;;  %s5027_s4 = inlined_call_operand.vmem [shape: bf16[64,128], index: 4, kind: input, shape index: {}]   ;;  %s5028_s5 = inlined_call_operand.vmem [shape: f32[64,1], index: 5, kind: input, shape index: {}]   ;;  %s5029_s6 = inlined_call_operand.vmem [shape: bf16[64,1536], index: 6, kind: output, shape index: {}]  }
   0x1   :  { %s18_s23 = sshll.u32 %s5023_s0, 4  ;;  %s19_s23 = int_to_ptr.vmem [resolvable:$true] %s18_s23 }
   0x2   :  { %s2537_s24 = scalar_lea.vmem %s19_s23, 32  ;;  %p2542_p1 = scmp.lt.s32.totalorder %s19_s23, %s19_s23 }
   0x3   :  { %p2538_p0 = scmp.ne.s32.totalorder %s19_s23, %s2537_s24  ;;  %p2543_p2 = scmp.lt.s32.totalorder %s2537_s24, %s2537_s24 }
   0x5   :  { %p2544_p3 = por %p2543_p2, %p2542_p1 }
   0x7   :  { %p2545_p4 = pnand %p2544_p3, %p2538_p0 }
   0x9   :  { %2548 = shalt.err (!%p2545_p4)
}
   0xa   :  { %s2551_s25 = smov [#allocation2]  }
   0xb   :  { %21 = dma.vmem_to_smem %s19_s23, 32, %s2551_s25, [#allocation3]  }
   0xc   :  { %2549 = dma.done.wait [#allocation3], 32  }
   0xd   :  { %2550 = vsyncadd [#allocation3], 4294967264 }
   0xe   :  { %35 = sfence }
   0xf   :  { %s341_s26 = sld [smem:[#allocation2]]  ;;  %s2344_s27 = sld [smem:[#allocation2 + $0x1]]  ;;  %v38_v0 = vld [vmem:[%s5024_s1 + $0x8] sm:$0xff]  ;;  %v44_v1 = vld [vmem:[%s5024_s1 + $0x38] sm:$0xff]  ;;  %v37_v41 = vld [vmem:[%s5024_s1] sm:$0xff] }
  0x10   :  { %s2373_s28 = sld [smem:[#allocation2 + $0x80]]  ;;  %s2374_s29 = sld [smem:[#allocation2 + $0x81]]  ;;  %v40_v2 = vld [vmem:[%s5024_s1 + $0x18] sm:$0xff]  ;;  %v134_v3 = vld [vmem:[%s5025_s2 + $0x8] sm:$0xff]  ;;  %v43_v46 = vld [vmem:[%s5024_s1 + $0x30] sm:$0xff] }
  0x11   :  { %v140_v4 = vld [vmem:[%s5025_s2 + $0x38] sm:$0xff]  ;;  %v46_v9 = vld [vmem:[%s5024_s1 + $0x48] sm:$0xff]  ;;  %v133_v47 = vld [vmem:[%s5025_s2] sm:$0xff] }
  0x12   :  { %v136_v10 = vld [vmem:[%s5025_s2 + $0x18] sm:$0xff]  ;;  %v142_v16 = vld [vmem:[%s5025_s2 + $0x48] sm:$0xff]  ;;  %v139_v50 = vld [vmem:[%s5025_s2 + $0x30] sm:$0xff] }
  0x13   :  { %v230_v17 = vld [vmem:[%s5026_s3 + $0x8] sm:$0xff]  ;;  %v236_v18 = vld [vmem:[%s5026_s3 + $0x38] sm:$0xff]  ;;  %v39_v59 = vld [vmem:[%s5024_s1 + $0x10] sm:$0xff] }
  0x14   :  { %v232_v29 = vld [vmem:[%s5026_s3 + $0x18] sm:$0xff]  ;;  %v238_v34 = vld [vmem:[%s5026_s3 + $0x48] sm:$0xff]  ;;  %v229_v61 = vld [vmem:[%s5026_s3] sm:$0xff] }
  0x15   :  { %v2606_v5 = vstv %s341_s26  ;;  %v2610_v8 = vstv %s2344_s27 }
  0x16   :  { %v345_v6 = vmul.f32 %v2606_v5, %v38_v0  ;;  %v351_v7 = vmul.f32 %v2606_v5, %v44_v1  ;;  %v347_v11 = vmul.f32 %v2606_v5, %v40_v2  ;;  %v442_v12 = vmul.f32 %v2610_v8, %v134_v3 }
  0x17   :  { %v448_v13 = vmul.f32 %v2610_v8, %v140_v4  ;;  %v2621_v14 = vstv %s2373_s28  ;;  %v2623_v15 = vstv %s2374_s29  ;;  %v353_v25 = vmul.f32 %v2606_v5, %v46_v9 }
  0x18   :  { %v1376_v19 = vmul.f32 %v2621_v14, %v38_v0  ;;  %v1382_v20 = vmul.f32 %v2621_v14, %v44_v1  ;;  %v1473_v21 = vmul.f32 %v2623_v15, %v134_v3  ;;  %v1479_v22 = vmul.f32 %v2623_v15, %v140_v4  ;;  %v45_v1 = vld [vmem:[%s5024_s1 + $0x40] sm:$0xff] }
  0x19   :  { %v538_v23 = vadd.f32 %v442_v12, %v345_v6  ;;  %v544_v24 = vadd.f32 %v448_v13, %v351_v7  ;;  %v444_v26 = vmul.f32 %v2610_v8, %v136_v10  ;;  %v450_v30 = vmul.f32 %v2610_v8, %v142_v16  ;;  %v235_v6 = vld [vmem:[%s5026_s3 + $0x30] sm:$0xff] }
  0x1a   :  { %v1569_v27 = vadd.f32 %v1473_v21, %v1376_v19  ;;  %v1575_v28 = vadd.f32 %v1479_v22, %v1382_v20  ;;  %v1378_v31 = vmul.f32 %v2621_v14, %v40_v2  ;;  %v1384_v36 = vmul.f32 %v2621_v14, %v46_v9  ;;  %v135_v2 = vld [vmem:[%s5025_s2 + $0x10] sm:$0xff] }
  0x1b   :  { %v634_v32 = vadd.f32 %v538_v23, %v230_v17  ;;  %v640_v33 = vadd.f32 %v544_v24, %v236_v18  ;;  %v540_v35 = vadd.f32 %v444_v26, %v347_v11  ;;  %v546_v39 = vadd.f32 %v450_v30, %v353_v25  ;;  %v231_v23 = vld [vmem:[%s5026_s3 + $0x10] sm:$0xff]  ;;  %v50_v26 = vld [vmem:[%s5024_s1 + $0x68] sm:$0xff] }
  0x1c   :  { %v2649_v37 = vadd.f32 %v1569_v27, %v230_v17  ;;  %v2651_v38 = vadd.f32 %v1575_v28, %v236_v18  ;;  %v1475_v40 = vmul.f32 %v2623_v15, %v136_v10  ;;  %v1481_v45 = vmul.f32 %v2623_v15, %v142_v16  ;;  %v141_v10 = vld [vmem:[%s5025_s2 + $0x40] sm:$0xff] }
  0x1d   :  { %v730_v42 = vmax.f32 %v634_v32, 0.0  ;;  %v736_v43 = vmax.f32 %v640_v33, 0.0  ;;  %v636_v44 = vadd.f32 %v540_v35, %v232_v29  ;;  %v642_v48 = vadd.f32 %v546_v39, %v238_v34  ;;  %v146_v39 = vld [vmem:[%s5025_s2 + $0x68] sm:$0xff] }
  0x1e   :  { %v1571_v49 = vadd.f32 %v1475_v40, %v1378_v31  ;;  %v1577_v53 = vadd.f32 %v1481_v45, %v1384_v36  ;;  %v344_v54 = vmul.f32 %v2606_v5, %v37_v41  ;;  %v350_v57 = vmul.f32 %v2606_v5, %v43_v46  ;;  %v56_v36 = vld [vmem:[%s5024_s1 + $0x98] sm:$0xff] }
  0x1f   :  { %v826_v51 = vpack.c.bf16 %v736_v43, %v730_v42  ;;  %v732_v52 = vmax.f32 %v636_v44, 0.0  ;;  %v738_v55 = vmax.f32 %v642_v48, 0.0  ;;  %v441_v58 = vmul.f32 %v2610_v8, %v133_v47  ;;  %v152_v43 = vld [vmem:[%s5025_s2 + $0x98] sm:$0xff] }
  0x20   :  { %v2668_v56 = vadd.f32 %v1571_v49, %v232_v29  ;;  %v2675_v60 = vadd.f32 %v1577_v53, %v238_v34  ;;  %v447_v62 = vmul.f32 %v2610_v8, %v139_v50  ;;  %v1375_v63 = vmul.f32 %v2621_v14, %v37_v41  ;;  %v237_v29 = vld [vmem:[%s5026_s3 + $0x40] sm:$0xff]  ;;  %v52_v45 = vld [vmem:[%s5024_s1 + $0x78] sm:$0xff] }
  0x21   :  { %937 = vmatprep.subr.bf16.mxu0 %v826_v51  ;;  %v1381_v0 = vmul.f32 %v2621_v14, %v43_v46  ;;  %v828_v4 = vpack.c.bf16 %v738_v55, %v732_v52  ;;  %v537_v7 = vadd.f32 %v441_v58, %v344_v54  ;;  %v1472_v9 = vmul.f32 %v2623_v15, %v133_v47  ;;  %v148_v51 = vld [vmem:[%s5025_s2 + $0x78] sm:$0xff] }
  0x22   :  { %v543_v12 = vadd.f32 %v447_v62, %v350_v57  ;;  %v1478_v13 = vmul.f32 %v2623_v15, %v139_v50  ;;  %v346_v16 = vmul.f32 %v2606_v5, %v39_v59  ;;  %v352_v19 = vmul.f32 %v2606_v5, %v45_v1  ;;  %v58_v50 = vld [vmem:[%s5024_s1 + $0xa8] sm:$0xff] }
  0x23   :  { %1010 = vmatprep.subr.bf16.mxu1 %v828_v4  ;;  %v633_v17 = vadd.f32 %v537_v7, %v229_v61  ;;  %v1568_v18 = vadd.f32 %v1472_v9, %v1375_v63  ;;  %v443_v20 = vmul.f32 %v2610_v8, %v135_v2  ;;  %v449_v24 = vmul.f32 %v2610_v8, %v141_v10  ;;  %v154_v57 = vld [vmem:[%s5025_s2 + $0xa8] sm:$0xff]  ;;  %v55_v9 = vld [vmem:[%s5024_s1 + $0x90] sm:$0xff] }
  0x24   :  { %v639_v21 = vadd.f32 %v543_v12, %v235_v6  ;;  %v1574_v22 = vadd.f32 %v1478_v13, %v1381_v0  ;;  %v1377_v25 = vmul.f32 %v2621_v14, %v39_v59  ;;  %v1383_v31 = vmul.f32 %v2621_v14, %v45_v1  ;;  %v49_v0 = vld [vmem:[%s5024_s1 + $0x60] sm:$0xff] }
  0x25   :  { %v729_v27 = vmax.f32 %v633_v17, 0.0  ;;  %v2710_v28 = vadd.f32 %v1568_v18, %v229_v61  ;;  %v539_v30 = vadd.f32 %v443_v20, %v346_v16  ;;  %v545_v34 = vadd.f32 %v449_v24, %v352_v19  ;;  %v242_v61 = vld [vmem:[%s5026_s3 + $0x68] sm:$0xff]  ;;  %v244_v17 = vld [vmem:[%s5026_s3 + $0x78] sm:$0xff]  ;;  %v151_v19 = vld [vmem:[%s5025_s2 + $0x90] sm:$0xff] }
  0x26   :  { %v735_v32 = vmax.f32 %v639_v21, 0.0  ;;  %v2716_v33 = vadd.f32 %v1574_v22, %v235_v6  ;;  %v1474_v35 = vmul.f32 %v2623_v15, %v135_v2  ;;  %v1480_v42 = vmul.f32 %v2623_v15, %v141_v10  ;;  %v248_v2 = vld [vmem:[%s5026_s3 + $0x98] sm:$0xff]  ;;  %v145_v10 = vld [vmem:[%s5025_s2 + $0x60] sm:$0xff]  ;;  %v250_v22 = vld [vmem:[%s5026_s3 + $0xa8] sm:$0xff] }
  0x27   :  { %v635_v41 = vadd.f32 %v539_v30, %v231_v23  ;;  %v357_v44 = vmul.f32 %v2606_v5, %v50_v26  ;;  %v641_v48 = vadd.f32 %v545_v34, %v237_v29  ;;  %v363_v54 = vmul.f32 %v2606_v5, %v56_v36  ;;  %v51_v36 = vld [vmem:[%s5024_s1 + $0x70] sm:$0xff] }
  0x28   :  { %v825_v47 = vpack.c.bf16 %v735_v32, %v729_v27  ;;  %v1570_v49 = vadd.f32 %v1474_v35, %v1377_v25  ;;  %v1576_v53 = vadd.f32 %v1480_v42, %v1383_v31  ;;  %v454_v55 = vmul.f32 %v2610_v8, %v146_v39  ;;  %v241_v32 = vld [vmem:[%s5026_s3 + $0x60] sm:$0xff]  ;;  %v247_v42 = vld [vmem:[%s5026_s3 + $0x90] sm:$0xff] }
  0x29   :  { %v731_v52 = vmax.f32 %v635_v41, 0.0  ;;  %v737_v58 = vmax.f32 %v641_v48, 0.0  ;;  %v460_v62 = vmul.f32 %v2610_v8, %v152_v43  ;;  %v359_v63 = vmul.f32 %v2606_v5, %v52_v45  ;;  %v57_v45 = vld [vmem:[%s5024_s1 + $0xa0] sm:$0xff] }
  0x2a   :  { %938 = vmatpush1.bf16.msra.mxu0 %v825_v47  ;;  %v2746_v59 = vadd.f32 %v1570_v49, %v231_v23  ;;  %v2756_v1 = vadd.f32 %v1576_v53, %v237_v29  ;;  %v550_v4 = vadd.f32 %v454_v55, %v357_v44  ;;  %v365_v6 = vmul.f32 %v2606_v5, %v58_v50 }
  0x2b   :  { %v456_v7 = vmul.f32 %v2610_v8, %v148_v51  ;;  %v827_v13 = vpack.c.bf16 %v737_v58, %v731_v52  ;;  %v556_v16 = vadd.f32 %v460_v62, %v363_v54  ;;  %v462_v18 = vmul.f32 %v2610_v8, %v154_v57  ;;  %v147_v51 = vld [vmem:[%s5025_s2 + $0x70] sm:$0xff]  ;;  %v153_v52 = vld [vmem:[%s5025_s2 + $0xa0] sm:$0xff] }
  0x2c   :  { %v646_v21 = vadd.f32 %v550_v4, %v242_v61  ;;  %v356_v24 = vmul.f32 %v2606_v5, %v49_v0  ;;  %v362_v27 = vmul.f32 %v2606_v5, %v55_v9  ;;  %v453_v29 = vmul.f32 %v2610_v8, %v145_v10 }
  0x2d   :  { %v552_v23 = vadd.f32 %v456_v7, %v359_v63  ;;  %1011 = vmatpush1.bf16.msra.mxu1 %v827_v13  ;;  %v652_v25 = vadd.f32 %v556_v16, %v248_v2  ;;  %v558_v26 = vadd.f32 %v462_v18, %v365_v6  ;;  %v459_v34 = vmul.f32 %v2610_v8, %v151_v19  ;;  %v243_v13 = vld [vmem:[%s5026_s3 + $0x70] sm:$0xff]  ;;  %v249_v16 = vld [vmem:[%s5026_s3 + $0xa0] sm:$0xff]  ;;  %v62_v18 = vld [vmem:[%s5024_s1 + $0xc8] sm:$0xff] }
  0x2e   :  { %v742_v30 = vmax.f32 %v646_v21, 0.0  ;;  %v1387_v35 = vmul.f32 %v2621_v14, %v49_v0  ;;  %v549_v43 = vadd.f32 %v453_v29, %v356_v24  ;;  %v1393_v44 = vmul.f32 %v2621_v14, %v55_v9  ;;  %v68_v24 = vld [vmem:[%s5024_s1 + $0xf8] sm:$0xff] }
  0x2f   :  { %v648_v31 = vadd.f32 %v552_v23, %v244_v17  ;;  %v748_v39 = vmax.f32 %v652_v25, 0.0  ;;  %v654_v41 = vadd.f32 %v558_v26, %v250_v22  ;;  %v555_v48 = vadd.f32 %v459_v34, %v362_v27  ;;  %v158_v25 = vld [vmem:[%s5025_s2 + $0xc8] sm:$0xff]  ;;  %v164_v26 = vld [vmem:[%s5025_s2 + $0xf8] sm:$0xff] }
  0x30   :  { %v1484_v49 = vmul.f32 %v2623_v15, %v145_v10  ;;  %v1490_v50 = vmul.f32 %v2623_v15, %v151_v19  ;;  %v645_v55 = vadd.f32 %v549_v43, %v241_v32  ;;  %v358_v57 = vmul.f32 %v2606_v5, %v51_v36 }
  0x31   :  { %v744_v47 = vmax.f32 %v648_v31, 0.0  ;;  %v832_v53 = vpack.c.bf16 %v748_v39, %v742_v30  ;;  %v750_v54 = vmax.f32 %v654_v41, 0.0  ;;  %v651_v58 = vadd.f32 %v555_v48, %v247_v42  ;;  %v70_v41 = vld [vmem:[%s5024_s1 + $0x108] sm:$0xff] }
  0x32   :  { %v1580_v61 = vadd.f32 %v1484_v49, %v1387_v35  ;;  %v1586_v62 = vadd.f32 %v1490_v50, %v1393_v44  ;;  %v364_v63 = vmul.f32 %v2606_v5, %v57_v45  ;;  %v741_v2 = vmax.f32 %v645_v55, 0.0  ;;  %v166_v48 = vld [vmem:[%s5025_s2 + $0x108] sm:$0xff]  ;;  %v61_v55 = vld [vmem:[%s5024_s1 + $0xc0] sm:$0xff] }
  0x33   :  { %939 = vmatprep.subr.bf16.mxu0 %v832_v53  ;;  %v834_v0 = vpack.c.bf16 %v750_v54, %v744_v47  ;;  %v455_v4 = vmul.f32 %v2610_v8, %v147_v51  ;;  %v461_v6 = vmul.f32 %v2610_v8, %v153_v52  ;;  %v747_v7 = vmax.f32 %v651_v58, 0.0  ;;  %v160_v47 = vld [vmem:[%s5025_s2 + $0xd8] sm:$0xff] }
  0x34   :  { %v2811_v9 = vadd.f32 %v1580_v61, %v241_v32  ;;  %v2813_v10 = vadd.f32 %v1586_v62, %v247_v42  ;;  %v1389_v17 = vmul.f32 %v2621_v14, %v51_v36  ;;  %v1395_v22 = vmul.f32 %v2621_v14, %v57_v45  ;;  %v64_v32 = vld [vmem:[%s5024_s1 + $0xd8] sm:$0xff] }
  0x35   :  { %1012 = vmatprep.subr.bf16.mxu1 %v834_v0  ;;  %v551_v19 = vadd.f32 %v455_v4, %v358_v57  ;;  %v557_v21 = vadd.f32 %v461_v6, %v364_v63  ;;  %v1486_v23 = vmul.f32 %v2623_v15, %v147_v51  ;;  %v831_v30 = vpack.c.bf16 %v747_v7, %v741_v2  ;;  %v260_v53 = vld [vmem:[%s5026_s3 + $0xf8] sm:$0xff]  ;;  %v67_v63 = vld [vmem:[%s5024_s1 + $0xf0] sm:$0xff]  ;;  %v157_v0 = vld [vmem:[%s5025_s2 + $0xc0] sm:$0xff] }
  0x36   :  { %v1492_v31 = vmul.f32 %v2623_v15, %v153_v52  ;;  %v369_v39 = vmul.f32 %v2606_v5, %v62_v18  ;;  %v375_v43 = vmul.f32 %v2606_v5, %v68_v24  ;;  %v466_v44 = vmul.f32 %v2610_v8, %v158_v25  ;;  %v254_v52 = vld [vmem:[%s5026_s3 + $0xc8] sm:$0xff] }
  0x37   :  { %v647_v34 = vadd.f32 %v551_v19, %v243_v13  ;;  %v653_v35 = vadd.f32 %v557_v21, %v249_v16  ;;  %v1582_v36 = vadd.f32 %v1486_v23, %v1389_v17  ;;  %940 = vmatpush1.bf16.msra.mxu0 %v831_v30  ;;  %v472_v45 = vmul.f32 %v2610_v8, %v164_v26  ;;  %v256_v19 = vld [vmem:[%s5026_s3 + $0xd8] sm:$0xff]  ;;  %v262_v21 = vld [vmem:[%s5026_s3 + $0x108] sm:$0xff] }
  0x38   :  { %v1588_v42 = vadd.f32 %v1492_v31, %v1395_v22  ;;  %v371_v54 = vmul.f32 %v2606_v5, %v64_v32  ;;  %v562_v58 = vadd.f32 %v466_v44, %v369_v39  ;;  %v377_v62 = vmul.f32 %v2606_v5, %v70_v41  ;;  %v253_v32 = vld [vmem:[%s5026_s3 + $0xc0] sm:$0xff] }
  0x39   :  { %v743_v49 = vmax.f32 %v647_v34, 0.0  ;;  %v749_v50 = vmax.f32 %v653_v35, 0.0  ;;  %v2855_v51 = vadd.f32 %v1582_v36, %v243_v13  ;;  %v568_v61 = vadd.f32 %v472_v45, %v375_v43  ;;  %v163_v13 = vld [vmem:[%s5025_s2 + $0xf0] sm:$0xff]  ;;  %v69_v45 = vld [vmem:[%s5024_s1 + $0x100] sm:$0xff] }
  0x3a   :  { %v2867_v57 = vadd.f32 %v1588_v42, %v249_v16  ;;  %v468_v6 = vmul.f32 %v2610_v8, %v160_v47  ;;  %v474_v7 = vmul.f32 %v2610_v8, %v166_v48  ;;  %v658_v17 = vadd.f32 %v562_v58, %v254_v52  ;;  %v63_v36 = vld [vmem:[%s5024_s1 + $0xd0] sm:$0xff] }
  0x3b   :  { %5117 = vst [vmem:[#allocation5_spill] sm:$0xff] %v2855_v51  ;;  %v833_v4 = vpack.c.bf16 %v749_v50, %v743_v49  ;;  %v664_v18 = vadd.f32 %v568_v61, %v260_v53  ;;  %v368_v22 = vmul.f32 %v2606_v5, %v61_v55  ;;  %v374_v25 = vmul.f32 %v2606_v5, %v67_v63  ;;  %v259_v42 = vld [vmem:[%s5026_s3 + $0xf0] sm:$0xff]  ;;  %v165_v53 = vld [vmem:[%s5025_s2 + $0x100] sm:$0xff] }
  0x3c   :  { %5118 = vst [vmem:[#allocation6_spill] sm:$0xff] %v2867_v57  ;;  %v564_v23 = vadd.f32 %v468_v6, %v371_v54  ;;  %v570_v24 = vadd.f32 %v474_v7, %v377_v62  ;;  %v465_v26 = vmul.f32 %v2610_v8, %v157_v0  ;;  %v754_v30 = vmax.f32 %v658_v17, 0.0  ;;  %v159_v52 = vld [vmem:[%s5025_s2 + $0xd0] sm:$0xff] }
  0x3d   :  { %1013 = vmatpush1.bf16.msra.mxu1 %v833_v4  ;;  %v760_v31 = vmax.f32 %v664_v18, 0.0  ;;  %v471_v34 = vmul.f32 %v2610_v8, %v163_v13  ;;  %v1399_v35 = vmul.f32 %v2621_v14, %v61_v55  ;;  %v1405_v44 = vmul.f32 %v2621_v14, %v67_v63 }
  0x3e   :  { %v660_v39 = vadd.f32 %v564_v23, %v256_v19  ;;  %v666_v41 = vadd.f32 %v570_v24, %v262_v21  ;;  %v561_v43 = vadd.f32 %v465_v26, %v368_v22  ;;  %v1496_v49 = vmul.f32 %v2623_v15, %v157_v0  ;;  %v255_v22 = vld [vmem:[%s5026_s3 + $0xd0] sm:$0xff]  ;;  %v261_v23 = vld [vmem:[%s5026_s3 + $0x100] sm:$0xff] }
  0x3f   :  { %v838_v47 = vpack.c.bf16 %v760_v31, %v754_v30  ;;  %v567_v48 = vadd.f32 %v471_v34, %v374_v25  ;;  %v1502_v50 = vmul.f32 %v2623_v15, %v163_v13  ;;  %v370_v61 = vmul.f32 %v2606_v5, %v63_v36  ;;  %v74_v25 = vld [vmem:[%s5024_s1 + $0x128] sm:$0xff]  ;;  %v80_v34 = vld [vmem:[%s5024_s1 + $0x158] sm:$0xff] }
  0x40   :  { %v756_v54 = vmax.f32 %v660_v39, 0.0  ;;  %v762_v55 = vmax.f32 %v666_v41, 0.0  ;;  %v657_v58 = vadd.f32 %v561_v43, %v253_v32  ;;  %v1592_v63 = vadd.f32 %v1496_v49, %v1399_v35  ;;  %v170_v35 = vld [vmem:[%s5025_s2 + $0x128] sm:$0xff] }
  0x41   :  { %941 = vmatprep.subr.bf16.mxu0 %v838_v47  ;;  %v663_v62 = vadd.f32 %v567_v48, %v259_v42  ;;  %v1598_v4 = vadd.f32 %v1502_v50, %v1405_v44  ;;  %v376_v0 = vmul.f32 %v2606_v5, %v69_v45  ;;  %v467_v13 = vmul.f32 %v2610_v8, %v159_v52  ;;  %v76_v44 = vld [vmem:[%s5024_s1 + $0x138] sm:$0xff]  ;;  %v82_v50 = vld [vmem:[%s5024_s1 + $0x168] sm:$0xff] }
  0x42   :  { %v840_v6 = vpack.c.bf16 %v762_v55, %v756_v54  ;;  %v753_v7 = vmax.f32 %v657_v58, 0.0  ;;  %v473_v17 = vmul.f32 %v2610_v8, %v165_v53  ;;  %v2919_v19 = vadd.f32 %v1592_v63, %v253_v32  ;;  %v172_v58 = vld [vmem:[%s5025_s2 + $0x138] sm:$0xff] }
  0x43   :  { %v759_v18 = vmax.f32 %v663_v62, 0.0  ;;  %v2921_v21 = vadd.f32 %v1598_v4, %v259_v42  ;;  %v1401_v24 = vmul.f32 %v2621_v14, %v63_v36  ;;  %v563_v26 = vadd.f32 %v467_v13, %v370_v61  ;;  %v176_v36 = vld [vmem:[%s5025_s2 + $0x158] sm:$0xff]  ;;  %v178_v61 = vld [vmem:[%s5025_s2 + $0x168] sm:$0xff]  ;;  %v73_v13 = vld [vmem:[%s5024_s1 + $0x120] sm:$0xff] }
  0x44   :  { %1014 = vmatprep.subr.bf16.mxu1 %v840_v6  ;;  %v569_v30 = vadd.f32 %v473_v17, %v376_v0  ;;  %v1407_v31 = vmul.f32 %v2621_v14, %v69_v45  ;;  %v1498_v32 = vmul.f32 %v2623_v15, %v159_v52  ;;  %v1504_v43 = vmul.f32 %v2623_v15, %v165_v53  ;;  %v266_v0 = vld [vmem:[%s5026_s3 + $0x128] sm:$0xff]  ;;  %v272_v6 = vld [vmem:[%s5026_s3 + $0x158] sm:$0xff] }
  0x45   :  { %v837_v42 = vpack.c.bf16 %v759_v18, %v753_v7  ;;  %v659_v45 = vadd.f32 %v563_v26, %v255_v22  ;;  %v381_v49 = vmul.f32 %v2606_v5, %v74_v25  ;;  %v387_v54 = vmul.f32 %v2606_v5, %v80_v34  ;;  %v79_v25 = vld [vmem:[%s5024_s1 + $0x150] sm:$0xff]  ;;  %v169_v26 = vld [vmem:[%s5025_s2 + $0x120] sm:$0xff] }
  0x46   :  { %v665_v47 = vadd.f32 %v569_v30, %v261_v23  ;;  %v1594_v48 = vadd.f32 %v1498_v32, %v1401_v24  ;;  %v1600_v52 = vadd.f32 %v1504_v43, %v1407_v31  ;;  %v478_v55 = vmul.f32 %v2610_v8, %v170_v35  ;;  %v175_v34 = vld [vmem:[%s5025_s2 + $0x150] sm:$0xff]  ;;  %v268_v43 = vld [vmem:[%s5026_s3 + $0x138] sm:$0xff] }
  0x47   :  { %942 = vmatpush1.bf16.msra.mxu0 %v837_v42  ;;  %v484_v53 = vmul.f32 %v2610_v8, %v176_v36  ;;  %v755_v62 = vmax.f32 %v659_v45, 0.0  ;;  %v383_v7 = vmul.f32 %v2606_v5, %v76_v44  ;;  %v480_v32 = vmul.f32 %v2610_v8, %v172_v58  ;;  %v274_v44 = vld [vmem:[%s5026_s3 + $0x168] sm:$0xff] }
  0x48   :  { %v761_v63 = vmax.f32 %v665_v47, 0.0  ;;  %v2963_v4 = vadd.f32 %v1594_v48, %v255_v22  ;;  %v2975_v17 = vadd.f32 %v1600_v52, %v261_v23  ;;  %v574_v18 = vadd.f32 %v478_v55, %v381_v49  ;;  %v265_v55 = vld [vmem:[%s5026_s3 + $0x120] sm:$0xff] }
  0x49   :  { %v580_v24 = vadd.f32 %v484_v53, %v387_v54  ;;  %v389_v22 = vmul.f32 %v2606_v5, %v82_v50  ;;  %v486_v23 = vmul.f32 %v2610_v8, %v178_v61  ;;  %v380_v45 = vmul.f32 %v2606_v5, %v73_v13  ;;  %v75_v61 = vld [vmem:[%s5024_s1 + $0x130] sm:$0xff] }
  0x4a   :  { %5119 = vst [vmem:[#allocation7_spill] sm:$0xff] %v2963_v4  ;;  %5120 = vst [vmem:[#allocation8_spill] sm:$0xff] %v2975_v17  ;;  %v839_v31 = vpack.c.bf16 %v761_v63, %v755_v62  ;;  %v670_v36 = vadd.f32 %v574_v18, %v266_v0  ;;  %v576_v47 = vadd.f32 %v480_v32, %v383_v7  ;;  %v271_v0 = vld [vmem:[%s5026_s3 + $0x150] sm:$0xff]  ;;  %v81_v18 = vld [vmem:[%s5024_s1 + $0x160] sm:$0xff] }
  0x4b   :  { %v676_v42 = vadd.f32 %v580_v24, %v272_v6  ;;  %v582_v48 = vadd.f32 %v486_v23, %v389_v22  ;;  %v386_v49 = vmul.f32 %v2606_v5, %v79_v25  ;;  %v477_v50 = vmul.f32 %v2610_v8, %v169_v26  ;;  %v171_v32 = vld [vmem:[%s5025_s2 + $0x130] sm:$0xff]  ;;  %v177_v23 = vld [vmem:[%s5025_s2 + $0x160] sm:$0xff] }
  0x4c   :  { %1015 = vmatpush1.bf16.msra.mxu1 %v839_v31  ;;  %v766_v52 = vmax.f32 %v670_v36, 0.0  ;;  %v483_v53 = vmul.f32 %v2610_v8, %v175_v34  ;;  %v1411_v58 = vmul.f32 %v2621_v14, %v73_v13  ;;  %v672_v62 = vadd.f32 %v576_v47, %v268_v43 }
  0x4d   :  { %v772_v54 = vmax.f32 %v676_v42, 0.0  ;;  %v678_v63 = vadd.f32 %v582_v48, %v274_v44  ;;  %v573_v6 = vadd.f32 %v477_v50, %v380_v45  ;;  %v1417_v7 = vmul.f32 %v2621_v14, %v79_v25 }
  0x4e   :  { %v579_v22 = vadd.f32 %v483_v53, %v386_v49  ;;  %v1508_v13 = vmul.f32 %v2623_v15, %v169_v26  ;;  %v1514_v31 = vmul.f32 %v2623_v15, %v175_v34  ;;  %v768_v36 = vmax.f32 %v672_v62, 0.0  ;;  %v267_v62 = vld [vmem:[%s5026_s3 + $0x130] sm:$0xff] }
  0x4f   :  { %v844_v24 = vpack.c.bf16 %v772_v54, %v766_v52  ;;  %v774_v25 = vmax.f32 %v678_v63, 0.0  ;;  %v669_v42 = vadd.f32 %v573_v6, %v265_v55  ;;  %v382_v43 = vmul.f32 %v2606_v5, %v75_v61  ;;  %v86_v6 = vld [vmem:[%s5024_s1 + $0x188] sm:$0xff] }
  0x50   :  { %v675_v44 = vadd.f32 %v579_v22, %v271_v0  ;;  %v1604_v45 = vadd.f32 %v1508_v13, %v1411_v58  ;;  %v1610_v47 = vadd.f32 %v1514_v31, %v1417_v7  ;;  %v388_v26 = vmul.f32 %v2606_v5, %v81_v18  ;;  %v273_v58 = vld [vmem:[%s5026_s3 + $0x160] sm:$0xff]  ;;  %v92_v22 = vld [vmem:[%s5024_s1 + $0x1b8] sm:$0xff]  ;;  %v182_v13 = vld [vmem:[%s5025_s2 + $0x188] sm:$0xff] }
  0x51   :  { %943 = vmatprep.subr.bf16.mxu0 %v844_v24  ;;  %v846_v34 = vpack.c.bf16 %v774_v25, %v768_v36  ;;  %v765_v48 = vmax.f32 %v669_v42, 0.0  ;;  %v479_v49 = vmul.f32 %v2610_v8, %v171_v32  ;;  %v485_v50 = vmul.f32 %v2610_v8, %v177_v23 }
  0x52   :  { %v771_v52 = vmax.f32 %v675_v44, 0.0  ;;  %v3027_v54 = vadd.f32 %v1604_v45, %v265_v55  ;;  %v3029_v53 = vadd.f32 %v1610_v47, %v271_v0  ;;  %v1413_v63 = vmul.f32 %v2621_v14, %v75_v61  ;;  %v188_v61 = vld [vmem:[%s5025_s2 + $0x1b8] sm:$0xff]  ;;  %v94_v47 = vld [vmem:[%s5024_s1 + $0x1c8] sm:$0xff] }
  0x53   :  { %1016 = vmatprep.subr.bf16.mxu1 %v846_v34  ;;  %v575_v7 = vadd.f32 %v479_v49, %v382_v43  ;;  %v581_v55 = vadd.f32 %v485_v50, %v388_v26  ;;  %v1419_v0 = vmul.f32 %v2621_v14, %v81_v18  ;;  %v1510_v24 = vmul.f32 %v2623_v15, %v171_v32  ;;  %v88_v32 = vld [vmem:[%s5024_s1 + $0x198] sm:$0xff]  ;;  %v190_v50 = vld [vmem:[%s5025_s2 + $0x1c8] sm:$0xff] }
  0x54   :  { %v843_v25 = vpack.c.bf16 %v771_v52, %v765_v48  ;;  %v1516_v18 = vmul.f32 %v2623_v15, %v177_v23  ;;  %v393_v45 = vmul.f32 %v2606_v5, %v86_v6  ;;  %v399_v34 = vmul.f32 %v2606_v5, %v92_v22  ;;  %v184_v49 = vld [vmem:[%s5025_s2 + $0x198] sm:$0xff] }
  0x55   :  { %v671_v42 = vadd.f32 %v575_v7, %v267_v62  ;;  %v677_v43 = vadd.f32 %v581_v55, %v273_v58  ;;  %v1606_v44 = vadd.f32 %v1510_v24, %v1413_v63  ;;  %v490_v48 = vmul.f32 %v2610_v8, %v182_v13  ;;  %v278_v7 = vld [vmem:[%s5026_s3 + $0x188] sm:$0xff]  ;;  %v284_v55 = vld [vmem:[%s5026_s3 + $0x1b8] sm:$0xff]  ;;  %v85_v24 = vld [vmem:[%s5024_s1 + $0x180] sm:$0xff] }
  0x56   :  { %944 = vmatpush1.bf16.msra.mxu0 %v843_v25  ;;  %v1612_v26 = vadd.f32 %v1516_v18, %v1419_v0  ;;  %v496_v23 = vmul.f32 %v2610_v8, %v188_v61  ;;  %v395_v0 = vmul.f32 %v2606_v5, %v88_v32  ;;  %v91_v25 = vld [vmem:[%s5024_s1 + $0x1b0] sm:$0xff]  ;;  %v181_v18 = vld [vmem:[%s5025_s2 + $0x180] sm:$0xff] }
  0x57   :  { %v767_v52 = vmax.f32 %v671_v42, 0.0  ;;  %v773_v63 = vmax.f32 %v677_v43, 0.0  ;;  %v3071_v6 = vadd.f32 %v1606_v44, %v267_v62  ;;  %v586_v13 = vadd.f32 %v490_v48, %v393_v45  ;;  %v187_v44 = vld [vmem:[%s5025_s2 + $0x1b0] sm:$0xff]  ;;  %v286_v48 = vld [vmem:[%s5026_s3 + $0x1c8] sm:$0xff] }
  0x58   :  { %v3083_v22 = vadd.f32 %v1612_v26, %v273_v58  ;;  %v592_v61 = vadd.f32 %v496_v23, %v399_v34  ;;  %v401_v62 = vmul.f32 %v2606_v5, %v94_v47  ;;  %v492_v43 = vmul.f32 %v2610_v8, %v184_v49  ;;  %v280_v34 = vld [vmem:[%s5026_s3 + $0x198] sm:$0xff] }
  0x59   :  { %5121 = vst [vmem:[#allocation9_spill] sm:$0xff] %v3071_v6  ;;  %v845_v42 = vpack.c.bf16 %v773_v63, %v767_v52  ;;  %v498_v58 = vmul.f32 %v2610_v8, %v190_v50  ;;  %v682_v47 = vadd.f32 %v586_v13, %v278_v7  ;;  %v392_v23 = vmul.f32 %v2606_v5, %v85_v24 }
  0x5a   :  { %5122 = vst [vmem:[#allocation10_spill] sm:$0xff] %v3083_v22  ;;  %v688_v26 = vadd.f32 %v592_v61, %v284_v55  ;;  %v588_v49 = vadd.f32 %v492_v43, %v395_v0  ;;  %v398_v52 = vmul.f32 %v2606_v5, %v91_v25  ;;  %v489_v63 = vmul.f32 %v2610_v8, %v181_v18  ;;  %v277_v55 = vld [vmem:[%s5026_s3 + $0x180] sm:$0xff]  ;;  %v283_v43 = vld [vmem:[%s5026_s3 + $0x1b0] sm:$0xff] }
  0x5b   :  { %1017 = vmatpush1.bf16.msra.mxu1 %v845_v42  ;;  %v594_v50 = vadd.f32 %v498_v58, %v401_v62  ;;  %v778_v36 = vmax.f32 %v682_v47, 0.0  ;;  %v495_v13 = vmul.f32 %v2610_v8, %v187_v44  ;;  %v1423_v61 = vmul.f32 %v2621_v14, %v85_v24  ;;  %v87_v42 = vld [vmem:[%s5024_s1 + $0x190] sm:$0xff] }
  0x5c   :  { %v784_v7 = vmax.f32 %v688_v26, 0.0  ;;  %v684_v0 = vadd.f32 %v588_v49, %v280_v34  ;;  %v585_v58 = vadd.f32 %v489_v63, %v392_v23  ;;  %v1429_v47 = vmul.f32 %v2621_v14, %v91_v25  ;;  %v93_v26 = vld [vmem:[%s5024_s1 + $0x1c0] sm:$0xff]  ;;  %v183_v34 = vld [vmem:[%s5025_s2 + $0x190] sm:$0xff] }
  0x5d   :  { %v690_v62 = vadd.f32 %v594_v50, %v286_v48  ;;  %v591_v41 = vadd.f32 %v495_v13, %v398_v52  ;;  %v1520_v24 = vmul.f32 %v2623_v15, %v181_v18  ;;  %v1526_v39 = vmul.f32 %v2623_v15, %v187_v44  ;;  %v189_v48 = vld [vmem:[%s5025_s2 + $0x1c0] sm:$0xff] }
  0x5e   :  { %v850_v31 = vpack.c.bf16 %v784_v7, %v778_v36  ;;  %v780_v23 = vmax.f32 %v684_v0, 0.0  ;;  %v681_v49 = vadd.f32 %v585_v58, %v277_v55  ;;  %v394_v50 = vmul.f32 %v2606_v5, %v87_v42 }
  0x5f   :  { %v786_v25 = vmax.f32 %v690_v62, 0.0  ;;  %v687_v36 = vadd.f32 %v591_v41, %v283_v43  ;;  %v1616_v52 = vadd.f32 %v1520_v24, %v1423_v61  ;;  %v1622_v63 = vadd.f32 %v1526_v39, %v1429_v47  ;;  %v285_v39 = vld [vmem:[%s5026_s3 + $0x1c0] sm:$0xff]  ;;  %v98_v61 = vld [vmem:[%s5024_s1 + $0x1e8] sm:$0xff]  ;;  %v104_v47 = vld [vmem:[%s5024_s1 + $0x218] sm:$0xff] }
  0x60   :  { %945 = vmatprep.subr.bf16.mxu0 %v850_v31  ;;  %v400_v18 = vmul.f32 %v2606_v5, %v93_v26  ;;  %v777_v7 = vmax.f32 %v681_v49, 0.0  ;;  %v491_v13 = vmul.f32 %v2610_v8, %v183_v34  ;;  %v497_v29 = vmul.f32 %v2610_v8, %v189_v48  ;;  %v279_v31 = vld [vmem:[%s5026_s3 + $0x190] sm:$0xff]  ;;  %v194_v24 = vld [vmem:[%s5025_s2 + $0x1e8] sm:$0xff] }
  0x61   :  { %v852_v44 = vpack.c.bf16 %v786_v25, %v780_v23  ;;  %v783_v27 = vmax.f32 %v687_v36, 0.0  ;;  %v3135_v46 = vadd.f32 %v1616_v52, %v277_v55  ;;  %v3137_v0 = vadd.f32 %v1622_v63, %v283_v43  ;;  %v290_v52 = vld [vmem:[%s5026_s3 + $0x1e8] sm:$0xff] }
  0x62   :  { %v1425_v41 = vmul.f32 %v2621_v14, %v87_v42  ;;  %v587_v62 = vadd.f32 %v491_v13, %v394_v50  ;;  %v593_v55 = vadd.f32 %v497_v29, %v400_v18  ;;  %v1431_v43 = vmul.f32 %v2621_v14, %v93_v26  ;;  %v200_v42 = vld [vmem:[%s5025_s2 + $0x218] sm:$0xff]  ;;  %v106_v18 = vld [vmem:[%s5024_s1 + $0x228] sm:$0xff] }
  0x63   :  { %1018 = vmatprep.subr.bf16.mxu1 %v852_v44  ;;  %v1522_v58 = vmul.f32 %v2623_v15, %v183_v34  ;;  %v849_v25 = vpack.c.bf16 %v783_v27, %v777_v7  ;;  %v1528_v26 = vmul.f32 %v2623_v15, %v189_v48  ;;  %v100_v34 = vld [vmem:[%s5024_s1 + $0x1f8] sm:$0xff]  ;;  %v405_v63 = vmul.f32 %v2606_v5, %v98_v61 }
  0x64   :  { %v683_v49 = vadd.f32 %v587_v62, %v279_v31  ;;  %v689_v50 = vadd.f32 %v593_v55, %v285_v39  ;;  %v411_v48 = vmul.f32 %v2606_v5, %v104_v47  ;;  %v502_v44 = vmul.f32 %v2610_v8, %v194_v24  ;;  %v196_v13 = vld [vmem:[%s5025_s2 + $0x1f8] sm:$0xff]  ;;  %v97_v47 = vld [vmem:[%s5024_s1 + $0x1e0] sm:$0xff] }
  0x65   :  { %v1618_v36 = vadd.f32 %v1522_v58, %v1425_v41  ;;  %946 = vmatpush1.bf16.msra.mxu0 %v849_v25  ;;  %v1624_v27 = vadd.f32 %v1528_v26, %v1431_v43  ;;  %v508_v7 = vmul.f32 %v2610_v8, %v200_v42  ;;  %v202_v41 = vld [vmem:[%s5025_s2 + $0x228] sm:$0xff]  ;;  %v296_v43 = vld [vmem:[%s5026_s3 + $0x218] sm:$0xff]  ;;  %v407_v58 = vmul.f32 %v2606_v5, %v100_v34 }
  0x66   :  { %v779_v61 = vmax.f32 %v683_v49, 0.0  ;;  %v785_v62 = vmax.f32 %v689_v50, 0.0  ;;  %v598_v42 = vadd.f32 %v502_v44, %v405_v63  ;;  %v413_v26 = vmul.f32 %v2606_v5, %v106_v18  ;;  %v193_v49 = vld [vmem:[%s5025_s2 + $0x1e0] sm:$0xff]  ;;  %v199_v63 = vld [vmem:[%s5025_s2 + $0x210] sm:$0xff]  ;;  %v292_v44 = vld [vmem:[%s5026_s3 + $0x1f8] sm:$0xff] }
  0x67   :  { %v3182_v55 = vadd.f32 %v1618_v36, %v279_v31  ;;  %v3191_v24 = vadd.f32 %v1624_v27, %v285_v39  ;;  %v604_v25 = vadd.f32 %v508_v7, %v411_v48  ;;  %v103_v31 = vld [vmem:[%s5024_s1 + $0x210] sm:$0xff]  ;;  %v504_v36 = vmul.f32 %v2610_v8, %v196_v13  ;;  %v298_v7 = vld [vmem:[%s5026_s3 + $0x228] sm:$0xff] }
  0x68   :  { %v851_v50 = vpack.c.bf16 %v785_v62, %v779_v61  ;;  %v510_v39 = vmul.f32 %v2610_v8, %v202_v41  ;;  %v694_v27 = vadd.f32 %v598_v42, %v290_v52  ;;  %v404_v13 = vmul.f32 %v2606_v5, %v97_v47 }
  0x69   :  { %5123 = vst [vmem:[#allocation11_spill] sm:$0xff] %v3182_v55  ;;  %5124 = vst [vmem:[#allocation12_spill] sm:$0xff] %v3191_v24  ;;  %v700_v48 = vadd.f32 %v604_v25, %v296_v43  ;;  %v600_v41 = vadd.f32 %v504_v36, %v407_v58  ;;  %v410_v62 = vmul.f32 %v2606_v5, %v103_v31  ;;  %v289_v43 = vld [vmem:[%s5026_s3 + $0x1e0] sm:$0xff]  ;;  %v295_v36 = vld [vmem:[%s5026_s3 + $0x210] sm:$0xff] }
  0x6a   :  { %1019 = vmatpush1.bf16.msra.mxu1 %v851_v50  ;;  %v606_v61 = vadd.f32 %v510_v39, %v413_v26  ;;  %v501_v29 = vmul.f32 %v2610_v8, %v193_v49  ;;  %v790_v23 = vmax.f32 %v694_v27, 0.0  ;;  %v507_v42 = vmul.f32 %v2610_v8, %v199_v63  ;;  %v99_v50 = vld [vmem:[%s5024_s1 + $0x1f0] sm:$0xff] }
  0x6b   :  { %v796_v52 = vmax.f32 %v700_v48, 0.0  ;;  %v1435_v25 = vmul.f32 %v2621_v14, %v97_v47  ;;  %v696_v58 = vadd.f32 %v600_v41, %v292_v44  ;;  %v1441_v27 = vmul.f32 %v2621_v14, %v103_v31  ;;  %v105_v48 = vld [vmem:[%s5024_s1 + $0x220] sm:$0xff]  ;;  %v195_v44 = vld [vmem:[%s5025_s2 + $0x1f0] sm:$0xff] }
  0x6c   :  { %v702_v26 = vadd.f32 %v606_v61, %v298_v7  ;;  %v597_v39 = vadd.f32 %v501_v29, %v404_v13  ;;  %v603_v18 = vadd.f32 %v507_v42, %v410_v62  ;;  %v1532_v47 = vmul.f32 %v2623_v15, %v193_v49  ;;  %v201_v29 = vld [vmem:[%s5025_s2 + $0x220] sm:$0xff] }
  0x6d   :  { %v856_v40 = vpack.c.bf16 %v796_v52, %v790_v23  ;;  %v1538_v34 = vmul.f32 %v2623_v15, %v199_v63  ;;  %v792_v7 = vmax.f32 %v696_v58, 0.0  ;;  %v406_v41 = vmul.f32 %v2606_v5, %v99_v50 }
  0x6e   :  { %v798_v31 = vmax.f32 %v702_v26, 0.0  ;;  %v693_v13 = vadd.f32 %v597_v39, %v289_v43  ;;  %v699_v23 = vadd.f32 %v603_v18, %v295_v36  ;;  %v1628_v61 = vadd.f32 %v1532_v47, %v1435_v25  ;;  %v110_v25 = vld [vmem:[%s5024_s1 + $0x248] sm:$0xff] }
  0x6f   :  { %947 = vmatprep.subr.bf16.mxu0 %v856_v40  ;;  %v1634_v62 = vadd.f32 %v1538_v34, %v1441_v27  ;;  %v412_v49 = vmul.f32 %v2606_v5, %v105_v48  ;;  %v503_v42 = vmul.f32 %v2610_v8, %v195_v44  ;;  %v509_v45 = vmul.f32 %v2610_v8, %v201_v29  ;;  %v291_v40 = vld [vmem:[%s5026_s3 + $0x1f0] sm:$0xff]  ;;  %v297_v34 = vld [vmem:[%s5026_s3 + $0x220] sm:$0xff]  ;;  %v116_v27 = vld [vmem:[%s5024_s1 + $0x278] sm:$0xff] }
  0x70   :  { %v858_v63 = vpack.c.bf16 %v798_v31, %v792_v7  ;;  %v789_v52 = vmax.f32 %v693_v13, 0.0  ;;  %v795_v32 = vmax.f32 %v699_v23, 0.0  ;;  %v3243_v35 = vadd.f32 %v1628_v61, %v289_v43  ;;  %v206_v47 = vld [vmem:[%s5025_s2 + $0x248] sm:$0xff] }
  0x71   :  { %v3245_v58 = vadd.f32 %v1634_v62, %v295_v36  ;;  %v1437_v18 = vmul.f32 %v2621_v14, %v99_v50  ;;  %v599_v26 = vadd.f32 %v503_v42, %v406_v41  ;;  %v605_v43 = vadd.f32 %v509_v45, %v412_v49  ;;  %v212_v50 = vld [vmem:[%s5025_s2 + $0x278] sm:$0xff]  ;;  %v118_v62 = vld [vmem:[%s5024_s1 + $0x288] sm:$0xff] }
  0x72   :  { %1020 = vmatprep.subr.bf16.mxu1 %v858_v63  ;;  %v1443_v36 = vmul.f32 %v2621_v14, %v105_v48  ;;  %v1534_v39 = vmul.f32 %v2623_v15, %v195_v44  ;;  %v855_v31 = vpack.c.bf16 %v795_v32, %v789_v52  ;;  %v1540_v48 = vmul.f32 %v2623_v15, %v201_v29  ;;  %v112_v44 = vld [vmem:[%s5024_s1 + $0x258] sm:$0xff]  ;;  %v214_v42 = vld [vmem:[%s5025_s2 + $0x288] sm:$0xff] }
  0x73   :  { %v695_v13 = vadd.f32 %v599_v26, %v291_v40  ;;  %v701_v41 = vadd.f32 %v605_v43, %v297_v34  ;;  %v417_v61 = vmul.f32 %v2606_v5, %v110_v25  ;;  %v423_v63 = vmul.f32 %v2606_v5, %v116_v27  ;;  %v208_v52 = vld [vmem:[%s5025_s2 + $0x258] sm:$0xff]  ;;  %v302_v43 = vld [vmem:[%s5026_s3 + $0x248] sm:$0xff]  ;;  %v109_v27 = vld [vmem:[%s5024_s1 + $0x240] sm:$0xff] }
  0x74   :  { %v1630_v23 = vadd.f32 %v1534_v39, %v1437_v18  ;;  %948 = vmatpush1.bf16.msra.mxu0 %v855_v31  ;;  %v1636_v49 = vadd.f32 %v1540_v48, %v1443_v36  ;;  %v514_v32 = vmul.f32 %v2610_v8, %v206_v47  ;;  %v520_v29 = vmul.f32 %v2610_v8, %v212_v50  ;;  %v308_v36 = vld [vmem:[%s5026_s3 + $0x278] sm:$0xff]  ;;  %v115_v48 = vld [vmem:[%s5024_s1 + $0x270] sm:$0xff] }
  0x75   :  { %v791_v18 = vmax.f32 %v695_v13, 0.0  ;;  %v797_v25 = vmax.f32 %v701_v41, 0.0  ;;  %v419_v39 = vmul.f32 %v2606_v5, %v112_v44  ;;  %v205_v13 = vld [vmem:[%s5025_s2 + $0x240] sm:$0xff] }
  0x76   :  { %v3287_v26 = vadd.f32 %v1630_v23, %v291_v40  ;;  %v3299_v47 = vadd.f32 %v1636_v49, %v297_v34  ;;  %v610_v50 = vadd.f32 %v514_v32, %v417_v61  ;;  %v616_v31 = vadd.f32 %v520_v29, %v423_v63  ;;  %v211_v61 = vld [vmem:[%s5025_s2 + $0x270] sm:$0xff]  ;;  %v304_v32 = vld [vmem:[%s5026_s3 + $0x258] sm:$0xff]  ;;  %v310_v29 = vld [vmem:[%s5026_s3 + $0x288] sm:$0xff] }
  0x77   :  { %v425_v40 = vmul.f32 %v2606_v5, %v118_v62  ;;  %v857_v41 = vpack.c.bf16 %v797_v25, %v791_v18  ;;  %v516_v23 = vmul.f32 %v2610_v8, %v208_v52  ;;  %v522_v34 = vmul.f32 %v2610_v8, %v214_v42 }
  0x78   :  { %5125 = vst [vmem:[#allocation13_spill] sm:$0xff] %v3287_v26  ;;  %5126 = vst [vmem:[#allocation14_spill] sm:$0xff] %v3299_v47  ;;  %v706_v49 = vadd.f32 %v610_v50, %v302_v43  ;;  %v712_v63 = vadd.f32 %v616_v31, %v308_v36  ;;  %v416_v52 = vmul.f32 %v2606_v5, %v109_v27  ;;  %v301_v36 = vld [vmem:[%s5026_s3 + $0x240] sm:$0xff] }
  0x79   :  { %1021 = vmatpush1.bf16.msra.mxu1 %v857_v41  ;;  %v612_v42 = vadd.f32 %v516_v23, %v419_v39  ;;  %v618_v18 = vadd.f32 %v522_v34, %v425_v40  ;;  %v422_v25 = vmul.f32 %v2606_v5, %v115_v48  ;;  %v513_v45 = vmul.f32 %v2610_v8, %v205_v13  ;;  %v111_v41 = vld [vmem:[%s5024_s1 + $0x250] sm:$0xff] }
  0x7a   :  { %v802_v7 = vmax.f32 %v706_v49, 0.0  ;;  %v808_v43 = vmax.f32 %v712_v63, 0.0  ;;  %v519_v50 = vmul.f32 %v2610_v8, %v211_v61  ;;  %v1447_v31 = vmul.f32 %v2621_v14, %v109_v27  ;;  %v307_v23 = vld [vmem:[%s5026_s3 + $0x270] sm:$0xff]  ;;  %v117_v63 = vld [vmem:[%s5024_s1 + $0x280] sm:$0xff] }
  0x7b   :  { %v708_v39 = vadd.f32 %v612_v42, %v304_v32  ;;  %v714_v40 = vadd.f32 %v618_v18, %v310_v29  ;;  %v609_v34 = vadd.f32 %v513_v45, %v416_v52  ;;  %v1453_v49 = vmul.f32 %v2621_v14, %v115_v48  ;;  %v207_v32 = vld [vmem:[%s5025_s2 + $0x250] sm:$0xff]  ;;  %v213_v45 = vld [vmem:[%s5025_s2 + $0x280] sm:$0xff] }
  0x7c   :  { %v862_v62 = vpack.c.bf16 %v808_v43, %v802_v7  ;;  %v615_v44 = vadd.f32 %v519_v50, %v422_v25  ;;  %v1544_v27 = vmul.f32 %v2623_v15, %v205_v13  ;;  %v1550_v30 = vmul.f32 %v2623_v15, %v211_v61 }
  0x7d   :  { %v804_v29 = vmax.f32 %v708_v39, 0.0  ;;  %v810_v48 = vmax.f32 %v714_v40, 0.0  ;;  %v705_v52 = vadd.f32 %v609_v34, %v301_v36  ;;  %v418_v42 = vmul.f32 %v2606_v5, %v111_v41 }
  0x7e   :  { %949 = vmatprep.subr.bf16.mxu0 %v862_v62  ;;  %v711_v7 = vadd.f32 %v615_v44, %v307_v23  ;;  %v1640_v18 = vadd.f32 %v1544_v27, %v1447_v31  ;;  %v1646_v25 = vadd.f32 %v1550_v30, %v1453_v49  ;;  %v424_v13 = vmul.f32 %v2606_v5, %v117_v63  ;;  %v303_v62 = vld [vmem:[%s5026_s3 + $0x250] sm:$0xff]  ;;  %v309_v30 = vld [vmem:[%s5026_s3 + $0x280] sm:$0xff]  ;;  %v3365_v31 = vld [vmem:[%s5024_s1 + $0x2a8] sm:$0xff] }
  0x7f   :  { %v864_v61 = vpack.c.bf16 %v810_v48, %v804_v29  ;;  %v801_v43 = vmax.f32 %v705_v52, 0.0  ;;  %v515_v50 = vmul.f32 %v2610_v8, %v207_v32  ;;  %v521_v16 = vmul.f32 %v2610_v8, %v213_v45  ;;  %v3372_v49 = vld [vmem:[%s5024_s1 + $0x2d8] sm:$0xff] }
  0x80   :  { %v807_v2 = vmax.f32 %v711_v7, 0.0  ;;  %v3351_v20 = vadd.f32 %v1640_v18, %v301_v36  ;;  %v3353_v39 = vadd.f32 %v1646_v25, %v307_v23  ;;  %v1449_v44 = vmul.f32 %v2621_v14, %v111_v41  ;;  %v3377_v41 = vld [vmem:[%s5025_s2 + $0x2a8] sm:$0xff]  ;;  %v3382_v27 = vld [vmem:[%s5025_s2 + $0x2d8] sm:$0xff] }
  0x81   :  { %1022 = vmatprep.subr.bf16.mxu1 %v864_v61  ;;  %v611_v36 = vadd.f32 %v515_v50, %v418_v42  ;;  %v617_v40 = vadd.f32 %v521_v16, %v424_v13  ;;  %v1455_v23 = vmul.f32 %v2621_v14, %v117_v63  ;;  %v1546_v34 = vmul.f32 %v2623_v15, %v207_v32  ;;  %v124_v48 = vld [vmem:[%s5024_s1 + $0x2b8] sm:$0xff]  ;;  %v130_v25 = vld [vmem:[%s5024_s1 + $0x2e8] sm:$0xff]  ;;  %v127_v63 = vld [vmem:[%s5024_s1 + $0x2d0] sm:$0xff] }
  0x82   :  { %v861_v32 = vpack.c.bf16 %v807_v2, %v801_v43  ;;  %v1552_v29 = vmul.f32 %v2623_v15, %v213_v45  ;;  %v429_v18 = vmul.f32 %v2606_v5, %v3365_v31  ;;  %v435_v2 = vmul.f32 %v2606_v5, %v3372_v49  ;;  %v220_v43 = vld [vmem:[%s5025_s2 + $0x2b8] sm:$0xff]  ;;  %v226_v50 = vld [vmem:[%s5025_s2 + $0x2e8] sm:$0xff]  ;;  %v217_v16 = vld [vmem:[%s5025_s2 + $0x2a0] sm:$0xff] }
  0x83   :  { %v707_v52 = vadd.f32 %v611_v36, %v303_v62  ;;  %v713_v42 = vadd.f32 %v617_v40, %v309_v30  ;;  %v1642_v7 = vadd.f32 %v1546_v34, %v1449_v44  ;;  %v526_v45 = vmul.f32 %v2610_v8, %v3377_v41  ;;  %v3417_v34 = vld [vmem:[%s5026_s3 + $0x2d8] sm:$0xff] }
  0x84   :  { %950 = vmatpush1.bf16.msra.mxu0 %v861_v32  ;;  %v1648_v13 = vadd.f32 %v1552_v29, %v1455_v23  ;;  %v532_v61 = vmul.f32 %v2610_v8, %v3382_v27  ;;  %v3412_v23 = vld [vmem:[%s5026_s3 + $0x2a8] sm:$0xff]  ;;  %v431_v32 = vmul.f32 %v2606_v5, %v124_v48  ;;  %v121_v29 = vld [vmem:[%s5024_s1 + $0x2a0] sm:$0xff]  ;;  %v528_v11 = vmul.f32 %v2610_v8, %v220_v43 }
  0x85   :  { %v803_v44 = vmax.f32 %v707_v52, 0.0  ;;  %v809_v36 = vmax.f32 %v713_v42, 0.0  ;;  %v3407_v40 = vadd.f32 %v1642_v7, %v303_v62  ;;  %v622_v62 = vadd.f32 %v526_v45, %v429_v18  ;;  %v223_v18 = vld [vmem:[%s5025_s2 + $0x2d0] sm:$0xff]  ;;  %v316_v45 = vld [vmem:[%s5026_s3 + $0x2b8] sm:$0xff] }
  0x86   :  { %v3423_v52 = vadd.f32 %v1648_v13, %v309_v30  ;;  %v628_v42 = vadd.f32 %v532_v61, %v435_v2  ;;  %v437_v7 = vmul.f32 %v2606_v5, %v130_v25  ;;  %v534_v30 = vmul.f32 %v2610_v8, %v226_v50  ;;  %v322_v61 = vld [vmem:[%s5026_s3 + $0x2e8] sm:$0xff] }
  0x87   :  { %5127 = vst [vmem:[#allocation15_spill] sm:$0xff] %v3407_v40  ;;  %v863_v12 = vpack.c.bf16 %v809_v36, %v803_v44  ;;  %v718_v13 = vadd.f32 %v622_v62, %v3412_v23  ;;  %v428_v43 = vmul.f32 %v2606_v5, %v121_v29  ;;  %v624_v50 = vadd.f32 %v528_v11, %v431_v32 }
  0x88   :  { %5128 = vst [vmem:[#allocation16_spill] sm:$0xff] %v3423_v52  ;;  %v724_v2 = vadd.f32 %v628_v42, %v3417_v34  ;;  %v630_v44 = vadd.f32 %v534_v30, %v437_v7  ;;  %v434_v36 = vmul.f32 %v2606_v5, %v127_v63  ;;  %v525_v25 = vmul.f32 %v2610_v8, %v217_v16  ;;  %v313_v42 = vld [vmem:[%s5026_s3 + $0x2a0] sm:$0xff]  ;;  %v319_v7 = vld [vmem:[%s5026_s3 + $0x2d0] sm:$0xff] }
  0x89   :  { %1023 = vmatpush1.bf16.msra.mxu1 %v863_v12  ;;  %v814_v62 = vmax.f32 %v718_v13, 0.0  ;;  %v531_v3 = vmul.f32 %v2610_v8, %v223_v18  ;;  %v1459_v47 = vmul.f32 %v2621_v14, %v121_v29  ;;  %v123_v12 = vld [vmem:[%s5024_s1 + $0x2b0] sm:$0xff]  ;;  %v720_v11 = vadd.f32 %v624_v50, %v316_v45 }
  0x8a   :  { %v820_v48 = vmax.f32 %v724_v2, 0.0  ;;  %v726_v32 = vadd.f32 %v630_v44, %v322_v61  ;;  %v621_v30 = vadd.f32 %v525_v25, %v428_v43  ;;  %v1465_v13 = vmul.f32 %v2621_v14, %v127_v63  ;;  %v129_v2 = vld [vmem:[%s5024_s1 + $0x2e0] sm:$0xff]  ;;  %v219_v45 = vld [vmem:[%s5025_s2 + $0x2b0] sm:$0xff] }
  0x8b   :  { %v627_v24 = vadd.f32 %v531_v3, %v434_v36  ;;  %v1556_v29 = vmul.f32 %v2623_v15, %v217_v16  ;;  %v1562_v55 = vmul.f32 %v2623_v15, %v223_v18  ;;  %v225_v25 = vld [vmem:[%s5025_s2 + $0x2e0] sm:$0xff]  ;;  %v816_v61 = vmax.f32 %v720_v11, 0.0 }
  0x8c   :  { %v868_v26 = vpack.c.bf16 %v820_v48, %v814_v62  ;;  %v822_v63 = vmax.f32 %v726_v32, 0.0  ;;  %v717_v43 = vadd.f32 %v621_v30, %v313_v42  ;;  %v430_v50 = vmul.f32 %v2606_v5, %v123_v12 }
  0x8d   :  { %v723_v48 = vadd.f32 %v627_v24, %v319_v7  ;;  %v1652_v3 = vadd.f32 %v1556_v29, %v1459_v47  ;;  %v1658_v44 = vadd.f32 %v1562_v55, %v1465_v13  ;;  %v436_v16 = vmul.f32 %v2606_v5, %v129_v2  ;;  %v321_v55 = vld [vmem:[%s5026_s3 + $0x2e0] sm:$0xff]  ;;  %v3498_v13 = vld [vmem:[%s5024_s1 + $0x58] sm:$0xff] }
  0x8e   :  { %951 = vmatprep.subr.bf16.mxu0 %v868_v26  ;;  %v870_v18 = vpack.c.bf16 %v822_v63, %v816_v61  ;;  %v813_v36 = vmax.f32 %v717_v43, 0.0  ;;  %v527_v62 = vmul.f32 %v2610_v8, %v219_v45  ;;  %v533_v22 = vmul.f32 %v2610_v8, %v225_v25  ;;  %v315_v26 = vld [vmem:[%s5026_s3 + $0x2b0] sm:$0xff] }
  0x8f   :  { %v819_v6 = vmax.f32 %v723_v48, 0.0  ;;  %v3477_v17 = vadd.f32 %v1652_v3, %v313_v42  ;;  %v3479_v11 = vadd.f32 %v1658_v44, %v319_v7  ;;  %v1461_v24 = vmul.f32 %v2621_v14, %v123_v12  ;;  %v3493_v7 = vld [vmem:[%s5024_s1 + $0x28] sm:$0xff]  ;;  %v3516_v48 = vld [vmem:[%s5025_s2 + $0x58] sm:$0xff] }
  0x90   :  { %1024 = vmatprep.subr.bf16.mxu1 %v870_v18  ;;  %v623_v47 = vadd.f32 %v527_v62, %v430_v50  ;;  %v629_v32 = vadd.f32 %v533_v22, %v436_v16  ;;  %v1467_v30 = vmul.f32 %v2621_v14, %v129_v2  ;;  %v1558_v42 = vmul.f32 %v2623_v15, %v219_v45  ;;  %v3506_v2 = vld [vmem:[%s5025_s2 + $0x28] sm:$0xff]  ;;  %v3511_v50 = vld [vmem:[%s5027_s4] sm:$0xff]  }
  0x91   :  { %v867_v61 = vpack.c.bf16 %v819_v6, %v813_v36  ;;  %v1564_v22 = vmul.f32 %v2623_v15, %v225_v25  ;;  %5129 = vst [vmem:[#allocation17_spill] sm:$0xff] %v3511_v50  ;;  %v3521_v6 = vld [vmem:[%s5024_s1 + $0x20] sm:$0xff]  ;;  %v5037_v44 = vmov 0   ;;  %v349_v16 = vmul.f32 %v2606_v5, %v3493_v7  ;;  %v3532_v36 = vld [vmem:[%s5024_s1 + $0x50] sm:$0xff]  ;;  %v3588_v25 = vld [vmem:[%s5025_s2 + $0x88] sm:$0xff] }
  0x92   :  { %v719_v45 = vadd.f32 %v623_v47, %v315_v26  ;;  %v725_v63 = vadd.f32 %v629_v32, %v321_v55  ;;  %v1654_v43 = vadd.f32 %v1558_v42, %v1461_v24  ;;  %969 = vmatprep.mubr.bf16.mxu0 %v5037_v44  ;;  %v355_v18 = vmul.f32 %v2606_v5, %v3498_v13  ;;  %v3547_v42 = vld [vmem:[%s5025_s2 + $0x50] sm:$0xff] }
  0x93   :  { %952 = vmatpush1.bf16.msra.mxu0 %v867_v61  ;;  %v1660_v3 = vadd.f32 %v1564_v22, %v1467_v30  ;;  %1042 = vmatprep.mubr.bf16.mxu1 %v5037_v44  ;;  %v446_v32 = vmul.f32 %v2610_v8, %v3506_v2  ;;  %v3542_v30 = vld [vmem:[%s5025_s2 + $0x20] sm:$0xff]  ;;  %v452_v22 = vmul.f32 %v2610_v8, %v3516_v48 }
  0x94   :  { %v815_v62 = vmax.f32 %v719_v45, 0.0  ;;  %v821_v24 = vmax.f32 %v725_v63, 0.0  ;;  %v3534_v47 = vadd.f32 %v1654_v43, %v315_v26  ;;  %2449 = vset.pattern.permute.xlu0 %v5037_v44  ;;  %v3555_v26 = vld [vmem:[%s5026_s3 + $0x28] sm:$0xff]  ;;  %v5132_v45 = vmax.f32 %v2649_v37, 0.0  ;;  %2450 = vset.pattern.permute.xlu1 %v5037_v44  ;;  %5137 = vst [vmem:[#allocation23_spill] sm:$0xff] %v3588_v25 }
  0x95   :  { %v3550_v61 = vadd.f32 %v1660_v3, %v321_v55  ;;  %v5133_v63 = vmax.f32 %v2651_v38, 0.0  ;;  %v348_v12 = vmul.f32 %v2606_v5, %v3521_v6  ;;  %v3568_v55 = vld [vmem:[%s5024_s1 + $0x88] sm:$0xff]  ;;  %v3573_v3 = vld [vmem:[%s5024_s1 + $0xb8] sm:$0xff]  ;;  %v548_v37 = vadd.f32 %v452_v22, %v355_v18  ;;  %v3605_v18 = vld [vmem:[%s5026_s3 + $0x20] sm:$0xff] }
  0x96   :  { %5130 = vst [vmem:[#allocation18_spill] sm:$0xff] %v3534_v47  ;;  %5134 = vst [vmem:[#allocation20_spill] sm:$0xff] %v3568_v55  ;;  %v869_v29 = vpack.c.bf16 %v821_v24, %v815_v62  ;;  %970 = vmatmul.mubr.bf16.vlgmr.msra.gmra.mrb[0].mxu0 %v3511_v50  ;;  %v3581_v38 = vld [vmem:[%s5026_s3 + $0x58] sm:$0xff]  ;;  %v445_v62 = vmul.f32 %v2610_v8, %v3542_v30  ;;  %v451_v24 = vmul.f32 %v2610_v8, %v3547_v42  ;;  %v3610_v22 = vld [vmem:[%s5026_s3 + $0x50] sm:$0xff] }
  0x97   :  { %5131 = vst [vmem:[#allocation19_spill] sm:$0xff] %v3550_v61  ;;  %v1857_v43 = vpack.c.bf16 %v5133_v63, %v5132_v45  ;;  %5135 = vst [vmem:[#allocation21_spill] sm:$0xff] %v3573_v3  ;;  %v542_v45 = vadd.f32 %v446_v32, %v349_v16  ;;  %v354_v63 = vmul.f32 %v2606_v5, %v3532_v36  ;;  %v3598_v16 = vld [vmem:[%s5025_s2 + $0xb8] sm:$0xff]  ;;  %v5139_v32 = vmov 0  }
  0x98   :  { %5136 = vst [vmem:[#allocation22_spill] sm:$0xff] %v3581_v38  ;;  %5138 = vst [vmem:[#allocation24_spill] sm:$0xff] %v3598_v16  ;;  %979 = vmatprep.mubr.bf16.mxu0 %v5139_v32  ;;  %1025 = vmatpush1.bf16.msra.mxu1 %v869_v29  ;;  %v5142_v44 = vmax.f32 %v2710_v28, 0.0  ;;  %v5143_v47 = vmax.f32 %v2716_v33, 0.0  ;;  %v361_v29 = vmul.f32 %v2606_v5, %v3568_v55  ;;  %v3626_v28 = vld [vmem:[%s5024_s1 + $0x80] sm:$0xff] }
  0x99   :  { %v638_v52 = vadd.f32 %v542_v45, %v3555_v26  ;;  %5140 = vst [vmem:[#allocation25_spill] sm:$0xff] %v3605_v18  ;;  %5141 = vst [vmem:[#allocation26_spill] sm:$0xff] %v3610_v22  ;;  %v367_v45 = vmul.f32 %v2606_v5, %v3573_v3  ;;  %v644_v4 = vadd.f32 %v548_v37, %v3581_v38  ;;  %1904 = vmatprep.subr.bf16.mxu1 %v1857_v43  ;;  %v2456_v37 = vld [vmem:[%s5024_s1 + $0x98] sm:$0xff] }
  0x9a   :  { %v1856_v40 = vpack.c.bf16 %v5143_v47, %v5142_v44  ;;  %v541_v61 = vadd.f32 %v445_v62, %v348_v12  ;;  %v547_v57 = vadd.f32 %v451_v24, %v354_v63  ;;  %v458_v51 = vmul.f32 %v2610_v8, %v3588_v25  ;;  %5144 = vst [vmem:[#allocation27_spill] sm:$0xff] %v3626_v28  ;;  %v3631_v44 = vld [vmem:[%s5026_s3 + $0x88] sm:$0xff] }
  0x9b   :  { %v734_v33 = vmax.f32 %v638_v52, 0.0  ;;  %5145 = vst [vmem:[#allocation28_spill] sm:$0xff] %v3631_v44  ;;  %v464_v47 = vmul.f32 %v2610_v8, %v3598_v16  ;;  %v2455_v12 = vld [vmem:[%s5024_s1 + $0x68] sm:$0xff]  ;;  %v1394_v52 = vmul.f32 %v2456_v37, %v2621_v14  ;;  %1043 = vmatmul.mubr.bf16.vlgmr.msra.gmra.mrb[0].mxu1 %v3511_v50  ;;  %v740_v62 = vmax.f32 %v644_v4, 0.0  ;;  %v3659_v37 = vld [vmem:[%s5024_s1 + $0xb0] sm:$0xff] }
  0x9c   :  { %v1388_v43 = vmul.f32 %v2455_v12, %v2621_v14  ;;  %v3646_v63 = vld [vmem:[%s5027_s4 + $0x8] sm:$0xff]   ;;  %v637_v24 = vadd.f32 %v541_v61, %v3605_v18  ;;  %v643_v16 = vadd.f32 %v547_v57, %v3610_v22  ;;  %v3654_v12 = vld [vmem:[%s5026_s3 + $0xb8] sm:$0xff]  ;;  %v554_v25 = vadd.f32 %v458_v51, %v361_v29  ;;  %1905 = vmatpush1.bf16.msra.mxu1 %v1856_v40  ;;  %v3672_v51 = vld [vmem:[%s5025_s2 + $0x80] sm:$0xff] }
  0x9d   :  { %5146 = vst [vmem:[#allocation29_spill] sm:$0xff] %v3646_v63  ;;  %5147 = vst [vmem:[#allocation30_spill] sm:$0xff] %v3654_v12  ;;  %v560_v3 = vadd.f32 %v464_v47, %v367_v45  ;;  %v2457_v4 = vld [vmem:[%s5025_s2 + $0x68] sm:$0xff]  ;;  %v2458_v57 = vld [vmem:[%s5025_s2 + $0x98] sm:$0xff]  ;;  %v360_v29 = vmul.f32 %v2606_v5, %v3626_v28  ;;  %v830_v45 = vpack.c.bf16 %v740_v62, %v734_v33  ;;  %1052 = vmatprep.mubr.bf16.mxu1 %v5139_v32 }
  0x9e   :  { %v1485_v61 = vmul.f32 %v2457_v4, %v2623_v15  ;;  %v1491_v50 = vmul.f32 %v2458_v57, %v2623_v15  ;;  %5148 = vst [vmem:[#allocation31_spill] sm:$0xff] %v3672_v51  ;;  %v3677_v40 = vld [vmem:[%s5025_s2 + $0xb0] sm:$0xff]  ;;  %v733_v47 = vmax.f32 %v637_v24, 0.0  ;;  %v739_v4 = vmax.f32 %v643_v16, 0.0  ;;  %980 = vmatmul.mubr.bf16.gmra.mrb[4].mxu0 %v3646_v63  ;;  %v3690_v28 = vld [vmem:[%s5024_s1 + $0xe8] sm:$0xff] }
  0x9f   :  { %5149 = vst [vmem:[#allocation32_spill] sm:$0xff] %v3677_v40  ;;  %v650_v22 = vadd.f32 %v554_v25, %v3631_v44  ;;  %v656_v57 = vadd.f32 %v560_v3, %v3654_v12  ;;  %v366_v38 = vmul.f32 %v2606_v5, %v3659_v37  ;;  %v3695_v25 = vld [vmem:[%s5024_s1 + $0x118] sm:$0xff]  ;;  %1083 = vmatprep.subr.bf16.mxu0 %v830_v45  ;;  %v2459_v62 = vld [vmem:[%s5026_s3 + $0x68] sm:$0xff]  ;;  %v3716_v45 = vld [vmem:[%s5026_s3 + $0x80] sm:$0xff] }
  0xa0   :  { %v1581_v18 = vadd.f32 %v1485_v61, %v1388_v43  ;;  %v1587_v55 = vadd.f32 %v1491_v50, %v1394_v52  ;;  %5150 = vst [vmem:[#allocation33_spill] sm:$0xff] %v3695_v25  ;;  %v829_v16 = vpack.c.bf16 %v739_v4, %v733_v47  ;;  %v457_v50 = vmul.f32 %v2610_v8, %v3672_v51  ;;  %v3704_v43 = vld [vmem:[%s5025_s2 + $0xe8] sm:$0xff]  ;;  %v3721_v47 = vld [vmem:[%s5026_s3 + $0xb0] sm:$0xff] }
  0xa1   :  { %v746_v3 = vmax.f32 %v650_v22, 0.0  ;;  %v463_v33 = vmul.f32 %v2610_v8, %v3677_v40  ;;  %5151 = vst [vmem:[#allocation34_spill] sm:$0xff] %v3704_v43  ;;  %989 = vmatprep.mubr.bf16.mxu0 %v5139_v32  ;;  %v752_v52 = vmax.f32 %v656_v57, 0.0  ;;  %v2460_v22 = vld [vmem:[%s5026_s3 + $0x98] sm:$0xff]  ;;  %5152 = vst [vmem:[#allocation35_spill] sm:$0xff] %v3721_v47  ;;  %v5153_v4 = vmax.f32 %v2811_v9, 0.0 }
  0xa2   :  { %v1677_v24 = vadd.f32 %v2459_v62, %v1581_v18  ;;  %v1683_v61 = vadd.f32 %v2460_v22, %v1587_v55  ;;  %v5154_v57 = vmax.f32 %v2813_v10, 0.0  ;;  %v3730_v62 = vld [vmem:[%s5025_s2 + $0x118] sm:$0xff]  ;;  %1084 = vmatpush1.bf16.msra.mxu0 %v829_v16  ;;  %v553_v55 = vadd.f32 %v457_v50, %v360_v29  ;;  %v2461_v16 = vld [vmem:[%s5024_s1 + $0xc8] sm:$0xff]  ;;  %v3755_v50 = vld [vmem:[%s5024_s1 + $0xe0] sm:$0xff] }
  0xa3   :  { %5155 = vst [vmem:[#allocation36_spill] sm:$0xff] %v3730_v62  ;;  %v559_v22 = vadd.f32 %v463_v33, %v366_v38  ;;  %v373_v40 = vmul.f32 %v2606_v5, %v3690_v28  ;;  %v379_v12 = vmul.f32 %v2606_v5, %v3695_v25  ;;  %v836_v51 = vpack.c.bf16 %v752_v52, %v746_v3  ;;  %v3744_v38 = vld [vmem:[%s5026_s3 + $0xe8] sm:$0xff]  ;;  %v3760_v33 = vld [vmem:[%s5024_s1 + $0x110] sm:$0xff] }
  0xa4   :  { %v1862_v18 = vpack.c.bf16 %v5154_v57, %v5153_v4  ;;  %v1773_v44 = vmax.f32 %v1677_v24, 0.0  ;;  %v1779_v9 = vmax.f32 %v1683_v61, 0.0  ;;  %v470_v10 = vmul.f32 %v2610_v8, %v3704_v43  ;;  %1053 = vmatmul.mubr.bf16.gmra.mrb[4].mxu1 %v3646_v63  ;;  %5156 = vst [vmem:[#allocation37_spill] sm:$0xff] %v3760_v33  ;;  %v3765_v24 = vld [vmem:[%s5026_s3 + $0x118] sm:$0xff] }
  0xa5   :  { %v649_v4 = vadd.f32 %v553_v55, %v3716_v45  ;;  %v655_v57 = vadd.f32 %v559_v22, %v3721_v47  ;;  %v476_v29 = vmul.f32 %v2610_v8, %v3730_v62  ;;  %v1400_v3 = vmul.f32 %v2461_v16, %v2621_v14  ;;  %1085 = vmatprep.subr.bf16.mxu0 %v836_v51  ;;  %v2462_v55 = vld [vmem:[%s5024_s1 + $0xf8] sm:$0xff]  ;;  %v2463_v16 = vld [vmem:[%s5025_s2 + $0xc8] sm:$0xff]  ;;  %v3783_v51 = vld [vmem:[%s5027_s4 + $0x10] sm:$0xff]  }
  0xa6   :  { %v1863_v52 = vpack.c.bf16 %v1779_v9, %v1773_v44  ;;  %5157 = vst [vmem:[#allocation38_spill] sm:$0xff] %v3765_v24  ;;  %v566_v61 = vadd.f32 %v470_v10, %v373_v40  ;;  %v1406_v22 = vmul.f32 %v2462_v55, %v2621_v14  ;;  %v1497_v62 = vmul.f32 %v2463_v16, %v2623_v15  ;;  %v3778_v44 = vld [vmem:[%s5025_s2 + $0xe0] sm:$0xff]  ;;  %v2464_v55 = vld [vmem:[%s5025_s2 + $0xf8] sm:$0xff]  ;;  %v3792_v16 = vld [vmem:[%s5025_s2 + $0x110] sm:$0xff] }
  0xa7   :  { %5158 = vst [vmem:[#allocation39_spill] sm:$0xff] %v3778_v44  ;;  %5159 = vst [vmem:[#allocation40_spill] sm:$0xff] %v3783_v51  ;;  %v745_v40 = vmax.f32 %v649_v4, 0.0  ;;  %v751_v9 = vmax.f32 %v655_v57, 0.0  ;;  %v572_v10 = vadd.f32 %v476_v29, %v379_v12  ;;  %v1503_v63 = vmul.f32 %v2464_v55, %v2623_v15  ;;  %1062 = vmatprep.mubr.bf16.mxu1 %v5139_v32  ;;  %v3803_v57 = vld [vmem:[%s5024_s1 + $0x148] sm:$0xff] }
  0xa8   :  { %5160 = vst [vmem:[#allocation41_spill] sm:$0xff] %v3792_v16  ;;  %1906 = vmatprep.subr.bf16.mxu1 %v1863_v52  ;;  %v662_v47 = vadd.f32 %v566_v61, %v3744_v38  ;;  %v1593_v43 = vadd.f32 %v1497_v62, %v1400_v3  ;;  %v372_v12 = vmul.f32 %v2606_v5, %v3755_v50  ;;  %5161 = vst [vmem:[#allocation42_spill] sm:$0xff] %v3803_v57  ;;  %v3811_v62 = vld [vmem:[%s5024_s1 + $0x178] sm:$0xff]  ;;  %v3816_v3 = vld [vmem:[%s5025_s2 + $0x148] sm:$0xff] }
  0xa9   :  { %v378_v4 = vmul.f32 %v2606_v5, %v3760_v33  ;;  %v835_v29 = vpack.c.bf16 %v751_v9, %v745_v40  ;;  %1907 = vmatpush1.bf16.msra.mxu1 %v1862_v18  ;;  %v668_v55 = vadd.f32 %v572_v10, %v3765_v24  ;;  %v1599_v25 = vadd.f32 %v1503_v63, %v1406_v22  ;;  %v2465_v18 = vld [vmem:[%s5026_s3 + $0xc8] sm:$0xff]  ;;  %v3824_v63 = vld [vmem:[%s5026_s3 + $0xe0] sm:$0xff] }
  0xaa   :  { %v469_v52 = vmul.f32 %v2610_v8, %v3778_v44  ;;  %5162 = vst [vmem:[#allocation43_spill] sm:$0xff] %v3811_v62  ;;  %5163 = vst [vmem:[#allocation44_spill] sm:$0xff] %v3816_v3  ;;  %v758_v61 = vmax.f32 %v662_v47, 0.0  ;;  %v1689_v40 = vadd.f32 %v2465_v18, %v1593_v43  ;;  %v475_v22 = vmul.f32 %v2610_v8, %v3792_v16  ;;  %v3835_v47 = vld [vmem:[%s5025_s2 + $0x178] sm:$0xff] }
  0xab   :  { %5164 = vst [vmem:[#allocation45_spill] sm:$0xff] %v3824_v63  ;;  %v5165_v9 = vmax.f32 %v2919_v19, 0.0  ;;  %v5166_v10 = vmax.f32 %v2921_v21, 0.0  ;;  %5167 = vst [vmem:[#allocation46_spill] sm:$0xff] %v3835_v47  ;;  %990 = vmatmul.mubr.bf16.gmra.mrb[8].mxu0 %v3783_v51  ;;  %v764_v43 = vmax.f32 %v668_v55, 0.0  ;;  %v2466_v18 = vld [vmem:[%s5026_s3 + $0xf8] sm:$0xff]  ;;  %v482_v55 = vmul.f32 %v2610_v8, %v3816_v3 }
  0xac   :  { %1086 = vmatpush1.bf16.msra.mxu0 %v835_v29  ;;  %v1695_v44 = vadd.f32 %v2466_v18, %v1599_v25  ;;  %v3844_v19 = vld [vmem:[%s5026_s3 + $0x110] sm:$0xff]  ;;  %v565_v21 = vadd.f32 %v469_v52, %v372_v12  ;;  %999 = vmatprep.mubr.bf16.mxu0 %v5139_v32  ;;  %v571_v16 = vadd.f32 %v475_v22, %v378_v4  ;;  %v3857_v12 = vld [vmem:[%s5026_s3 + $0x148] sm:$0xff]  ;;  %v3862_v52 = vld [vmem:[%s5026_s3 + $0x178] sm:$0xff] }
  0xad   :  { %v1868_v24 = vpack.c.bf16 %v5166_v10, %v5165_v9  ;;  %5168 = vst [vmem:[#allocation47_spill] sm:$0xff] %v3844_v19  ;;  %v385_v9 = vmul.f32 %v2606_v5, %v3803_v57  ;;  %v1785_v10 = vmax.f32 %v1689_v40, 0.0  ;;  %v391_v29 = vmul.f32 %v2606_v5, %v3811_v62  ;;  %5169 = vst [vmem:[#allocation48_spill] sm:$0xff] %v3857_v12  ;;  %v2467_v22 = vld [vmem:[%s5024_s1 + $0x128] sm:$0xff]  ;;  %v3884_v3 = vld [vmem:[%s5024_s1 + $0x170] sm:$0xff] }
  0xae   :  { %v842_v25 = vpack.c.bf16 %v764_v43, %v758_v61  ;;  %v1791_v18 = vmax.f32 %v1695_v44, 0.0  ;;  %v661_v33 = vadd.f32 %v565_v21, %v3824_v63  ;;  %5170 = vst [vmem:[#allocation49_spill] sm:$0xff] %v3862_v52  ;;  %v488_v4 = vmul.f32 %v2610_v8, %v3835_v47  ;;  %v3869_v61 = vld [vmem:[%s5024_s1 + $0x140] sm:$0xff]  ;;  %1063 = vmatmul.mubr.bf16.gmra.mrb[8].mxu1 %v3783_v51  ;;  %v2468_v21 = vld [vmem:[%s5024_s1 + $0x158] sm:$0xff]  ;;  %v2469_v51 = vld [vmem:[%s5025_s2 + $0x128] sm:$0xff] }
  0xaf   :  { %v667_v44 = vadd.f32 %v571_v16, %v3844_v19  ;;  %v578_v40 = vadd.f32 %v482_v55, %v385_v9  ;;  %v1412_v43 = vmul.f32 %v2467_v22, %v2621_v14  ;;  %v1418_v47 = vmul.f32 %v2468_v21, %v2621_v14  ;;  %5171 = vst [vmem:[#allocation50_spill] sm:$0xff] %v3884_v3  ;;  %v3889_v16 = vld [vmem:[%s5025_s2 + $0x140] sm:$0xff]  ;;  %v3895_v9 = vld [vmem:[%s5027_s4 + $0x18] sm:$0xff]   ;;  %v3904_v63 = vld [vmem:[%s5025_s2 + $0x170] sm:$0xff] }
  0xb0   :  { %5172 = vst [vmem:[#allocation51_spill] sm:$0xff] %v3889_v16  ;;  %1072 = vmatprep.mubr.bf16.mxu1 %v5139_v32  ;;  %5173 = vst [vmem:[#allocation52_spill] sm:$0xff] %v3895_v9  ;;  %1087 = vmatprep.subr.bf16.mxu0 %v842_v25  ;;  %v1869_v55 = vpack.c.bf16 %v1791_v18, %v1785_v10  ;;  %v757_v22 = vmax.f32 %v661_v33, 0.0  ;;  %v584_v21 = vadd.f32 %v488_v4, %v391_v29  ;;  %v2470_v10 = vld [vmem:[%s5025_s2 + $0x158] sm:$0xff] }
  0xb1   :  { %v1509_v19 = vmul.f32 %v2469_v51, %v2623_v15  ;;  %5174 = vst [vmem:[#allocation53_spill] sm:$0xff] %v3904_v63  ;;  %v763_v62 = vmax.f32 %v667_v44, 0.0  ;;  %v674_v57 = vadd.f32 %v578_v40, %v3857_v12  ;;  %v1515_v33 = vmul.f32 %v2470_v10, %v2623_v15  ;;  %v3921_v44 = vld [vmem:[%s5024_s1 + $0x1a8] sm:$0xff]  ;;  %v3926_v40 = vld [vmem:[%s5024_s1 + $0x1d8] sm:$0xff] }
  0xb2   :  { %v384_v29 = vmul.f32 %v2606_v5, %v3869_v61  ;;  %1908 = vmatprep.subr.bf16.mxu1 %v1869_v55  ;;  %v680_v51 = vadd.f32 %v584_v21, %v3862_v52  ;;  %v390_v18 = vmul.f32 %v2606_v5, %v3884_v3  ;;  %v481_v4 = vmul.f32 %v2610_v8, %v3889_v16  ;;  %v3938_v52 = vld [vmem:[%s5025_s2 + $0x1a8] sm:$0xff] }
  0xb3   :  { %v1605_v25 = vadd.f32 %v1509_v19, %v1412_v43  ;;  %5175 = vst [vmem:[#allocation54_spill] sm:$0xff] %v3921_v44  ;;  %5176 = vst [vmem:[#allocation55_spill] sm:$0xff] %v3926_v40  ;;  %v841_v55 = vpack.c.bf16 %v763_v62, %v757_v22  ;;  %1909 = vmatpush1.bf16.msra.mxu1 %v1868_v24  ;;  %v770_v21 = vmax.f32 %v674_v57, 0.0  ;;  %v3931_v43 = vld [vmem:[%s5026_s3 + $0x140] sm:$0xff]  ;;  %1000 = vmatmul.mubr.bf16.gmra.mrb[12].mxu0 %v3895_v9  ;;  %v2471_v24 = vld [vmem:[%s5026_s3 + $0x128] sm:$0xff] }
  0xb4   :  { %v1611_v19 = vadd.f32 %v1515_v33, %v1418_v47  ;;  %5177 = vst [vmem:[#allocation56_spill] sm:$0xff] %v3931_v43  ;;  %v487_v10 = vmul.f32 %v2610_v8, %v3904_v63  ;;  %5178 = vst [vmem:[#allocation57_spill] sm:$0xff] %v3938_v52  ;;  %v776_v16 = vmax.f32 %v680_v51, 0.0  ;;  %v3947_v62 = vld [vmem:[%s5026_s3 + $0x170] sm:$0xff]  ;;  %v577_v47 = vadd.f32 %v481_v4, %v384_v29  ;;  %v3956_v51 = vld [vmem:[%s5025_s2 + $0x1d8] sm:$0xff] }
  0xb5   :  { %v1701_v57 = vadd.f32 %v2471_v24, %v1605_v25  ;;  %5179 = vst [vmem:[#allocation58_spill] sm:$0xff] %v3947_v62  ;;  %v5180_v22 = vmax.f32 %v3027_v54, 0.0  ;;  %v5181_v33 = vmax.f32 %v3029_v53, 0.0  ;;  %5182 = vst [vmem:[#allocation59_spill] sm:$0xff] %v3956_v51  ;;  %1115 = vmatprep.mubr.bf16.mxu0 %v5139_v32  ;;  %1088 = vmatpush1.bf16.msra.mxu0 %v841_v55  ;;  %v2472_v25 = vld [vmem:[%s5026_s3 + $0x158] sm:$0xff]  ;;  %v333_v29 = vld [vmem:[%s5028_s5] sm:$0xff] }
  0xb6   :  { %v1707_v24 = vadd.f32 %v2472_v25, %v1611_v19  ;;  %v583_v12 = vadd.f32 %v487_v10, %v390_v18  ;;  %v397_v54 = vmul.f32 %v2606_v5, %v3921_v44  ;;  %v403_v53 = vmul.f32 %v2606_v5, %v3926_v40  ;;  %1073 = vmatmul.mubr.bf16.gmra.mrb[12].mxu1 %v3895_v9  ;;  %v3993_v25 = vld [vmem:[%s5024_s1 + $0x1d0] sm:$0xff]  ;;  %v2474_v9 = vld [vmem:[%s5024_s1 + $0x1b8] sm:$0xff] }
  0xb7   :  { %v1874_v63 = vpack.c.bf16 %v5181_v33, %v5180_v22  ;;  %v848_v4 = vpack.c.bf16 %v776_v16, %v770_v21  ;;  %v1797_v22 = vmax.f32 %v1701_v57, 0.0  ;;  %v673_v55 = vadd.f32 %v577_v47, %v3931_v43  ;;  %v3973_v33 = vld [vmem:[%s5026_s3 + $0x1a8] sm:$0xff]  ;;  %875 = vperm.xlu0 %2449, %v333_v29   ;;  %v3988_v47 = vld [vmem:[%s5024_s1 + $0x1a0] sm:$0xff]  ;;  %1936 = vmatprep.mubr.bf16.mxu1 %v5139_v32  ;;  %v4002_v29 = vld [vmem:[%s5026_s3 + $0x1d8] sm:$0xff] }
  0xb8   :  { %5183 = vst [vmem:[#allocation60_spill] sm:$0xff] %v3973_v33  ;;  %v494_v18 = vmul.f32 %v2610_v8, %v3938_v52  ;;  %v1803_v19 = vmax.f32 %v1707_v24, 0.0  ;;  %v679_v10 = vadd.f32 %v583_v12, %v3947_v62  ;;  %v500_v16 = vmul.f32 %v2610_v8, %v3956_v51  ;;  %v2473_v21 = vld [vmem:[%s5024_s1 + $0x188] sm:$0xff]  ;;  %5184 = vst [vmem:[#allocation61_spill] sm:$0xff] %v4002_v29  ;;  %v4024_v44 = vld [vmem:[%s5025_s2 + $0x1d0] sm:$0xff] }
  0xb9   :  { %v1424_v57 = vmul.f32 %v2473_v21, %v2621_v14  ;;  %v334_v12 = vld [vmem:[%s5028_s5 + $0x8] sm:$0xff]  ;;  %1089 = vmatprep.subr.bf16.mxu0 %v848_v4  ;;  %v769_v24 = vmax.f32 %v673_v55, 0.0  ;;  %v1430_v51 = vmul.f32 %v2474_v9, %v2621_v14  ;;  %v4015_v4 = vld [vmem:[%s5025_s2 + $0x1a0] sm:$0xff]  ;;  %5186 = vst [vmem:[#allocation63_spill] sm:$0xff] %v4024_v44  ;;  %v396_v3 = vmul.f32 %v2606_v5, %v3988_v47 }
  0xba   :  { %v590_v21 = vadd.f32 %v494_v18, %v397_v54  ;;  %v2475_v52 = vld [vmem:[%s5025_s2 + $0x188] sm:$0xff]  ;;  %5185 = vst [vmem:[#allocation62_spill] sm:$0xff] %v4015_v4  ;;  %v1875_v55 = vpack.c.bf16 %v1803_v19, %v1797_v22  ;;  %v775_v40 = vmax.f32 %v679_v10, 0.0  ;;  %v596_v54 = vadd.f32 %v500_v16, %v403_v53  ;;  %v2476_v18 = vld [vmem:[%s5025_s2 + $0x1b8] sm:$0xff] }
  0xbb   :  { %v1521_v62 = vmul.f32 %v2475_v52, %v2623_v15  ;;  %v1527_v9 = vmul.f32 %v2476_v18, %v2623_v15  ;;  %v402_v53 = vmul.f32 %v2606_v5, %v3993_v25  ;;  %v4034_v22 = vld [vmem:[%s5024_s1 + $0x208] sm:$0xff]  ;;  %880 = vperm.xlu0 %2449, %v334_v12   ;;  %v5192_v18 = vmax.f32 %v3137_v0, 0.0 }
  0xbc   :  { %v686_v52 = vadd.f32 %v590_v21, %v3973_v33  ;;  %5187 = vst [vmem:[#allocation64_spill] sm:$0xff] %v4034_v22  ;;  %1910 = vmatprep.subr.bf16.mxu1 %v1875_v55  ;;  %v847_v19 = vpack.c.bf16 %v775_v40, %v769_v24  ;;  %v692_v10 = vadd.f32 %v596_v54, %v4002_v29  ;;  %v4047_v21 = vld [vmem:[%s5025_s2 + $0x208] sm:$0xff]  ;;  %v4055_v24 = vld [vmem:[%s5026_s3 + $0x1a0] sm:$0xff]  ;;  %v5191_v54 = vmax.f32 %v3135_v46, 0.0  ;;  %v4074_v29 = vld [vmem:[%s5026_s3 + $0x1d0] sm:$0xff] }
  0xbd   :  { %v1617_v43 = vadd.f32 %v1521_v62, %v1424_v57  ;;  %v1623_v16 = vadd.f32 %v1527_v9, %v1430_v51  ;;  %v493_v62 = vmul.f32 %v2610_v8, %v4015_v4  ;;  %v4042_v57 = vld [vmem:[%s5024_s1 + $0x238] sm:$0xff]  ;;  %5189 = vst [vmem:[#allocation66_spill] sm:$0xff] %v4047_v21  ;;  %1911 = vmatpush1.bf16.msra.mxu1 %v1874_v63  ;;  %v2477_v40 = vld [vmem:[%s5026_s3 + $0x188] sm:$0xff]  ;;  %5190 = vst [vmem:[#allocation67_spill] sm:$0xff] %v4055_v24 }
  0xbe   :  { %5188 = vst [vmem:[#allocation65_spill] sm:$0xff] %v4042_v57  ;;  %v782_v12 = vmax.f32 %v686_v52, 0.0  ;;  %v499_v55 = vmul.f32 %v2610_v8, %v4024_v44  ;;  %v1880_v9 = vpack.c.bf16 %v5192_v18, %v5191_v54  ;;  %v4066_v63 = vld [vmem:[%s5025_s2 + $0x238] sm:$0xff]  ;;  %1090 = vmatpush1.bf16.msra.mxu0 %v847_v19  ;;  %5194 = vst [vmem:[#allocation69_spill] sm:$0xff] %v4074_v29  ;;  %v335_v54 = vld [vmem:[%s5028_s5 + $0x10] sm:$0xff] }
  0xbf   :  { %v1713_v51 = vadd.f32 %v2477_v40, %v1617_v43  ;;  %5193 = vst [vmem:[#allocation68_spill] sm:$0xff] %v4066_v63  ;;  %v788_v43 = vmax.f32 %v692_v10, 0.0  ;;  %v2478_v52 = vld [vmem:[%s5026_s3 + $0x1b8] sm:$0xff]  ;;  %v589_v46 = vadd.f32 %v493_v62, %v396_v3  ;;  %v409_v0 = vmul.f32 %v2606_v5, %v4034_v22  ;;  %v337_v19 = vld [vmem:[%s5028_s5 + $0x20] sm:$0xff]  ;;  %885 = vperm.xlu1 %2450, %v335_v54   ;;  %v339_v54 = vld [vmem:[%s5028_s5 + $0x30] sm:$0xff] }
  0xc0   :  { %v1719_v40 = vadd.f32 %v2478_v52, %v1623_v16  ;;  %v595_v18 = vadd.f32 %v499_v55, %v402_v53  ;;  %v4087_v16 = vld [vmem:[%s5026_s3 + $0x208] sm:$0xff]  ;;  %v415_v3 = vmul.f32 %v2606_v5, %v4042_v57  ;;  %v506_v62 = vmul.f32 %v2610_v8, %v4047_v21  ;;  %895 = vperm.xlu0 %2449, %v337_v19   ;;  %v336_v55 = vld [vmem:[%s5028_s5 + $0x18] sm:$0xff] }
  0xc1   :  { %v1809_v10 = vmax.f32 %v1713_v51, 0.0  ;;  %5195 = vst [vmem:[#allocation70_spill] sm:$0xff] %v4087_v16  ;;  %v854_v52 = vpack.c.bf16 %v788_v43, %v782_v12  ;;  %v685_v44 = vadd.f32 %v589_v46, %v4055_v24  ;;  %v512_v53 = vmul.f32 %v2610_v8, %v4066_v63  ;;  %v4099_v51 = vld [vmem:[%s5024_s1 + $0x200] sm:$0xff]  ;;  %v4111_v43 = vld [vmem:[%s5026_s3 + $0x238] sm:$0xff]  ;;  %v2479_v46 = vld [vmem:[%s5024_s1 + $0x1e8] sm:$0xff] }
  0xc2   :  { %v1815_v22 = vmax.f32 %v1719_v40, 0.0  ;;  %v691_v12 = vadd.f32 %v595_v18, %v4074_v29  ;;  %5196 = vst [vmem:[#allocation71_spill] sm:$0xff] %v4111_v43  ;;  %v602_v40 = vadd.f32 %v506_v62, %v409_v0  ;;  %v1436_v19 = vmul.f32 %v2479_v46, %v2621_v14  ;;  %v2480_v63 = vld [vmem:[%s5024_s1 + $0x218] sm:$0xff]  ;;  %v4124_v18 = vld [vmem:[%s5024_s1 + $0x230] sm:$0xff]  ;;  %v4129_v0 = vld [vmem:[%s5025_s2 + $0x200] sm:$0xff] }
  0xc3   :  { %v1442_v21 = vmul.f32 %v2480_v63, %v2621_v14  ;;  %5197 = vst [vmem:[#allocation72_spill] sm:$0xff] %v4129_v0  ;;  %1091 = vmatprep.subr.bf16.mxu0 %v854_v52  ;;  %v781_v57 = vmax.f32 %v685_v44, 0.0  ;;  %v608_v46 = vadd.f32 %v512_v53, %v415_v3  ;;  %v2481_v29 = vld [vmem:[%s5025_s2 + $0x1e8] sm:$0xff]  ;;  %v4138_v24 = vld [vmem:[%s5025_s2 + $0x230] sm:$0xff]  ;;  %890 = vperm.xlu1 %2450, %v336_v55   ;;  %v4160_v55 = vld [vmem:[%s5024_s1 + $0x298] sm:$0xff] }
  0xc4   :  { %v1881_v62 = vpack.c.bf16 %v1815_v22, %v1809_v10  ;;  %v1533_v63 = vmul.f32 %v2481_v29, %v2623_v15  ;;  %5198 = vst [vmem:[#allocation73_spill] sm:$0xff] %v4138_v24  ;;  %v787_v33 = vmax.f32 %v691_v12, 0.0  ;;  %v698_v4 = vadd.f32 %v602_v40, %v4087_v16  ;;  %v2482_v22 = vld [vmem:[%s5025_s2 + $0x218] sm:$0xff]  ;;  %905 = vperm.xlu0 %2449, %v339_v54   ;;  %v4155_v12 = vld [vmem:[%s5024_s1 + $0x268] sm:$0xff] }
  0xc5   :  { %v1539_v44 = vmul.f32 %v2482_v22, %v2623_v15  ;;  %v408_v10 = vmul.f32 %v2606_v5, %v4099_v51  ;;  %v704_v29 = vadd.f32 %v608_v46, %v4111_v43  ;;  %v414_v52 = vmul.f32 %v2606_v5, %v4124_v18  ;;  %5199 = vst [vmem:[#allocation74_spill] sm:$0xff] %v4155_v12 }
  0xc6   :  { %1912 = vmatprep.subr.bf16.mxu1 %v1881_v62  ;;  %v1629_v3 = vadd.f32 %v1533_v63, %v1436_v19  ;;  %v505_v53 = vmul.f32 %v2610_v8, %v4129_v0  ;;  %5200 = vst [vmem:[#allocation75_spill] sm:$0xff] %v4160_v55  ;;  %v853_v54 = vpack.c.bf16 %v787_v33, %v781_v57  ;;  %v794_v40 = vmax.f32 %v698_v4, 0.0  ;;  %v4165_v62 = vld [vmem:[%s5026_s3 + $0x200] sm:$0xff]  ;;  %v4172_v63 = vld [vmem:[%s5025_s2 + $0x268] sm:$0xff] }
  0xc7   :  { %1913 = vmatpush1.bf16.msra.mxu1 %v1880_v9  ;;  %v1635_v19 = vadd.f32 %v1539_v44, %v1442_v21  ;;  %5201 = vst [vmem:[#allocation76_spill] sm:$0xff] %v4165_v62  ;;  %v511_v46 = vmul.f32 %v2610_v8, %v4138_v24  ;;  %5202 = vst [vmem:[#allocation77_spill] sm:$0xff] %v4172_v63  ;;  %v338_v33 = vld [vmem:[%s5028_s5 + $0x28] sm:$0xff]  ;;  %v800_v57 = vmax.f32 %v704_v29, 0.0  ;;  %v4183_v9 = vld [vmem:[%s5026_s3 + $0x230] sm:$0xff]  ;;  %v5204_v44 = vmax.f32 %v3243_v35, 0.0 }
  0xc8   :  { %v2483_v4 = vld [vmem:[%s5026_s3 + $0x1e8] sm:$0xff]  ;;  %5203 = vst [vmem:[#allocation78_spill] sm:$0xff] %v4183_v9  ;;  %v601_v22 = vadd.f32 %v505_v53, %v408_v10  ;;  %v5205_v24 = vmax.f32 %v3245_v58, 0.0  ;;  %v4192_v29 = vld [vmem:[%s5025_s2 + $0x298] sm:$0xff]  ;;  %1092 = vmatpush1.bf16.msra.mxu0 %v853_v54  ;;  %v421_v10 = vmul.f32 %v2606_v5, %v4155_v12  ;;  %v427_v35 = vmul.f32 %v2606_v5, %v4160_v55  ;;  %v4254_v12 = vld [vmem:[%s5025_s2 + $0x290] sm:$0xff] }
  0xc9   :  { %v1725_v21 = vadd.f32 %v2483_v4, %v1629_v3  ;;  %5206 = vst [vmem:[#allocation79_spill] sm:$0xff] %v4192_v29  ;;  %v2484_v3 = vld [vmem:[%s5026_s3 + $0x218] sm:$0xff]  ;;  %v607_v0 = vadd.f32 %v511_v46, %v414_v52  ;;  %v860_v58 = vpack.c.bf16 %v800_v57, %v794_v40  ;;  %v4205_v54 = vld [vmem:[%s5026_s3 + $0x268] sm:$0xff]  ;;  %900 = vperm.xlu1 %2450, %v338_v33   ;;  %v4224_v33 = vld [vmem:[%s5024_s1 + $0x290] sm:$0xff] }
  0xca   :  { %v1886_v43 = vpack.c.bf16 %v5205_v24, %v5204_v44  ;;  %v1731_v4 = vadd.f32 %v2484_v3, %v1635_v19  ;;  %v697_v53 = vadd.f32 %v601_v22, %v4165_v62  ;;  %5207 = vst [vmem:[#allocation80_spill] sm:$0xff] %v4205_v54  ;;  %v518_v44 = vmul.f32 %v2610_v8, %v4172_v63  ;;  %v2485_v40 = vld [vmem:[%s5024_s1 + $0x248] sm:$0xff]  ;;  %v4232_v3 = vld [vmem:[%s5026_s3 + $0x298] sm:$0xff] }
  0xcb   :  { %v1821_v24 = vmax.f32 %v1725_v21, 0.0  ;;  %v703_v19 = vadd.f32 %v607_v0, %v4183_v9  ;;  %v524_v46 = vmul.f32 %v2610_v8, %v4192_v29  ;;  %v1448_v57 = vmul.f32 %v2485_v40, %v2621_v14  ;;  %v4219_v21 = vld [vmem:[%s5024_s1 + $0x260] sm:$0xff]  ;;  %v340_v0 = vld [vmem:[%s5028_s5 + $0x38] sm:$0xff]  ;;  %1093 = vmatprep.subr.bf16.mxu0 %v860_v58  ;;  %5208 = vst [vmem:[#allocation81_spill] sm:$0xff] %v4232_v3  ;;  %v2487_v63 = vld [vmem:[%s5025_s2 + $0x248] sm:$0xff] }
  0xcc   :  { %v1827_v52 = vmax.f32 %v1731_v4, 0.0  ;;  %v793_v22 = vmax.f32 %v697_v53, 0.0  ;;  %v614_v4 = vadd.f32 %v518_v44, %v421_v10  ;;  %v2486_v40 = vld [vmem:[%s5024_s1 + $0x278] sm:$0xff]  ;;  %v1545_v9 = vmul.f32 %v2487_v63, %v2623_v15  ;;  %v4245_v58 = vld [vmem:[%s5025_s2 + $0x260] sm:$0xff]  ;;  %5209 = vst [vmem:[#allocation82_spill] sm:$0xff] %v4254_v12 }
  0xcd   :  { %v1454_v29 = vmul.f32 %v2486_v40, %v2621_v14  ;;  %v799_v55 = vmax.f32 %v703_v19, 0.0  ;;  %v620_v10 = vadd.f32 %v524_v46, %v427_v35  ;;  %v2488_v44 = vld [vmem:[%s5025_s2 + $0x278] sm:$0xff]  ;;  %v420_v16 = vmul.f32 %v2606_v5, %v4219_v21  ;;  %910 = vperm.xlu1 %2450, %v340_v0  }
  0xce   :  { %v1887_v53 = vpack.c.bf16 %v1827_v52, %v1821_v24  ;;  %v1551_v40 = vmul.f32 %v2488_v44, %v2623_v15  ;;  %v710_v63 = vadd.f32 %v614_v4, %v4205_v54  ;;  %v1641_v62 = vadd.f32 %v1545_v9, %v1448_v57  ;;  %v4264_v24 = vld [vmem:[%s5024_s1 + $0x2c8] sm:$0xff]  ;;  %v4272_v57 = vld [vmem:[%s5024_s1 + $0x2f8] sm:$0xff] }
  0xcf   :  { %v426_v35 = vmul.f32 %v2606_v5, %v4224_v33  ;;  %v859_v52 = vpack.c.bf16 %v799_v55, %v793_v22  ;;  %v716_v19 = vadd.f32 %v620_v10, %v4232_v3  ;;  %v517_v9 = vmul.f32 %v2610_v8, %v4245_v58  ;;  %5210 = vst [vmem:[#allocation83_spill] sm:$0xff] %v4272_v57  ;;  %v4277_v4 = vld [vmem:[%s5025_s2 + $0x2c8] sm:$0xff]  ;;  %v4285_v22 = vld [vmem:[%s5026_s3 + $0x260] sm:$0xff]  ;;  %v4304_v3 = vld [vmem:[%s5026_s3 + $0x290] sm:$0xff] }
  0xd0   :  { %1914 = vmatprep.subr.bf16.mxu1 %v1887_v53  ;;  %v1647_v46 = vadd.f32 %v1551_v40, %v1454_v29  ;;  %5211 = vst [vmem:[#allocation84_spill] sm:$0xff] %v4277_v4  ;;  %v806_v0 = vmax.f32 %v710_v63, 0.0  ;;  %v2489_v55 = vld [vmem:[%s5026_s3 + $0x248] sm:$0xff]  ;;  %v523_v53 = vmul.f32 %v2610_v8, %v4254_v12  ;;  %v5212_v10 = vmax.f32 %v3351_v20, 0.0  ;;  %v2490_v63 = vld [vmem:[%s5026_s3 + $0x278] sm:$0xff] }
  0xd1   :  { %1915 = vmatpush1.bf16.msra.mxu1 %v1886_v43  ;;  %v1737_v29 = vadd.f32 %v2489_v55, %v1641_v62  ;;  %v5213_v44 = vmax.f32 %v3353_v39, 0.0  ;;  %v4296_v43 = vld [vmem:[%s5025_s2 + $0x2f8] sm:$0xff]  ;;  %1094 = vmatpush1.bf16.msra.mxu0 %v859_v52  ;;  %v812_v62 = vmax.f32 %v716_v19, 0.0  ;;  %v613_v20 = vadd.f32 %v517_v9, %v420_v16 }
  0xd2   :  { %5214 = vst [vmem:[#allocation85_spill] sm:$0xff] %v4296_v43  ;;  %v1743_v55 = vadd.f32 %v2490_v63, %v1647_v46  ;;  %v433_v39 = vmul.f32 %v2606_v5, %v4264_v24  ;;  %v439_v52 = vmul.f32 %v2606_v5, %v4272_v57  ;;  %v530_v19 = vmul.f32 %v2610_v8, %v4277_v4  ;;  %v4316_v63 = vld [vmem:[%s5026_s3 + $0x2c8] sm:$0xff] }
  0xd3   :  { %v1892_v40 = vpack.c.bf16 %v5213_v44, %v5212_v10  ;;  %v1833_v10 = vmax.f32 %v1737_v29, 0.0  ;;  %v619_v44 = vadd.f32 %v523_v53, %v426_v35  ;;  %v866_v12 = vpack.c.bf16 %v812_v62, %v806_v0  ;;  %v4323_v35 = vld [vmem:[%s5024_s1 + $0x2c0] sm:$0xff]  ;;  %v4329_v0 = vld [vmem:[%s5026_s3 + $0x2f8] sm:$0xff] }
  0xd4   :  { %v1839_v54 = vmax.f32 %v1743_v55, 0.0  ;;  %v709_v46 = vadd.f32 %v613_v20, %v4285_v22  ;;  %v536_v16 = vmul.f32 %v2610_v8, %v4296_v43  ;;  %v626_v29 = vadd.f32 %v530_v19, %v433_v39  ;;  %v4338_v55 = vld [vmem:[%s5024_s1 + $0x2f0] sm:$0xff]  ;;  %v4343_v20 = vld [vmem:[%s5025_s2 + $0x2c0] sm:$0xff] }
  0xd5   :  { %v715_v9 = vadd.f32 %v619_v44, %v4304_v3  ;;  %v1460_v53 = vmul.f32 %v2621_v14, %v3365_v31  ;;  %v1466_v62 = vmul.f32 %v2621_v14, %v3372_v49  ;;  %1095 = vmatprep.subr.bf16.mxu0 %v866_v12  ;;  %v1557_v31 = vmul.f32 %v2623_v15, %v3377_v41  ;;  %v4350_v49 = vld [vmem:[%s5025_s2 + $0x2f0] sm:$0xff] }
  0xd6   :  { %v1893_v44 = vpack.c.bf16 %v1839_v54, %v1833_v10  ;;  %v805_v43 = vmax.f32 %v709_v46, 0.0  ;;  %v632_v39 = vadd.f32 %v536_v16, %v439_v52  ;;  %v722_v4 = vadd.f32 %v626_v29, %v4316_v63 }
  0xd7   :  { %v811_v19 = vmax.f32 %v715_v9, 0.0  ;;  %v1563_v57 = vmul.f32 %v2623_v15, %v3382_v27  ;;  %v432_v12 = vmul.f32 %v2606_v5, %v4323_v35  ;;  %v1653_v10 = vadd.f32 %v1557_v31, %v1460_v53  ;;  %v4365_v27 = vld [vmem:[%s5026_s3 + $0x2c0] sm:$0xff] }
  0xd8   :  { %1916 = vmatprep.subr.bf16.mxu1 %v1893_v44  ;;  %v728_v54 = vadd.f32 %v632_v39, %v4329_v0  ;;  %v438_v41 = vmul.f32 %v2606_v5, %v4338_v55  ;;  %v529_v52 = vmul.f32 %v2610_v8, %v4343_v20  ;;  %v818_v16 = vmax.f32 %v722_v4, 0.0  ;;  %v4373_v5 = vld [vmem:[%s5026_s3 + $0x2f0] sm:$0xff] }
  0xd9   :  { %v865_v46 = vpack.c.bf16 %v811_v19, %v805_v43  ;;  %1917 = vmatpush1.bf16.msra.mxu1 %v1892_v40  ;;  %v1659_v9 = vadd.f32 %v1563_v57, %v1466_v62  ;;  %v535_v29 = vmul.f32 %v2610_v8, %v4350_v49  ;;  %v1749_v53 = vadd.f32 %v1653_v10, %v3412_v23 }
  0xda   :  { %v824_v44 = vmax.f32 %v728_v54, 0.0  ;;  %v625_v43 = vadd.f32 %v529_v52, %v432_v12  ;;  %v5215_v4 = vmax.f32 %v3477_v17, 0.0  ;;  %v5216_v57 = vmax.f32 %v3479_v11, 0.0 }
  0xdb   :  { %1096 = vmatpush1.bf16.msra.mxu0 %v865_v46  ;;  %v1755_v62 = vadd.f32 %v1659_v9, %v3417_v34  ;;  %v631_v39 = vadd.f32 %v535_v29, %v438_v41  ;;  %v5217_v8 = vmax.f32 %v2668_v56, 0.0  ;;  %v5218_v31 = vmax.f32 %v2675_v60, 0.0 }
  0xdc   :  { %v1898_v40 = vpack.c.bf16 %v5216_v57, %v5215_v4  ;;  %v1380_v19 = vmul.f32 %v2621_v14, %v3493_v7  ;;  %v872_v54 = vpack.c.bf16 %v824_v44, %v818_v16  ;;  %v1845_v10 = vmax.f32 %v1749_v53, 0.0 }
  0xdd   :  { %v1859_v23 = vpack.c.bf16 %v5218_v31, %v5217_v8  ;;  %v721_v12 = vadd.f32 %v625_v43, %v4365_v27  ;;  %v1386_v17 = vmul.f32 %v2621_v14, %v3498_v13  ;;  %v1851_v11 = vmax.f32 %v1755_v62, 0.0  ;;  %v2494_v31 = vld [vmem:[%s5025_s2 + $0xa8] sm:$0xff] }
  0xde   :  { %v727_v52 = vadd.f32 %v631_v39, %v4373_v5  ;;  %v1477_v34 = vmul.f32 %v2623_v15, %v3506_v2  ;;  %v1483_v56 = vmul.f32 %v2623_v15, %v3516_v48  ;;  %1097 = vmatprep.subr.bf16.mxu0 %v872_v54  ;;  %v5219_v7 = vmax.f32 %v2746_v59, 0.0  ;;  %v2491_v59 = vld [vmem:[%s5024_s1 + $0x78] sm:$0xff] }
  0xdf   :  { %v817_v60 = vmax.f32 %v721_v12, 0.0  ;;  %v5220_v41 = vmax.f32 %v2756_v1, 0.0  ;;  %v1379_v16 = vmul.f32 %v2621_v14, %v3521_v6  ;;  %v1385_v13 = vmul.f32 %v2621_v14, %v3532_v36  ;;  %v2492_v6 = vld [vmem:[%s5024_s1 + $0xa8] sm:$0xff]  ;;  %v5222_v54 = vld [vmem:[#allocation20_spill] sm:$0xff] }
  0xe0   :  { %v1899_v9 = vpack.c.bf16 %v1851_v11, %v1845_v10  ;;  %v823_v29 = vmax.f32 %v727_v52, 0.0  ;;  %v1573_v44 = vadd.f32 %v1477_v34, %v1380_v19  ;;  %v1579_v2 = vadd.f32 %v1483_v56, %v1386_v17  ;;  %v5223_v11 = vld [vmem:[#allocation21_spill] sm:$0xff]  ;;  %v5225_v56 = vld [vmem:[#allocation26_spill] sm:$0xff] }
  0xe1   :  { %v1858_v46 = vpack.c.bf16 %v5220_v41, %v5219_v7  ;;  %v1476_v48 = vmul.f32 %v2623_v15, %v3542_v30  ;;  %v1482_v53 = vmul.f32 %v2623_v15, %v3547_v42  ;;  %v1390_v1 = vmul.f32 %v2491_v59, %v2621_v14  ;;  %v5221_v30 = vld [vmem:[#allocation22_spill] sm:$0xff]  ;;  %v2493_v42 = vld [vmem:[%s5025_s2 + $0x78] sm:$0xff]  ;;  %v5226_v41 = vld [vmem:[#allocation23_spill] sm:$0xff] }
  0xe2   :  { %v1396_v36 = vmul.f32 %v2492_v6, %v2621_v14  ;;  %1918 = vmatprep.subr.bf16.mxu1 %v1899_v9  ;;  %v871_v43 = vpack.c.bf16 %v823_v29, %v817_v60  ;;  %v1669_v4 = vadd.f32 %v1573_v44, %v3555_v26  ;;  %v1675_v57 = vadd.f32 %v1579_v2, %v5221_v30  ;;  %v2495_v29 = vld [vmem:[%s5026_s3 + $0x78] sm:$0xff]  ;;  %v5231_v59 = vld [vmem:[#allocation6_spill] sm:$0xff] }
  0xe3   :  { %v1487_v62 = vmul.f32 %v2493_v42, %v2623_v15  ;;  %1919 = vmatpush1.bf16.msra.mxu1 %v1898_v40  ;;  %v1572_v39 = vadd.f32 %v1476_v48, %v1379_v16  ;;  %v1578_v8 = vadd.f32 %v1482_v53, %v1385_v13  ;;  %v1493_v19 = vmul.f32 %v2494_v31, %v2623_v15  ;;  %v5224_v40 = vld [vmem:[#allocation25_spill] sm:$0xff]  ;;  %v5228_v2 = vld [vmem:[#allocation24_spill] sm:$0xff] }
  0xe4   :  { %v1392_v26 = vmul.f32 %v2621_v14, %v5222_v54  ;;  %1098 = vmatpush1.bf16.msra.mxu0 %v871_v43  ;;  %v1765_v10 = vmax.f32 %v1669_v4, 0.0  ;;  %v1771_v12 = vmax.f32 %v1675_v57, 0.0  ;;  %v1398_v52 = vmul.f32 %v2621_v14, %v5223_v11  ;;  %v5227_v13 = vld [vmem:[#allocation17_spill] sm:$0xff]  ;;  %v2496_v4 = vld [vmem:[%s5026_s3 + $0xa8] sm:$0xff] }
  0xe5   :  { %v1583_v17 = vadd.f32 %v1487_v62, %v1390_v1  ;;  %1977 = vmatprep.subr.bf16.mxu0 %v1859_v23  ;;  %v1668_v34 = vadd.f32 %v1572_v39, %v5224_v40  ;;  %v1674_v60 = vadd.f32 %v1578_v8, %v5225_v56  ;;  %v1589_v7 = vadd.f32 %v1493_v19, %v1396_v36  ;;  %v5229_v23 = vld [vmem:[#allocation5_spill] sm:$0xff]  ;;  %v5233_v39 = vld [vmem:[#allocation27_spill] sm:$0xff]  ;;  %v2498_v56 = vld [vmem:[%s5024_s1 + $0x108] sm:$0xff] }
  0xe6   :  { %v1489_v16 = vmul.f32 %v2623_v15, %v5226_v41  ;;  %1937 = vmatmul.mubr.bf16.vlgmr.msra.gmra.mrb[16].mxu1 %v5227_v13  ;;  %v1861_v9 = vpack.c.bf16 %v1771_v12, %v1765_v10  ;;  %v1495_v48 = vmul.f32 %v2623_v15, %v5228_v2  ;;  %v5230_v53 = vmax.f32 %v5229_v23, 0.0  ;;  %v5234_v10 = vld [vmem:[#allocation28_spill] sm:$0xff]  ;;  %v2500_v2 = vld [vmem:[%s5025_s2 + $0x108] sm:$0xff] }
  0xe7   :  { %v1679_v44 = vadd.f32 %v2495_v29, %v1583_v17  ;;  %v5232_v1 = vmax.f32 %v5231_v59, 0.0  ;;  %1116 = vmatmul.mubr.bf16.vlgmr.msra.gmra.mrb[16].mxu0 %v5227_v13  ;;  %v1764_v36 = vmax.f32 %v1668_v34, 0.0  ;;  %v1770_v43 = vmax.f32 %v1674_v60, 0.0  ;;  %1946 = vmatprep.mubr.bf16.mxu1 %v5139_v32  ;;  %v5235_v17 = vld [vmem:[#allocation31_spill] sm:$0xff]  ;;  %v2497_v34 = vld [vmem:[%s5024_s1 + $0xd8] sm:$0xff] }
  0xe8   :  { %v1685_v30 = vadd.f32 %v2496_v4, %v1589_v7  ;;  %v1585_v57 = vadd.f32 %v1489_v16, %v1392_v26  ;;  %2050 = vmatprep.subr.bf16.mxu1 %v1861_v9  ;;  %1978 = vmatpush1.bf16.msra.mxu0 %v1858_v46  ;;  %v1591_v62 = vadd.f32 %v1495_v48, %v1398_v52  ;;  %v5236_v26 = vld [vmem:[#allocation30_spill] sm:$0xff]  ;;  %v5237_v46 = vld [vmem:[#allocation32_spill] sm:$0xff] }
  0xe9   :  { %v1864_v6 = vpack.c.bf16 %v5232_v1, %v5230_v53  ;;  %v1775_v42 = vmax.f32 %v1679_v44, 0.0  ;;  %v1391_v8 = vmul.f32 %v2621_v14, %v5233_v39  ;;  %v1397_v31 = vmul.f32 %v2621_v14, %v3659_v37  ;;  %1125 = vmatprep.mubr.bf16.mxu0 %v5139_v32  ;;  %v2499_v13 = vld [vmem:[%s5025_s2 + $0xd8] sm:$0xff]  ;;  %v5238_v1 = vld [vmem:[#allocation33_spill] sm:$0xff] }
  0xea   :  { %v1860_v19 = vpack.c.bf16 %v1770_v43, %v1764_v36  ;;  %v1781_v54 = vmax.f32 %v1685_v30, 0.0  ;;  %v1681_v12 = vadd.f32 %v1585_v57, %v5234_v10  ;;  %v1488_v11 = vmul.f32 %v2623_v15, %v5235_v17  ;;  %v5239_v43 = vld [vmem:[#allocation34_spill] sm:$0xff]  ;;  %v5240_v30 = vld [vmem:[#allocation19_spill] sm:$0xff] }
  0xeb   :  { %v1687_v40 = vadd.f32 %v1591_v62, %v5236_v26  ;;  %v1494_v52 = vmul.f32 %v2623_v15, %v5237_v46  ;;  %v1402_v37 = vmul.f32 %v2497_v34, %v2621_v14  ;;  %v1408_v60 = vmul.f32 %v2498_v56, %v2621_v14  ;;  %v5241_v62 = vld [vmem:[#allocation35_spill] sm:$0xff]  ;;  %v2502_v17 = vld [vmem:[%s5026_s3 + $0x108] sm:$0xff]  ;;  %v5246_v46 = vld [vmem:[#allocation8_spill] sm:$0xff] }
  0xec   :  { %2051 = vmatpush1.bf16.msra.mxu1 %v1860_v19  ;;  %v1865_v7 = vpack.c.bf16 %v1781_v54, %v1775_v42  ;;  %v1777_v41 = vmax.f32 %v1681_v12, 0.0  ;;  %v1584_v16 = vadd.f32 %v1488_v11, %v1391_v8  ;;  %v1499_v9 = vmul.f32 %v2499_v13, %v2623_v15  ;;  %v5242_v8 = vld [vmem:[#allocation29_spill] sm:$0xff]  ;;  %v5243_v54 = vld [vmem:[#allocation36_spill] sm:$0xff]  ;;  %v5244_v26 = vld [vmem:[#allocation7_spill] sm:$0xff] }
  0xed   :  { %v1783_v29 = vmax.f32 %v1687_v40, 0.0  ;;  %v1590_v44 = vadd.f32 %v1494_v52, %v1397_v31  ;;  %v1505_v48 = vmul.f32 %v2500_v2, %v2623_v15  ;;  %v1404_v23 = vmul.f32 %v2621_v14, %v3690_v28  ;;  %v5250_v2 = vld [vmem:[#allocation41_spill] sm:$0xff] }
  0xee   :  { %1979 = vmatprep.subr.bf16.mxu0 %v1865_v7  ;;  %v1680_v53 = vadd.f32 %v1584_v16, %v3716_v45  ;;  %v1595_v59 = vadd.f32 %v1499_v9, %v1402_v37  ;;  %v1410_v36 = vmul.f32 %v2621_v14, %v5238_v1  ;;  %v1501_v4 = vmul.f32 %v2623_v15, %v5239_v43  ;;  %v2501_v45 = vld [vmem:[%s5026_s3 + $0xd8] sm:$0xff]  ;;  %v2504_v1 = vld [vmem:[%s5024_s1 + $0x168] sm:$0xff] }
  0xef   :  { %v1852_v57 = vmax.f32 %v5240_v30, 0.0  ;;  %v1867_v42 = vpack.c.bf16 %v1783_v29, %v1777_v41  ;;  %1980 = vmatpush1.bf16.msra.mxu0 %v1864_v6  ;;  %v1686_v39 = vadd.f32 %v1590_v44, %v5241_v62  ;;  %1947 = vmatmul.mubr.bf16.gmra.mrb[20].mxu1 %v5242_v8  ;;  %v1601_v31 = vadd.f32 %v1505_v48, %v1408_v60  ;;  %v5248_v41 = vld [vmem:[#allocation37_spill] sm:$0xff]  ;;  %v5249_v29 = vld [vmem:[#allocation39_spill] sm:$0xff]  ;;  %v2505_v62 = vld [vmem:[%s5025_s2 + $0x138] sm:$0xff] }
  0xf0   :  { %v1776_v28 = vmax.f32 %v1680_v53, 0.0  ;;  %1126 = vmatmul.mubr.bf16.gmra.mrb[20].mxu0 %v5242_v8  ;;  %v1691_v19 = vadd.f32 %v2501_v45, %v1595_v59  ;;  %v1507_v10 = vmul.f32 %v2623_v15, %v5243_v54  ;;  %v1597_v12 = vadd.f32 %v1501_v4, %v1404_v23  ;;  %1956 = vmatprep.mubr.bf16.mxu1 %v5139_v32  ;;  %v5251_v23 = vld [vmem:[#allocation38_spill] sm:$0xff]  ;;  %v2503_v59 = vld [vmem:[%s5024_s1 + $0x138] sm:$0xff]  ;;  %v5253_v54 = vld [vmem:[#allocation43_spill] sm:$0xff] }
  0xf1   :  { %2052 = vmatprep.subr.bf16.mxu1 %v1867_v42  ;;  %v1782_v6 = vmax.f32 %v1686_v39, 0.0  ;;  %v1697_v11 = vadd.f32 %v2502_v17, %v1601_v31  ;;  %v5245_v40 = vmax.f32 %v5244_v26, 0.0  ;;  %v5247_v52 = vmax.f32 %v5246_v46, 0.0  ;;  %1135 = vmatprep.mubr.bf16.mxu0 %v5139_v32  ;;  %v2506_v31 = vld [vmem:[%s5025_s2 + $0x168] sm:$0xff]  ;;  %v5255_v17 = vld [vmem:[#allocation47_spill] sm:$0xff] }
  0xf2   :  { %v1403_v37 = vmul.f32 %v2621_v14, %v3755_v50  ;;  %v1787_v56 = vmax.f32 %v1691_v19, 0.0  ;;  %v1603_v60 = vadd.f32 %v1507_v10, %v1410_v36  ;;  %v1693_v7 = vadd.f32 %v1597_v12, %v3744_v38  ;;  %v5252_v45 = vld [vmem:[#allocation42_spill] sm:$0xff]  ;;  %v5254_v12 = vld [vmem:[#allocation45_spill] sm:$0xff] }
  0xf3   :  { %v1870_v34 = vpack.c.bf16 %v5247_v52, %v5245_v40  ;;  %v1409_v16 = vmul.f32 %v2621_v14, %v5248_v41  ;;  %v1866_v13 = vpack.c.bf16 %v1782_v6, %v1776_v28  ;;  %v1793_v9 = vmax.f32 %v1697_v11, 0.0  ;;  %v5256_v40 = vld [vmem:[#allocation44_spill] sm:$0xff] }
  0xf4   :  { %v1500_v44 = vmul.f32 %v2623_v15, %v5249_v29  ;;  %v1506_v48 = vmul.f32 %v2623_v15, %v5250_v2  ;;  %v1699_v53 = vadd.f32 %v1603_v60, %v5251_v23  ;;  %v1789_v50 = vmax.f32 %v1693_v7, 0.0  ;;  %v5258_v7 = vld [vmem:[#allocation9_spill] sm:$0xff]  ;;  %v2507_v2 = vld [vmem:[%s5026_s3 + $0x138] sm:$0xff] }
  0xf5   :  { %v1414_v38 = vmul.f32 %v2503_v59, %v2621_v14  ;;  %v1420_v36 = vmul.f32 %v2504_v1, %v2621_v14  ;;  %2053 = vmatpush1.bf16.msra.mxu1 %v1866_v13  ;;  %v1871_v43 = vpack.c.bf16 %v1793_v9, %v1787_v56  ;;  %v1511_v39 = vmul.f32 %v2505_v62, %v2623_v15  ;;  %v5257_v56 = vld [vmem:[#allocation46_spill] sm:$0xff] }
  0xf6   :  { %v1596_v4 = vadd.f32 %v1500_v44, %v1403_v37  ;;  %v1602_v42 = vadd.f32 %v1506_v48, %v1409_v16  ;;  %v1795_v8 = vmax.f32 %v1699_v53, 0.0  ;;  %v1517_v28 = vmul.f32 %v2506_v31, %v2623_v15  ;;  %v5260_v16 = vld [vmem:[#allocation10_spill] sm:$0xff]  ;;  %v5262_v53 = vld [vmem:[#allocation40_spill] sm:$0xff] }
  0xf7   :  { %v1416_v19 = vmul.f32 %v2621_v14, %v5252_v45  ;;  %v1422_v10 = vmul.f32 %v2621_v14, %v5253_v54  ;;  %1981 = vmatprep.subr.bf16.mxu0 %v1871_v43  ;;  %v1607_v26 = vadd.f32 %v1511_v39, %v1414_v38  ;;  %v1513_v46 = vmul.f32 %v2623_v15, %v5256_v40  ;;  %v5263_v1 = vld [vmem:[#allocation50_spill] sm:$0xff]  ;;  %v5265_v39 = vld [vmem:[#allocation51_spill] sm:$0xff]  ;;  %v2509_v54 = vld [vmem:[%s5024_s1 + $0x198] sm:$0xff] }
  0xf8   :  { %v1692_v6 = vadd.f32 %v1596_v4, %v5254_v12  ;;  %v1698_v11 = vadd.f32 %v1602_v42, %v5255_v17  ;;  %v1873_v52 = vpack.c.bf16 %v1795_v8, %v1789_v50  ;;  %1982 = vmatpush1.bf16.msra.mxu0 %v1870_v34  ;;  %v1613_v37 = vadd.f32 %v1517_v28, %v1420_v36  ;;  %v2508_v34 = vld [vmem:[%s5026_s3 + $0x168] sm:$0xff]  ;;  %v5264_v42 = vld [vmem:[#allocation48_spill] sm:$0xff]  ;;  %v5266_v28 = vld [vmem:[#allocation49_spill] sm:$0xff] }
  0xf9   :  { %v1519_v60 = vmul.f32 %v2623_v15, %v5257_v56  ;;  %v5259_v41 = vmax.f32 %v5258_v7, 0.0  ;;  %v5261_v13 = vmax.f32 %v5260_v16, 0.0  ;;  %v1703_v48 = vadd.f32 %v2507_v2, %v1607_v26  ;;  %1136 = vmatmul.mubr.bf16.gmra.mrb[24].mxu0 %v5262_v53  ;;  %1957 = vmatmul.mubr.bf16.gmra.mrb[24].mxu1 %v5262_v53  ;;  %v2510_v17 = vld [vmem:[%s5024_s1 + $0x1c8] sm:$0xff]  ;;  %v2511_v26 = vld [vmem:[%s5025_s2 + $0x198] sm:$0xff] }
  0xfa   :  { %v1788_v29 = vmax.f32 %v1692_v6, 0.0  ;;  %v1794_v44 = vmax.f32 %v1698_v11, 0.0  ;;  %v1609_v23 = vadd.f32 %v1513_v46, %v1416_v19  ;;  %2054 = vmatprep.subr.bf16.mxu1 %v1873_v52  ;;  %v1709_v50 = vadd.f32 %v2508_v34, %v1613_v37  ;;  %1145 = vmatprep.mubr.bf16.mxu0 %v5139_v32  ;;  %v5267_v19 = vld [vmem:[#allocation53_spill] sm:$0xff]  ;;  %v2512_v56 = vld [vmem:[%s5025_s2 + $0x1c8] sm:$0xff]  ;;  %v5268_v7 = vld [vmem:[#allocation56_spill] sm:$0xff] }
  0xfb   :  { %v1876_v9 = vpack.c.bf16 %v5261_v13, %v5259_v41  ;;  %v1615_v59 = vadd.f32 %v1519_v60, %v1422_v10  ;;  %v1415_v38 = vmul.f32 %v2621_v14, %v3869_v61  ;;  %v1421_v36 = vmul.f32 %v2621_v14, %v5263_v1  ;;  %1966 = vmatprep.mubr.bf16.mxu1 %v5139_v32  ;;  %v5269_v13 = vld [vmem:[#allocation54_spill] sm:$0xff]  ;;  %v2513_v1 = vld [vmem:[%s5026_s3 + $0x198] sm:$0xff] }
  0xfc   :  { %v1872_v43 = vpack.c.bf16 %v1794_v44, %v1788_v29  ;;  %v1799_v4 = vmax.f32 %v1703_v48, 0.0  ;;  %v1705_v62 = vadd.f32 %v1609_v23, %v5264_v42  ;;  %v1512_v8 = vmul.f32 %v2623_v15, %v5265_v39  ;;  %v5270_v44 = vld [vmem:[#allocation55_spill] sm:$0xff]  ;;  %v5271_v23 = vld [vmem:[#allocation58_spill] sm:$0xff]  ;;  %v5276_v39 = vld [vmem:[#allocation12_spill] sm:$0xff] }
  0xfd   :  { %v1805_v31 = vmax.f32 %v1709_v50, 0.0  ;;  %v1711_v45 = vadd.f32 %v1615_v59, %v5266_v28  ;;  %v1518_v61 = vmul.f32 %v2623_v15, %v5267_v19  ;;  %v1426_v10 = vmul.f32 %v2509_v54, %v2621_v14  ;;  %v5272_v50 = vld [vmem:[#allocation57_spill] sm:$0xff]  ;;  %v5274_v42 = vld [vmem:[#allocation11_spill] sm:$0xff]  ;;  %v5278_v28 = vld [vmem:[#allocation52_spill] sm:$0xff] }
  0xfe   :  { %2055 = vmatpush1.bf16.msra.mxu1 %v1872_v43  ;;  %v1801_v12 = vmax.f32 %v1705_v62, 0.0  ;;  %v1608_v6 = vadd.f32 %v1512_v8, %v1415_v38  ;;  %v1432_v11 = vmul.f32 %v2510_v17, %v2621_v14  ;;  %v1523_v40 = vmul.f32 %v2511_v26, %v2623_v15  ;;  %v5273_v43 = vld [vmem:[#allocation59_spill] sm:$0xff]  ;;  %v5279_v17 = vld [vmem:[#allocation62_spill] sm:$0xff] }
  0xff   :  { %v1877_v46 = vpack.c.bf16 %v1805_v31, %v1799_v4  ;;  %v1807_v52 = vmax.f32 %v1711_v45, 0.0  ;;  %v1614_v37 = vadd.f32 %v1518_v61, %v1421_v36  ;;  %v1529_v60 = vmul.f32 %v2512_v56, %v2623_v15  ;;  %v5282_v56 = vld [vmem:[#allocation61_spill] sm:$0xff] }
 0x100   :  { %v1704_v41 = vadd.f32 %v1608_v6, %v5268_v7  ;;  %v1619_v16 = vadd.f32 %v1523_v40, %v1426_v10  ;;  %v1428_v29 = vmul.f32 %v2621_v14, %v5269_v13  ;;  %v1434_v2 = vmul.f32 %v2621_v14, %v5270_v44 }
 0x101   :  { %1983 = vmatprep.subr.bf16.mxu0 %v1877_v46  ;;  %v1879_v48 = vpack.c.bf16 %v1807_v52, %v1801_v12  ;;  %v1710_v53 = vadd.f32 %v1614_v37, %v5271_v23  ;;  %v1625_v34 = vadd.f32 %v1529_v60, %v1432_v11  ;;  %v1525_v59 = vmul.f32 %v2623_v15, %v5272_v50  ;;  %v5280_v46 = vld [vmem:[#allocation60_spill] sm:$0xff]  ;;  %v5281_v37 = vld [vmem:[#allocation63_spill] sm:$0xff] }
 0x102   :  { %1984 = vmatpush1.bf16.msra.mxu0 %v1876_v9  ;;  %v1800_v38 = vmax.f32 %v1704_v41, 0.0  ;;  %v1715_v36 = vadd.f32 %v2513_v1, %v1619_v16  ;;  %v1531_v4 = vmul.f32 %v2623_v15, %v5273_v43  ;;  %v5275_v62 = vmax.f32 %v5274_v42, 0.0  ;;  %1967 = vmatmul.mubr.bf16.gmra.mrb[28].mxu1 %v5278_v28  ;;  %v2514_v9 = vld [vmem:[%s5026_s3 + $0x1c8] sm:$0xff]  ;;  %v5284_v1 = vld [vmem:[#allocation64_spill] sm:$0xff]  ;;  %v5285_v43 = vld [vmem:[#allocation69_spill] sm:$0xff] }
 0x103   :  { %v5277_v8 = vmax.f32 %v5276_v39, 0.0  ;;  %2056 = vmatprep.subr.bf16.mxu1 %v1879_v48  ;;  %v1806_v45 = vmax.f32 %v1710_v53, 0.0  ;;  %v1721_v19 = vadd.f32 %v2514_v9, %v1625_v34  ;;  %v1621_v61 = vadd.f32 %v1525_v59, %v1428_v29  ;;  %1146 = vmatmul.mubr.bf16.gmra.mrb[28].mxu0 %v5278_v28  ;;  %v2516_v16 = vld [vmem:[%s5024_s1 + $0x228] sm:$0xff]  ;;  %v2517_v48 = vld [vmem:[%s5025_s2 + $0x1f8] sm:$0xff]  ;;  %v5283_v34 = vld [vmem:[#allocation67_spill] sm:$0xff] }
 0x104   :  { %v1427_v54 = vmul.f32 %v2621_v14, %v3988_v47  ;;  %v1811_v10 = vmax.f32 %v1715_v36, 0.0  ;;  %v1627_v12 = vadd.f32 %v1531_v4, %v1434_v2  ;;  %v1433_v6 = vmul.f32 %v2621_v14, %v3993_v25  ;;  %2009 = vmatprep.mubr.bf16.mxu0 %v5139_v32  ;;  %2082 = vmatprep.mubr.bf16.mxu1 %v5139_v32  ;;  %v2515_v25 = vld [vmem:[%s5024_s1 + $0x1f8] sm:$0xff]  ;;  %v2518_v59 = vld [vmem:[%s5025_s2 + $0x228] sm:$0xff] }
 0x105   :  { %v1882_v31 = vpack.c.bf16 %v5277_v8, %v5275_v62  ;;  %v1524_v11 = vmul.f32 %v2623_v15, %v5279_v17  ;;  %v1878_v26 = vpack.c.bf16 %v1806_v45, %v1800_v38  ;;  %v1817_v40 = vmax.f32 %v1721_v19, 0.0  ;;  %v5286_v62 = vld [vmem:[#allocation65_spill] sm:$0xff]  ;;  %v5287_v8 = vld [vmem:[#allocation66_spill] sm:$0xff] }
 0x106   :  { %v1717_v52 = vadd.f32 %v1621_v61, %v5280_v46  ;;  %v1530_v47 = vmul.f32 %v2623_v15, %v5281_v37  ;;  %v1723_v60 = vadd.f32 %v1627_v12, %v5282_v56  ;;  %v1438_v41 = vmul.f32 %v2515_v25, %v2621_v14  ;;  %v5288_v61 = vld [vmem:[#allocation68_spill] sm:$0xff] }
 0x107   :  { %v1620_v7 = vadd.f32 %v1524_v11, %v1427_v54  ;;  %v1444_v13 = vmul.f32 %v2516_v16, %v2621_v14  ;;  %2057 = vmatpush1.bf16.msra.mxu1 %v1878_v26  ;;  %v1883_v29 = vpack.c.bf16 %v1817_v40, %v1811_v10  ;;  %v1535_v23 = vmul.f32 %v2517_v48, %v2623_v15  ;;  %v2519_v12 = vld [vmem:[%s5026_s3 + $0x1f8] sm:$0xff]  ;;  %v5289_v11 = vld [vmem:[#allocation13_spill] sm:$0xff]  ;;  %v5291_v40 = vld [vmem:[#allocation14_spill] sm:$0xff] }
 0x108   :  { %v1813_v44 = vmax.f32 %v1717_v52, 0.0  ;;  %v1626_v2 = vadd.f32 %v1530_v47, %v1433_v6  ;;  %v1819_v53 = vmax.f32 %v1723_v60, 0.0  ;;  %v1541_v38 = vmul.f32 %v2518_v59, %v2623_v15  ;;  %v2522_v59 = vld [vmem:[%s5024_s1 + $0x288] sm:$0xff] }
 0x109   :  { %v1716_v50 = vadd.f32 %v1620_v7, %v5283_v34  ;;  %v1440_v36 = vmul.f32 %v2621_v14, %v5284_v1  ;;  %1985 = vmatprep.subr.bf16.mxu0 %v1883_v29  ;;  %v1631_v42 = vadd.f32 %v1535_v23, %v1438_v41  ;;  %v1446_v39 = vmul.f32 %v2621_v14, %v5286_v62  ;;  %v5293_v41 = vld [vmem:[#allocation70_spill] sm:$0xff]  ;;  %v5296_v23 = vld [vmem:[#allocation73_spill] sm:$0xff]  ;;  %v2523_v1 = vld [vmem:[%s5025_s2 + $0x258] sm:$0xff] }
 0x10a   :  { %v1722_v4 = vadd.f32 %v1626_v2, %v5285_v43  ;;  %v1537_v28 = vmul.f32 %v2623_v15, %v5287_v8  ;;  %v1885_v45 = vpack.c.bf16 %v1819_v53, %v1813_v44  ;;  %1986 = vmatpush1.bf16.msra.mxu0 %v1882_v31  ;;  %v1637_v19 = vadd.f32 %v1541_v38, %v1444_v13  ;;  %v2520_v31 = vld [vmem:[%s5026_s3 + $0x228] sm:$0xff]  ;;  %v5294_v13 = vld [vmem:[#allocation72_spill] sm:$0xff]  ;;  %v5295_v2 = vld [vmem:[#allocation71_spill] sm:$0xff] }
 0x10b   :  { %v1812_v9 = vmax.f32 %v1716_v50, 0.0  ;;  %v1543_v54 = vmul.f32 %v2623_v15, %v5288_v61  ;;  %v1727_v6 = vadd.f32 %v2519_v12, %v1631_v42  ;;  %v5290_v26 = vmax.f32 %v5289_v11, 0.0  ;;  %v2524_v62 = vld [vmem:[%s5025_s2 + $0x288] sm:$0xff]  ;;  %v5297_v8 = vld [vmem:[#allocation76_spill] sm:$0xff]  ;;  %v5299_v61 = vld [vmem:[#allocation75_spill] sm:$0xff] }
 0x10c   :  { %v1818_v10 = vmax.f32 %v1722_v4, 0.0  ;;  %v1633_v17 = vadd.f32 %v1537_v28, %v1440_v36  ;;  %v5292_v46 = vmax.f32 %v5291_v40, 0.0  ;;  %2058 = vmatprep.subr.bf16.mxu1 %v1885_v45  ;;  %v1733_v37 = vadd.f32 %v2520_v31, %v1637_v19  ;;  %v5300_v12 = vld [vmem:[#allocation78_spill] sm:$0xff]  ;;  %v5301_v11 = vld [vmem:[#allocation77_spill] sm:$0xff] }
 0x10d   :  { %v1639_v47 = vadd.f32 %v1543_v54, %v1446_v39  ;;  %v1439_v56 = vmul.f32 %v2621_v14, %v4099_v51  ;;  %v1445_v60 = vmul.f32 %v2621_v14, %v4124_v18  ;;  %v1823_v25 = vmax.f32 %v1727_v6, 0.0  ;;  %v2521_v51 = vld [vmem:[%s5024_s1 + $0x258] sm:$0xff] }
 0x10e   :  { %v1888_v52 = vpack.c.bf16 %v5292_v46, %v5290_v26  ;;  %v1884_v7 = vpack.c.bf16 %v1818_v10, %v1812_v9  ;;  %v1729_v16 = vadd.f32 %v1633_v17, %v5293_v41  ;;  %v1536_v29 = vmul.f32 %v2623_v15, %v5294_v13  ;;  %v5298_v9 = vld [vmem:[#allocation74_spill] sm:$0xff]  ;;  %v2525_v46 = vld [vmem:[%s5026_s3 + $0x258] sm:$0xff] }
 0x10f   :  { %v1829_v44 = vmax.f32 %v1733_v37, 0.0  ;;  %v1735_v48 = vadd.f32 %v1639_v47, %v5295_v2  ;;  %v1542_v53 = vmul.f32 %v2623_v15, %v5296_v23  ;;  %v1450_v34 = vmul.f32 %v2521_v51, %v2621_v14  ;;  %v5302_v37 = vld [vmem:[#allocation79_spill] sm:$0xff] }
 0x110   :  { %2059 = vmatpush1.bf16.msra.mxu1 %v1884_v7  ;;  %v1825_v18 = vmax.f32 %v1729_v16, 0.0  ;;  %v1632_v50 = vadd.f32 %v1536_v29, %v1439_v56  ;;  %v1456_v38 = vmul.f32 %v2522_v59, %v2621_v14  ;;  %v1547_v36 = vmul.f32 %v2523_v1, %v2623_v15  ;;  %v5303_v56 = vld [vmem:[#allocation15_spill] sm:$0xff]  ;;  %v5305_v7 = vld [vmem:[#allocation16_spill] sm:$0xff]  ;;  %v5308_v59 = vld [vmem:[#allocation82_spill] sm:$0xff] }
 0x111   :  { %v1889_v43 = vpack.c.bf16 %v1829_v44, %v1823_v25  ;;  %v1831_v4 = vmax.f32 %v1735_v48, 0.0  ;;  %v1638_v42 = vadd.f32 %v1542_v53, %v1445_v60  ;;  %v1553_v39 = vmul.f32 %v2524_v62, %v2623_v15  ;;  %v5309_v1 = vld [vmem:[#allocation81_spill] sm:$0xff] }
 0x112   :  { %v1728_v28 = vadd.f32 %v1632_v50, %v5297_v8  ;;  %v1643_v45 = vadd.f32 %v1547_v36, %v1450_v34  ;;  %v1452_v19 = vmul.f32 %v2621_v14, %v5298_v9  ;;  %v1458_v54 = vmul.f32 %v2621_v14, %v5299_v61  ;;  %v2529_v8 = vld [vmem:[%s5025_s2 + $0x2b8] sm:$0xff] }
 0x113   :  { %1987 = vmatprep.subr.bf16.mxu0 %v1889_v43  ;;  %v1891_v10 = vpack.c.bf16 %v1831_v4, %v1825_v18  ;;  %v1734_v6 = vadd.f32 %v1638_v42, %v5300_v12  ;;  %v1649_v17 = vadd.f32 %v1553_v39, %v1456_v38  ;;  %v1549_v26 = vmul.f32 %v2623_v15, %v5301_v11  ;;  %v5307_v18 = vld [vmem:[#allocation80_spill] sm:$0xff] }
 0x114   :  { %1988 = vmatpush1.bf16.msra.mxu0 %v1888_v52  ;;  %v1824_v40 = vmax.f32 %v1728_v28, 0.0  ;;  %v1739_v31 = vadd.f32 %v2525_v46, %v1643_v45  ;;  %v1555_v47 = vmul.f32 %v2623_v15, %v5302_v37  ;;  %v5304_v60 = vmax.f32 %v5303_v56, 0.0  ;;  %v2526_v52 = vld [vmem:[%s5026_s3 + $0x288] sm:$0xff]  ;;  %v5311_v11 = vld [vmem:[#allocation84_spill] sm:$0xff] }
 0x115   :  { %v5306_v25 = vmax.f32 %v5305_v7, 0.0  ;;  %2060 = vmatprep.subr.bf16.mxu1 %v1891_v10  ;;  %v1830_v16 = vmax.f32 %v1734_v6, 0.0  ;;  %v1745_v13 = vadd.f32 %v2526_v52, %v1649_v17  ;;  %v1645_v29 = vadd.f32 %v1549_v26, %v1452_v19  ;;  %v2530_v19 = vld [vmem:[%s5025_s2 + $0x2e8] sm:$0xff]  ;;  %v5310_v6 = vld [vmem:[#allocation83_spill] sm:$0xff] }
 0x116   :  { %v1451_v44 = vmul.f32 %v2621_v14, %v4219_v21  ;;  %v1835_v2 = vmax.f32 %v1739_v31, 0.0  ;;  %v1651_v48 = vadd.f32 %v1555_v47, %v1458_v54  ;;  %v1457_v23 = vmul.f32 %v2621_v14, %v4224_v33  ;;  %v2527_v21 = vld [vmem:[%s5024_s1 + $0x2b8] sm:$0xff]  ;;  %v2528_v33 = vld [vmem:[%s5024_s1 + $0x2e8] sm:$0xff]  ;;  %v5312_v31 = vld [vmem:[#allocation85_spill] sm:$0xff] }
 0x117   :  { %v1894_v41 = vpack.c.bf16 %v5306_v25, %v5304_v60  ;;  %v1548_v53 = vmul.f32 %v2623_v15, %v4245_v58  ;;  %v1890_v51 = vpack.c.bf16 %v1830_v16, %v1824_v40  ;;  %v1841_v34 = vmax.f32 %v1745_v13, 0.0  ;;  %v5313_v60 = vld [vmem:[#allocation18_spill] sm:$0xff] }
 0x118   :  { %v1741_v50 = vadd.f32 %v1645_v29, %v5307_v18  ;;  %v1554_v38 = vmul.f32 %v2623_v15, %v5308_v59  ;;  %v1747_v36 = vadd.f32 %v1651_v48, %v5309_v1  ;;  %v1462_v4 = vmul.f32 %v2527_v21, %v2621_v14 }
 0x119   :  { %v1644_v43 = vadd.f32 %v1548_v53, %v1451_v44  ;;  %v1468_v58 = vmul.f32 %v2528_v33, %v2621_v14  ;;  %2061 = vmatpush1.bf16.msra.mxu1 %v1890_v51  ;;  %v1895_v42 = vpack.c.bf16 %v1841_v34, %v1835_v2  ;;  %v1559_v28 = vmul.f32 %v2529_v8, %v2623_v15 }
 0x11a   :  { %v1837_v62 = vmax.f32 %v1741_v50, 0.0  ;;  %v1650_v39 = vadd.f32 %v1554_v38, %v1457_v23  ;;  %v1843_v45 = vmax.f32 %v1747_v36, 0.0  ;;  %v1565_v61 = vmul.f32 %v2530_v19, %v2623_v15 }
 0x11b   :  { %v1740_v9 = vadd.f32 %v1644_v43, %v4285_v22  ;;  %v1464_v54 = vmul.f32 %v2621_v14, %v4264_v24  ;;  %1989 = vmatprep.subr.bf16.mxu0 %v1895_v42  ;;  %v1655_v12 = vadd.f32 %v1559_v28, %v1462_v4  ;;  %v1470_v17 = vmul.f32 %v2621_v14, %v5310_v6  ;;  %v2531_v24 = vld [vmem:[%s5026_s3 + $0x2b8] sm:$0xff] }
 0x11c   :  { %v1746_v10 = vadd.f32 %v1650_v39, %v4304_v3  ;;  %v1561_v26 = vmul.f32 %v2623_v15, %v5311_v11  ;;  %v1897_v22 = vpack.c.bf16 %v1843_v45, %v1837_v62  ;;  %1990 = vmatpush1.bf16.msra.mxu0 %v1894_v41  ;;  %v1661_v46 = vadd.f32 %v1565_v61, %v1468_v58  ;;  %v2532_v41 = vld [vmem:[%s5026_s3 + $0x2e8] sm:$0xff] }
 0x11d   :  { %v1836_v40 = vmax.f32 %v1740_v9, 0.0  ;;  %v1567_v37 = vmul.f32 %v2623_v15, %v5312_v31  ;;  %v1751_v3 = vadd.f32 %v2531_v24, %v1655_v12  ;;  %v5314_v7 = vmax.f32 %v5313_v60, 0.0 }
 0x11e   :  { %v1842_v47 = vmax.f32 %v1746_v10, 0.0  ;;  %v1657_v56 = vadd.f32 %v1561_v26, %v1464_v54  ;;  %2062 = vmatprep.subr.bf16.mxu1 %v1897_v22  ;;  %v1757_v16 = vadd.f32 %v2532_v41, %v1661_v46  ;;  %v1463_v13 = vmul.f32 %v2621_v14, %v4323_v35 }
 0x11f   :  { %v1900_v25 = vpack.c.bf16 %v1852_v57, %v5314_v7  ;;  %v1663_v52 = vadd.f32 %v1567_v37, %v1470_v17  ;;  %v1469_v29 = vmul.f32 %v2621_v14, %v4338_v55  ;;  %v1847_v2 = vmax.f32 %v1751_v3, 0.0 }
 0x120   :  { %v1896_v44 = vpack.c.bf16 %v1842_v47, %v1836_v40  ;;  %v1753_v48 = vadd.f32 %v1657_v56, %v4316_v63  ;;  %v1560_v30 = vmul.f32 %v2623_v15, %v4343_v20  ;;  %v1853_v57 = vmax.f32 %v1757_v16, 0.0 }
 0x121   :  { %v1759_v23 = vadd.f32 %v1663_v52, %v4329_v0  ;;  %v1566_v53 = vmul.f32 %v2623_v15, %v4350_v49  ;;  %v2533_v15 = vld [vmem:[%s5027_s4] sm:$0xff]   ;;  %v2534_v49 = vld [vmem:[%s5027_s4 + $0x8] sm:$0xff]  }
 0x122   :  { %2063 = vmatpush1.bf16.msra.mxu1 %v1896_v44  ;;  %v1849_v51 = vmax.f32 %v1753_v48, 0.0  ;;  %v1656_v34 = vadd.f32 %v1560_v30, %v1463_v13  ;;  %v1901_v35 = vpack.c.bf16 %v1853_v57, %v1847_v2 }
 0x123   :  { %v1855_v18 = vmax.f32 %v1759_v23, 0.0  ;;  %v1662_v50 = vadd.f32 %v1566_v53, %v1469_v29 }
 0x124   :  { %v1752_v14 = vadd.f32 %v1656_v34, %v4365_v27  ;;  %1991 = vmatprep.subr.bf16.mxu0 %v1901_v35  ;;  %v2535_v27 = vld [vmem:[%s5027_s4 + $0x10] sm:$0xff]  }
 0x125   :  { %v1903_v55 = vpack.c.bf16 %v1855_v18, %v1849_v51  ;;  %v1758_v63 = vadd.f32 %v1662_v50, %v4373_v5  ;;  %1992 = vmatpush1.bf16.msra.mxu0 %v1900_v25  ;;  %v2536_v5 = vld [vmem:[%s5027_s4 + $0x18] sm:$0xff]  }
 0x126   :  { %v1848_v20 = vmax.f32 %v1752_v14, 0.0 }
 0x127   :  { %2064 = vmatprep.subr.bf16.mxu1 %v1903_v55  ;;  %v1854_v59 = vmax.f32 %v1758_v63, 0.0 }
 0x128   :  { %2010 = vmatmul.mubr.bf16.vlgmr.msra.gmra.mrb[32].mxu0 %v2533_v15 }
 0x129   :  { %v1902_v0 = vpack.c.bf16 %v1854_v59, %v1848_v20  ;;  %2019 = vmatprep.mubr.bf16.mxu0 %v5139_v32 }
 0x12b   :  { %2065 = vmatpush1.bf16.msra.mxu1 %v1902_v0 }
 0x12e   :  { %2083 = vmatmul.mubr.bf16.vlgmr.msra.gmra.mrb[32].mxu1 %v2533_v15 }
 0x12f   :  { %2092 = vmatprep.mubr.bf16.mxu1 %v5139_v32 }
 0x130   :  { %2020 = vmatmul.mubr.bf16.gmra.mrb[36].mxu0 %v2534_v49 }
 0x131   :  { %2029 = vmatprep.mubr.bf16.mxu0 %v5139_v32 }
 0x136   :  { %2093 = vmatmul.mubr.bf16.gmra.mrb[36].mxu1 %v2534_v49  ;;  %v4767_v38 = vpop.permute.xlu0 %875 }
 0x137   :  { %2102 = vmatprep.mubr.bf16.mxu1 %v5139_v32 }
 0x138   :  { %2030 = vmatmul.mubr.bf16.gmra.mrb[40].mxu0 %v2535_v27 }
 0x139   :  { %2039 = vmatprep.mubr.bf16.mxu0 %v5139_v32 }
 0x13a   :  { %v4769_v36 = vpop.permute.xlu0 %880 }
 0x13e   :  { %2103 = vmatmul.mubr.bf16.gmra.mrb[40].mxu1 %v2535_v27  ;;  %v4772_v4 = vpop.permute.xlu1 %885 }
 0x13f   :  { %2112 = vmatprep.mubr.bf16.mxu1 %v5139_v32  ;;  %v4805_v14 = vpop.permute.xlu0 %895 }
 0x140   :  { %2040 = vmatmul.mubr.bf16.gmra.mrb[44].mxu0 %v2536_v5 }
 0x142   :  { %v4779_v6 = vpop.permute.xlu1 %890 }
 0x146   :  { %2113 = vmatmul.mubr.bf16.gmra.mrb[44].mxu1 %v2536_v5 }
 0x148   :  { %v4811_v0 = vpop.permute.xlu1 %900 }
 0x169   :  { %v971_v1 = vpop.f32.mrb[0].mxu0 }
 0x16a   :  { %v972_v43 = vadd.f32 %v971_v1, %v4767_v38  ;;  %v973_v21 = vpop.f32.mrb[1].mxu0 }
 0x16b   :  { %v974_v33 = vadd.f32 %v973_v21, %v4767_v38  ;;  %v975_v58 = vpop.f32.mrb[2].mxu0 }
 0x16c   :  { %v1156_v32 = vmax.f32 %v972_v43, 0.0  ;;  %v976_v42 = vadd.f32 %v975_v58, %v4769_v36  ;;  %v977_v62 = vpop.f32.mrb[3].mxu0 }
 0x16d   :  { %v1157_v39 = vmax.f32 %v974_v33, 0.0  ;;  %v978_v8 = vadd.f32 %v977_v62, %v4769_v36 }
 0x16e   :  { %v1044_v28 = vpop.f32.mrb[0].mxu1  ;;  %v1162_v45 = vmax.f32 %v976_v42, 0.0 }
 0x16f   :  { %v1045_v9 = vadd.f32 %v1044_v28, %v4767_v38  ;;  %v2399_v19 = vpack.c.bf16 %v1157_v39, %v1156_v32  ;;  %v1046_v61 = vpop.f32.mrb[1].mxu1  ;;  %v1163_v54 = vmax.f32 %v978_v8, 0.0 }
 0x170   :  { %v1047_v10 = vadd.f32 %v1046_v61, %v4767_v38  ;;  %v1048_v12 = vpop.f32.mrb[2].mxu1 }
 0x171   :  { %v1158_v17 = vmax.f32 %v1045_v9, 0.0  ;;  %1348 = vst [vmem:[%s5029_s6] sm:$0xff] %v2399_v19  ;;  %v1049_v11 = vadd.f32 %v1048_v12, %v4769_v36  ;;  %v2402_v26 = vpack.c.bf16 %v1163_v54, %v1162_v45  ;;  %v1050_v22 = vpop.f32.mrb[3].mxu1  ;;  %v981_v40 = vpop.f32.mrb[4].mxu0 }
 0x172   :  { %v1159_v46 = vmax.f32 %v1047_v10, 0.0  ;;  %v1051_v31 = vadd.f32 %v1050_v22, %v4769_v36  ;;  %v982_v37 = vadd.f32 %v981_v40, %v4772_v4  ;;  %v983_v47 = vpop.f32.mrb[5].mxu0 }
 0x173   :  { %v1164_v24 = vmax.f32 %v1049_v11, 0.0  ;;  %1351 = vst [vmem:[%s5029_s6 + $0x30] sm:$0xff] %v2402_v26  ;;  %v984_v3 = vadd.f32 %v983_v47, %v4772_v4  ;;  %v985_v56 = vpop.f32.mrb[6].mxu0  ;;  %v4826_v11 = vpop.permute.xlu0 %905 }
 0x174   :  { %v2400_v60 = vpack.c.bf16 %v1159_v46, %v1158_v17  ;;  %v1165_v7 = vmax.f32 %v1051_v31, 0.0  ;;  %v1168_v25 = vmax.f32 %v982_v37, 0.0  ;;  %v986_v41 = vadd.f32 %v985_v56, %v4779_v6  ;;  %v987_v16 = vpop.f32.mrb[7].mxu0  ;;  %v4832_v37 = vpop.permute.xlu1 %910 }
 0x175   :  { %v1169_v52 = vmax.f32 %v984_v3, 0.0  ;;  %v988_v13 = vadd.f32 %v987_v16, %v4779_v6 }
 0x176   :  { %1349 = vst [vmem:[%s5029_s6 + $0x8] sm:$0xff] %v2400_v60  ;;  %v2403_v29 = vpack.c.bf16 %v1165_v7, %v1164_v24  ;;  %v1174_v2 = vmax.f32 %v986_v41, 0.0 }
 0x177   :  { %v1054_v44 = vpop.f32.mrb[4].mxu1  ;;  %v2405_v30 = vpack.c.bf16 %v1169_v52, %v1168_v25  ;;  %v1175_v23 = vmax.f32 %v988_v13, 0.0 }
 0x178   :  { %v1055_v48 = vadd.f32 %v1054_v44, %v4772_v4  ;;  %v1056_v57 = vpop.f32.mrb[5].mxu1  ;;  %1352 = vst [vmem:[%s5029_s6 + $0x38] sm:$0xff] %v2403_v29 }
 0x179   :  { %v1057_v53 = vadd.f32 %v1056_v57, %v4772_v4  ;;  %v1058_v51 = vpop.f32.mrb[6].mxu1  ;;  %1354 = vst [vmem:[%s5029_s6 + $0x60] sm:$0xff] %v2405_v30  ;;  %v2408_v18 = vpack.c.bf16 %v1175_v23, %v1174_v2 }
 0x17a   :  { %v1170_v34 = vmax.f32 %v1055_v48, 0.0  ;;  %v1059_v35 = vadd.f32 %v1058_v51, %v4779_v6  ;;  %v1060_v50 = vpop.f32.mrb[7].mxu1 }
 0x17b   :  { %v1171_v55 = vmax.f32 %v1057_v53, 0.0  ;;  %v1061_v63 = vadd.f32 %v1060_v50, %v4779_v6  ;;  %1357 = vst [vmem:[%s5029_s6 + $0x90] sm:$0xff] %v2408_v18 }
 0x17c   :  { %v1176_v20 = vmax.f32 %v1059_v35, 0.0 }
 0x17d   :  { %v2406_v15 = vpack.c.bf16 %v1171_v55, %v1170_v34  ;;  %v1177_v49 = vmax.f32 %v1061_v63, 0.0 }
 0x17e   :  { %v991_v59 = vpop.f32.mrb[8].mxu0 }
 0x17f   :  { %v992_v27 = vadd.f32 %v991_v59, %v4805_v14  ;;  %v993_v5 = vpop.f32.mrb[9].mxu0  ;;  %1355 = vst [vmem:[%s5029_s6 + $0x68] sm:$0xff] %v2406_v15  ;;  %v2409_v21 = vpack.c.bf16 %v1177_v49, %v1176_v20 }
 0x180   :  { %v994_v1 = vadd.f32 %v993_v5, %v4805_v14  ;;  %v995_v43 = vpop.f32.mrb[10].mxu0 }
 0x181   :  { %v1064_v33 = vpop.f32.mrb[8].mxu1  ;;  %v1180_v58 = vmax.f32 %v992_v27, 0.0  ;;  %v996_v32 = vadd.f32 %v995_v43, %v4811_v0  ;;  %v997_v42 = vpop.f32.mrb[11].mxu0  ;;  %1358 = vst [vmem:[%s5029_s6 + $0x98] sm:$0xff] %v2409_v21 }
 0x182   :  { %v1181_v62 = vmax.f32 %v994_v1, 0.0  ;;  %v1065_v39 = vadd.f32 %v1064_v33, %v4805_v14  ;;  %v1066_v8 = vpop.f32.mrb[9].mxu1  ;;  %v998_v28 = vadd.f32 %v997_v42, %v4811_v0 }
 0x183   :  { %v1067_v45 = vadd.f32 %v1066_v8, %v4805_v14  ;;  %v1186_v9 = vmax.f32 %v996_v32, 0.0  ;;  %v1068_v19 = vpop.f32.mrb[10].mxu1 }
 0x184   :  { %v2411_v61 = vpack.c.bf16 %v1181_v62, %v1180_v58  ;;  %v1182_v54 = vmax.f32 %v1065_v39, 0.0  ;;  %v1069_v10 = vadd.f32 %v1068_v19, %v4811_v0  ;;  %v1187_v12 = vmax.f32 %v998_v28, 0.0  ;;  %v1070_v17 = vpop.f32.mrb[11].mxu1 }
 0x185   :  { %v1183_v26 = vmax.f32 %v1067_v45, 0.0  ;;  %v1071_v22 = vadd.f32 %v1070_v17, %v4811_v0 }
 0x186   :  { %1360 = vst [vmem:[%s5029_s6 + $0xc0] sm:$0xff] %v2411_v61  ;;  %v1188_v40 = vmax.f32 %v1069_v10, 0.0  ;;  %v2414_v46 = vpack.c.bf16 %v1187_v12, %v1186_v9  ;;  %v1001_v31 = vpop.f32.mrb[12].mxu0 }
 0x187   :  { %v2412_v47 = vpack.c.bf16 %v1183_v26, %v1182_v54  ;;  %v1189_v24 = vmax.f32 %v1071_v22, 0.0  ;;  %v1002_v3 = vadd.f32 %v1001_v31, %v4826_v11  ;;  %v1003_v56 = vpop.f32.mrb[13].mxu0 }
 0x188   :  { %1363 = vst [vmem:[%s5029_s6 + $0xf0] sm:$0xff] %v2414_v46  ;;  %v1004_v60 = vadd.f32 %v1003_v56, %v4826_v11  ;;  %v1005_v7 = vpop.f32.mrb[14].mxu0 }
 0x189   :  { %1361 = vst [vmem:[%s5029_s6 + $0xc8] sm:$0xff] %v2412_v47  ;;  %v2415_v25 = vpack.c.bf16 %v1189_v24, %v1188_v40  ;;  %v1074_v41 = vpop.f32.mrb[12].mxu1  ;;  %v1192_v16 = vmax.f32 %v1002_v3, 0.0  ;;  %v1006_v52 = vadd.f32 %v1005_v7, %v4832_v37  ;;  %v1007_v13 = vpop.f32.mrb[15].mxu0 }
 0x18a   :  { %v1193_v29 = vmax.f32 %v1004_v60, 0.0  ;;  %v1075_v44 = vadd.f32 %v1074_v41, %v4826_v11  ;;  %v1076_v2 = vpop.f32.mrb[13].mxu1  ;;  %v1008_v48 = vadd.f32 %v1007_v13, %v4832_v37 }
 0x18b   :  { %1364 = vst [vmem:[%s5029_s6 + $0xf8] sm:$0xff] %v2415_v25  ;;  %v1077_v30 = vadd.f32 %v1076_v2, %v4826_v11  ;;  %v1198_v57 = vmax.f32 %v1006_v52, 0.0  ;;  %v1078_v23 = vpop.f32.mrb[14].mxu1 }
 0x18c   :  { %v2417_v53 = vpack.c.bf16 %v1193_v29, %v1192_v16  ;;  %v1194_v51 = vmax.f32 %v1075_v44, 0.0  ;;  %v1079_v34 = vadd.f32 %v1078_v23, %v4832_v37  ;;  %v1199_v35 = vmax.f32 %v1008_v48, 0.0  ;;  %v1080_v18 = vpop.f32.mrb[15].mxu1 }
 0x18d   :  { %v1195_v50 = vmax.f32 %v1077_v30, 0.0  ;;  %v1081_v55 = vadd.f32 %v1080_v18, %v4832_v37 }
 0x18e   :  { %1366 = vst [vmem:[%s5029_s6 + $0x120] sm:$0xff] %v2417_v53  ;;  %v1200_v63 = vmax.f32 %v1079_v34, 0.0  ;;  %v2420_v20 = vpack.c.bf16 %v1199_v35, %v1198_v57 }
 0x18f   :  { %v2418_v59 = vpack.c.bf16 %v1195_v50, %v1194_v51  ;;  %v1201_v15 = vmax.f32 %v1081_v55, 0.0 }
 0x190   :  { %1369 = vst [vmem:[%s5029_s6 + $0x150] sm:$0xff] %v2420_v20 }
 0x191   :  { %1367 = vst [vmem:[%s5029_s6 + $0x128] sm:$0xff] %v2418_v59  ;;  %v2421_v49 = vpack.c.bf16 %v1201_v15, %v1200_v63 }
 0x193   :  { %1370 = vst [vmem:[%s5029_s6 + $0x158] sm:$0xff] %v2421_v49 }
 0x1b9   :  { %v1938_v27 = vpop.f32.mrb[16].mxu1 }
 0x1ba   :  { %v1117_v5 = vpop.f32.mrb[16].mxu0  ;;  %v1939_v1 = vadd.f32 %v1938_v27, %v4767_v38  ;;  %v1940_v43 = vpop.f32.mrb[17].mxu1 }
 0x1bb   :  { %v1118_v21 = vadd.f32 %v1117_v5, %v4767_v38  ;;  %v1119_v33 = vpop.f32.mrb[17].mxu0  ;;  %v1941_v58 = vadd.f32 %v1940_v43, %v4767_v38  ;;  %v1942_v32 = vpop.f32.mrb[18].mxu1 }
 0x1bc   :  { %v2123_v42 = vmax.f32 %v1939_v1, 0.0  ;;  %v1120_v62 = vadd.f32 %v1119_v33, %v4767_v38  ;;  %v1121_v39 = vpop.f32.mrb[18].mxu0  ;;  %v1943_v8 = vadd.f32 %v1942_v32, %v4769_v36  ;;  %v1944_v28 = vpop.f32.mrb[19].mxu1 }
 0x1bd   :  { %v1160_v45 = vmax.f32 %v1118_v21, 0.0  ;;  %v2124_v9 = vmax.f32 %v1941_v58, 0.0  ;;  %v1122_v19 = vadd.f32 %v1121_v39, %v4769_v36  ;;  %v1123_v61 = vpop.f32.mrb[19].mxu0  ;;  %v1945_v54 = vadd.f32 %v1944_v28, %v4769_v36 }
 0x1be   :  { %v1161_v10 = vmax.f32 %v1120_v62, 0.0  ;;  %v2129_v12 = vmax.f32 %v1943_v8, 0.0  ;;  %v1124_v17 = vadd.f32 %v1123_v61, %v4769_v36 }
 0x1bf   :  { %v2423_v26 = vpack.c.bf16 %v2124_v9, %v2123_v42  ;;  %v1166_v22 = vmax.f32 %v1122_v19, 0.0  ;;  %v2130_v40 = vmax.f32 %v1945_v54, 0.0 }
 0x1c0   :  { %v2401_v46 = vpack.c.bf16 %v1161_v10, %v1160_v45  ;;  %v1167_v31 = vmax.f32 %v1124_v17, 0.0 }
 0x1c1   :  { %2315 = vst [vmem:[%s5029_s6 + $0x18] sm:$0xff] %v2423_v26  ;;  %v2426_v47 = vpack.c.bf16 %v2130_v40, %v2129_v12 }
 0x1c2   :  { %v1948_v24 = vpop.f32.mrb[20].mxu1  ;;  %1350 = vst [vmem:[%s5029_s6 + $0x10] sm:$0xff] %v2401_v46  ;;  %v2404_v3 = vpack.c.bf16 %v1167_v31, %v1166_v22 }
 0x1c3   :  { %v1127_v56 = vpop.f32.mrb[20].mxu0  ;;  %v1949_v60 = vadd.f32 %v1948_v24, %v4772_v4  ;;  %v1950_v7 = vpop.f32.mrb[21].mxu1  ;;  %2318 = vst [vmem:[%s5029_s6 + $0x48] sm:$0xff] %v2426_v47 }
 0x1c4   :  { %v1128_v25 = vadd.f32 %v1127_v56, %v4772_v4  ;;  %v1129_v41 = vpop.f32.mrb[21].mxu0  ;;  %v1951_v16 = vadd.f32 %v1950_v7, %v4772_v4  ;;  %v1952_v52 = vpop.f32.mrb[22].mxu1  ;;  %1353 = vst [vmem:[%s5029_s6 + $0x40] sm:$0xff] %v2404_v3 }
 0x1c5   :  { %v2135_v13 = vmax.f32 %v1949_v60, 0.0  ;;  %v1130_v29 = vadd.f32 %v1129_v41, %v4772_v4  ;;  %v1131_v44 = vpop.f32.mrb[22].mxu0  ;;  %v1953_v2 = vadd.f32 %v1952_v52, %v4779_v6  ;;  %v1954_v48 = vpop.f32.mrb[23].mxu1 }
 0x1c6   :  { %v1172_v30 = vmax.f32 %v1128_v25, 0.0  ;;  %v2136_v57 = vmax.f32 %v1951_v16, 0.0  ;;  %v1132_v23 = vadd.f32 %v1131_v44, %v4779_v6  ;;  %v1133_v53 = vpop.f32.mrb[23].mxu0  ;;  %v1955_v51 = vadd.f32 %v1954_v48, %v4779_v6 }
 0x1c7   :  { %v1173_v34 = vmax.f32 %v1130_v29, 0.0  ;;  %v2141_v35 = vmax.f32 %v1953_v2, 0.0  ;;  %v1134_v18 = vadd.f32 %v1133_v53, %v4779_v6 }
 0x1c8   :  { %v2429_v50 = vpack.c.bf16 %v2136_v57, %v2135_v13  ;;  %v1178_v55 = vmax.f32 %v1132_v23, 0.0  ;;  %v2142_v63 = vmax.f32 %v1955_v51, 0.0 }
 0x1c9   :  { %v2407_v20 = vpack.c.bf16 %v1173_v34, %v1172_v30  ;;  %v1179_v59 = vmax.f32 %v1134_v18, 0.0 }
 0x1ca   :  { %2321 = vst [vmem:[%s5029_s6 + $0x78] sm:$0xff] %v2429_v50  ;;  %v2432_v15 = vpack.c.bf16 %v2142_v63, %v2141_v35 }
 0x1cb   :  { %1356 = vst [vmem:[%s5029_s6 + $0x70] sm:$0xff] %v2407_v20  ;;  %v2410_v49 = vpack.c.bf16 %v1179_v59, %v1178_v55 }
 0x1cc   :  { %2324 = vst [vmem:[%s5029_s6 + $0xa8] sm:$0xff] %v2432_v15  ;;  %v1137_v27 = vpop.f32.mrb[24].mxu0  ;;  %v1958_v5 = vpop.f32.mrb[24].mxu1 }
 0x1cd   :  { %1359 = vst [vmem:[%s5029_s6 + $0xa0] sm:$0xff] %v2410_v49  ;;  %v1138_v1 = vadd.f32 %v1137_v27, %v4805_v14  ;;  %v1959_v43 = vadd.f32 %v1958_v5, %v4805_v14  ;;  %v1139_v21 = vpop.f32.mrb[25].mxu0  ;;  %v1960_v33 = vpop.f32.mrb[25].mxu1 }
 0x1ce   :  { %v1140_v58 = vadd.f32 %v1139_v21, %v4805_v14  ;;  %v1961_v32 = vadd.f32 %v1960_v33, %v4805_v14  ;;  %v1141_v42 = vpop.f32.mrb[26].mxu0  ;;  %v1962_v62 = vpop.f32.mrb[26].mxu1 }
 0x1cf   :  { %v1184_v39 = vmax.f32 %v1138_v1, 0.0  ;;  %v2147_v8 = vmax.f32 %v1959_v43, 0.0  ;;  %v1142_v28 = vadd.f32 %v1141_v42, %v4811_v0  ;;  %v1963_v45 = vadd.f32 %v1962_v62, %v4811_v0  ;;  %v1143_v9 = vpop.f32.mrb[27].mxu0  ;;  %v1964_v19 = vpop.f32.mrb[27].mxu1 }
 0x1d0   :  { %v1185_v61 = vmax.f32 %v1140_v58, 0.0  ;;  %v2148_v54 = vmax.f32 %v1961_v32, 0.0  ;;  %v1144_v10 = vadd.f32 %v1143_v9, %v4811_v0  ;;  %v1965_v12 = vadd.f32 %v1964_v19, %v4811_v0 }
 0x1d1   :  { %v1190_v17 = vmax.f32 %v1142_v28, 0.0  ;;  %v2153_v26 = vmax.f32 %v1963_v45, 0.0 }
 0x1d2   :  { %v2413_v22 = vpack.c.bf16 %v1185_v61, %v1184_v39  ;;  %v2435_v40 = vpack.c.bf16 %v2148_v54, %v2147_v8  ;;  %v1191_v46 = vmax.f32 %v1144_v10, 0.0  ;;  %v2154_v31 = vmax.f32 %v1965_v12, 0.0 }
 0x1d4   :  { %1362 = vst [vmem:[%s5029_s6 + $0xd0] sm:$0xff] %v2413_v22  ;;  %2327 = vst [vmem:[%s5029_s6 + $0xd8] sm:$0xff] %v2435_v40  ;;  %v2416_v47 = vpack.c.bf16 %v1191_v46, %v1190_v17  ;;  %v2438_v24 = vpack.c.bf16 %v2154_v31, %v2153_v26 }
 0x1d5   :  { %v1968_v3 = vpop.f32.mrb[28].mxu1 }
 0x1d6   :  { %v1147_v56 = vpop.f32.mrb[28].mxu0  ;;  %v1969_v60 = vadd.f32 %v1968_v3, %v4826_v11  ;;  %v1970_v7 = vpop.f32.mrb[29].mxu1  ;;  %1365 = vst [vmem:[%s5029_s6 + $0x100] sm:$0xff] %v2416_v47  ;;  %2330 = vst [vmem:[%s5029_s6 + $0x108] sm:$0xff] %v2438_v24 }
 0x1d7   :  { %v1148_v25 = vadd.f32 %v1147_v56, %v4826_v11  ;;  %v1149_v41 = vpop.f32.mrb[29].mxu0  ;;  %v1971_v16 = vadd.f32 %v1970_v7, %v4826_v11  ;;  %v1972_v52 = vpop.f32.mrb[30].mxu1 }
 0x1d8   :  { %v2159_v13 = vmax.f32 %v1969_v60, 0.0  ;;  %v1150_v29 = vadd.f32 %v1149_v41, %v4826_v11  ;;  %v1151_v44 = vpop.f32.mrb[30].mxu0  ;;  %v1973_v2 = vadd.f32 %v1972_v52, %v4832_v37  ;;  %v1974_v48 = vpop.f32.mrb[31].mxu1 }
 0x1d9   :  { %v1196_v30 = vmax.f32 %v1148_v25, 0.0  ;;  %v2160_v57 = vmax.f32 %v1971_v16, 0.0  ;;  %v1152_v23 = vadd.f32 %v1151_v44, %v4832_v37  ;;  %v1153_v53 = vpop.f32.mrb[31].mxu0  ;;  %v1975_v51 = vadd.f32 %v1974_v48, %v4832_v37 }
 0x1da   :  { %v1197_v34 = vmax.f32 %v1150_v29, 0.0  ;;  %v2165_v35 = vmax.f32 %v1973_v2, 0.0  ;;  %v1154_v18 = vadd.f32 %v1153_v53, %v4832_v37 }
 0x1db   :  { %v2441_v50 = vpack.c.bf16 %v2160_v57, %v2159_v13  ;;  %v1202_v55 = vmax.f32 %v1152_v23, 0.0  ;;  %v2166_v63 = vmax.f32 %v1975_v51, 0.0 }
 0x1dc   :  { %v2419_v20 = vpack.c.bf16 %v1197_v34, %v1196_v30  ;;  %v1203_v59 = vmax.f32 %v1154_v18, 0.0 }
 0x1dd   :  { %2333 = vst [vmem:[%s5029_s6 + $0x138] sm:$0xff] %v2441_v50  ;;  %v2444_v15 = vpack.c.bf16 %v2166_v63, %v2165_v35 }
 0x1de   :  { %1368 = vst [vmem:[%s5029_s6 + $0x130] sm:$0xff] %v2419_v20  ;;  %v2422_v49 = vpack.c.bf16 %v1203_v59, %v1202_v55 }
 0x1df   :  { %2336 = vst [vmem:[%s5029_s6 + $0x168] sm:$0xff] %v2444_v15 }
 0x1e0   :  { %1371 = vst [vmem:[%s5029_s6 + $0x160] sm:$0xff] %v2422_v49 }
 0x1fb   :  { %v2011_v27 = vpop.f32.mrb[32].mxu0 }
 0x1fc   :  { %v2012_v5 = vadd.f32 %v2011_v27, %v4767_v38  ;;  %v2013_v1 = vpop.f32.mrb[33].mxu0 }
 0x1fd   :  { %v2014_v43 = vadd.f32 %v2013_v1, %v4767_v38  ;;  %v2015_v21 = vpop.f32.mrb[34].mxu0 }
 0x1fe   :  { %v2125_v33 = vmax.f32 %v2012_v5, 0.0  ;;  %v2016_v58 = vadd.f32 %v2015_v21, %v4769_v36  ;;  %v2017_v32 = vpop.f32.mrb[35].mxu0 }
 0x1ff   :  { %v2126_v42 = vmax.f32 %v2014_v43, 0.0  ;;  %v2018_v62 = vadd.f32 %v2017_v32, %v4769_v36 }
 0x200   :  { %v2131_v8 = vmax.f32 %v2016_v58, 0.0 }
 0x201   :  { %v2084_v39 = vpop.f32.mrb[32].mxu1  ;;  %v2424_v45 = vpack.c.bf16 %v2126_v42, %v2125_v33  ;;  %v2132_v19 = vmax.f32 %v2018_v62, 0.0 }
 0x202   :  { %v2085_v28 = vadd.f32 %v2084_v39, %v4767_v38  ;;  %v2086_v9 = vpop.f32.mrb[33].mxu1 }
 0x203   :  { %v2087_v61 = vadd.f32 %v2086_v9, %v4767_v38  ;;  %v2088_v54 = vpop.f32.mrb[34].mxu1  ;;  %2316 = vst [vmem:[%s5029_s6 + $0x20] sm:$0xff] %v2424_v45  ;;  %v2427_v17 = vpack.c.bf16 %v2132_v19, %v2131_v8  ;;  %v2021_v22 = vpop.f32.mrb[36].mxu0 }
 0x204   :  { %v2127_v10 = vmax.f32 %v2085_v28, 0.0  ;;  %v2089_v12 = vadd.f32 %v2088_v54, %v4769_v36  ;;  %v2090_v26 = vpop.f32.mrb[35].mxu1  ;;  %v2022_v31 = vadd.f32 %v2021_v22, %v4772_v4  ;;  %v2023_v47 = vpop.f32.mrb[37].mxu0 }
 0x205   :  { %v2128_v40 = vmax.f32 %v2087_v61, 0.0  ;;  %v2091_v46 = vadd.f32 %v2090_v26, %v4769_v36  ;;  %2319 = vst [vmem:[%s5029_s6 + $0x50] sm:$0xff] %v2427_v17  ;;  %v2024_v38 = vadd.f32 %v2023_v47, %v4772_v4  ;;  %v2025_v3 = vpop.f32.mrb[38].mxu0 }
 0x206   :  { %v2133_v24 = vmax.f32 %v2089_v12, 0.0  ;;  %v2137_v7 = vmax.f32 %v2022_v31, 0.0  ;;  %v2026_v25 = vadd.f32 %v2025_v3, %v4779_v6  ;;  %v2027_v41 = vpop.f32.mrb[39].mxu0 }
 0x207   :  { %v2425_v56 = vpack.c.bf16 %v2128_v40, %v2127_v10  ;;  %v2134_v60 = vmax.f32 %v2091_v46, 0.0  ;;  %v2138_v16 = vmax.f32 %v2024_v38, 0.0  ;;  %v2028_v36 = vadd.f32 %v2027_v41, %v4779_v6 }
 0x208   :  { %v2143_v29 = vmax.f32 %v2026_v25, 0.0 }
 0x209   :  { %2317 = vst [vmem:[%s5029_s6 + $0x28] sm:$0xff] %v2425_v56  ;;  %v2428_v52 = vpack.c.bf16 %v2134_v60, %v2133_v24  ;;  %v2094_v13 = vpop.f32.mrb[36].mxu1  ;;  %v2430_v2 = vpack.c.bf16 %v2138_v16, %v2137_v7  ;;  %v2144_v30 = vmax.f32 %v2028_v36, 0.0 }
 0x20a   :  { %v2095_v44 = vadd.f32 %v2094_v13, %v4772_v4  ;;  %v2096_v48 = vpop.f32.mrb[37].mxu1 }
 0x20b   :  { %2320 = vst [vmem:[%s5029_s6 + $0x58] sm:$0xff] %v2428_v52  ;;  %v2097_v57 = vadd.f32 %v2096_v48, %v4772_v4  ;;  %v2098_v23 = vpop.f32.mrb[38].mxu1  ;;  %2322 = vst [vmem:[%s5029_s6 + $0x80] sm:$0xff] %v2430_v2  ;;  %v2433_v34 = vpack.c.bf16 %v2144_v30, %v2143_v29  ;;  %v2031_v18 = vpop.f32.mrb[40].mxu0 }
 0x20c   :  { %v2139_v53 = vmax.f32 %v2095_v44, 0.0  ;;  %v2099_v51 = vadd.f32 %v2098_v23, %v4779_v6  ;;  %v2100_v35 = vpop.f32.mrb[39].mxu1  ;;  %v2032_v63 = vadd.f32 %v2031_v18, %v4805_v14  ;;  %v2033_v20 = vpop.f32.mrb[41].mxu0 }
 0x20d   :  { %v2140_v50 = vmax.f32 %v2097_v57, 0.0  ;;  %v2101_v55 = vadd.f32 %v2100_v35, %v4779_v6  ;;  %2325 = vst [vmem:[%s5029_s6 + $0xb0] sm:$0xff] %v2433_v34  ;;  %v2034_v4 = vadd.f32 %v2033_v20, %v4805_v14  ;;  %v2035_v15 = vpop.f32.mrb[42].mxu0 }
 0x20e   :  { %v2145_v59 = vmax.f32 %v2099_v51, 0.0  ;;  %v2149_v5 = vmax.f32 %v2032_v63, 0.0  ;;  %v2036_v1 = vadd.f32 %v2035_v15, %v4811_v0  ;;  %v2037_v43 = vpop.f32.mrb[43].mxu0 }
 0x20f   :  { %v2431_v49 = vpack.c.bf16 %v2140_v50, %v2139_v53  ;;  %v2146_v27 = vmax.f32 %v2101_v55, 0.0  ;;  %v2150_v21 = vmax.f32 %v2034_v4, 0.0  ;;  %v2038_v6 = vadd.f32 %v2037_v43, %v4811_v0 }
 0x210   :  { %v2155_v32 = vmax.f32 %v2036_v1, 0.0 }
 0x211   :  { %2323 = vst [vmem:[%s5029_s6 + $0x88] sm:$0xff] %v2431_v49  ;;  %v2434_v33 = vpack.c.bf16 %v2146_v27, %v2145_v59  ;;  %v2104_v58 = vpop.f32.mrb[40].mxu1  ;;  %v2436_v62 = vpack.c.bf16 %v2150_v21, %v2149_v5  ;;  %v2156_v8 = vmax.f32 %v2038_v6, 0.0 }
 0x212   :  { %v2105_v42 = vadd.f32 %v2104_v58, %v4805_v14  ;;  %v2106_v39 = vpop.f32.mrb[41].mxu1 }
 0x213   :  { %2326 = vst [vmem:[%s5029_s6 + $0xb8] sm:$0xff] %v2434_v33  ;;  %v2107_v28 = vadd.f32 %v2106_v39, %v4805_v14  ;;  %v2108_v45 = vpop.f32.mrb[42].mxu1  ;;  %2328 = vst [vmem:[%s5029_s6 + $0xe0] sm:$0xff] %v2436_v62  ;;  %v2439_v61 = vpack.c.bf16 %v2156_v8, %v2155_v32  ;;  %v2041_v10 = vpop.f32.mrb[44].mxu0 }
 0x214   :  { %v2151_v9 = vmax.f32 %v2105_v42, 0.0  ;;  %v2109_v19 = vadd.f32 %v2108_v45, %v4811_v0  ;;  %v2110_v54 = vpop.f32.mrb[43].mxu1  ;;  %v2042_v26 = vadd.f32 %v2041_v10, %v4826_v11  ;;  %v2043_v22 = vpop.f32.mrb[45].mxu0 }
 0x215   :  { %v2152_v12 = vmax.f32 %v2107_v28, 0.0  ;;  %v2111_v17 = vadd.f32 %v2110_v54, %v4811_v0  ;;  %2331 = vst [vmem:[%s5029_s6 + $0x110] sm:$0xff] %v2439_v61  ;;  %v2044_v14 = vadd.f32 %v2043_v22, %v4826_v11  ;;  %v2045_v46 = vpop.f32.mrb[46].mxu0 }
 0x216   :  { %v2157_v40 = vmax.f32 %v2109_v19, 0.0  ;;  %v2161_v24 = vmax.f32 %v2042_v26, 0.0  ;;  %v2046_v38 = vadd.f32 %v2045_v46, %v4832_v37  ;;  %v2047_v3 = vpop.f32.mrb[47].mxu0 }
 0x217   :  { %v2437_v31 = vpack.c.bf16 %v2152_v12, %v2151_v9  ;;  %v2158_v47 = vmax.f32 %v2111_v17, 0.0  ;;  %v2162_v56 = vmax.f32 %v2044_v14, 0.0  ;;  %v2048_v0 = vadd.f32 %v2047_v3, %v4832_v37 }
 0x218   :  { %v2167_v25 = vmax.f32 %v2046_v38, 0.0 }
 0x219   :  { %2329 = vst [vmem:[%s5029_s6 + $0xe8] sm:$0xff] %v2437_v31  ;;  %v2440_v60 = vpack.c.bf16 %v2158_v47, %v2157_v40  ;;  %v2114_v7 = vpop.f32.mrb[44].mxu1  ;;  %v2442_v16 = vpack.c.bf16 %v2162_v56, %v2161_v24  ;;  %v2168_v52 = vmax.f32 %v2048_v0, 0.0 }
 0x21a   :  { %v2115_v41 = vadd.f32 %v2114_v7, %v4826_v11  ;;  %v2116_v36 = vpop.f32.mrb[45].mxu1 }
 0x21b   :  { %2332 = vst [vmem:[%s5029_s6 + $0x118] sm:$0xff] %v2440_v60  ;;  %v2117_v13 = vadd.f32 %v2116_v36, %v4826_v11  ;;  %v2118_v29 = vpop.f32.mrb[46].mxu1  ;;  %2334 = vst [vmem:[%s5029_s6 + $0x140] sm:$0xff] %v2442_v16  ;;  %v2445_v48 = vpack.c.bf16 %v2168_v52, %v2167_v25 }
 0x21c   :  { %v2163_v44 = vmax.f32 %v2115_v41, 0.0  ;;  %v2119_v2 = vadd.f32 %v2118_v29, %v4832_v37  ;;  %v2120_v30 = vpop.f32.mrb[47].mxu1 }
 0x21d   :  { %v2164_v57 = vmax.f32 %v2117_v13, 0.0  ;;  %v2121_v23 = vadd.f32 %v2120_v30, %v4832_v37  ;;  %2337 = vst [vmem:[%s5029_s6 + $0x170] sm:$0xff] %v2445_v48 }
 0x21e   :  { %v2169_v53 = vmax.f32 %v2119_v2, 0.0 }
 0x21f   :  { %v2443_v51 = vpack.c.bf16 %v2164_v57, %v2163_v44  ;;  %v2170_v11 = vmax.f32 %v2121_v23, 0.0 }
 0x221   :  { %2335 = vst [vmem:[%s5029_s6 + $0x148] sm:$0xff] %v2443_v51  ;;  %v2446_v34 = vpack.c.bf16 %v2170_v11, %v2169_v53 }
 0x223   :  { %2338 = vst [vmem:[%s5029_s6 + $0x178] sm:$0xff] %v2446_v34 }
 0x224   :  { %2343 = vsyncpa [#allocation3], 1 }

// kernel: vae_forward.7
= control target key start
LH: loop header
LB: loop body
LE: loop exit
PB: predicated region body
PF: predicated region fallthrough
CT: control target
= control target key end

     0   :  { %s2441_s12 = smov 0   ;;  %s2443_s13 = smov 0   ;;  %s3047_s0 = inlined_call_operand.vmem [shape: bf16[16,64], index: 0, kind: input, shape index: {}]   ;;  %s3048_s1 = inlined_call_operand.vmem [shape: bf16[64,6144], index: 1, kind: input, shape index: {}]   ;;  %s3049_s2 = inlined_call_operand.vmem [shape: f32[16,1], index: 2, kind: input, shape index: {}]   ;;  %s3050_s3 = inlined_call_operand.vmem [shape: f32[16,6144], index: 3, kind: output, shape index: {}]  }
   0x1   :  { %s2445_s14 = smov 0  }
   0x2 LB: > { %s2006_s15 = sadd.s32 4294967295, %s2418_s14   ;;  %s2458_s16 = sadd.s32 1, %s2418_s14   ;;  %s2418_s14 = sphi %s2445_s14, %s3054_s14   ;;  %s2414_s13 = sphi %s2443_s13, %s3053_s13   ;;  %s2410_s12 = sphi %s2441_s12, %s3052_s12  }
   0x3   : > { %s38_s17 = ssub.s32 %s2418_s14, %s2458_s16  ;;  %s41_s18 = sadd.s32 1, %s2414_s13 }
   0x4   : > { %p39_p0 = scmp.eq.s32.totalorder %s38_s17, 0  ;;  %p48_p1 = scmp.ne.s32.totalorder %s2414_s13, %s2410_s12 }
   0x5   : > { %p49_p2 = scmp.eq.s32.totalorder %s2418_s14, 0  ;;  %p99_p3 = scmp.eq.s32.totalorder %s2006_s15, 1 }
   0x6   : > { %s2469_s19 = scalar_select %p39_p0, %s2414_s13, %s41_s18  }
   0x7   : > { %p50_p4 = por %p49_p2, %p48_p1  ;;  %p2471_p5 = por %p99_p3, %p48_p1 }
   0x8   : > { %p2009_p6 = scmp.ge.s32.totalorder %s2418_s14, 2 }
   0xa   : > { %127 = sbr.rel (%p2009_p6) target bundleno = 70 (0x46), region = 24 }
  0x11   : > { %130 = sbr.rel (!%p50_p4) target bundleno = 70 (0x46), region = 28  ;;  %s132_s21 = sand.u32 (%p50_p4), 1, %s2414_s13  }
  0x12   : > { %s2172_s22 = smul.u32 (%p50_p4), 96, %s2418_s14 }
  0x13   : > { %s2174_s23 = smul.u32 (%p50_p4), 768, %s132_s21 }
  0x14   : > { %s2481_s26 = scalar_lea.vmem (%p50_p4), %s3048_s1, %s2172_s22 }
  0x15   : > { %v150_v0 = vld [vmem:[%s2481_s26] sm:$0xff] (%p50_p4)  ;;  %v152_v1 = vld [vmem:[%s2481_s26 + $0x8] sm:$0xff] (%p50_p4)  ;;  %v154_v2 = vld [vmem:[%s2481_s26 + $0x10] sm:$0xff] (%p50_p4)  ;;  %s2486_s27 = scalar_lea.vmem (%p50_p4), [#allocation2], %s2174_s23 }
  0x16   : > { %151 = vst [vmem:[%s2486_s27] sm:$0xff] (%p50_p4), %v150_v0  ;;  %153 = vst [vmem:[%s2486_s27 + $0x8] sm:$0xff] (%p50_p4), %v152_v1  ;;  %v156_v3 = vld [vmem:[%s2481_s26 + $0x18] sm:$0xff] (%p50_p4)  ;;  %v158_v4 = vld [vmem:[%s2481_s26 + $0x20] sm:$0xff] (%p50_p4) }
  0x17   : > { %155 = vst [vmem:[%s2486_s27 + $0x10] sm:$0xff] (%p50_p4), %v154_v2  ;;  %v160_v5 = vld [vmem:[%s2481_s26 + $0x28] sm:$0xff] (%p50_p4)  ;;  %157 = vst [vmem:[%s2486_s27 + $0x18] sm:$0xff] (%p50_p4), %v156_v3  ;;  %v162_v6 = vld [vmem:[%s2481_s26 + $0x30] sm:$0xff] (%p50_p4) }
  0x18   : > { %159 = vst [vmem:[%s2486_s27 + $0x20] sm:$0xff] %v158_v4  ;;  %161 = vst [vmem:[%s2486_s27 + $0x28] sm:$0xff] %v160_v5  ;;  %v164_v7 = vld [vmem:[%s2481_s26 + $0x38] sm:$0xff]  ;;  %v166_v8 = vld [vmem:[%s2481_s26 + $0x40] sm:$0xff] }
  0x19   : > { %163 = vst [vmem:[%s2486_s27 + $0x30] sm:$0xff] %v162_v6  ;;  %165 = vst [vmem:[%s2486_s27 + $0x38] sm:$0xff] %v164_v7  ;;  %v168_v9 = vld [vmem:[%s2481_s26 + $0x48] sm:$0xff]  ;;  %v170_v10 = vld [vmem:[%s2481_s26 + $0x50] sm:$0xff] }
  0x1a   : > { %167 = vst [vmem:[%s2486_s27 + $0x40] sm:$0xff] %v166_v8  ;;  %v172_v11 = vld [vmem:[%s2481_s26 + $0x58] sm:$0xff]  ;;  %169 = vst [vmem:[%s2486_s27 + $0x48] sm:$0xff] %v168_v9  ;;  %v174_v12 = vld [vmem:[%s2481_s26 + $0xc0] sm:$0xff] }
  0x1b   : > { %171 = vst [vmem:[%s2486_s27 + $0x50] sm:$0xff] %v170_v10  ;;  %173 = vst [vmem:[%s2486_s27 + $0x58] sm:$0xff] %v172_v11  ;;  %v176_v13 = vld [vmem:[%s2481_s26 + $0xc8] sm:$0xff]  ;;  %v178_v14 = vld [vmem:[%s2481_s26 + $0xd0] sm:$0xff] }
  0x1c   : > { %175 = vst [vmem:[%s2486_s27 + $0x60] sm:$0xff] %v174_v12  ;;  %177 = vst [vmem:[%s2486_s27 + $0x68] sm:$0xff] %v176_v13  ;;  %v180_v15 = vld [vmem:[%s2481_s26 + $0xd8] sm:$0xff]  ;;  %v182_v16 = vld [vmem:[%s2481_s26 + $0xe0] sm:$0xff] }
  0x1d   : > { %179 = vst [vmem:[%s2486_s27 + $0x70] sm:$0xff] %v178_v14  ;;  %v184_v17 = vld [vmem:[%s2481_s26 + $0xe8] sm:$0xff]  ;;  %181 = vst [vmem:[%s2486_s27 + $0x78] sm:$0xff] %v180_v15  ;;  %v186_v18 = vld [vmem:[%s2481_s26 + $0xf0] sm:$0xff] }
  0x1e   : > { %183 = vst [vmem:[%s2486_s27 + $0x80] sm:$0xff] %v182_v16  ;;  %185 = vst [vmem:[%s2486_s27 + $0x88] sm:$0xff] %v184_v17  ;;  %v188_v19 = vld [vmem:[%s2481_s26 + $0xf8] sm:$0xff]  ;;  %v190_v20 = vld [vmem:[%s2481_s26 + $0x100] sm:$0xff] }
  0x1f   : > { %187 = vst [vmem:[%s2486_s27 + $0x90] sm:$0xff] %v186_v18  ;;  %189 = vst [vmem:[%s2486_s27 + $0x98] sm:$0xff] %v188_v19  ;;  %v192_v21 = vld [vmem:[%s2481_s26 + $0x108] sm:$0xff]  ;;  %v194_v22 = vld [vmem:[%s2481_s26 + $0x110] sm:$0xff] }
  0x20   : > { %191 = vst [vmem:[%s2486_s27 + $0xa0] sm:$0xff] %v190_v20  ;;  %v196_v23 = vld [vmem:[%s2481_s26 + $0x118] sm:$0xff]  ;;  %193 = vst [vmem:[%s2486_s27 + $0xa8] sm:$0xff] %v192_v21  ;;  %v198_v24 = vld [vmem:[%s2481_s26 + $0x180] sm:$0xff] }
  0x21   : > { %195 = vst [vmem:[%s2486_s27 + $0xb0] sm:$0xff] %v194_v22  ;;  %197 = vst [vmem:[%s2486_s27 + $0xb8] sm:$0xff] %v196_v23  ;;  %v200_v25 = vld [vmem:[%s2481_s26 + $0x188] sm:$0xff]  ;;  %v202_v26 = vld [vmem:[%s2481_s26 + $0x190] sm:$0xff] }
  0x22   : > { %199 = vst [vmem:[%s2486_s27 + $0xc0] sm:$0xff] %v198_v24  ;;  %201 = vst [vmem:[%s2486_s27 + $0xc8] sm:$0xff] %v200_v25  ;;  %v204_v27 = vld [vmem:[%s2481_s26 + $0x198] sm:$0xff]  ;;  %v206_v28 = vld [vmem:[%s2481_s26 + $0x1a0] sm:$0xff] }
  0x23   : > { %203 = vst [vmem:[%s2486_s27 + $0xd0] sm:$0xff] %v202_v26  ;;  %v208_v29 = vld [vmem:[%s2481_s26 + $0x1a8] sm:$0xff]  ;;  %205 = vst [vmem:[%s2486_s27 + $0xd8] sm:$0xff] %v204_v27  ;;  %v210_v30 = vld [vmem:[%s2481_s26 + $0x1b0] sm:$0xff] }
  0x24   : > { %207 = vst [vmem:[%s2486_s27 + $0xe0] sm:$0xff] %v206_v28  ;;  %209 = vst [vmem:[%s2486_s27 + $0xe8] sm:$0xff] %v208_v29  ;;  %v212_v31 = vld [vmem:[%s2481_s26 + $0x1b8] sm:$0xff]  ;;  %v214_v32 = vld [vmem:[%s2481_s26 + $0x1c0] sm:$0xff] }
  0x25   : > { %211 = vst [vmem:[%s2486_s27 + $0xf0] sm:$0xff] %v210_v30  ;;  %213 = vst [vmem:[%s2486_s27 + $0xf8] sm:$0xff] %v212_v31  ;;  %v216_v33 = vld [vmem:[%s2481_s26 + $0x1c8] sm:$0xff]  ;;  %v218_v34 = vld [vmem:[%s2481_s26 + $0x1d0] sm:$0xff] }
  0x26   : > { %215 = vst [vmem:[%s2486_s27 + $0x100] sm:$0xff] %v214_v32  ;;  %v220_v35 = vld [vmem:[%s2481_s26 + $0x1d8] sm:$0xff]  ;;  %217 = vst [vmem:[%s2486_s27 + $0x108] sm:$0xff] %v216_v33  ;;  %v222_v36 = vld [vmem:[%s2481_s26 + $0x240] sm:$0xff] }
  0x27   : > { %219 = vst [vmem:[%s2486_s27 + $0x110] sm:$0xff] %v218_v34  ;;  %221 = vst [vmem:[%s2486_s27 + $0x118] sm:$0xff] %v220_v35  ;;  %v224_v37 = vld [vmem:[%s2481_s26 + $0x248] sm:$0xff]  ;;  %v226_v38 = vld [vmem:[%s2481_s26 + $0x250] sm:$0xff] }
  0x28   : > { %223 = vst [vmem:[%s2486_s27 + $0x120] sm:$0xff] %v222_v36  ;;  %225 = vst [vmem:[%s2486_s27 + $0x128] sm:$0xff] %v224_v37  ;;  %v228_v39 = vld [vmem:[%s2481_s26 + $0x258] sm:$0xff]  ;;  %v230_v40 = vld [vmem:[%s2481_s26 + $0x260] sm:$0xff] }
  0x29   : > { %227 = vst [vmem:[%s2486_s27 + $0x130] sm:$0xff] %v226_v38  ;;  %v232_v41 = vld [vmem:[%s2481_s26 + $0x268] sm:$0xff]  ;;  %229 = vst [vmem:[%s2486_s27 + $0x138] sm:$0xff] %v228_v39  ;;  %v234_v42 = vld [vmem:[%s2481_s26 + $0x270] sm:$0xff] }
  0x2a   : > { %231 = vst [vmem:[%s2486_s27 + $0x140] sm:$0xff] %v230_v40  ;;  %233 = vst [vmem:[%s2486_s27 + $0x148] sm:$0xff] %v232_v41  ;;  %v236_v43 = vld [vmem:[%s2481_s26 + $0x278] sm:$0xff]  ;;  %v238_v44 = vld [vmem:[%s2481_s26 + $0x280] sm:$0xff] }
  0x2b   : > { %235 = vst [vmem:[%s2486_s27 + $0x150] sm:$0xff] %v234_v42  ;;  %237 = vst [vmem:[%s2486_s27 + $0x158] sm:$0xff] %v236_v43  ;;  %v240_v45 = vld [vmem:[%s2481_s26 + $0x288] sm:$0xff]  ;;  %v242_v46 = vld [vmem:[%s2481_s26 + $0x290] sm:$0xff] }
  0x2c   : > { %239 = vst [vmem:[%s2486_s27 + $0x160] sm:$0xff] %v238_v44  ;;  %v244_v47 = vld [vmem:[%s2481_s26 + $0x298] sm:$0xff]  ;;  %241 = vst [vmem:[%s2486_s27 + $0x168] sm:$0xff] %v240_v45  ;;  %v246_v48 = vld [vmem:[%s2481_s26 + $0x300] sm:$0xff] }
  0x2d   : > { %243 = vst [vmem:[%s2486_s27 + $0x170] sm:$0xff] %v242_v46  ;;  %245 = vst [vmem:[%s2486_s27 + $0x178] sm:$0xff] %v244_v47  ;;  %v248_v49 = vld [vmem:[%s2481_s26 + $0x308] sm:$0xff]  ;;  %v250_v50 = vld [vmem:[%s2481_s26 + $0x310] sm:$0xff] }
  0x2e   : > { %247 = vst [vmem:[%s2486_s27 + $0x180] sm:$0xff] %v246_v48  ;;  %249 = vst [vmem:[%s2486_s27 + $0x188] sm:$0xff] %v248_v49  ;;  %v252_v51 = vld [vmem:[%s2481_s26 + $0x318] sm:$0xff]  ;;  %v254_v52 = vld [vmem:[%s2481_s26 + $0x320] sm:$0xff] }
  0x2f   : > { %251 = vst [vmem:[%s2486_s27 + $0x190] sm:$0xff] %v250_v50  ;;  %v256_v53 = vld [vmem:[%s2481_s26 + $0x328] sm:$0xff]  ;;  %253 = vst [vmem:[%s2486_s27 + $0x198] sm:$0xff] %v252_v51  ;;  %v258_v54 = vld [vmem:[%s2481_s26 + $0x330] sm:$0xff] }
  0x30   : > { %255 = vst [vmem:[%s2486_s27 + $0x1a0] sm:$0xff] %v254_v52  ;;  %257 = vst [vmem:[%s2486_s27 + $0x1a8] sm:$0xff] %v256_v53  ;;  %v260_v55 = vld [vmem:[%s2481_s26 + $0x338] sm:$0xff]  ;;  %v262_v56 = vld [vmem:[%s2481_s26 + $0x340] sm:$0xff] }
  0x31   : > { %259 = vst [vmem:[%s2486_s27 + $0x1b0] sm:$0xff] %v258_v54  ;;  %261 = vst [vmem:[%s2486_s27 + $0x1b8] sm:$0xff] %v260_v55  ;;  %v264_v57 = vld [vmem:[%s2481_s26 + $0x348] sm:$0xff]  ;;  %v266_v58 = vld [vmem:[%s2481_s26 + $0x350] sm:$0xff] }
  0x32   : > { %263 = vst [vmem:[%s2486_s27 + $0x1c0] sm:$0xff] %v262_v56  ;;  %v268_v59 = vld [vmem:[%s2481_s26 + $0x358] sm:$0xff]  ;;  %265 = vst [vmem:[%s2486_s27 + $0x1c8] sm:$0xff] %v264_v57  ;;  %v270_v60 = vld [vmem:[%s2481_s26 + $0x3c0] sm:$0xff] }
  0x33   : > { %267 = vst [vmem:[%s2486_s27 + $0x1d0] sm:$0xff] %v266_v58  ;;  %269 = vst [vmem:[%s2486_s27 + $0x1d8] sm:$0xff] %v268_v59  ;;  %v272_v61 = vld [vmem:[%s2481_s26 + $0x3c8] sm:$0xff]  ;;  %v274_v62 = vld [vmem:[%s2481_s26 + $0x3d0] sm:$0xff] }
  0x34   : > { %271 = vst [vmem:[%s2486_s27 + $0x1e0] sm:$0xff] %v270_v60  ;;  %273 = vst [vmem:[%s2486_s27 + $0x1e8] sm:$0xff] %v272_v61  ;;  %v276_v63 = vld [vmem:[%s2481_s26 + $0x3d8] sm:$0xff]  ;;  %v278_v0 = vld [vmem:[%s2481_s26 + $0x3e0] sm:$0xff] }
  0x35   : > { %275 = vst [vmem:[%s2486_s27 + $0x1f0] sm:$0xff] %v274_v62  ;;  %v280_v1 = vld [vmem:[%s2481_s26 + $0x3e8] sm:$0xff]  ;;  %277 = vst [vmem:[%s2486_s27 + $0x1f8] sm:$0xff] %v276_v63  ;;  %v282_v2 = vld [vmem:[%s2481_s26 + $0x3f0] sm:$0xff] }
  0x36   : > { %279 = vst [vmem:[%s2486_s27 + $0x200] sm:$0xff] %v278_v0  ;;  %281 = vst [vmem:[%s2486_s27 + $0x208] sm:$0xff] %v280_v1  ;;  %v284_v3 = vld [vmem:[%s2481_s26 + $0x3f8] sm:$0xff]  ;;  %v286_v4 = vld [vmem:[%s2481_s26 + $0x400] sm:$0xff] }
  0x37   : > { %283 = vst [vmem:[%s2486_s27 + $0x210] sm:$0xff] %v282_v2  ;;  %285 = vst [vmem:[%s2486_s27 + $0x218] sm:$0xff] %v284_v3  ;;  %v288_v5 = vld [vmem:[%s2481_s26 + $0x408] sm:$0xff]  ;;  %v290_v6 = vld [vmem:[%s2481_s26 + $0x410] sm:$0xff] }
  0x38   : > { %287 = vst [vmem:[%s2486_s27 + $0x220] sm:$0xff] %v286_v4  ;;  %v292_v7 = vld [vmem:[%s2481_s26 + $0x418] sm:$0xff]  ;;  %289 = vst [vmem:[%s2486_s27 + $0x228] sm:$0xff] %v288_v5  ;;  %v294_v8 = vld [vmem:[%s2481_s26 + $0x480] sm:$0xff] }
  0x39   : > { %291 = vst [vmem:[%s2486_s27 + $0x230] sm:$0xff] %v290_v6  ;;  %293 = vst [vmem:[%s2486_s27 + $0x238] sm:$0xff] %v292_v7  ;;  %v296_v9 = vld [vmem:[%s2481_s26 + $0x488] sm:$0xff]  ;;  %v298_v10 = vld [vmem:[%s2481_s26 + $0x490] sm:$0xff] }
  0x3a   : > { %295 = vst [vmem:[%s2486_s27 + $0x240] sm:$0xff] %v294_v8  ;;  %297 = vst [vmem:[%s2486_s27 + $0x248] sm:$0xff] %v296_v9  ;;  %v300_v11 = vld [vmem:[%s2481_s26 + $0x498] sm:$0xff]  ;;  %v302_v12 = vld [vmem:[%s2481_s26 + $0x4a0] sm:$0xff] }
  0x3b   : > { %299 = vst [vmem:[%s2486_s27 + $0x250] sm:$0xff] %v298_v10  ;;  %v304_v13 = vld [vmem:[%s2481_s26 + $0x4a8] sm:$0xff]  ;;  %301 = vst [vmem:[%s2486_s27 + $0x258] sm:$0xff] %v300_v11  ;;  %v306_v14 = vld [vmem:[%s2481_s26 + $0x4b0] sm:$0xff] }
  0x3c   : > { %303 = vst [vmem:[%s2486_s27 + $0x260] sm:$0xff] %v302_v12  ;;  %305 = vst [vmem:[%s2486_s27 + $0x268] sm:$0xff] %v304_v13  ;;  %v308_v15 = vld [vmem:[%s2481_s26 + $0x4b8] sm:$0xff]  ;;  %v310_v16 = vld [vmem:[%s2481_s26 + $0x4c0] sm:$0xff] }
  0x3d   : > { %307 = vst [vmem:[%s2486_s27 + $0x270] sm:$0xff] %v306_v14  ;;  %309 = vst [vmem:[%s2486_s27 + $0x278] sm:$0xff] %v308_v15  ;;  %v312_v17 = vld [vmem:[%s2481_s26 + $0x4c8] sm:$0xff]  ;;  %v314_v18 = vld [vmem:[%s2481_s26 + $0x4d0] sm:$0xff] }
  0x3e   : > { %311 = vst [vmem:[%s2486_s27 + $0x280] sm:$0xff] %v310_v16  ;;  %v316_v19 = vld [vmem:[%s2481_s26 + $0x4d8] sm:$0xff]  ;;  %313 = vst [vmem:[%s2486_s27 + $0x288] sm:$0xff] %v312_v17  ;;  %v318_v20 = vld [vmem:[%s2481_s26 + $0x540] sm:$0xff] }
  0x3f   : > { %315 = vst [vmem:[%s2486_s27 + $0x290] sm:$0xff] %v314_v18  ;;  %317 = vst [vmem:[%s2486_s27 + $0x298] sm:$0xff] %v316_v19  ;;  %v320_v21 = vld [vmem:[%s2481_s26 + $0x548] sm:$0xff]  ;;  %v322_v22 = vld [vmem:[%s2481_s26 + $0x550] sm:$0xff] }
  0x40   : > { %319 = vst [vmem:[%s2486_s27 + $0x2a0] sm:$0xff] %v318_v20  ;;  %321 = vst [vmem:[%s2486_s27 + $0x2a8] sm:$0xff] %v320_v21  ;;  %v324_v23 = vld [vmem:[%s2481_s26 + $0x558] sm:$0xff]  ;;  %v326_v24 = vld [vmem:[%s2481_s26 + $0x560] sm:$0xff] }
  0x41   : > { %323 = vst [vmem:[%s2486_s27 + $0x2b0] sm:$0xff] %v322_v22  ;;  %v328_v25 = vld [vmem:[%s2481_s26 + $0x568] sm:$0xff]  ;;  %325 = vst [vmem:[%s2486_s27 + $0x2b8] sm:$0xff] %v324_v23  ;;  %v330_v26 = vld [vmem:[%s2481_s26 + $0x570] sm:$0xff] }
  0x42   : > { %327 = vst [vmem:[%s2486_s27 + $0x2c0] sm:$0xff] %v326_v24  ;;  %329 = vst [vmem:[%s2486_s27 + $0x2c8] sm:$0xff] %v328_v25  ;;  %v332_v27 = vld [vmem:[%s2481_s26 + $0x578] sm:$0xff]  ;;  %v334_v28 = vld [vmem:[%s2481_s26 + $0x580] sm:$0xff] }
  0x43   : > { %331 = vst [vmem:[%s2486_s27 + $0x2d0] sm:$0xff] %v330_v26  ;;  %333 = vst [vmem:[%s2486_s27 + $0x2d8] sm:$0xff] %v332_v27  ;;  %v336_v29 = vld [vmem:[%s2481_s26 + $0x588] sm:$0xff]  ;;  %v338_v30 = vld [vmem:[%s2481_s26 + $0x590] sm:$0xff] }
  0x44   : > { %335 = vst [vmem:[%s2486_s27 + $0x2e0] sm:$0xff] %v334_v28  ;;  %v340_v31 = vld [vmem:[%s2481_s26 + $0x598] sm:$0xff]  ;;  %337 = vst [vmem:[%s2486_s27 + $0x2e8] sm:$0xff] %v336_v29 }
  0x45   : > { %339 = vst [vmem:[%s2486_s27 + $0x2f0] sm:$0xff] %v338_v30  ;;  %341 = vst [vmem:[%s2486_s27 + $0x2f8] sm:$0xff] %v340_v31 }
  0x46 PF: > { %p2011_p7 = scmp.ge.s32.totalorder %s2418_s14, 1  ;;  %p346_p8 = scmp.lt.s32.totalorder %s2418_s14, 3 }
  0x48   : > { %p347_p9 = pnand %p2011_p7, %p346_p8 }
  0x49   : > { %s353_s28 = sand.u32 (!%p347_p9), 1, %s2410_s12   ;;  %v2420_v32 = vmov (!%p347_p9), 0   ;;  %v476_v33 = vld [vmem:[%s3049_s2] sm:$0xff] (!%p347_p9)  ;;  %v477_v34 = vld [vmem:[%s3049_s2 + $0x8] sm:$0xff] (!%p347_p9)  ;;  %vm973_vm0 = vcmask (!%p347_p9), 523264  }
  0x4a   : > { %350 = sbr.rel (%p347_p9) target bundleno = 448 (0x1c0), region = 51  ;;  %1009 = vmatprep.mubr.bf16.mxu0 (!%p347_p9), %v2420_v32  ;;  %1052 = vmatprep.mubr.bf16.mxu1 (!%p347_p9), %v2420_v32  ;;  %v2718_v11 = vld [vmem:[%s3047_s0] sm:$0xff] (!%p347_p9)  }
  0x4b   : > { %s2175_s29 = smul.u32 (!%p347_p9), 768, %s353_s28  ;;  %2202 = vset.pattern.permute.xlu0 (!%p347_p9), %v2420_v32 }
  0x4c   : > { %480 = vperm.xlu0 (!%p347_p9), %2202, %v476_v33   ;;  %s2176_s10 = smul.u32 (!%p347_p9), 384, %s353_s28 }
  0x4d   : > { %s2691_s7 = scalar_lea.vmem (!%p347_p9), [#allocation2], %s2175_s29 }
  0x4e   : > { %v380_v35 = vld [vmem:[%s2691_s7] sm:$0xff] (!%p347_p9)  ;;  %v381_v37 = vld [vmem:[%s2691_s7 + $0x8] sm:$0xff] (!%p347_p9)  ;;  %v382_v1 = vld [vmem:[%s2691_s7 + $0x10] sm:$0xff] (!%p347_p9)  ;;  %s2850_s11 = scalar_lea.vmem (!%p347_p9), [#allocation3], %s2176_s10 }
  0x4f   : > { %v392_v36 = vld [vmem:[%s2691_s7 + $0x60] sm:$0xff] (!%p347_p9)  ;;  %v393_v39 = vld [vmem:[%s2691_s7 + $0x68] sm:$0xff] (!%p347_p9)  ;;  %v394_v2 = vld [vmem:[%s2691_s7 + $0x70] sm:$0xff] (!%p347_p9) }
  0x50   : > { %v2014_v38 = vcombine.high (!%p347_p9), %v380_v35, %v392_v36  ;;  %v2013_v40 = vcombine.low (!%p347_p9), %v380_v35, %v392_v36  ;;  %v404_v41 = vld [vmem:[%s2691_s7 + $0xc0] sm:$0xff] (!%p347_p9)  ;;  %v2016_v43 = vcombine.high (!%p347_p9), %v381_v37, %v393_v39  ;;  %v2015_v44 = vcombine.low (!%p347_p9), %v381_v37, %v393_v39  ;;  %v405_v46 = vld [vmem:[%s2691_s7 + $0xc8] sm:$0xff] (!%p347_p9)  ;;  %485 = vperm.xlu0 (!%p347_p9), %2202, %v477_v34   ;;  %v383_v3 = vld [vmem:[%s2691_s7 + $0x18] sm:$0xff] (!%p347_p9) }
  0x51   : > { %v416_v42 = vld [vmem:[%s2691_s7 + $0x120] sm:$0xff]  ;;  %v417_v47 = vld [vmem:[%s2691_s7 + $0x128] sm:$0xff]  ;;  %v395_v4 = vld [vmem:[%s2691_s7 + $0x78] sm:$0xff]  ;;  %v2018_v7 = vcombine.high %v382_v1, %v394_v2  ;;  %v2017_v14 = vcombine.low %v382_v1, %v394_v2  ;;  %s2173_s12 = smul.u32 (%p2471_p5), 192, %s2006_s15 }
  0x52   : > { %v2038_v45 = vcombine.high %v404_v41, %v416_v42  ;;  %v428_v48 = vld [vmem:[%s2691_s7 + $0x180] sm:$0xff]  ;;  %977 = vmatprep.subr.bf16.mxu0 %v2014_v38  ;;  %v2040_v49 = vcombine.high %v405_v46, %v417_v47  ;;  %v429_v51 = vld [vmem:[%s2691_s7 + $0x188] sm:$0xff]  ;;  %1020 = vmatprep.subr.bf16.mxu1 %v2016_v43  ;;  %v2037_v53 = vcombine.low %v404_v41, %v416_v42  ;;  %v406_v9 = vld [vmem:[%s2691_s7 + $0xd0] sm:$0xff] }
  0x53   : > { %v440_v50 = vld [vmem:[%s2691_s7 + $0x1e0] sm:$0xff]  ;;  %v441_v52 = vld [vmem:[%s2691_s7 + $0x1e8] sm:$0xff]  ;;  %978 = vmatpush1.bf16.msra.mxu0 %v2013_v40  ;;  %1021 = vmatpush1.bf16.msra.mxu1 %v2015_v44  ;;  %v2039_v54 = vcombine.low %v405_v46, %v417_v47  ;;  %v2020_v8 = vcombine.high %v383_v3, %v395_v4  ;;  %v418_v10 = vld [vmem:[%s2691_s7 + $0x130] sm:$0xff]  ;;  %v2019_v15 = vcombine.low %v383_v3, %v395_v4  ;;  %s2945_s18 = scalar_lea.vmem (%p2471_p5), %s3050_s3, %s2173_s12 }
  0x54   : > { %979 = vmatprep.subr.bf16.mxu0 %v2038_v45  ;;  %v2062_v55 = vcombine.high %v428_v48, %v440_v50  ;;  %1022 = vmatprep.subr.bf16.mxu1 %v2040_v49  ;;  %v2064_v56 = vcombine.high %v429_v51, %v441_v52  ;;  %v452_v57 = vld [vmem:[%s2691_s7 + $0x240] sm:$0xff]  ;;  %v453_v59 = vld [vmem:[%s2691_s7 + $0x248] sm:$0xff]  ;;  %v2061_v61 = vcombine.low %v428_v48, %v440_v50  ;;  %v407_v12 = vld [vmem:[%s2691_s7 + $0xd8] sm:$0xff] }
  0x55   : > { %v464_v58 = vld [vmem:[%s2691_s7 + $0x2a0] sm:$0xff]  ;;  %v465_v60 = vld [vmem:[%s2691_s7 + $0x2a8] sm:$0xff]  ;;  %v2063_v62 = vcombine.low %v429_v51, %v441_v52  ;;  %v419_v13 = vld [vmem:[%s2691_s7 + $0x138] sm:$0xff]  ;;  %v2042_v16 = vcombine.high %v406_v9, %v418_v10  ;;  %v2041_v22 = vcombine.low %v406_v9, %v418_v10 }
  0x56   : > { %v2086_v63 = vcombine.high %v452_v57, %v464_v58  ;;  %v2088_v0 = vcombine.high %v453_v59, %v465_v60  ;;  %v2085_v5 = vcombine.low %v452_v57, %v464_v58  ;;  %v2087_v6 = vcombine.low %v453_v59, %v465_v60  ;;  %v430_v18 = vld [vmem:[%s2691_s7 + $0x190] sm:$0xff]  ;;  %v431_v20 = vld [vmem:[%s2691_s7 + $0x198] sm:$0xff]  ;;  %v384_v35 = vld [vmem:[%s2691_s7 + $0x20] sm:$0xff] }
  0x57   : > { %980 = vmatpush1.bf16.msra.mxu0 %v2037_v53  ;;  %1023 = vmatpush1.bf16.msra.mxu1 %v2039_v54  ;;  %v2044_v17 = vcombine.high %v407_v12, %v419_v13  ;;  %v442_v19 = vld [vmem:[%s2691_s7 + $0x1f0] sm:$0xff]  ;;  %v443_v21 = vld [vmem:[%s2691_s7 + $0x1f8] sm:$0xff]  ;;  %v2043_v23 = vcombine.low %v407_v12, %v419_v13  ;;  %v396_v36 = vld [vmem:[%s2691_s7 + $0x80] sm:$0xff] }
  0x58   : > { %981 = vmatprep.subr.bf16.mxu0 %v2062_v55  ;;  %1024 = vmatprep.subr.bf16.mxu1 %v2064_v56  ;;  %v2066_v24 = vcombine.high %v430_v18, %v442_v19  ;;  %v2068_v25 = vcombine.high %v431_v20, %v443_v21  ;;  %v454_v26 = vld [vmem:[%s2691_s7 + $0x250] sm:$0xff]  ;;  %v455_v28 = vld [vmem:[%s2691_s7 + $0x258] sm:$0xff]  ;;  %v2065_v30 = vcombine.low %v430_v18, %v442_v19  ;;  %v385_v37 = vld [vmem:[%s2691_s7 + $0x28] sm:$0xff] }
  0x59   : > { %v466_v27 = vld [vmem:[%s2691_s7 + $0x2b0] sm:$0xff]  ;;  %v467_v29 = vld [vmem:[%s2691_s7 + $0x2b8] sm:$0xff]  ;;  %v2067_v31 = vcombine.low %v431_v20, %v443_v21  ;;  %v397_v38 = vld [vmem:[%s2691_s7 + $0x88] sm:$0xff]  ;;  %v2022_v41 = vcombine.high %v384_v35, %v396_v36  ;;  %v2021_v47 = vcombine.low %v384_v35, %v396_v36 }
  0x5a   : > { %v2090_v33 = vcombine.high %v454_v26, %v466_v27  ;;  %v2092_v34 = vcombine.high %v455_v28, %v467_v29  ;;  %v2089_v39 = vcombine.low %v454_v26, %v466_v27  ;;  %v2091_v40 = vcombine.low %v455_v28, %v467_v29  ;;  %v408_v43 = vld [vmem:[%s2691_s7 + $0xe0] sm:$0xff]  ;;  %v409_v45 = vld [vmem:[%s2691_s7 + $0xe8] sm:$0xff]  ;;  %v386_v3 = vld [vmem:[%s2691_s7 + $0x30] sm:$0xff] }
  0x5b   : > { %982 = vmatpush1.bf16.msra.mxu0 %v2061_v61  ;;  %1025 = vmatpush1.bf16.msra.mxu1 %v2063_v62  ;;  %v2024_v42 = vcombine.high %v385_v37, %v397_v38  ;;  %v420_v44 = vld [vmem:[%s2691_s7 + $0x140] sm:$0xff]  ;;  %v421_v46 = vld [vmem:[%s2691_s7 + $0x148] sm:$0xff]  ;;  %v2023_v48 = vcombine.low %v385_v37, %v397_v38  ;;  %v398_v4 = vld [vmem:[%s2691_s7 + $0x90] sm:$0xff] }
  0x5c   : > { %983 = vmatprep.subr.bf16.mxu0 %v2086_v63  ;;  %1026 = vmatprep.subr.bf16.mxu1 %v2088_v0  ;;  %v2046_v49 = vcombine.high %v408_v43, %v420_v44  ;;  %v2048_v50 = vcombine.high %v409_v45, %v421_v46  ;;  %v432_v51 = vld [vmem:[%s2691_s7 + $0x1a0] sm:$0xff]  ;;  %v433_v53 = vld [vmem:[%s2691_s7 + $0x1a8] sm:$0xff]  ;;  %v2045_v55 = vcombine.low %v408_v43, %v420_v44  ;;  %v410_v12 = vld [vmem:[%s2691_s7 + $0xf0] sm:$0xff] }
  0x5d   : > { %v444_v52 = vld [vmem:[%s2691_s7 + $0x200] sm:$0xff]  ;;  %v445_v54 = vld [vmem:[%s2691_s7 + $0x208] sm:$0xff]  ;;  %v2047_v56 = vcombine.low %v409_v45, %v421_v46  ;;  %v2026_v9 = vcombine.high %v386_v3, %v398_v4  ;;  %v422_v13 = vld [vmem:[%s2691_s7 + $0x150] sm:$0xff] }
  0x5e   : > { %v2070_v57 = vcombine.high %v432_v51, %v444_v52  ;;  %v2072_v58 = vcombine.high %v433_v53, %v445_v54  ;;  %v456_v59 = vld [vmem:[%s2691_s7 + $0x260] sm:$0xff]  ;;  %v457_v61 = vld [vmem:[%s2691_s7 + $0x268] sm:$0xff]  ;;  %v2069_v63 = vcombine.low %v432_v51, %v444_v52  ;;  %v2071_v0 = vcombine.low %v433_v53, %v445_v54  ;;  %v434_v20 = vld [vmem:[%s2691_s7 + $0x1b0] sm:$0xff] }
  0x5f   : > { %984 = vmatpush1.bf16.msra.mxu0 %v2085_v5  ;;  %1027 = vmatpush1.bf16.msra.mxu1 %v2087_v6  ;;  %v468_v60 = vld [vmem:[%s2691_s7 + $0x2c0] sm:$0xff]  ;;  %v469_v62 = vld [vmem:[%s2691_s7 + $0x2c8] sm:$0xff]  ;;  %v387_v5 = vld [vmem:[%s2691_s7 + $0x38] sm:$0xff]  ;;  %v2050_v18 = vcombine.high %v410_v12, %v422_v13 }
  0x60   : > { %1063 = vmatprep.subr.bf16.mxu0 %v2018_v7  ;;  %1106 = vmatprep.subr.bf16.mxu1 %v2020_v8  ;;  %v2094_v1 = vcombine.high %v456_v59, %v468_v60  ;;  %v2096_v2 = vcombine.high %v457_v61, %v469_v62  ;;  %v399_v6 = vld [vmem:[%s2691_s7 + $0x98] sm:$0xff]  ;;  %v2093_v7 = vcombine.low %v456_v59, %v468_v60  ;;  %v446_v21 = vld [vmem:[%s2691_s7 + $0x210] sm:$0xff]  ;;  %v388_v37 = vld [vmem:[%s2691_s7 + $0x40] sm:$0xff] }
  0x61   : > { %v2095_v8 = vcombine.low %v457_v61, %v469_v62  ;;  %v2028_v10 = vcombine.high %v387_v5, %v399_v6  ;;  %v2074_v26 = vcombine.high %v434_v20, %v446_v21  ;;  %v458_v28 = vld [vmem:[%s2691_s7 + $0x270] sm:$0xff]  ;;  %v400_v38 = vld [vmem:[%s2691_s7 + $0xa0] sm:$0xff] }
  0x62   : > { %2109 = vmatmul.mubr.msk.bf16.vlgmr.msra.gmra.mrb[0].mxu0 %vm973_vm0, %v2718_v11  ;;  %2110 = vmatmul.mubr.msk.bf16.vlgmr.msra.gmra.mrb[0].mxu1 %vm973_vm0, %v2718_v11  ;;  %v470_v29 = vld [vmem:[%s2691_s7 + $0x2d0] sm:$0xff]  ;;  %v2030_v43 = vcombine.high %v388_v37, %v400_v38  ;;  %v412_v45 = vld [vmem:[%s2691_s7 + $0x100] sm:$0xff] }
  0x63   : > { %1064 = vmatpush1.bf16.msra.mxu0 %v2017_v14  ;;  %1107 = vmatpush1.bf16.msra.mxu1 %v2019_v15  ;;  %v411_v14 = vld [vmem:[%s2691_s7 + $0xf8] sm:$0xff]  ;;  %v2098_v35 = vcombine.high %v458_v28, %v470_v29  ;;  %v424_v46 = vld [vmem:[%s2691_s7 + $0x160] sm:$0xff] }
  0x64   : > { %1065 = vmatprep.subr.bf16.mxu0 %v2042_v16  ;;  %1108 = vmatprep.subr.bf16.mxu1 %v2044_v17  ;;  %v423_v15 = vld [vmem:[%s2691_s7 + $0x158] sm:$0xff]  ;;  %v2025_v16 = vcombine.low %v386_v3, %v398_v4  ;;  %v2027_v17 = vcombine.low %v387_v5, %v399_v6  ;;  %v2054_v51 = vcombine.high %v412_v45, %v424_v46  ;;  %v436_v53 = vld [vmem:[%s2691_s7 + $0x1c0] sm:$0xff]  ;;  %v390_v5 = vld [vmem:[%s2691_s7 + $0x50] sm:$0xff] }
  0x65   : > { %1095 = vmatprep.mubr.bf16.mxu0 %v2420_v32  ;;  %1138 = vmatprep.mubr.bf16.mxu1 %v2420_v32  ;;  %v2052_v19 = vcombine.high %v411_v14, %v423_v15  ;;  %v448_v54 = vld [vmem:[%s2691_s7 + $0x220] sm:$0xff]  ;;  %v402_v6 = vld [vmem:[%s2691_s7 + $0xb0] sm:$0xff] }
  0x66   : > { %v2078_v59 = vcombine.high %v436_v53, %v448_v54  ;;  %v460_v61 = vld [vmem:[%s2691_s7 + $0x280] sm:$0xff] }
  0x67   : > { %1066 = vmatpush1.bf16.msra.mxu0 %v2041_v22  ;;  %1109 = vmatpush1.bf16.msra.mxu1 %v2043_v23  ;;  %v435_v22 = vld [vmem:[%s2691_s7 + $0x1b8] sm:$0xff]  ;;  %v472_v62 = vld [vmem:[%s2691_s7 + $0x2e0] sm:$0xff] }
  0x68   : > { %1067 = vmatprep.subr.bf16.mxu0 %v2066_v24  ;;  %1110 = vmatprep.subr.bf16.mxu1 %v2068_v25  ;;  %v447_v23 = vld [vmem:[%s2691_s7 + $0x218] sm:$0xff]  ;;  %v2049_v24 = vcombine.low %v410_v12, %v422_v13  ;;  %v2051_v25 = vcombine.low %v411_v14, %v423_v15  ;;  %v2102_v3 = vcombine.high %v460_v61, %v472_v62  ;;  %v414_v14 = vld [vmem:[%s2691_s7 + $0x110] sm:$0xff] }
  0x69   : > { %v2076_v27 = vcombine.high %v435_v22, %v447_v23  ;;  %v2034_v12 = vcombine.high %v390_v5, %v402_v6  ;;  %v426_v15 = vld [vmem:[%s2691_s7 + $0x170] sm:$0xff] }
  0x6b   : > { %1068 = vmatpush1.bf16.msra.mxu0 %v2065_v30  ;;  %1111 = vmatpush1.bf16.msra.mxu1 %v2067_v31  ;;  %v459_v30 = vld [vmem:[%s2691_s7 + $0x278] sm:$0xff] }
  0x6c   : > { %1069 = vmatprep.subr.bf16.mxu0 %v2090_v33  ;;  %1112 = vmatprep.subr.bf16.mxu1 %v2092_v34  ;;  %v471_v31 = vld [vmem:[%s2691_s7 + $0x2d8] sm:$0xff]  ;;  %v2073_v33 = vcombine.low %v434_v20, %v446_v21  ;;  %v2075_v34 = vcombine.low %v435_v22, %v447_v23  ;;  %v2058_v20 = vcombine.high %v414_v14, %v426_v15  ;;  %v438_v22 = vld [vmem:[%s2691_s7 + $0x1d0] sm:$0xff] }
  0x6d   : > { %v2100_v36 = vcombine.high %v459_v30, %v471_v31  ;;  %v450_v23 = vld [vmem:[%s2691_s7 + $0x230] sm:$0xff] }
  0x6f   : > { %1070 = vmatpush1.bf16.msra.mxu0 %v2089_v39  ;;  %1113 = vmatpush1.bf16.msra.mxu1 %v2091_v40  ;;  %v389_v39 = vld [vmem:[%s2691_s7 + $0x48] sm:$0xff] }
  0x70   : > { %1149 = vmatprep.subr.bf16.mxu0 %v2022_v41  ;;  %1192 = vmatprep.subr.bf16.mxu1 %v2024_v42  ;;  %v401_v40 = vld [vmem:[%s2691_s7 + $0xa8] sm:$0xff]  ;;  %v2097_v41 = vcombine.low %v458_v28, %v470_v29  ;;  %v2099_v42 = vcombine.low %v459_v30, %v471_v31  ;;  %v2082_v28 = vcombine.high %v438_v22, %v450_v23  ;;  %v462_v30 = vld [vmem:[%s2691_s7 + $0x290] sm:$0xff] }
  0x71   : > { %v2032_v44 = vcombine.high %v389_v39, %v401_v40  ;;  %v474_v31 = vld [vmem:[%s2691_s7 + $0x2f0] sm:$0xff] }
  0x72   : > { %2111 = vmatmul.mubr.msk.bf16.vlgmr.msra.gmra.mrb[4].mxu0 %vm973_vm0, %v2718_v11  ;;  %2112 = vmatmul.mubr.msk.bf16.vlgmr.msra.gmra.mrb[4].mxu1 %vm973_vm0, %v2718_v11 }
  0x73   : > { %1150 = vmatpush1.bf16.msra.mxu0 %v2021_v47  ;;  %1193 = vmatpush1.bf16.msra.mxu1 %v2023_v48  ;;  %v413_v47 = vld [vmem:[%s2691_s7 + $0x108] sm:$0xff] }
  0x74   : > { %1151 = vmatprep.subr.bf16.mxu0 %v2046_v49  ;;  %1194 = vmatprep.subr.bf16.mxu1 %v2048_v50  ;;  %v425_v48 = vld [vmem:[%s2691_s7 + $0x168] sm:$0xff]  ;;  %v2029_v49 = vcombine.low %v388_v37, %v400_v38  ;;  %v2031_v50 = vcombine.low %v389_v39, %v401_v40  ;;  %v2106_v37 = vcombine.high %v462_v30, %v474_v31 }
  0x75   : > { %1181 = vmatprep.mubr.bf16.mxu0 %v2420_v32  ;;  %1224 = vmatprep.mubr.bf16.mxu1 %v2420_v32  ;;  %v2056_v52 = vcombine.high %v413_v47, %v425_v48  ;;  %v2105_v39 = vcombine.low %v462_v30, %v474_v31 }
  0x77   : > { %1152 = vmatpush1.bf16.msra.mxu0 %v2045_v55  ;;  %1195 = vmatpush1.bf16.msra.mxu1 %v2047_v56  ;;  %v437_v55 = vld [vmem:[%s2691_s7 + $0x1c8] sm:$0xff] }
  0x78   : > { %1153 = vmatprep.subr.bf16.mxu0 %v2070_v57  ;;  %1196 = vmatprep.subr.bf16.mxu1 %v2072_v58  ;;  %v449_v56 = vld [vmem:[%s2691_s7 + $0x228] sm:$0xff]  ;;  %v2053_v57 = vcombine.low %v412_v45, %v424_v46  ;;  %v2055_v58 = vcombine.low %v413_v47, %v425_v48 }
  0x79   : > { %v2080_v60 = vcombine.high %v437_v55, %v449_v56 }
  0x7b   : > { %1154 = vmatpush1.bf16.msra.mxu0 %v2069_v63  ;;  %1197 = vmatpush1.bf16.msra.mxu1 %v2071_v0  ;;  %v461_v63 = vld [vmem:[%s2691_s7 + $0x288] sm:$0xff] }
  0x7c   : > { %1155 = vmatprep.subr.bf16.mxu0 %v2094_v1  ;;  %1198 = vmatprep.subr.bf16.mxu1 %v2096_v2  ;;  %v473_v0 = vld [vmem:[%s2691_s7 + $0x2e8] sm:$0xff]  ;;  %v2077_v1 = vcombine.low %v436_v53, %v448_v54  ;;  %v2079_v2 = vcombine.low %v437_v55, %v449_v56 }
  0x7d   : > { %v2104_v4 = vcombine.high %v461_v63, %v473_v0 }
  0x7f   : > { %1156 = vmatpush1.bf16.msra.mxu0 %v2093_v7  ;;  %1199 = vmatpush1.bf16.msra.mxu1 %v2095_v8  ;;  %v391_v7 = vld [vmem:[%s2691_s7 + $0x58] sm:$0xff] }
  0x80   : > { %1235 = vmatprep.subr.bf16.mxu0 %v2026_v9  ;;  %1278 = vmatprep.subr.bf16.mxu1 %v2028_v10  ;;  %v403_v8 = vld [vmem:[%s2691_s7 + $0xb8] sm:$0xff]  ;;  %v2101_v9 = vcombine.low %v460_v61, %v472_v62  ;;  %v2103_v10 = vcombine.low %v461_v63, %v473_v0 }
  0x81   : > { %v2036_v13 = vcombine.high %v391_v7, %v403_v8 }
  0x82   : > { %2113 = vmatmul.mubr.msk.bf16.vlgmr.msra.gmra.mrb[8].mxu0 %vm973_vm0, %v2718_v11  ;;  %2114 = vmatmul.mubr.msk.bf16.vlgmr.msra.gmra.mrb[8].mxu1 %vm973_vm0, %v2718_v11 }
  0x83   : > { %1236 = vmatpush1.bf16.msra.mxu0 %v2025_v16  ;;  %1279 = vmatpush1.bf16.msra.mxu1 %v2027_v17  ;;  %v415_v16 = vld [vmem:[%s2691_s7 + $0x118] sm:$0xff] }
  0x84   : > { %1237 = vmatprep.subr.bf16.mxu0 %v2050_v18  ;;  %1280 = vmatprep.subr.bf16.mxu1 %v2052_v19  ;;  %v427_v17 = vld [vmem:[%s2691_s7 + $0x178] sm:$0xff]  ;;  %v2033_v18 = vcombine.low %v390_v5, %v402_v6  ;;  %v2035_v19 = vcombine.low %v391_v7, %v403_v8 }
  0x85   : > { %1267 = vmatprep.mubr.bf16.mxu0 %v2420_v32  ;;  %1310 = vmatprep.mubr.bf16.mxu1 %v2420_v32  ;;  %v2060_v21 = vcombine.high %v415_v16, %v427_v17 }
  0x87   : > { %1238 = vmatpush1.bf16.msra.mxu0 %v2049_v24  ;;  %1281 = vmatpush1.bf16.msra.mxu1 %v2051_v25  ;;  %v439_v24 = vld [vmem:[%s2691_s7 + $0x1d8] sm:$0xff] }
  0x88   : > { %1239 = vmatprep.subr.bf16.mxu0 %v2074_v26  ;;  %1282 = vmatprep.subr.bf16.mxu1 %v2076_v27  ;;  %v451_v25 = vld [vmem:[%s2691_s7 + $0x238] sm:$0xff]  ;;  %v2057_v26 = vcombine.low %v414_v14, %v426_v15  ;;  %v2059_v27 = vcombine.low %v415_v16, %v427_v17 }
  0x89   : > { %v2084_v29 = vcombine.high %v439_v24, %v451_v25 }
  0x8b   : > { %1240 = vmatpush1.bf16.msra.mxu0 %v2073_v33  ;;  %1283 = vmatpush1.bf16.msra.mxu1 %v2075_v34  ;;  %v463_v33 = vld [vmem:[%s2691_s7 + $0x298] sm:$0xff] }
  0x8c   : > { %1241 = vmatprep.subr.bf16.mxu0 %v2098_v35  ;;  %1284 = vmatprep.subr.bf16.mxu1 %v2100_v36  ;;  %v475_v34 = vld [vmem:[%s2691_s7 + $0x2f8] sm:$0xff]  ;;  %v2081_v35 = vcombine.low %v438_v22, %v450_v23  ;;  %v2083_v36 = vcombine.low %v439_v24, %v451_v25 }
  0x8d   : > { %v2108_v38 = vcombine.high %v463_v33, %v475_v34  ;;  %v2107_v40 = vcombine.low %v463_v33, %v475_v34 }
  0x8f   : > { %1242 = vmatpush1.bf16.msra.mxu0 %v2097_v41  ;;  %1285 = vmatpush1.bf16.msra.mxu1 %v2099_v42 }
  0x90   : > { %1321 = vmatprep.subr.bf16.mxu0 %v2030_v43  ;;  %1364 = vmatprep.subr.bf16.mxu1 %v2032_v44 }
  0x92   : > { %2115 = vmatmul.mubr.msk.bf16.vlgmr.msra.gmra.mrb[12].mxu0 %vm973_vm0, %v2718_v11  ;;  %2116 = vmatmul.mubr.msk.bf16.vlgmr.msra.gmra.mrb[12].mxu1 %vm973_vm0, %v2718_v11 }
  0x93   : > { %1322 = vmatpush1.bf16.msra.mxu0 %v2029_v49  ;;  %1365 = vmatpush1.bf16.msra.mxu1 %v2031_v50 }
  0x94   : > { %1323 = vmatprep.subr.bf16.mxu0 %v2054_v51  ;;  %1366 = vmatprep.subr.bf16.mxu1 %v2056_v52 }
  0x95   : > { %1353 = vmatprep.mubr.bf16.mxu0 %v2420_v32  ;;  %1396 = vmatprep.mubr.bf16.mxu1 %v2420_v32 }
  0x97   : > { %1324 = vmatpush1.bf16.msra.mxu0 %v2053_v57  ;;  %1367 = vmatpush1.bf16.msra.mxu1 %v2055_v58 }
  0x98   : > { %1325 = vmatprep.subr.bf16.mxu0 %v2078_v59  ;;  %1368 = vmatprep.subr.bf16.mxu1 %v2080_v60 }
  0x9b   : > { %1326 = vmatpush1.bf16.msra.mxu0 %v2077_v1  ;;  %1369 = vmatpush1.bf16.msra.mxu1 %v2079_v2 }
  0x9c   : > { %1327 = vmatprep.subr.bf16.mxu0 %v2102_v3  ;;  %1370 = vmatprep.subr.bf16.mxu1 %v2104_v4 }
  0x9f   : > { %1328 = vmatpush1.bf16.msra.mxu0 %v2101_v9  ;;  %1371 = vmatpush1.bf16.msra.mxu1 %v2103_v10 }
  0xa0   : > { %1407 = vmatprep.subr.bf16.mxu0 %v2034_v12  ;;  %1450 = vmatprep.subr.bf16.mxu1 %v2036_v13 }
  0xa2   : > { %2117 = vmatmul.mubr.msk.bf16.vlgmr.msra.gmra.mrb[16].mxu0 %vm973_vm0, %v2718_v11  ;;  %2118 = vmatmul.mubr.msk.bf16.vlgmr.msra.gmra.mrb[16].mxu1 %vm973_vm0, %v2718_v11 }
  0xa3   : > { %1408 = vmatpush1.bf16.msra.mxu0 %v2033_v18  ;;  %1451 = vmatpush1.bf16.msra.mxu1 %v2035_v19 }
  0xa4   : > { %1409 = vmatprep.subr.bf16.mxu0 %v2058_v20  ;;  %1452 = vmatprep.subr.bf16.mxu1 %v2060_v21 }
  0xa5   : > { %1439 = vmatprep.mubr.bf16.mxu0 %v2420_v32  ;;  %1482 = vmatprep.mubr.bf16.mxu1 %v2420_v32 }
  0xa7   : > { %1410 = vmatpush1.bf16.msra.mxu0 %v2057_v26  ;;  %1453 = vmatpush1.bf16.msra.mxu1 %v2059_v27 }
  0xa8   : > { %1411 = vmatprep.subr.bf16.mxu0 %v2082_v28  ;;  %1454 = vmatprep.subr.bf16.mxu1 %v2084_v29 }
  0xab   : > { %1412 = vmatpush1.bf16.msra.mxu0 %v2081_v35  ;;  %1455 = vmatpush1.bf16.msra.mxu1 %v2083_v36 }
  0xac   : > { %1413 = vmatprep.subr.bf16.mxu0 %v2106_v37  ;;  %1456 = vmatprep.subr.bf16.mxu1 %v2108_v38 }
  0xaf   : > { %1414 = vmatpush1.bf16.msra.mxu0 %v2105_v39  ;;  %1457 = vmatpush1.bf16.msra.mxu1 %v2107_v40 }
  0xb2   : > { %2119 = vmatmul.mubr.msk.bf16.vlgmr.msra.gmra.mrb[20].mxu0 %vm973_vm0, %v2718_v11  ;;  %2120 = vmatmul.mubr.msk.bf16.vlgmr.msra.gmra.mrb[20].mxu1 %vm973_vm0, %v2718_v11 }
  0xcb   : > { %v2828_v32 = vpop.permute.xlu0 %480 }
  0xcf   : > { %v2830_v42 = vpop.permute.xlu0 %485 }
 0x135   : > { %v1011_v41 = vpop.f32.mrb[0].mxu0  ;;  %v1054_v44 = vpop.f32.mrb[0].mxu1 }
 0x136   : > { %v1012_v43 = vadd.f32 %v1011_v41, %v2828_v32  ;;  %v1013_v45 = vpop.f32.mrb[1].mxu0  ;;  %v1055_v46 = vadd.f32 %v1054_v44, %v2828_v32  ;;  %v1056_v48 = vpop.f32.mrb[1].mxu1 }
 0x137   : > { %v1014_v47 = vadd.f32 %v1013_v45, %v2828_v32  ;;  %v1015_v49 = vpop.f32.mrb[2].mxu0  ;;  %v1057_v51 = vadd.f32 %v1056_v48, %v2828_v32  ;;  %v1058_v52 = vpop.f32.mrb[2].mxu1 }
 0x138   : > { %v2121_v50 = vmul.f32 -1.442695, %v1012_v43  ;;  %v1016_v11 = vadd.f32 %v1015_v49, %v2830_v42  ;;  %v1017_v53 = vpop.f32.mrb[3].mxu0  ;;  %v2123_v54 = vmul.f32 -1.442695, %v1055_v46  ;;  %v1059_v56 = vadd.f32 %v1058_v52, %v2830_v42  ;;  %v1060_v58 = vpop.f32.mrb[3].mxu1 }
 0x139   : > { %v2122_v55 = vmul.f32 -1.442695, %v1014_v47  ;;  %v1018_v57 = vadd.f32 %v1017_v53, %v2830_v42  ;;  %v2124_v59 = vmul.f32 -1.442695, %v1057_v51  ;;  %v1061_v61 = vadd.f32 %v1060_v58, %v2830_v42 }
 0x13a   : > { %2204 = vpow2.f32 %v2121_v50  ;;  %v2145_v60 = vmul.f32 -1.442695, %v1016_v11  ;;  %v2147_v62 = vmul.f32 -1.442695, %v1059_v56 }
 0x13b   : > { %2206 = vpow2.f32 %v2123_v54  ;;  %v2146_v63 = vmul.f32 -1.442695, %v1018_v57  ;;  %v2148_v0 = vmul.f32 -1.442695, %v1061_v61 }
 0x13c   : > { %2208 = vpow2.f32 %v2122_v55 }
 0x13d   : > { %2210 = vpow2.f32 %v2124_v59 }
 0x13e   : > { %2212 = vpow2.f32 %v2145_v60 }
 0x13f   : > { %2214 = vpow2.f32 %v2147_v62 }
 0x140   : > { %2216 = vpow2.f32 %v2146_v63 }
 0x141   : > { %2218 = vpow2.f32 %v2148_v0 }
 0x144   : > { %v2205_v1 = vpop.eup %2204 }
 0x145   : > { %v2207_v2 = vpop.eup %2206  ;;  %v1637_v3 = vadd.f32 1.0, %v2205_v1  ;;  %v1097_v4 = vpop.f32.mrb[4].mxu0 }
 0x146   : > { %v2209_v5 = vpop.eup %2208  ;;  %v1639_v6 = vadd.f32 1.0, %v2207_v2  ;;  %v1140_v7 = vpop.f32.mrb[4].mxu1  ;;  %v1098_v12 = vadd.f32 %v1097_v4, %v2828_v32 }
 0x147   : > { %v1099_v8 = vpop.f32.mrb[5].mxu0  ;;  %v2211_v9 = vpop.eup %2210  ;;  %2220 = vrcp.f32 %v1637_v3  ;;  %v1638_v10 = vadd.f32 1.0, %v2209_v5  ;;  %v1141_v17 = vadd.f32 %v1140_v7, %v2828_v32 }
 0x148   : > { %v1142_v13 = vpop.f32.mrb[5].mxu1  ;;  %v1101_v14 = vpop.f32.mrb[6].mxu0  ;;  %2222 = vrcp.f32 %v1639_v6  ;;  %v1640_v16 = vadd.f32 1.0, %v2211_v9  ;;  %v1100_v22 = vadd.f32 %v1099_v8, %v2828_v32  ;;  %v2125_v29 = vmul.f32 -1.442695, %v1098_v12 }
 0x149   : > { %v2213_v15 = vpop.eup %2212  ;;  %v1144_v18 = vpop.f32.mrb[6].mxu1  ;;  %2224 = vrcp.f32 %v1638_v10  ;;  %v1143_v26 = vadd.f32 %v1142_v13, %v2828_v32  ;;  %v1102_v30 = vadd.f32 %v1101_v14, %v2830_v42  ;;  %v2127_v33 = vmul.f32 -1.442695, %v1141_v17 }
 0x14a   : > { %v1103_v19 = vpop.f32.mrb[7].mxu0  ;;  %v2215_v20 = vpop.eup %2214  ;;  %v1661_v21 = vadd.f32 1.0, %v2213_v15  ;;  %2226 = vrcp.f32 %v1640_v16  ;;  %v1145_v34 = vadd.f32 %v1144_v18, %v2830_v42  ;;  %v2126_v35 = vmul.f32 -1.442695, %v1100_v22 }
 0x14b   : > { %v1146_v23 = vpop.f32.mrb[7].mxu1  ;;  %v2217_v24 = vpop.eup %2216  ;;  %v1663_v25 = vadd.f32 1.0, %v2215_v20  ;;  %v1104_v36 = vadd.f32 %v1103_v19, %v2830_v42  ;;  %v2128_v37 = vmul.f32 -1.442695, %v1143_v26  ;;  %v2149_v39 = vmul.f32 -1.442695, %v1102_v30 }
 0x14c   : > { %v2219_v27 = vpop.eup %2218  ;;  %2228 = vrcp.f32 %v1661_v21  ;;  %v1662_v28 = vadd.f32 1.0, %v2217_v24  ;;  %v1147_v38 = vadd.f32 %v1146_v23, %v2830_v42  ;;  %v2151_v40 = vmul.f32 -1.442695, %v1145_v34 }
 0x14d   : > { %2230 = vrcp.f32 %v1663_v25  ;;  %v1664_v31 = vadd.f32 1.0, %v2219_v27  ;;  %v2150_v43 = vmul.f32 -1.442695, %v1104_v36 }
 0x14e   : > { %2232 = vrcp.f32 %v1662_v28  ;;  %v2152_v45 = vmul.f32 -1.442695, %v1147_v38 }
 0x14f   : > { %2234 = vrcp.f32 %v1664_v31 }
 0x150   : > { %2236 = vpow2.f32 %v2125_v29 }
 0x151   : > { %2238 = vpow2.f32 %v2127_v33  ;;  %v2221_v41 = vpop.eup %2220 }
 0x152   : > { %2240 = vpow2.f32 %v2126_v35  ;;  %v2223_v44 = vpop.eup %2222  ;;  %1781 = vst [vmem:[%s2850_s11] sm:$0xff] %v2221_v41 }
 0x153   : > { %2242 = vpow2.f32 %v2128_v37  ;;  %v2225_v46 = vpop.eup %2224  ;;  %1783 = vst [vmem:[%s2850_s11 + $0x10] sm:$0xff] %v2223_v44 }
 0x154   : > { %2244 = vpow2.f32 %v2149_v39  ;;  %v2227_v47 = vpop.eup %2226  ;;  %1782 = vst [vmem:[%s2850_s11 + $0x8] sm:$0xff] %v2225_v46 }
 0x155   : > { %2246 = vpow2.f32 %v2151_v40  ;;  %1784 = vst [vmem:[%s2850_s11 + $0x18] sm:$0xff] %v2227_v47  ;;  %v1183_v49 = vpop.f32.mrb[8].mxu0  ;;  %v1226_v11 = vpop.f32.mrb[8].mxu1 }
 0x156   : > { %v2229_v48 = vpop.eup %2228  ;;  %2248 = vpow2.f32 %v2150_v43  ;;  %v1184_v51 = vadd.f32 %v1183_v49, %v2828_v32  ;;  %v1185_v52 = vpop.f32.mrb[9].mxu0  ;;  %v1227_v54 = vadd.f32 %v1226_v11, %v2828_v32 }
 0x157   : > { %v2231_v50 = vpop.eup %2230  ;;  %1805 = vst [vmem:[%s2850_s11 + $0xc0] sm:$0xff] %v2229_v48  ;;  %2250 = vpow2.f32 %v2152_v45  ;;  %v1228_v55 = vpop.f32.mrb[9].mxu1  ;;  %v1186_v6 = vadd.f32 %v1185_v52, %v2828_v32 }
 0x158   : > { %v2233_v53 = vpop.eup %2232  ;;  %1807 = vst [vmem:[%s2850_s11 + $0xd0] sm:$0xff] %v2231_v50  ;;  %v1187_v56 = vpop.f32.mrb[10].mxu0  ;;  %v2129_v58 = vmul.f32 -1.442695, %v1184_v51  ;;  %v2131_v62 = vmul.f32 -1.442695, %v1227_v54  ;;  %v1229_v9 = vadd.f32 %v1228_v55, %v2828_v32 }
 0x159   : > { %v2235_v57 = vpop.eup %2234  ;;  %1806 = vst [vmem:[%s2850_s11 + $0xc8] sm:$0xff] %v2233_v53  ;;  %v1230_v59 = vpop.f32.mrb[10].mxu1  ;;  %v1188_v13 = vadd.f32 %v1187_v56, %v2830_v42  ;;  %v2130_v18 = vmul.f32 -1.442695, %v1186_v6 }
 0x15a   : > { %v1189_v60 = vpop.f32.mrb[11].mxu0  ;;  %v2237_v61 = vpop.eup %2236  ;;  %1808 = vst [vmem:[%s2850_s11 + $0xd8] sm:$0xff] %v2235_v57  ;;  %2252 = vpow2.f32 %v2129_v58  ;;  %v2132_v20 = vmul.f32 -1.442695, %v1229_v9  ;;  %v1231_v21 = vadd.f32 %v1230_v59, %v2830_v42 }
 0x15b   : > { %v1232_v63 = vpop.f32.mrb[11].mxu1  ;;  %v2239_v0 = vpop.eup %2238  ;;  %v1641_v1 = vadd.f32 1.0, %v2237_v61  ;;  %2254 = vpow2.f32 %v2131_v62  ;;  %v2153_v22 = vmul.f32 -1.442695, %v1188_v13  ;;  %v1190_v23 = vadd.f32 %v1189_v60, %v2830_v42 }
 0x15c   : > { %v2241_v2 = vpop.eup %2240  ;;  %v1643_v3 = vadd.f32 1.0, %v2239_v0  ;;  %v1233_v24 = vadd.f32 %v1232_v63, %v2830_v42  ;;  %v2155_v28 = vmul.f32 -1.442695, %v1231_v21 }
 0x15d   : > { %v2243_v4 = vpop.eup %2242  ;;  %2256 = vrcp.f32 %v1641_v1  ;;  %v1642_v5 = vadd.f32 1.0, %v2241_v2  ;;  %v2154_v33 = vmul.f32 -1.442695, %v1190_v23 }
 0x15e   : > { %v2245_v7 = vpop.eup %2244  ;;  %2258 = vrcp.f32 %v1643_v3  ;;  %v1644_v8 = vadd.f32 1.0, %v2243_v4  ;;  %v2156_v38 = vmul.f32 -1.442695, %v1233_v24 }
 0x15f   : > { %v2247_v10 = vpop.eup %2246  ;;  %2260 = vrcp.f32 %v1642_v5  ;;  %v1665_v12 = vadd.f32 1.0, %v2245_v7 }
 0x160   : > { %v2249_v14 = vpop.eup %2248  ;;  %2262 = vrcp.f32 %v1644_v8  ;;  %v1667_v15 = vadd.f32 1.0, %v2247_v10 }
 0x161   : > { %v2251_v16 = vpop.eup %2250  ;;  %2264 = vrcp.f32 %v1665_v12  ;;  %v1666_v17 = vadd.f32 1.0, %v2249_v14 }
 0x162   : > { %2266 = vrcp.f32 %v1667_v15  ;;  %v1668_v19 = vadd.f32 1.0, %v2251_v16 }
 0x163   : > { %2268 = vrcp.f32 %v1666_v17 }
 0x164   : > { %2270 = vrcp.f32 %v1668_v19  ;;  %v2253_v25 = vpop.eup %2252 }
 0x165   : > { %2272 = vpow2.f32 %v2130_v18  ;;  %v2255_v26 = vpop.eup %2254  ;;  %v1645_v27 = vadd.f32 1.0, %v2253_v25  ;;  %v1269_v29 = vpop.f32.mrb[12].mxu0 }
 0x166   : > { %2274 = vpow2.f32 %v2132_v20  ;;  %v1647_v31 = vadd.f32 1.0, %v2255_v26  ;;  %v1270_v34 = vadd.f32 %v1269_v29, %v2828_v32  ;;  %v1312_v35 = vpop.f32.mrb[12].mxu1  ;;  %v1271_v36 = vpop.f32.mrb[13].mxu0 }
 0x167   : > { %v2257_v30 = vpop.eup %2256  ;;  %2276 = vpow2.f32 %v2153_v22  ;;  %v1313_v39 = vadd.f32 %v1312_v35, %v2828_v32  ;;  %v1272_v40 = vadd.f32 %v1271_v36, %v2828_v32  ;;  %v1314_v41 = vpop.f32.mrb[13].mxu1 }
 0x168   : > { %v2259_v37 = vpop.eup %2258  ;;  %1785 = vst [vmem:[%s2850_s11 + $0x20] sm:$0xff] %v2257_v30  ;;  %2278 = vrcp.f32 %v1645_v27  ;;  %v1273_v43 = vpop.f32.mrb[14].mxu0  ;;  %v2133_v45 = vmul.f32 -1.442695, %v1270_v34  ;;  %v1315_v46 = vadd.f32 %v1314_v41, %v2828_v32 }
 0x169   : > { %v2261_v44 = vpop.eup %2260  ;;  %1787 = vst [vmem:[%s2850_s11 + $0x30] sm:$0xff] %v2259_v37  ;;  %2280 = vrcp.f32 %v1647_v31  ;;  %v1274_v47 = vadd.f32 %v1273_v43, %v2830_v42  ;;  %v1316_v48 = vpop.f32.mrb[14].mxu1  ;;  %v2135_v51 = vmul.f32 -1.442695, %v1313_v39  ;;  %v2134_v53 = vmul.f32 -1.442695, %v1272_v40 }
 0x16a   : > { %v1275_v49 = vpop.f32.mrb[15].mxu0  ;;  %v2263_v50 = vpop.eup %2262  ;;  %1786 = vst [vmem:[%s2850_s11 + $0x28] sm:$0xff] %v2261_v44  ;;  %2282 = vpow2.f32 %v2155_v28  ;;  %v2136_v55 = vmul.f32 -1.442695, %v1315_v46  ;;  %v1317_v58 = vadd.f32 %v1316_v48, %v2830_v42 }
 0x16b   : > { %v1318_v11 = vpop.f32.mrb[15].mxu1  ;;  %v2265_v52 = vpop.eup %2264  ;;  %1788 = vst [vmem:[%s2850_s11 + $0x38] sm:$0xff] %v2263_v50  ;;  %2284 = vpow2.f32 %v2154_v33  ;;  %v2157_v57 = vmul.f32 -1.442695, %v1274_v47  ;;  %v1276_v60 = vadd.f32 %v1275_v49, %v2830_v42 }
 0x16c   : > { %v2267_v54 = vpop.eup %2266  ;;  %1809 = vst [vmem:[%s2850_s11 + $0xe0] sm:$0xff] %v2265_v52  ;;  %2286 = vpow2.f32 %v2156_v38  ;;  %v2159_v2 = vmul.f32 -1.442695, %v1317_v58  ;;  %v1319_v16 = vadd.f32 %v1318_v11, %v2830_v42 }
 0x16d   : > { %v2269_v56 = vpop.eup %2268  ;;  %1811 = vst [vmem:[%s2850_s11 + $0xf0] sm:$0xff] %v2267_v54  ;;  %2288 = vpow2.f32 %v2133_v45  ;;  %v2158_v5 = vmul.f32 -1.442695, %v1276_v60 }
 0x16e   : > { %v2271_v59 = vpop.eup %2270  ;;  %1810 = vst [vmem:[%s2850_s11 + $0xe8] sm:$0xff] %v2269_v56  ;;  %2290 = vpow2.f32 %v2135_v51  ;;  %v2160_v35 = vmul.f32 -1.442695, %v1319_v16 }
 0x16f   : > { %v2273_v61 = vpop.eup %2272  ;;  %1812 = vst [vmem:[%s2850_s11 + $0xf8] sm:$0xff] %v2271_v59  ;;  %2292 = vpow2.f32 %v2134_v53 }
 0x170   : > { %v2275_v62 = vpop.eup %2274  ;;  %v1646_v63 = vadd.f32 1.0, %v2273_v61  ;;  %2294 = vpow2.f32 %v2136_v55 }
 0x171   : > { %v2277_v0 = vpop.eup %2276  ;;  %v1648_v1 = vadd.f32 1.0, %v2275_v62  ;;  %2296 = vpow2.f32 %v2157_v57 }
 0x172   : > { %v2279_v3 = vpop.eup %2278  ;;  %2298 = vrcp.f32 %v1646_v63  ;;  %v1669_v4 = vadd.f32 1.0, %v2277_v0 }
 0x173   : > { %v2281_v6 = vpop.eup %2280  ;;  %1789 = vst [vmem:[%s2850_s11 + $0x40] sm:$0xff] %v2279_v3  ;;  %2300 = vrcp.f32 %v1648_v1 }
 0x174   : > { %v2283_v7 = vpop.eup %2282  ;;  %1791 = vst [vmem:[%s2850_s11 + $0x50] sm:$0xff] %v2281_v6  ;;  %2302 = vrcp.f32 %v1669_v4 }
 0x175   : > { %v2285_v8 = vpop.eup %2284  ;;  %v1671_v9 = vadd.f32 1.0, %v2283_v7  ;;  %2304 = vpow2.f32 %v2159_v2  ;;  %v1355_v13 = vpop.f32.mrb[16].mxu0 }
 0x176   : > { %v2287_v10 = vpop.eup %2286  ;;  %v1670_v12 = vadd.f32 1.0, %v2285_v8  ;;  %2306 = vpow2.f32 %v2158_v5  ;;  %v1398_v17 = vpop.f32.mrb[16].mxu1  ;;  %v1356_v21 = vadd.f32 %v1355_v13, %v2828_v32 }
 0x177   : > { %v2289_v14 = vpop.eup %2288  ;;  %2308 = vrcp.f32 %v1671_v9  ;;  %v1672_v15 = vadd.f32 1.0, %v2287_v10  ;;  %v1357_v18 = vpop.f32.mrb[17].mxu0  ;;  %v1399_v26 = vadd.f32 %v1398_v17, %v2828_v32 }
 0x178   : > { %v2291_v19 = vpop.eup %2290  ;;  %2310 = vrcp.f32 %v1670_v12  ;;  %v1649_v20 = vadd.f32 1.0, %v2289_v14  ;;  %v1400_v22 = vpop.f32.mrb[17].mxu1  ;;  %v2137_v38 = vmul.f32 -1.442695, %v1356_v21  ;;  %v1358_v39 = vadd.f32 %v1357_v18, %v2828_v32 }
 0x179   : > { %v1359_v23 = vpop.f32.mrb[18].mxu0  ;;  %v2293_v24 = vpop.eup %2292  ;;  %2312 = vrcp.f32 %v1672_v15  ;;  %v1651_v25 = vadd.f32 1.0, %v2291_v19  ;;  %v2139_v41 = vmul.f32 -1.442695, %v1399_v26  ;;  %v1401_v43 = vadd.f32 %v1400_v22, %v2828_v32 }
 0x17a   : > { %v1402_v27 = vpop.f32.mrb[18].mxu1  ;;  %v1361_v28 = vpop.f32.mrb[19].mxu0  ;;  %2314 = vrcp.f32 %v1649_v20  ;;  %v1650_v30 = vadd.f32 1.0, %v2293_v24  ;;  %v1360_v45 = vadd.f32 %v1359_v23, %v2830_v42  ;;  %v2138_v50 = vmul.f32 -1.442695, %v1358_v39 }
 0x17b   : > { %v2295_v29 = vpop.eup %2294  ;;  %v1404_v31 = vpop.f32.mrb[19].mxu1  ;;  %2316 = vrcp.f32 %v1651_v25  ;;  %v1403_v47 = vadd.f32 %v1402_v27, %v2830_v42  ;;  %v1362_v51 = vadd.f32 %v1361_v28, %v2830_v42  ;;  %v2140_v53 = vmul.f32 -1.442695, %v1401_v43 }
 0x17c   : > { %v2297_v33 = vpop.eup %2296  ;;  %v1652_v34 = vadd.f32 1.0, %v2295_v29  ;;  %2318 = vrcp.f32 %v1650_v30  ;;  %v1405_v54 = vadd.f32 %v1404_v31, %v2830_v42  ;;  %v2161_v56 = vmul.f32 -1.442695, %v1360_v45 }
 0x17d   : > { %v2299_v36 = vpop.eup %2298  ;;  %v1673_v37 = vadd.f32 1.0, %v2297_v33  ;;  %v2163_v58 = vmul.f32 -1.442695, %v1403_v47  ;;  %v2162_v60 = vmul.f32 -1.442695, %v1362_v51 }
 0x17e   : > { %v2301_v40 = vpop.eup %2300  ;;  %1790 = vst [vmem:[%s2850_s11 + $0x48] sm:$0xff] %v2299_v36  ;;  %2320 = vrcp.f32 %v1652_v34  ;;  %v2164_v62 = vmul.f32 -1.442695, %v1405_v54 }
 0x17f   : > { %v2303_v44 = vpop.eup %2302  ;;  %1792 = vst [vmem:[%s2850_s11 + $0x58] sm:$0xff] %v2301_v40  ;;  %2322 = vrcp.f32 %v1673_v37 }
 0x180   : > { %v2305_v46 = vpop.eup %2304  ;;  %1813 = vst [vmem:[%s2850_s11 + $0x100] sm:$0xff] %v2303_v44  ;;  %2324 = vpow2.f32 %v2160_v35 }
 0x181   : > { %v2307_v48 = vpop.eup %2306  ;;  %v1675_v49 = vadd.f32 1.0, %v2305_v46  ;;  %2326 = vpow2.f32 %v2137_v38 }
 0x182   : > { %v2309_v11 = vpop.eup %2308  ;;  %v1674_v52 = vadd.f32 1.0, %v2307_v48  ;;  %2328 = vpow2.f32 %v2139_v41 }
 0x183   : > { %v2311_v55 = vpop.eup %2310  ;;  %1815 = vst [vmem:[%s2850_s11 + $0x110] sm:$0xff] %v2309_v11  ;;  %2330 = vrcp.f32 %v1675_v49 }
 0x184   : > { %v2313_v57 = vpop.eup %2312  ;;  %1814 = vst [vmem:[%s2850_s11 + $0x108] sm:$0xff] %v2311_v55  ;;  %2332 = vrcp.f32 %v1674_v52 }
 0x185   : > { %v2315_v59 = vpop.eup %2314  ;;  %1816 = vst [vmem:[%s2850_s11 + $0x118] sm:$0xff] %v2313_v57  ;;  %2334 = vpow2.f32 %v2138_v50  ;;  %v1441_v0 = vpop.f32.mrb[20].mxu0 }
 0x186   : > { %v2317_v61 = vpop.eup %2316  ;;  %1793 = vst [vmem:[%s2850_s11 + $0x60] sm:$0xff] %v2315_v59  ;;  %2336 = vpow2.f32 %v2140_v53  ;;  %v1442_v2 = vadd.f32 %v1441_v0, %v2828_v32  ;;  %v1484_v3 = vpop.f32.mrb[20].mxu1 }
 0x187   : > { %v2319_v63 = vpop.eup %2318  ;;  %1795 = vst [vmem:[%s2850_s11 + $0x70] sm:$0xff] %v2317_v61  ;;  %2338 = vpow2.f32 %v2161_v56  ;;  %v1443_v4 = vpop.f32.mrb[21].mxu0  ;;  %v1485_v6 = vadd.f32 %v1484_v3, %v2828_v32 }
 0x188   : > { %v2321_v1 = vpop.eup %2320  ;;  %1794 = vst [vmem:[%s2850_s11 + $0x68] sm:$0xff] %v2319_v63  ;;  %2340 = vpow2.f32 %v2163_v58  ;;  %v1444_v7 = vadd.f32 %v1443_v4, %v2828_v32  ;;  %v1486_v8 = vpop.f32.mrb[21].mxu1  ;;  %v2141_v12 = vmul.f32 -1.442695, %v1442_v2 }
 0x189   : > { %v2323_v5 = vpop.eup %2322  ;;  %1796 = vst [vmem:[%s2850_s11 + $0x78] sm:$0xff] %v2321_v1  ;;  %2342 = vpow2.f32 %v2162_v60  ;;  %v1445_v9 = vpop.f32.mrb[22].mxu0  ;;  %v2143_v20 = vmul.f32 -1.442695, %v1485_v6  ;;  %v1487_v28 = vadd.f32 %v1486_v8, %v2828_v32 }
 0x18a   : > { %v2325_v10 = vpop.eup %2324  ;;  %1817 = vst [vmem:[%s2850_s11 + $0x120] sm:$0xff] %v2323_v5  ;;  %2344 = vpow2.f32 %v2164_v62  ;;  %v1488_v13 = vpop.f32.mrb[22].mxu1  ;;  %v2142_v23 = vmul.f32 -1.442695, %v1444_v7  ;;  %v1446_v34 = vadd.f32 %v1445_v9, %v2830_v42 }
 0x18b   : > { %v1447_v14 = vpop.f32.mrb[23].mxu0  ;;  %v2327_v15 = vpop.eup %2326  ;;  %v1676_v16 = vadd.f32 1.0, %v2325_v10  ;;  %2346 = vpow2.f32 %v2141_v12  ;;  %v1489_v37 = vadd.f32 %v1488_v13, %v2830_v42  ;;  %v2144_v40 = vmul.f32 -1.442695, %v1487_v28 }
 0x18c   : > { %v1490_v17 = vpop.f32.mrb[23].mxu1  ;;  %v2329_v18 = vpop.eup %2328  ;;  %v1653_v19 = vadd.f32 1.0, %v2327_v15  ;;  %v1448_v32 = vadd.f32 %v1447_v14, %v2830_v42  ;;  %v2165_v44 = vmul.f32 -1.442695, %v1446_v34 }
 0x18d   : > { %v2331_v21 = vpop.eup %2330  ;;  %2348 = vrcp.f32 %v1676_v16  ;;  %v1655_v22 = vadd.f32 1.0, %v2329_v18  ;;  %v2167_v47 = vmul.f32 -1.442695, %v1489_v37  ;;  %v1491_v48 = vadd.f32 %v1490_v17, %v2830_v42  ;;  %v1851_v16 = vld [vmem:[%s2850_s11] sm:$0xff] (%p2471_p5)  ;;  %v1853_v17 = vld [vmem:[%s2850_s11 + $0x8] sm:$0xff] (%p2471_p5)  ;;  %v1855_v18 = vld [vmem:[%s2850_s11 + $0x10] sm:$0xff] (%p2471_p5) }
 0x18e   : > { %v2333_v24 = vpop.eup %2332  ;;  %1819 = vst [vmem:[%s2850_s11 + $0x130] sm:$0xff] %v2331_v21  ;;  %2350 = vrcp.f32 %v1653_v19  ;;  %v2166_v50 = vmul.f32 -1.442695, %v1448_v32  ;;  %v1857_v19 = vld [vmem:[%s2850_s11 + $0x18] sm:$0xff] (%p2471_p5)  ;;  %v1861_v21 = vld [vmem:[%s2850_s11 + $0x28] sm:$0xff] (%p2471_p5)  ;;  %1852 = vst [vmem:[%s2945_s18] sm:$0xff] (%p2471_p5), %v1851_v16 }
 0x18f   : > { %v2335_v25 = vpop.eup %2334  ;;  %1818 = vst [vmem:[%s2850_s11 + $0x128] sm:$0xff] %v2333_v24  ;;  %2352 = vrcp.f32 %v1655_v22  ;;  %v2168_v54 = vmul.f32 -1.442695, %v1491_v48  ;;  %v1863_v22 = vld [vmem:[%s2850_s11 + $0x30] sm:$0xff] (%p2471_p5)  ;;  %v1867_v24 = vld [vmem:[%s2850_s11 + $0x40] sm:$0xff] (%p2471_p5)  ;;  %1854 = vst [vmem:[%s2945_s18 + $0x8] sm:$0xff] (%p2471_p5), %v1853_v17 }
 0x190   : > { %v2337_v26 = vpop.eup %2336  ;;  %v1654_v27 = vadd.f32 1.0, %v2335_v25  ;;  %2354 = vpow2.f32 %v2143_v20  ;;  %v1859_v20 = vld [vmem:[%s2850_s11 + $0x20] sm:$0xff] (%p2471_p5)  ;;  %1856 = vst [vmem:[%s2945_s18 + $0x10] sm:$0xff] (%p2471_p5), %v1855_v18  ;;  %1858 = vst [vmem:[%s2945_s18 + $0x18] sm:$0xff] (%p2471_p5), %v1857_v19  ;;  %v1869_v25 = vld [vmem:[%s2850_s11 + $0x48] sm:$0xff] (%p2471_p5) }
 0x191   : > { %v2339_v29 = vpop.eup %2338  ;;  %v1656_v30 = vadd.f32 1.0, %v2337_v26  ;;  %2356 = vpow2.f32 %v2142_v23  ;;  %v1865_v23 = vld [vmem:[%s2850_s11 + $0x38] sm:$0xff] (%p2471_p5)  ;;  %1860 = vst [vmem:[%s2945_s18 + $0x20] sm:$0xff] (%p2471_p5), %v1859_v20  ;;  %1862 = vst [vmem:[%s2945_s18 + $0x28] sm:$0xff] (%p2471_p5), %v1861_v21  ;;  %v1871_v26 = vld [vmem:[%s2850_s11 + $0x50] sm:$0xff] (%p2471_p5) }
 0x192   : > { %v2341_v31 = vpop.eup %2340  ;;  %2358 = vrcp.f32 %v1654_v27  ;;  %v1677_v33 = vadd.f32 1.0, %v2339_v29  ;;  %1864 = vst [vmem:[%s2945_s18 + $0x30] sm:$0xff] (%p2471_p5), %v1863_v22  ;;  %1866 = vst [vmem:[%s2945_s18 + $0x38] sm:$0xff] (%p2471_p5), %v1865_v23  ;;  %v1873_v27 = vld [vmem:[%s2850_s11 + $0x58] sm:$0xff] (%p2471_p5)  ;;  %v1875_v28 = vld [vmem:[%s2850_s11 + $0x60] sm:$0xff] (%p2471_p5) }
 0x193   : > { %v2343_v35 = vpop.eup %2342  ;;  %2360 = vrcp.f32 %v1656_v30  ;;  %v1679_v36 = vadd.f32 1.0, %v2341_v31  ;;  %1868 = vst [vmem:[%s2945_s18 + $0x40] sm:$0xff] (%p2471_p5), %v1867_v24  ;;  %1870 = vst [vmem:[%s2945_s18 + $0x48] sm:$0xff] (%p2471_p5), %v1869_v25  ;;  %v1877_v29 = vld [vmem:[%s2850_s11 + $0x68] sm:$0xff] (%p2471_p5)  ;;  %v1879_v30 = vld [vmem:[%s2850_s11 + $0x70] sm:$0xff] (%p2471_p5) }
 0x194   : > { %v2345_v38 = vpop.eup %2344  ;;  %2362 = vrcp.f32 %v1677_v33  ;;  %v1678_v39 = vadd.f32 1.0, %v2343_v35  ;;  %1872 = vst [vmem:[%s2945_s18 + $0x50] sm:$0xff] (%p2471_p5), %v1871_v26  ;;  %1874 = vst [vmem:[%s2945_s18 + $0x58] sm:$0xff] (%p2471_p5), %v1873_v27  ;;  %v1881_v31 = vld [vmem:[%s2850_s11 + $0x78] sm:$0xff] (%p2471_p5)  ;;  %v1899_v32 = vld [vmem:[%s2850_s11 + $0xc0] sm:$0xff] (%p2471_p5) }
 0x195   : > { %2364 = vrcp.f32 %v1679_v36  ;;  %v1680_v41 = vadd.f32 1.0, %v2345_v38  ;;  %v2347_v43 = vpop.eup %2346  ;;  %1876 = vst [vmem:[%s2945_s18 + $0x60] sm:$0xff] (%p2471_p5), %v1875_v28  ;;  %1878 = vst [vmem:[%s2945_s18 + $0x68] sm:$0xff] (%p2471_p5), %v1877_v29  ;;  %v1913_v48 = vld [vmem:[%s2850_s11 + $0xf8] sm:$0xff] (%p2471_p5) }
 0x196   : > { %2366 = vrcp.f32 %v1678_v39  ;;  %v1657_v46 = vadd.f32 1.0, %v2347_v43  ;;  %1880 = vst [vmem:[%s2945_s18 + $0x70] sm:$0xff] (%p2471_p5), %v1879_v30  ;;  %1882 = vst [vmem:[%s2945_s18 + $0x78] sm:$0xff] (%p2471_p5), %v1881_v31  ;;  %v1903_v43 = vld [vmem:[%s2850_s11 + $0xd0] sm:$0xff] (%p2471_p5) }
 0x197   : > { %v2349_v45 = vpop.eup %2348  ;;  %2368 = vrcp.f32 %v1680_v41  ;;  %v1901_v41 = vld [vmem:[%s2850_s11 + $0xc8] sm:$0xff] (%p2471_p5)  ;;  %1900 = vst [vmem:[%s2945_s18 + $0x180] sm:$0xff] (%p2471_p5), %v1899_v32  ;;  %1904 = vst [vmem:[%s2945_s18 + $0x190] sm:$0xff] (%p2471_p5), %v1903_v43 }
 0x198   : > { %v2351_v49 = vpop.eup %2350  ;;  %1820 = vst [vmem:[%s2850_s11 + $0x138] sm:$0xff] %v2349_v45  ;;  %2370 = vpow2.f32 %v2144_v40  ;;  %1902 = vst [vmem:[%s2945_s18 + $0x188] sm:$0xff] (%p2471_p5), %v1901_v41  ;;  %v1907_v45 = vld [vmem:[%s2850_s11 + $0xe0] sm:$0xff] (%p2471_p5) }
 0x199   : > { %v2353_v51 = vpop.eup %2352  ;;  %1797 = vst [vmem:[%s2850_s11 + $0x80] sm:$0xff] %v2351_v49  ;;  %2372 = vrcp.f32 %v1657_v46  ;;  %v1909_v46 = vld [vmem:[%s2850_s11 + $0xe8] sm:$0xff] (%p2471_p5)  ;;  %1908 = vst [vmem:[%s2945_s18 + $0x1a0] sm:$0xff] (%p2471_p5), %v1907_v45  ;;  %v1915_v49 = vld [vmem:[%s2850_s11 + $0x100] sm:$0xff] (%p2471_p5) }
 0x19a   : > { %v2355_v11 = vpop.eup %2354  ;;  %1799 = vst [vmem:[%s2850_s11 + $0x90] sm:$0xff] %v2353_v51  ;;  %2374 = vpow2.f32 %v2165_v44  ;;  %v1905_v44 = vld [vmem:[%s2850_s11 + $0xd8] sm:$0xff] (%p2471_p5)  ;;  %1910 = vst [vmem:[%s2945_s18 + $0x1a8] sm:$0xff] (%p2471_p5), %v1909_v46  ;;  %v1919_v51 = vld [vmem:[%s2850_s11 + $0x110] sm:$0xff] (%p2471_p5) }
 0x19b   : > { %v2357_v52 = vpop.eup %2356  ;;  %v1659_v53 = vadd.f32 1.0, %v2355_v11  ;;  %2376 = vpow2.f32 %v2167_v47  ;;  %1906 = vst [vmem:[%s2945_s18 + $0x198] sm:$0xff] (%p2471_p5), %v1905_v44  ;;  %v1911_v47 = vld [vmem:[%s2850_s11 + $0xf0] sm:$0xff] (%p2471_p5)  ;;  %1914 = vst [vmem:[%s2945_s18 + $0x1b8] sm:$0xff] (%p2471_p5), %v1913_v48  ;;  %v1921_v11 = vld [vmem:[%s2850_s11 + $0x118] sm:$0xff] (%p2471_p5) }
 0x19c   : > { %v2359_v42 = vpop.eup %2358  ;;  %v1658_v55 = vadd.f32 1.0, %v2357_v52  ;;  %2378 = vpow2.f32 %v2166_v50  ;;  %1912 = vst [vmem:[%s2945_s18 + $0x1b0] sm:$0xff] (%p2471_p5), %v1911_v47  ;;  %1916 = vst [vmem:[%s2945_s18 + $0x1c0] sm:$0xff] (%p2471_p5), %v1915_v49  ;;  %v1917_v50 = vld [vmem:[%s2850_s11 + $0x108] sm:$0xff] (%p2471_p5)  ;;  %v1923_v52 = vld [vmem:[%s2850_s11 + $0x120] sm:$0xff] (%p2471_p5) }
 0x19d   : > { %v2361_v56 = vpop.eup %2360  ;;  %1798 = vst [vmem:[%s2850_s11 + $0x88] sm:$0xff] %v2359_v42  ;;  %2380 = vrcp.f32 %v1659_v53  ;;  %1918 = vst [vmem:[%s2945_s18 + $0x1c8] sm:$0xff] (%p2471_p5), %v1917_v50  ;;  %v1925_v53 = vld [vmem:[%s2850_s11 + $0x128] sm:$0xff] (%p2471_p5) }
 0x19e   : > { %v2363_v57 = vpop.eup %2362  ;;  %1800 = vst [vmem:[%s2850_s11 + $0x98] sm:$0xff] %v2361_v56  ;;  %2382 = vrcp.f32 %v1658_v55  ;;  %1920 = vst [vmem:[%s2945_s18 + $0x1d0] sm:$0xff] (%p2471_p5), %v1919_v51 }
 0x19f   : > { %v2365_v58 = vpop.eup %2364  ;;  %1821 = vst [vmem:[%s2850_s11 + $0x140] sm:$0xff] %v2363_v57  ;;  %2384 = vpow2.f32 %v2168_v54  ;;  %1922 = vst [vmem:[%s2945_s18 + $0x1d8] sm:$0xff] (%p2471_p5), %v1921_v11  ;;  %v1927_v54 = vld [vmem:[%s2850_s11 + $0x130] sm:$0xff] (%p2471_p5)  ;;  %v1929_v42 = vld [vmem:[%s2850_s11 + $0x138] sm:$0xff] (%p2471_p5) }
 0x1a0   : > { %v2367_v59 = vpop.eup %2366  ;;  %1823 = vst [vmem:[%s2850_s11 + $0x150] sm:$0xff] %v2365_v58  ;;  %v1883_v33 = vld [vmem:[%s2850_s11 + $0x80] sm:$0xff] (%p2471_p5)  ;;  %1924 = vst [vmem:[%s2945_s18 + $0x1e0] sm:$0xff] (%p2471_p5), %v1923_v52 }
 0x1a1   : > { %v2369_v60 = vpop.eup %2368  ;;  %1822 = vst [vmem:[%s2850_s11 + $0x148] sm:$0xff] %v2367_v59  ;;  %1884 = vst [vmem:[%s2945_s18 + $0x80] sm:$0xff] (%p2471_p5), %v1883_v33  ;;  %v1887_v35 = vld [vmem:[%s2850_s11 + $0x90] sm:$0xff] (%p2471_p5) }
 0x1a2   : > { %v2371_v61 = vpop.eup %2370  ;;  %1824 = vst [vmem:[%s2850_s11 + $0x158] sm:$0xff] %v2369_v60  ;;  %1888 = vst [vmem:[%s2945_s18 + $0x90] sm:$0xff] (%p2471_p5), %v1887_v35 }
 0x1a3   : > { %v2373_v62 = vpop.eup %2372  ;;  %v1660_v63 = vadd.f32 1.0, %v2371_v61  ;;  %1926 = vst [vmem:[%s2945_s18 + $0x1e8] sm:$0xff] (%p2471_p5), %v1925_v53  ;;  %1928 = vst [vmem:[%s2945_s18 + $0x1f0] sm:$0xff] (%p2471_p5), %v1927_v54 }
 0x1a4   : > { %v2375_v0 = vpop.eup %2374  ;;  %1801 = vst [vmem:[%s2850_s11 + $0xa0] sm:$0xff] %v2373_v62  ;;  %v1885_v34 = vld [vmem:[%s2850_s11 + $0x88] sm:$0xff] (%p2471_p5)  ;;  %1930 = vst [vmem:[%s2945_s18 + $0x1f8] sm:$0xff] (%p2471_p5), %v1929_v42 }
 0x1a5   : > { %v2377_v1 = vpop.eup %2376  ;;  %2386 = vrcp.f32 %v1660_v63  ;;  %v1681_v2 = vadd.f32 1.0, %v2375_v0  ;;  %1886 = vst [vmem:[%s2945_s18 + $0x88] sm:$0xff] (%p2471_p5), %v1885_v34  ;;  %v1889_v36 = vld [vmem:[%s2850_s11 + $0x98] sm:$0xff] (%p2471_p5) }
 0x1a6   : > { %v2379_v3 = vpop.eup %2378  ;;  %v1683_v4 = vadd.f32 1.0, %v2377_v1  ;;  %1890 = vst [vmem:[%s2945_s18 + $0x98] sm:$0xff] (%p2471_p5), %v1889_v36  ;;  %v1931_v55 = vld [vmem:[%s2850_s11 + $0x140] sm:$0xff] (%p2471_p5) }
 0x1a7   : > { %v2381_v5 = vpop.eup %2380  ;;  %2388 = vrcp.f32 %v1681_v2  ;;  %v1682_v6 = vadd.f32 1.0, %v2379_v3  ;;  %1932 = vst [vmem:[%s2945_s18 + $0x200] sm:$0xff] (%p2471_p5), %v1931_v55  ;;  %v1935_v57 = vld [vmem:[%s2850_s11 + $0x150] sm:$0xff] (%p2471_p5) }
 0x1a8   : > { %v2383_v7 = vpop.eup %2382  ;;  %1803 = vst [vmem:[%s2850_s11 + $0xb0] sm:$0xff] %v2381_v5  ;;  %2390 = vrcp.f32 %v1683_v4  ;;  %v1933_v56 = vld [vmem:[%s2850_s11 + $0x148] sm:$0xff] (%p2471_p5)  ;;  %1936 = vst [vmem:[%s2945_s18 + $0x210] sm:$0xff] (%p2471_p5), %v1935_v57 }
 0x1a9   : > { %v2385_v8 = vpop.eup %2384  ;;  %1802 = vst [vmem:[%s2850_s11 + $0xa8] sm:$0xff] %v2383_v7  ;;  %2392 = vrcp.f32 %v1682_v6  ;;  %1934 = vst [vmem:[%s2945_s18 + $0x208] sm:$0xff] (%p2471_p5), %v1933_v56  ;;  %v1937_v58 = vld [vmem:[%s2850_s11 + $0x158] sm:$0xff] (%p2471_p5) }
 0x1aa   : > { %v1684_v9 = vadd.f32 1.0, %v2385_v8  ;;  %1938 = vst [vmem:[%s2945_s18 + $0x218] sm:$0xff] (%p2471_p5), %v1937_v58 }
 0x1ab   : > { %v1891_v37 = vld [vmem:[%s2850_s11 + $0xa0] sm:$0xff] (%p2471_p5) }
 0x1ac   : > { %2394 = vrcp.f32 %v1684_v9  ;;  %1892 = vst [vmem:[%s2945_s18 + $0xa0] sm:$0xff] (%p2471_p5), %v1891_v37 }
 0x1af   : > { %v2387_v10 = vpop.eup %2386  ;;  %v1895_v39 = vld [vmem:[%s2850_s11 + $0xb0] sm:$0xff] (%p2471_p5) }
 0x1b0   : > { %1804 = vst [vmem:[%s2850_s11 + $0xb8] sm:$0xff] %v2387_v10  ;;  %v1893_v38 = vld [vmem:[%s2850_s11 + $0xa8] sm:$0xff] (%p2471_p5)  ;;  %1896 = vst [vmem:[%s2945_s18 + $0xb0] sm:$0xff] (%p2471_p5), %v1895_v39 }
 0x1b1   : > { %v2389_v12 = vpop.eup %2388  ;;  %1835 = sbr.rel (!%p2471_p5) target bundleno = 448 (0x1c0), region = 59  ;;  %1894 = vst [vmem:[%s2945_s18 + $0xa8] sm:$0xff] (%p2471_p5), %v1893_v38 }
 0x1b2   : > { %v2391_v13 = vpop.eup %2390  ;;  %1825 = vst [vmem:[%s2850_s11 + $0x160] sm:$0xff] %v2389_v12 }
 0x1b3   : > { %v2393_v14 = vpop.eup %2392  ;;  %1827 = vst [vmem:[%s2850_s11 + $0x170] sm:$0xff] %v2391_v13 }
 0x1b4   : > { %1826 = vst [vmem:[%s2850_s11 + $0x168] sm:$0xff] %v2393_v14 }
 0x1b6   : > { %v2395_v15 = vpop.eup %2394 }
 0x1b7   : > { %1828 = vst [vmem:[%s2850_s11 + $0x178] sm:$0xff] %v2395_v15  ;;  %v1897_v40 = vld [vmem:[%s2850_s11 + $0xb8] sm:$0xff] (%p2471_p5) }
 0x1b8   : > { %1898 = vst [vmem:[%s2945_s18 + $0xb8] sm:$0xff] %v1897_v40 }
 0x1b9   : > { %v1939_v59 = vld [vmem:[%s2850_s11 + $0x160] sm:$0xff] }
 0x1ba   : > { %1940 = vst [vmem:[%s2945_s18 + $0x220] sm:$0xff] %v1939_v59  ;;  %v1943_v61 = vld [vmem:[%s2850_s11 + $0x170] sm:$0xff] }
 0x1bb   : > { %v1941_v60 = vld [vmem:[%s2850_s11 + $0x168] sm:$0xff]  ;;  %1944 = vst [vmem:[%s2945_s18 + $0x230] sm:$0xff] %v1943_v61 }
 0x1bc   : > { %1942 = vst [vmem:[%s2945_s18 + $0x228] sm:$0xff] %v1941_v60 }
 0x1be   : > { %v1945_v62 = vld [vmem:[%s2850_s11 + $0x178] sm:$0xff] }
 0x1bf   : > { %1946 = vst [vmem:[%s2945_s18 + $0x238] sm:$0xff] %v1945_v62 }
 0x1c0 PF: > { %p10_p10 = scmp.ge.s32.totalorder %s2458_s16, 4   ;;  %s3052_s12 = smov %s2414_s13 }
 0x1c1   : > { %s3053_s13 = smov %s2469_s19  ;;  %s3054_s14 = smov %s2458_s16 }
 0x1c2   :  { %12 = sbr.rel (!%p10_p10) target bundleno = 2 (0x2), region = 113 }

</bundles_post_ra>
